<compile_context>
chip_gen: v7x
topology: tpu7x:2x2x1
jax: 0.10.0
libtpu: 0.0.40
codegen_flags: <defaults>
</compile_context>

<pallas_src>
import functools

import numpy as np

import jax
import jax.numpy as jnp
from jax.experimental import pallas as pl
from jax.experimental.pallas import tpu as pltpu

EPS = 1e-5


# ----------------------------------------------------------------------------
# Batch-tile choice: largest divisor of N that is <= desired while keeping at
# least 2 grid steps (so the batch axis can shard across v7x's 2 TensorCores).
# ----------------------------------------------------------------------------
def _pick_batch_tile(n, desired=8):
    best = 1
    for d in range(1, n + 1):
        if n % d == 0 and d <= desired and n // d >= 2:
            best = d
    return best


# ----------------------------------------------------------------------------
# Host-side constants: depthwise halo masks and strip-pooling lane selects,
# tiled b_tile times along the flattened (b, h, w) lane axis.
# ----------------------------------------------------------------------------
def _spatial_constants(H, W, b_tile):
    S = H * W
    hh, ww = np.divmod(np.arange(S), W)

    tap_masks = np.zeros((9, 1, S), np.float32)
    t = 0
    for dh in (-1, 0, 1):
        for dw in (-1, 0, 1):
            tap_masks[t, 0] = ((hh + dh >= 0) & (hh + dh < H)
                               & (ww + dw >= 0) & (ww + dw < W))
            t += 1

    n_wsteps = W.bit_length() - 1                 # W is a power of two
    wsel = np.zeros((n_wsteps, 1, S), np.float32)
    d = 1
    for i in range(n_wsteps):
        wsel[i, 0] = (ww < W - d)                 # forward shift stays in the row
        d *= 2

    n_hsteps = H.bit_length() - 1                 # H is a power of two
    hsel = np.zeros((n_hsteps, 1, S), np.float32)
    d = 1
    for i in range(n_hsteps):
        hsel[i, 0] = (hh < H - d)                 # forward shift stays in the image
        d *= 2

    tap_masks = np.tile(tap_masks, (1, 1, b_tile))
    wsel = np.tile(wsel, (1, 1, b_tile))
    hsel = np.tile(hsel, (1, 1, b_tile))
    return jnp.asarray(tap_masks), jnp.asarray(wsel), jnp.asarray(hsel)


def _const_spec(arr):
    nd = arr.ndim
    return pl.BlockSpec(arr.shape, lambda n, _nd=nd: (0,) * _nd)


# ----------------------------------------------------------------------------
# The fused ss_block kernel (one grid step == one B_TILE-image slab).
# All activations are (channels, L) with L = B_TILE * H * W on the lane axis.
# ----------------------------------------------------------------------------
def make_fused_kernel(H, W, C, b_tile, apply_block1):
    S = H * W
    L = b_tile * S
    n_hsteps = H.bit_length() - 1
    n_wsteps = W.bit_length() - 1
    f32 = jnp.float32

    def kernel(x_in_ref, x2_ref, coef_ref, wsel_ref, hsel_ref,
               w1_ref, b1_ref, dwb_ref, pww_ref, pwb_ref,
               bnsc_ref, bnsh_ref, w5_ref, b5_ref, o_ref):

        def shift_flat(x, off):
            # y[:, l] = x[:, (l + off) mod L] (cyclic lane rotation on the XLU;
            # callers mask / never read the wrapped lanes, so wrapping across
            # image boundaries inside the slab is harmless).
            off = off % L
            if off == 0:
                return x
            return pltpu.roll(x, shift=L - off, axis=1)

        def pointwise(x, w, b):
            # 1x1 conv as an MXU matmul (Cout, Cin) @ (Cin, L): tiny K but it
            # moves ~40% of the former VALU vreg-ops onto the idle MXU.
            return jnp.dot(w, x, preferred_element_type=f32) + b

        def depthwise3x3(x, dw_i):
            # Zero-padded 3x3 depthwise conv on the flattened (C, L) slab.
            # Halo masks are pre-fused into coef_ref (one multiply-add per
            # tap); three partial accumulators break the 9-long add chain.
            acc0 = coef_ref[dw_i, 4] * x            # centre tap (mask == 1)
            acc1 = None
            acc2 = None
            t = 0
            for dh in (-1, 0, 1):
                for dw in (-1, 0, 1):
                    if dh == 0 and dw == 0:
                        t += 1
                        continue
                    contrib = coef_ref[dw_i, t] * shift_flat(x, dh * W + dw)
                    if t % 2 == 0:
                        acc1 = contrib if acc1 is None else acc1 + contrib
                    else:
                        acc2 = contrib if acc2 is None else acc2 + contrib
                    t += 1
            return (acc0 + acc1) + (acc2 + dwb_ref[dw_i])

        def dwsep(x, dw_i, pw_i, bn_i, residual=None):
            # DWConvNobr (+ folded BN) (+ residual) -> ReLU
            y = depthwise3x3(x, dw_i)
            y = pointwise(y, pww_ref[pw_i], pwb_ref[pw_i])
            y = y * bnsc_ref[bn_i] + bnsh_ref[bn_i]
            if residual is not None:
                y = y + residual
            return jnp.maximum(y, 0.0)

        # ---- block1: Conv1x1(cat(x1, y)) + BN + ReLU ---------------------------
        x_in = x_in_ref[...].astype(f32)
        if apply_block1:
            x1 = pointwise(x_in, w1_ref[...], b1_ref[...])
            x1 = jnp.maximum(x1 * bnsc_ref[0] + bnsh_ref[0], 0.0)
        else:
            x1 = x_in

        # ---- block2: DWConv ----------------------------------------------------
        x1 = dwsep(x1, 0, 0, 1)

        # ---- xs = x1 * softmax(|x1 - x2|, channel axis == sublanes) ------------
        a = jnp.abs(x1 - x2_ref[...].astype(f32))
        m = jnp.max(a, axis=0, keepdims=True)
        e = jnp.exp(a - m)
        inv_den = pl.reciprocal(jnp.sum(e, axis=0, keepdims=True), approx=True)
        xs = x1 * (e * inv_den)

        # ---- block3: BasicBlock ------------------------------------------------
        hmid = dwsep(xs, 1, 1, 2)
        xs = dwsep(hmid, 2, 2, 3, residual=xs)

        # ---- HwPooling: exact per-image strip means via masked log-step rolls --
        rowsum = xs                                   # sum over W for each (c, h)
        d = 1
        for i in range(n_wsteps):
            rowsum = rowsum + jnp.where(wsel_ref[i] > 0.0,
                                        shift_flat(rowsum, d),
                                        shift_flat(rowsum, d - W))
            d *= 2
        mean_over_w = rowsum * (1.0 / W)

        colsum = xs                                   # sum over H for each (c, w)
        d = 1
        for i in range(n_hsteps):
            colsum = colsum + jnp.where(hsel_ref[i] > 0.0,
                                        shift_flat(colsum, d * W),
                                        shift_flat(colsum, (d - H) * W))
            d *= 2
        mean_over_h = colsum * (1.0 / H)

        g = pointwise(mean_over_w + mean_over_h, pww_ref[3], pwb_ref[3])
        gate = pl.reciprocal(1.0 + jnp.exp(-g), approx=True)   # sigmoid gate
        xs = xs * gate

        # ---- block4: BasicBlock ------------------------------------------------
        hmid = dwsep(xs, 3, 4, 4)
        xs = dwsep(hmid, 4, 5, 5, residual=xs)

        # ---- block5: (x1 + xs) -> ConvTranspose2d(2, stride=2), 4 taps stacked --
        out = pointwise(x1 + xs, w5_ref[...], b5_ref[...])     # (4*C, L)
        o_ref[...] = out.astype(o_ref.dtype)

    return kernel


# ----------------------------------------------------------------------------
# Forward wrapper.  XLA glue is limited to layout plumbing: one small input
# transpose to the lane-dense (C, B_TILE*S) slab layout, and the final 2x2
# ConvTranspose pixel interleave of the output.
# ----------------------------------------------------------------------------
def ss_block_forward(x1_nchw, x2_nchw, y_nchw, params, b_tile=None):
    N, _, H, W = x1_nchw.shape
    C = x2_nchw.shape[1]
    S = H * W
    assert H & (H - 1) == 0 and W & (W - 1) == 0, "power-of-two H/W assumed"

    if b_tile is None:
        b_tile = _pick_batch_tile(N, desired=8)
    assert N % b_tile == 0
    NB = N // b_tile
    L = b_tile * S

    apply_block1 = y_nchw.shape[1] != 2
    x_in = jnp.concatenate([x1_nchw, y_nchw], axis=1) if apply_block1 else x1_nchw
    Cin1 = x_in.shape[1]
    if not apply_block1:
        assert Cin1 == C

    def to_lane_major(x):
        # (N, Ch, H, W) -> (N/BT, Ch, BT*H*W): lane index = b_local*S + h*W + w
        ch = x.shape[1]
        return (x.reshape(NB, b_tile, ch, S)
                .transpose(0, 2, 1, 3)
                .reshape(NB, ch, L))

    x_in = to_lane_major(x_in)
    x2 = to_lane_major(x2_nchw)

    tap_masks, wsel, hsel = _spatial_constants(H, W, b_tile)
    # Fuse the halo mask into the depthwise tap weight: coef[l, t, c, :]
    dww_t = jnp.transpose(params["dww"], (0, 2, 1))            # (5, 9, C)
    coef = dww_t[:, :, :, None] * tap_masks[None, :, :, :]     # (5, 9, C, L)

    out = pl.pallas_call(
        make_fused_kernel(H, W, C, b_tile, apply_block1),
        out_shape=jax.ShapeDtypeStruct((NB, 4 * C, L), x1_nchw.dtype),
        grid=(NB,),
        in_specs=[
            pl.BlockSpec((None, Cin1, L), lambda n: (n, 0, 0)),   # x1 (or cat(x1,y))
            pl.BlockSpec((None, C, L), lambda n: (n, 0, 0)),      # x2
            _const_spec(coef),
            _const_spec(wsel),
            _const_spec(hsel),
            _const_spec(params["w1"]), _const_spec(params["b1"]),
            _const_spec(params["dwb"]),
            _const_spec(params["pww"]), _const_spec(params["pwb"]),
            _const_spec(params["bnsc"]), _const_spec(params["bnsh"]),
            _const_spec(params["w5"]), _const_spec(params["b5"]),
        ],
        out_specs=pl.BlockSpec((None, 4 * C, L), lambda n: (n, 0, 0)),
        compiler_params=pltpu.CompilerParams(
            dimension_semantics=("parallel",)),       # batch shards across 2 TCs
        # NOTE: per-step VMEM use is a few MiB at these shapes (slab + fused
        # coef constants); for much larger B_TILE on v7x (64 MiB VMEM, 32 MiB
        # default scoped limit) set vmem_limit_bytes explicitly.
    )(x_in, x2, coef, wsel, hsel,
      params["w1"], params["b1"], params["dwb"],
      params["pww"], params["pwb"], params["bnsc"], params["bnsh"],
      params["w5"], params["b5"])

    # 2x2 pixel interleave of the 4 ConvTranspose taps: element-granular, so it
    # cannot be folded into a BlockSpec index_map -- one tiny XLA transpose.
    out = out.reshape(NB, 2, 2, C, b_tile, H, W)
    out = out.transpose(0, 4, 3, 5, 1, 6, 2)          # (NB, BT, C, H, kh, W, kw)
    return out.reshape(N, C, 2 * H, 2 * W)


# ----------------------------------------------------------------------------
# Pure-JAX/XLA reference (NCHW), used to validate the fused kernel.
# ----------------------------------------------------------------------------
def ss_block_reference(x1_nchw, x2_nchw, y_nchw, params):
    N, _, H, W = x1_nchw.shape
    C = x2_nchw.shape[1]
    hi = jax.lax.Precision.HIGHEST

    def conv1x1(x, w, b):
        y = jnp.einsum("oc,nchw->nohw", w, x, precision=hi)
        return y + b.reshape(1, -1, 1, 1)

    def depthwise3x3(x, k9, bvec):
        xp = jnp.pad(x, ((0, 0), (0, 0), (1, 1), (1, 1)))
        acc = jnp.zeros_like(x)
        t = 0
        for i in range(3):
            for j in range(3):
                acc = acc + k9[:, t].reshape(1, -1, 1, 1) * xp[:, :, i:i + H, j:j + W]
                t += 1
        return acc + bvec.reshape(1, -1, 1, 1)

    def bn(x, i):
        return (x * params["bnsc"][i].reshape(1, -1, 1, 1)
                + params["bnsh"][i].reshape(1, -1, 1, 1))

    def dwsep(x, dw_i, pw_i, bn_i, residual=None):
        y = depthwise3x3(x, params["dww"][dw_i], params["dwb"][dw_i])
        y = conv1x1(y, params["pww"][pw_i], params["pwb"][pw_i])
        y = bn(y, bn_i)
        if residual is not None:
            y = y + residual
        return jnp.maximum(y, 0.0)

    if y_nchw.shape[1] != 2:
        x1 = conv1x1(jnp.concatenate([x1_nchw, y_nchw], axis=1),
                     params["w1"], params["b1"])
        x1 = jnp.maximum(bn(x1, 0), 0.0)
    else:
        x1 = x1_nchw
    x1 = dwsep(x1, 0, 0, 1)
    xs = x1 * jax.nn.softmax(jnp.abs(x1 - x2_nchw), axis=1)
    xs = dwsep(dwsep(xs, 1, 1, 2), 2, 2, 3, residual=xs)
    a = jnp.mean(xs, axis=3, keepdims=True) + jnp.mean(xs, axis=2, keepdims=True)
    xs = xs * jax.nn.sigmoid(conv1x1(a, params["pww"][3], params["pwb"][3]))
    xs = dwsep(dwsep(xs, 3, 4, 4), 4, 5, 5, residual=xs)
    z = x1 + xs

    out = jnp.zeros((N, C, 2 * H, 2 * W), x1_nchw.dtype)
    for kh in range(2):
        for kw in range(2):
            k = kh * 2 + kw
            yk = conv1x1(z, params["w5"][k * C:(k + 1) * C],
                         params["b5"][k * C:(k + 1) * C])
            out = out.at[:, :, kh::2, kw::2].set(yk)
    return out


# ----------------------------------------------------------------------------
# Deterministic synthetic parameters (shapes follow the module __init__).
# ----------------------------------------------------------------------------
def init_params(key, in_cha, out_cha):
    C = out_cha
    keys = iter(jax.random.split(key, 64))

    def rnd(shape, scale=0.1):
        return jax.random.normal(next(keys), shape, jnp.float32) * scale

    def bn_fold():
        gamma = 1.0 + rnd((C, 1))
        beta = rnd((C, 1))
        mean = rnd((C, 1))
        var = 1.0 + jnp.abs(rnd((C, 1)))
        scale = gamma / jnp.sqrt(var + EPS)
        return scale, beta - mean * scale

    # depthwise 3x3 kernels (C, 9), taps row-major (dh, dw); ordering:
    #   [block2, block3.conv1, block3.conv2, block4.conv1, block4.conv2]
    dww = jnp.stack([rnd((C, 9)) for _ in range(5)])
    dwb = jnp.stack([rnd((C, 1)) for _ in range(5)])
    # pointwise 1x1 weights (Cout, Cin); ordering:
    #   [block2, block3.conv1, block3.conv2, pool, block4.conv1, block4.conv2]
    pww = jnp.stack([rnd((C, C)) for _ in range(6)])
    pwb = jnp.stack([rnd((C, 1)) for _ in range(6)])
    # folded BatchNorm affine; ordering:
    #   [block1, block2, block3.bn1, block3.bn2, block4.bn1, block4.bn2]
    bns = [bn_fold() for _ in range(6)]
    bnsc = jnp.stack([s for s, _ in bns])
    bnsh = jnp.stack([s for _, s in bns])
    # block5 ConvTranspose2d: rows ordered k*C + co with tap k = kh*2 + kw;
    # bias is shared across the 4 taps.
    b5 = jnp.tile(rnd((C, 1)), (4, 1))
    return {
        "w1": rnd((C, in_cha)), "b1": rnd((C, 1)),
        "dww": dww, "dwb": dwb, "pww": pww, "pwb": pwb,
        "bnsc": bnsc, "bnsh": bnsh,
        "w5": rnd((4 * C, C)), "b5": b5,
    }


if __name__ == "__main__":
    N, H, W = 8, 16, 16                  # N=8 -> B_TILE=4, grid=(2,)
    c_x1, c_y, out_cha = 4, 4, 8
    in_cha = c_x1 + c_y                  # block1 consumes cat((x1, y), dim=1)

    key = jax.random.PRNGKey(0)
    k1, k2, k3 = jax.random.split(key, 3)
    x1 = jax.random.normal(k1, (N, c_x1, H, W), jnp.float32)
    x2 = jax.random.normal(k2, (N, out_cha, H, W), jnp.float32)
    y = jax.random.normal(k3, (N, c_y, H, W), jnp.float32)

    params = init_params(jax.random.PRNGKey(42), in_cha, out_cha)

    fwd = jax.jit(functools.partial(ss_block_forward, params=params))
    out = jax.block_until_ready(fwd(x1, x2, y))

    assert out.shape == (N, out_cha, 2 * H, 2 * W), out.shape
    assert bool(jnp.all(jnp.isfinite(out)))

    # Validate against a pure-JAX reference of the same module.  Tolerance is
    # slightly looser than the exact-divide version because the kernel uses
    # pl.reciprocal(approx=True) for the softmax / sigmoid denominators.
    ref = jax.jit(functools.partial(ss_block_reference, params=params))(x1, x2, y)
    err = float(jnp.max(jnp.abs(out - ref)))
    assert err < 1e-2, f"kernel vs reference mismatch: max|err| = {err}"

    print("KERNEL_OK")
</pallas_src>

<mosaic_0001>
module attributes {stable_mosaic.version = 11 : i64} {
  func.func @kernel(%arg0: i32, %arg1: memref<1x8x1024xf32, #tpu.memory_space<vmem>>, %arg2: memref<1x8x1024xf32, #tpu.memory_space<vmem>>, %arg3: memref<5x9x8x1024xf32, #tpu.memory_space<vmem>>, %arg4: memref<4x1x1024xf32, #tpu.memory_space<vmem>>, %arg5: memref<4x1x1024xf32, #tpu.memory_space<vmem>>, %arg6: memref<8x8xf32, #tpu.memory_space<vmem>>, %arg7: memref<8x1xf32, #tpu.memory_space<vmem>>, %arg8: memref<5x8x1xf32, #tpu.memory_space<vmem>>, %arg9: memref<6x8x8xf32, #tpu.memory_space<vmem>>, %arg10: memref<6x8x1xf32, #tpu.memory_space<vmem>>, %arg11: memref<6x8x1xf32, #tpu.memory_space<vmem>>, %arg12: memref<6x8x1xf32, #tpu.memory_space<vmem>>, %arg13: memref<32x8xf32, #tpu.memory_space<vmem>>, %arg14: memref<32x1xf32, #tpu.memory_space<vmem>>, %arg15: memref<1x32x1024xf32, #tpu.memory_space<vmem>>) attributes {dimension_semantics = [#tpu.dimension_semantics<parallel>], iteration_bounds = array<i64: 2>, scalar_prefetch = 0 : i64, scratch_operands = 0 : i64, tpu.core_type = #tpu.core_type<tc>, window_params = [{transform_indices = @transform_0, window_bounds = array<i64: 1, 8, 1024>}, {transform_indices = @transform_1, window_bounds = array<i64: 1, 8, 1024>}, {pipeline_mode = #tpu.pipeline_mode<synchronous>, transform_indices = @transform_2, window_bounds = array<i64: 5, 9, 8, 1024>}, {pipeline_mode = #tpu.pipeline_mode<synchronous>, transform_indices = @transform_3, window_bounds = array<i64: 4, 1, 1024>}, {pipeline_mode = #tpu.pipeline_mode<synchronous>, transform_indices = @transform_4, window_bounds = array<i64: 4, 1, 1024>}, {pipeline_mode = #tpu.pipeline_mode<synchronous>, transform_indices = @transform_5, window_bounds = array<i64: 8, 8>}, {pipeline_mode = #tpu.pipeline_mode<synchronous>, transform_indices = @transform_6, window_bounds = array<i64: 8, 1>}, {pipeline_mode = #tpu.pipeline_mode<synchronous>, transform_indices = @transform_7, window_bounds = array<i64: 5, 8, 1>}, {pipeline_mode = #tpu.pipeline_mode<synchronous>, transform_indices = @transform_8, window_bounds = array<i64: 6, 8, 8>}, {pipeline_mode = #tpu.pipeline_mode<synchronous>, transform_indices = @transform_9, window_bounds = array<i64: 6, 8, 1>}, {pipeline_mode = #tpu.pipeline_mode<synchronous>, transform_indices = @transform_10, window_bounds = array<i64: 6, 8, 1>}, {pipeline_mode = #tpu.pipeline_mode<synchronous>, transform_indices = @transform_11, window_bounds = array<i64: 6, 8, 1>}, {pipeline_mode = #tpu.pipeline_mode<synchronous>, transform_indices = @transform_12, window_bounds = array<i64: 32, 8>}, {pipeline_mode = #tpu.pipeline_mode<synchronous>, transform_indices = @transform_13, window_bounds = array<i64: 32, 1>}, {transform_indices = @transform_14, window_bounds = array<i64: 1, 32, 1024>}]} {
    %c0 = arith.constant 0 : index
    %c0_0 = arith.constant 0 : index
    %c0_1 = arith.constant 0 : index
    %0 = vector.load %arg1[%c0, %c0_0, %c0_1] : memref<1x8x1024xf32, #tpu.memory_space<vmem>>, vector<1x8x1024xf32>
    %1 = vector.shape_cast %0 : vector<1x8x1024xf32> to vector<8x1024xf32>
    %c0_2 = arith.constant 0 : index
    %c0_3 = arith.constant 0 : index
    %2 = vector.load %arg6[%c0_2, %c0_3] : memref<8x8xf32, #tpu.memory_space<vmem>>, vector<8x8xf32>
    %c0_4 = arith.constant 0 : index
    %c0_5 = arith.constant 0 : index
    %3 = vector.load %arg7[%c0_4, %c0_5] : memref<8x1xf32, #tpu.memory_space<vmem>>, vector<8x1xf32>
    %cst = arith.constant dense<0.000000e+00> : vector<8x1024xf32>
    %4 = tpu.matmul %2, %1, %cst {dimension_numbers = #tpu.dot_dimension_numbers<[1], [0], [0], [1], [0, 0, 1, 1], [], []>} : vector<8x8xf32>, vector<8x1024xf32>, vector<8x1024xf32> -> vector<8x1024xf32>
    %5 = vector.broadcast %3 : vector<8x1xf32> to vector<8x1024xf32>
    %6 = arith.addf %4, %5 : vector<8x1024xf32>
    %c0_6 = arith.constant 0 : index
    %c0_7 = arith.constant 0 : index
    %c0_8 = arith.constant 0 : index
    %7 = vector.load %arg11[%c0_6, %c0_7, %c0_8] : memref<6x8x1xf32, #tpu.memory_space<vmem>>, vector<1x8x1xf32>
    %8 = vector.shape_cast %7 : vector<1x8x1xf32> to vector<8x1xf32>
    %9 = vector.broadcast %8 : vector<8x1xf32> to vector<8x1024xf32>
    %10 = arith.mulf %6, %9 : vector<8x1024xf32>
    %c0_9 = arith.constant 0 : index
    %c0_10 = arith.constant 0 : index
    %c0_11 = arith.constant 0 : index
    %11 = vector.load %arg12[%c0_9, %c0_10, %c0_11] : memref<6x8x1xf32, #tpu.memory_space<vmem>>, vector<1x8x1xf32>
    %12 = vector.shape_cast %11 : vector<1x8x1xf32> to vector<8x1xf32>
    %13 = vector.broadcast %12 : vector<8x1xf32> to vector<8x1024xf32>
    %14 = arith.addf %10, %13 : vector<8x1024xf32>
    %cst_12 = arith.constant 0.000000e+00 : f32
    %15 = vector.broadcast %cst_12 : f32 to vector<8x1024xf32>
    %16 = arith.maximumf %14, %15 : vector<8x1024xf32>
    %c0_13 = arith.constant 0 : index
    %c4 = arith.constant 4 : index
    %c0_14 = arith.constant 0 : index
    %c0_15 = arith.constant 0 : index
    %17 = vector.load %arg3[%c0_13, %c4, %c0_14, %c0_15] : memref<5x9x8x1024xf32, #tpu.memory_space<vmem>>, vector<1x1x8x1024xf32>
    %18 = vector.shape_cast %17 : vector<1x1x8x1024xf32> to vector<8x1024xf32>
    %19 = arith.mulf %18, %16 : vector<8x1024xf32>
    %c0_16 = arith.constant 0 : index
    %c0_17 = arith.constant 0 : index
    %c0_18 = arith.constant 0 : index
    %c0_19 = arith.constant 0 : index
    %20 = vector.load %arg3[%c0_16, %c0_17, %c0_18, %c0_19] : memref<5x9x8x1024xf32, #tpu.memory_space<vmem>>, vector<1x1x8x1024xf32>
    %21 = vector.shape_cast %20 : vector<1x1x8x1024xf32> to vector<8x1024xf32>
    %c17_i32 = arith.constant 17 : i32
    %22 = tpu.dynamic_rotate %16 by %c17_i32 dim 1 : vector<8x1024xf32>, i32 -> vector<8x1024xf32>
    %23 = arith.mulf %21, %22 : vector<8x1024xf32>
    %c0_20 = arith.constant 0 : index
    %c1 = arith.constant 1 : index
    %c0_21 = arith.constant 0 : index
    %c0_22 = arith.constant 0 : index
    %24 = vector.load %arg3[%c0_20, %c1, %c0_21, %c0_22] : memref<5x9x8x1024xf32, #tpu.memory_space<vmem>>, vector<1x1x8x1024xf32>
    %25 = vector.shape_cast %24 : vector<1x1x8x1024xf32> to vector<8x1024xf32>
    %c16_i32 = arith.constant 16 : i32
    %26 = tpu.dynamic_rotate %16 by %c16_i32 dim 1 : vector<8x1024xf32>, i32 -> vector<8x1024xf32>
    %27 = arith.mulf %25, %26 : vector<8x1024xf32>
    %c0_23 = arith.constant 0 : index
    %c2 = arith.constant 2 : index
    %c0_24 = arith.constant 0 : index
    %c0_25 = arith.constant 0 : index
    %28 = vector.load %arg3[%c0_23, %c2, %c0_24, %c0_25] : memref<5x9x8x1024xf32, #tpu.memory_space<vmem>>, vector<1x1x8x1024xf32>
    %29 = vector.shape_cast %28 : vector<1x1x8x1024xf32> to vector<8x1024xf32>
    %c15_i32 = arith.constant 15 : i32
    %30 = tpu.dynamic_rotate %16 by %c15_i32 dim 1 : vector<8x1024xf32>, i32 -> vector<8x1024xf32>
    %31 = arith.mulf %29, %30 : vector<8x1024xf32>
    %32 = arith.addf %23, %31 : vector<8x1024xf32>
    %c0_26 = arith.constant 0 : index
    %c3 = arith.constant 3 : index
    %c0_27 = arith.constant 0 : index
    %c0_28 = arith.constant 0 : index
    %33 = vector.load %arg3[%c0_26, %c3, %c0_27, %c0_28] : memref<5x9x8x1024xf32, #tpu.memory_space<vmem>>, vector<1x1x8x1024xf32>
    %34 = vector.shape_cast %33 : vector<1x1x8x1024xf32> to vector<8x1024xf32>
    %c1_i32 = arith.constant 1 : i32
    %35 = tpu.dynamic_rotate %16 by %c1_i32 dim 1 : vector<8x1024xf32>, i32 -> vector<8x1024xf32>
    %36 = arith.mulf %34, %35 : vector<8x1024xf32>
    %37 = arith.addf %27, %36 : vector<8x1024xf32>
    %c0_29 = arith.constant 0 : index
    %c5 = arith.constant 5 : index
    %c0_30 = arith.constant 0 : index
    %c0_31 = arith.constant 0 : index
    %38 = vector.load %arg3[%c0_29, %c5, %c0_30, %c0_31] : memref<5x9x8x1024xf32, #tpu.memory_space<vmem>>, vector<1x1x8x1024xf32>
    %39 = vector.shape_cast %38 : vector<1x1x8x1024xf32> to vector<8x1024xf32>
    %c1023_i32 = arith.constant 1023 : i32
    %40 = tpu.dynamic_rotate %16 by %c1023_i32 dim 1 : vector<8x1024xf32>, i32 -> vector<8x1024xf32>
    %41 = arith.mulf %39, %40 : vector<8x1024xf32>
    %42 = arith.addf %37, %41 : vector<8x1024xf32>
    %c0_32 = arith.constant 0 : index
    %c6 = arith.constant 6 : index
    %c0_33 = arith.constant 0 : index
    %c0_34 = arith.constant 0 : index
    %43 = vector.load %arg3[%c0_32, %c6, %c0_33, %c0_34] : memref<5x9x8x1024xf32, #tpu.memory_space<vmem>>, vector<1x1x8x1024xf32>
    %44 = vector.shape_cast %43 : vector<1x1x8x1024xf32> to vector<8x1024xf32>
    %c1009_i32 = arith.constant 1009 : i32
    %45 = tpu.dynamic_rotate %16 by %c1009_i32 dim 1 : vector<8x1024xf32>, i32 -> vector<8x1024xf32>
    %46 = arith.mulf %44, %45 : vector<8x1024xf32>
    %47 = arith.addf %32, %46 : vector<8x1024xf32>
    %c0_35 = arith.constant 0 : index
    %c7 = arith.constant 7 : index
    %c0_36 = arith.constant 0 : index
    %c0_37 = arith.constant 0 : index
    %48 = vector.load %arg3[%c0_35, %c7, %c0_36, %c0_37] : memref<5x9x8x1024xf32, #tpu.memory_space<vmem>>, vector<1x1x8x1024xf32>
    %49 = vector.shape_cast %48 : vector<1x1x8x1024xf32> to vector<8x1024xf32>
    %c1008_i32 = arith.constant 1008 : i32
    %50 = tpu.dynamic_rotate %16 by %c1008_i32 dim 1 : vector<8x1024xf32>, i32 -> vector<8x1024xf32>
    %51 = arith.mulf %49, %50 : vector<8x1024xf32>
    %52 = arith.addf %42, %51 : vector<8x1024xf32>
    %c0_38 = arith.constant 0 : index
    %c8 = arith.constant 8 : index
    %c0_39 = arith.constant 0 : index
    %c0_40 = arith.constant 0 : index
    %53 = vector.load %arg3[%c0_38, %c8, %c0_39, %c0_40] : memref<5x9x8x1024xf32, #tpu.memory_space<vmem>>, vector<1x1x8x1024xf32>
    %54 = vector.shape_cast %53 : vector<1x1x8x1024xf32> to vector<8x1024xf32>
    %c1007_i32 = arith.constant 1007 : i32
    %55 = tpu.dynamic_rotate %16 by %c1007_i32 dim 1 : vector<8x1024xf32>, i32 -> vector<8x1024xf32>
    %56 = arith.mulf %54, %55 : vector<8x1024xf32>
    %57 = arith.addf %47, %56 : vector<8x1024xf32>
    %58 = arith.addf %19, %57 : vector<8x1024xf32>
    %c0_41 = arith.constant 0 : index
    %c0_42 = arith.constant 0 : index
    %c0_43 = arith.constant 0 : index
    %59 = vector.load %arg8[%c0_41, %c0_42, %c0_43] : memref<5x8x1xf32, #tpu.memory_space<vmem>>, vector<1x8x1xf32>
    %60 = vector.shape_cast %59 : vector<1x8x1xf32> to vector<8x1xf32>
    %61 = vector.broadcast %60 : vector<8x1xf32> to vector<8x1024xf32>
    %62 = arith.addf %52, %61 : vector<8x1024xf32>
    %63 = arith.addf %58, %62 : vector<8x1024xf32>
    %c0_44 = arith.constant 0 : index
    %c0_45 = arith.constant 0 : index
    %c0_46 = arith.constant 0 : index
    %64 = vector.load %arg9[%c0_44, %c0_45, %c0_46] : memref<6x8x8xf32, #tpu.memory_space<vmem>>, vector<1x8x8xf32>
    %65 = vector.shape_cast %64 : vector<1x8x8xf32> to vector<8x8xf32>
    %c0_47 = arith.constant 0 : index
    %c0_48 = arith.constant 0 : index
    %c0_49 = arith.constant 0 : index
    %66 = vector.load %arg10[%c0_47, %c0_48, %c0_49] : memref<6x8x1xf32, #tpu.memory_space<vmem>>, vector<1x8x1xf32>
    %67 = vector.shape_cast %66 : vector<1x8x1xf32> to vector<8x1xf32>
    %cst_50 = arith.constant dense<0.000000e+00> : vector<8x1024xf32>
    %68 = tpu.matmul %65, %63, %cst_50 {dimension_numbers = #tpu.dot_dimension_numbers<[1], [0], [0], [1], [0, 0, 1, 1], [], []>} : vector<8x8xf32>, vector<8x1024xf32>, vector<8x1024xf32> -> vector<8x1024xf32>
    %69 = vector.broadcast %67 : vector<8x1xf32> to vector<8x1024xf32>
    %70 = arith.addf %68, %69 : vector<8x1024xf32>
    %c1_51 = arith.constant 1 : index
    %c0_52 = arith.constant 0 : index
    %c0_53 = arith.constant 0 : index
    %71 = vector.load %arg11[%c1_51, %c0_52, %c0_53] : memref<6x8x1xf32, #tpu.memory_space<vmem>>, vector<1x8x1xf32>
    %72 = vector.shape_cast %71 : vector<1x8x1xf32> to vector<8x1xf32>
    %73 = vector.broadcast %72 : vector<8x1xf32> to vector<8x1024xf32>
    %74 = arith.mulf %70, %73 : vector<8x1024xf32>
    %c1_54 = arith.constant 1 : index
    %c0_55 = arith.constant 0 : index
    %c0_56 = arith.constant 0 : index
    %75 = vector.load %arg12[%c1_54, %c0_55, %c0_56] : memref<6x8x1xf32, #tpu.memory_space<vmem>>, vector<1x8x1xf32>
    %76 = vector.shape_cast %75 : vector<1x8x1xf32> to vector<8x1xf32>
    %77 = vector.broadcast %76 : vector<8x1xf32> to vector<8x1024xf32>
    %78 = arith.addf %74, %77 : vector<8x1024xf32>
    %cst_57 = arith.constant 0.000000e+00 : f32
    %79 = vector.broadcast %cst_57 : f32 to vector<8x1024xf32>
    %80 = arith.maximumf %78, %79 : vector<8x1024xf32>
    %c0_58 = arith.constant 0 : index
    %c0_59 = arith.constant 0 : index
    %c0_60 = arith.constant 0 : index
    %81 = vector.load %arg2[%c0_58, %c0_59, %c0_60] : memref<1x8x1024xf32, #tpu.memory_space<vmem>>, vector<1x8x1024xf32>
    %82 = vector.shape_cast %81 : vector<1x8x1024xf32> to vector<8x1024xf32>
    %83 = arith.subf %80, %82 : vector<8x1024xf32>
    %84 = math.absf %83 : vector<8x1024xf32>
    %cst_61 = arith.constant dense<0xFF800000> : vector<1024xf32>
    %85 = vector.multi_reduction <maximumf>, %84, %cst_61 [0] : vector<8x1024xf32> to vector<1024xf32>
    %86 = vector.shape_cast %85 : vector<1024xf32> to vector<1x1024xf32>
    %87 = vector.broadcast %86 : vector<1x1024xf32> to vector<8x1024xf32>
    %88 = arith.subf %84, %87 : vector<8x1024xf32>
    %89 = math.exp %88 : vector<8x1024xf32>
    %cst_62 = arith.constant dense<0.000000e+00> : vector<1024xf32>
    %90 = vector.multi_reduction <add>, %89, %cst_62 [0] : vector<8x1024xf32> to vector<1024xf32>
    %91 = vector.shape_cast %90 : vector<1024xf32> to vector<1x1024xf32>
    %92 = tpu.reciprocal %91 {approx = true} : vector<1x1024xf32> -> vector<1x1024xf32>
    %93 = vector.broadcast %92 : vector<1x1024xf32> to vector<8x1024xf32>
    %94 = arith.mulf %89, %93 : vector<8x1024xf32>
    %95 = arith.mulf %80, %94 : vector<8x1024xf32>
    %c1_63 = arith.constant 1 : index
    %c4_64 = arith.constant 4 : index
    %c0_65 = arith.constant 0 : index
    %c0_66 = arith.constant 0 : index
    %96 = vector.load %arg3[%c1_63, %c4_64, %c0_65, %c0_66] : memref<5x9x8x1024xf32, #tpu.memory_space<vmem>>, vector<1x1x8x1024xf32>
    %97 = vector.shape_cast %96 : vector<1x1x8x1024xf32> to vector<8x1024xf32>
    %98 = arith.mulf %97, %95 : vector<8x1024xf32>
    %c1_67 = arith.constant 1 : index
    %c0_68 = arith.constant 0 : index
    %c0_69 = arith.constant 0 : index
    %c0_70 = arith.constant 0 : index
    %99 = vector.load %arg3[%c1_67, %c0_68, %c0_69, %c0_70] : memref<5x9x8x1024xf32, #tpu.memory_space<vmem>>, vector<1x1x8x1024xf32>
    %100 = vector.shape_cast %99 : vector<1x1x8x1024xf32> to vector<8x1024xf32>
    %c17_i32_71 = arith.constant 17 : i32
    %101 = tpu.dynamic_rotate %95 by %c17_i32_71 dim 1 : vector<8x1024xf32>, i32 -> vector<8x1024xf32>
    %102 = arith.mulf %100, %101 : vector<8x1024xf32>
    %c1_72 = arith.constant 1 : index
    %c1_73 = arith.constant 1 : index
    %c0_74 = arith.constant 0 : index
    %c0_75 = arith.constant 0 : index
    %103 = vector.load %arg3[%c1_72, %c1_73, %c0_74, %c0_75] : memref<5x9x8x1024xf32, #tpu.memory_space<vmem>>, vector<1x1x8x1024xf32>
    %104 = vector.shape_cast %103 : vector<1x1x8x1024xf32> to vector<8x1024xf32>
    %c16_i32_76 = arith.constant 16 : i32
    %105 = tpu.dynamic_rotate %95 by %c16_i32_76 dim 1 : vector<8x1024xf32>, i32 -> vector<8x1024xf32>
    %106 = arith.mulf %104, %105 : vector<8x1024xf32>
    %c1_77 = arith.constant 1 : index
    %c2_78 = arith.constant 2 : index
    %c0_79 = arith.constant 0 : index
    %c0_80 = arith.constant 0 : index
    %107 = vector.load %arg3[%c1_77, %c2_78, %c0_79, %c0_80] : memref<5x9x8x1024xf32, #tpu.memory_space<vmem>>, vector<1x1x8x1024xf32>
    %108 = vector.shape_cast %107 : vector<1x1x8x1024xf32> to vector<8x1024xf32>
    %c15_i32_81 = arith.constant 15 : i32
    %109 = tpu.dynamic_rotate %95 by %c15_i32_81 dim 1 : vector<8x1024xf32>, i32 -> vector<8x1024xf32>
    %110 = arith.mulf %108, %109 : vector<8x1024xf32>
    %111 = arith.addf %102, %110 : vector<8x1024xf32>
    %c1_82 = arith.constant 1 : index
    %c3_83 = arith.constant 3 : index
    %c0_84 = arith.constant 0 : index
    %c0_85 = arith.constant 0 : index
    %112 = vector.load %arg3[%c1_82, %c3_83, %c0_84, %c0_85] : memref<5x9x8x1024xf32, #tpu.memory_space<vmem>>, vector<1x1x8x1024xf32>
    %113 = vector.shape_cast %112 : vector<1x1x8x1024xf32> to vector<8x1024xf32>
    %c1_i32_86 = arith.constant 1 : i32
    %114 = tpu.dynamic_rotate %95 by %c1_i32_86 dim 1 : vector<8x1024xf32>, i32 -> vector<8x1024xf32>
    %115 = arith.mulf %113, %114 : vector<8x1024xf32>
    %116 = arith.addf %106, %115 : vector<8x1024xf32>
    %c1_87 = arith.constant 1 : index
    %c5_88 = arith.constant 5 : index
    %c0_89 = arith.constant 0 : index
    %c0_90 = arith.constant 0 : index
    %117 = vector.load %arg3[%c1_87, %c5_88, %c0_89, %c0_90] : memref<5x9x8x1024xf32, #tpu.memory_space<vmem>>, vector<1x1x8x1024xf32>
    %118 = vector.shape_cast %117 : vector<1x1x8x1024xf32> to vector<8x1024xf32>
    %c1023_i32_91 = arith.constant 1023 : i32
    %119 = tpu.dynamic_rotate %95 by %c1023_i32_91 dim 1 : vector<8x1024xf32>, i32 -> vector<8x1024xf32>
    %120 = arith.mulf %118, %119 : vector<8x1024xf32>
    %121 = arith.addf %116, %120 : vector<8x1024xf32>
    %c1_92 = arith.constant 1 : index
    %c6_93 = arith.constant 6 : index
    %c0_94 = arith.constant 0 : index
    %c0_95 = arith.constant 0 : index
    %122 = vector.load %arg3[%c1_92, %c6_93, %c0_94, %c0_95] : memref<5x9x8x1024xf32, #tpu.memory_space<vmem>>, vector<1x1x8x1024xf32>
    %123 = vector.shape_cast %122 : vector<1x1x8x1024xf32> to vector<8x1024xf32>
    %c1009_i32_96 = arith.constant 1009 : i32
    %124 = tpu.dynamic_rotate %95 by %c1009_i32_96 dim 1 : vector<8x1024xf32>, i32 -> vector<8x1024xf32>
    %125 = arith.mulf %123, %124 : vector<8x1024xf32>
    %126 = arith.addf %111, %125 : vector<8x1024xf32>
    %c1_97 = arith.constant 1 : index
    %c7_98 = arith.constant 7 : index
    %c0_99 = arith.constant 0 : index
    %c0_100 = arith.constant 0 : index
    %127 = vector.load %arg3[%c1_97, %c7_98, %c0_99, %c0_100] : memref<5x9x8x1024xf32, #tpu.memory_space<vmem>>, vector<1x1x8x1024xf32>
    %128 = vector.shape_cast %127 : vector<1x1x8x1024xf32> to vector<8x1024xf32>
    %c1008_i32_101 = arith.constant 1008 : i32
    %129 = tpu.dynamic_rotate %95 by %c1008_i32_101 dim 1 : vector<8x1024xf32>, i32 -> vector<8x1024xf32>
    %130 = arith.mulf %128, %129 : vector<8x1024xf32>
    %131 = arith.addf %121, %130 : vector<8x1024xf32>
    %c1_102 = arith.constant 1 : index
    %c8_103 = arith.constant 8 : index
    %c0_104 = arith.constant 0 : index
    %c0_105 = arith.constant 0 : index
    %132 = vector.load %arg3[%c1_102, %c8_103, %c0_104, %c0_105] : memref<5x9x8x1024xf32, #tpu.memory_space<vmem>>, vector<1x1x8x1024xf32>
    %133 = vector.shape_cast %132 : vector<1x1x8x1024xf32> to vector<8x1024xf32>
    %c1007_i32_106 = arith.constant 1007 : i32
    %134 = tpu.dynamic_rotate %95 by %c1007_i32_106 dim 1 : vector<8x1024xf32>, i32 -> vector<8x1024xf32>
    %135 = arith.mulf %133, %134 : vector<8x1024xf32>
    %136 = arith.addf %126, %135 : vector<8x1024xf32>
    %137 = arith.addf %98, %136 : vector<8x1024xf32>
    %c1_107 = arith.constant 1 : index
    %c0_108 = arith.constant 0 : index
    %c0_109 = arith.constant 0 : index
    %138 = vector.load %arg8[%c1_107, %c0_108, %c0_109] : memref<5x8x1xf32, #tpu.memory_space<vmem>>, vector<1x8x1xf32>
    %139 = vector.shape_cast %138 : vector<1x8x1xf32> to vector<8x1xf32>
    %140 = vector.broadcast %139 : vector<8x1xf32> to vector<8x1024xf32>
    %141 = arith.addf %131, %140 : vector<8x1024xf32>
    %142 = arith.addf %137, %141 : vector<8x1024xf32>
    %c1_110 = arith.constant 1 : index
    %c0_111 = arith.constant 0 : index
    %c0_112 = arith.constant 0 : index
    %143 = vector.load %arg9[%c1_110, %c0_111, %c0_112] : memref<6x8x8xf32, #tpu.memory_space<vmem>>, vector<1x8x8xf32>
    %144 = vector.shape_cast %143 : vector<1x8x8xf32> to vector<8x8xf32>
    %c1_113 = arith.constant 1 : index
    %c0_114 = arith.constant 0 : index
    %c0_115 = arith.constant 0 : index
    %145 = vector.load %arg10[%c1_113, %c0_114, %c0_115] : memref<6x8x1xf32, #tpu.memory_space<vmem>>, vector<1x8x1xf32>
    %146 = vector.shape_cast %145 : vector<1x8x1xf32> to vector<8x1xf32>
    %cst_116 = arith.constant dense<0.000000e+00> : vector<8x1024xf32>
    %147 = tpu.matmul %144, %142, %cst_116 {dimension_numbers = #tpu.dot_dimension_numbers<[1], [0], [0], [1], [0, 0, 1, 1], [], []>} : vector<8x8xf32>, vector<8x1024xf32>, vector<8x1024xf32> -> vector<8x1024xf32>
    %148 = vector.broadcast %146 : vector<8x1xf32> to vector<8x1024xf32>
    %149 = arith.addf %147, %148 : vector<8x1024xf32>
    %c2_117 = arith.constant 2 : index
    %c0_118 = arith.constant 0 : index
    %c0_119 = arith.constant 0 : index
    %150 = vector.load %arg11[%c2_117, %c0_118, %c0_119] : memref<6x8x1xf32, #tpu.memory_space<vmem>>, vector<1x8x1xf32>
    %151 = vector.shape_cast %150 : vector<1x8x1xf32> to vector<8x1xf32>
    %152 = vector.broadcast %151 : vector<8x1xf32> to vector<8x1024xf32>
    %153 = arith.mulf %149, %152 : vector<8x1024xf32>
    %c2_120 = arith.constant 2 : index
    %c0_121 = arith.constant 0 : index
    %c0_122 = arith.constant 0 : index
    %154 = vector.load %arg12[%c2_120, %c0_121, %c0_122] : memref<6x8x1xf32, #tpu.memory_space<vmem>>, vector<1x8x1xf32>
    %155 = vector.shape_cast %154 : vector<1x8x1xf32> to vector<8x1xf32>
    %156 = vector.broadcast %155 : vector<8x1xf32> to vector<8x1024xf32>
    %157 = arith.addf %153, %156 : vector<8x1024xf32>
    %cst_123 = arith.constant 0.000000e+00 : f32
    %158 = vector.broadcast %cst_123 : f32 to vector<8x1024xf32>
    %159 = arith.maximumf %157, %158 : vector<8x1024xf32>
    %c2_124 = arith.constant 2 : index
    %c4_125 = arith.constant 4 : index
    %c0_126 = arith.constant 0 : index
    %c0_127 = arith.constant 0 : index
    %160 = vector.load %arg3[%c2_124, %c4_125, %c0_126, %c0_127] : memref<5x9x8x1024xf32, #tpu.memory_space<vmem>>, vector<1x1x8x1024xf32>
    %161 = vector.shape_cast %160 : vector<1x1x8x1024xf32> to vector<8x1024xf32>
    %162 = arith.mulf %161, %159 : vector<8x1024xf32>
    %c2_128 = arith.constant 2 : index
    %c0_129 = arith.constant 0 : index
    %c0_130 = arith.constant 0 : index
    %c0_131 = arith.constant 0 : index
    %163 = vector.load %arg3[%c2_128, %c0_129, %c0_130, %c0_131] : memref<5x9x8x1024xf32, #tpu.memory_space<vmem>>, vector<1x1x8x1024xf32>
    %164 = vector.shape_cast %163 : vector<1x1x8x1024xf32> to vector<8x1024xf32>
    %c17_i32_132 = arith.constant 17 : i32
    %165 = tpu.dynamic_rotate %159 by %c17_i32_132 dim 1 : vector<8x1024xf32>, i32 -> vector<8x1024xf32>
    %166 = arith.mulf %164, %165 : vector<8x1024xf32>
    %c2_133 = arith.constant 2 : index
    %c1_134 = arith.constant 1 : index
    %c0_135 = arith.constant 0 : index
    %c0_136 = arith.constant 0 : index
    %167 = vector.load %arg3[%c2_133, %c1_134, %c0_135, %c0_136] : memref<5x9x8x1024xf32, #tpu.memory_space<vmem>>, vector<1x1x8x1024xf32>
    %168 = vector.shape_cast %167 : vector<1x1x8x1024xf32> to vector<8x1024xf32>
    %c16_i32_137 = arith.constant 16 : i32
    %169 = tpu.dynamic_rotate %159 by %c16_i32_137 dim 1 : vector<8x1024xf32>, i32 -> vector<8x1024xf32>
    %170 = arith.mulf %168, %169 : vector<8x1024xf32>
    %c2_138 = arith.constant 2 : index
    %c2_139 = arith.constant 2 : index
    %c0_140 = arith.constant 0 : index
    %c0_141 = arith.constant 0 : index
    %171 = vector.load %arg3[%c2_138, %c2_139, %c0_140, %c0_141] : memref<5x9x8x1024xf32, #tpu.memory_space<vmem>>, vector<1x1x8x1024xf32>
    %172 = vector.shape_cast %171 : vector<1x1x8x1024xf32> to vector<8x1024xf32>
    %c15_i32_142 = arith.constant 15 : i32
    %173 = tpu.dynamic_rotate %159 by %c15_i32_142 dim 1 : vector<8x1024xf32>, i32 -> vector<8x1024xf32>
    %174 = arith.mulf %172, %173 : vector<8x1024xf32>
    %175 = arith.addf %166, %174 : vector<8x1024xf32>
    %c2_143 = arith.constant 2 : index
    %c3_144 = arith.constant 3 : index
    %c0_145 = arith.constant 0 : index
    %c0_146 = arith.constant 0 : index
    %176 = vector.load %arg3[%c2_143, %c3_144, %c0_145, %c0_146] : memref<5x9x8x1024xf32, #tpu.memory_space<vmem>>, vector<1x1x8x1024xf32>
    %177 = vector.shape_cast %176 : vector<1x1x8x1024xf32> to vector<8x1024xf32>
    %c1_i32_147 = arith.constant 1 : i32
    %178 = tpu.dynamic_rotate %159 by %c1_i32_147 dim 1 : vector<8x1024xf32>, i32 -> vector<8x1024xf32>
    %179 = arith.mulf %177, %178 : vector<8x1024xf32>
    %180 = arith.addf %170, %179 : vector<8x1024xf32>
    %c2_148 = arith.constant 2 : index
    %c5_149 = arith.constant 5 : index
    %c0_150 = arith.constant 0 : index
    %c0_151 = arith.constant 0 : index
    %181 = vector.load %arg3[%c2_148, %c5_149, %c0_150, %c0_151] : memref<5x9x8x1024xf32, #tpu.memory_space<vmem>>, vector<1x1x8x1024xf32>
    %182 = vector.shape_cast %181 : vector<1x1x8x1024xf32> to vector<8x1024xf32>
    %c1023_i32_152 = arith.constant 1023 : i32
    %183 = tpu.dynamic_rotate %159 by %c1023_i32_152 dim 1 : vector<8x1024xf32>, i32 -> vector<8x1024xf32>
    %184 = arith.mulf %182, %183 : vector<8x1024xf32>
    %185 = arith.addf %180, %184 : vector<8x1024xf32>
    %c2_153 = arith.constant 2 : index
    %c6_154 = arith.constant 6 : index
    %c0_155 = arith.constant 0 : index
    %c0_156 = arith.constant 0 : index
    %186 = vector.load %arg3[%c2_153, %c6_154, %c0_155, %c0_156] : memref<5x9x8x1024xf32, #tpu.memory_space<vmem>>, vector<1x1x8x1024xf32>
    %187 = vector.shape_cast %186 : vector<1x1x8x1024xf32> to vector<8x1024xf32>
    %c1009_i32_157 = arith.constant 1009 : i32
    %188 = tpu.dynamic_rotate %159 by %c1009_i32_157 dim 1 : vector<8x1024xf32>, i32 -> vector<8x1024xf32>
    %189 = arith.mulf %187, %188 : vector<8x1024xf32>
    %190 = arith.addf %175, %189 : vector<8x1024xf32>
    %c2_158 = arith.constant 2 : index
    %c7_159 = arith.constant 7 : index
    %c0_160 = arith.constant 0 : index
    %c0_161 = arith.constant 0 : index
    %191 = vector.load %arg3[%c2_158, %c7_159, %c0_160, %c0_161] : memref<5x9x8x1024xf32, #tpu.memory_space<vmem>>, vector<1x1x8x1024xf32>
    %192 = vector.shape_cast %191 : vector<1x1x8x1024xf32> to vector<8x1024xf32>
    %c1008_i32_162 = arith.constant 1008 : i32
    %193 = tpu.dynamic_rotate %159 by %c1008_i32_162 dim 1 : vector<8x1024xf32>, i32 -> vector<8x1024xf32>
    %194 = arith.mulf %192, %193 : vector<8x1024xf32>
    %195 = arith.addf %185, %194 : vector<8x1024xf32>
    %c2_163 = arith.constant 2 : index
    %c8_164 = arith.constant 8 : index
    %c0_165 = arith.constant 0 : index
    %c0_166 = arith.constant 0 : index
    %196 = vector.load %arg3[%c2_163, %c8_164, %c0_165, %c0_166] : memref<5x9x8x1024xf32, #tpu.memory_space<vmem>>, vector<1x1x8x1024xf32>
    %197 = vector.shape_cast %196 : vector<1x1x8x1024xf32> to vector<8x1024xf32>
    %c1007_i32_167 = arith.constant 1007 : i32
    %198 = tpu.dynamic_rotate %159 by %c1007_i32_167 dim 1 : vector<8x1024xf32>, i32 -> vector<8x1024xf32>
    %199 = arith.mulf %197, %198 : vector<8x1024xf32>
    %200 = arith.addf %190, %199 : vector<8x1024xf32>
    %201 = arith.addf %162, %200 : vector<8x1024xf32>
    %c2_168 = arith.constant 2 : index
    %c0_169 = arith.constant 0 : index
    %c0_170 = arith.constant 0 : index
    %202 = vector.load %arg8[%c2_168, %c0_169, %c0_170] : memref<5x8x1xf32, #tpu.memory_space<vmem>>, vector<1x8x1xf32>
    %203 = vector.shape_cast %202 : vector<1x8x1xf32> to vector<8x1xf32>
    %204 = vector.broadcast %203 : vector<8x1xf32> to vector<8x1024xf32>
    %205 = arith.addf %195, %204 : vector<8x1024xf32>
    %206 = arith.addf %201, %205 : vector<8x1024xf32>
    %c2_171 = arith.constant 2 : index
    %c0_172 = arith.constant 0 : index
    %c0_173 = arith.constant 0 : index
    %207 = vector.load %arg9[%c2_171, %c0_172, %c0_173] : memref<6x8x8xf32, #tpu.memory_space<vmem>>, vector<1x8x8xf32>
    %208 = vector.shape_cast %207 : vector<1x8x8xf32> to vector<8x8xf32>
    %c2_174 = arith.constant 2 : index
    %c0_175 = arith.constant 0 : index
    %c0_176 = arith.constant 0 : index
    %209 = vector.load %arg10[%c2_174, %c0_175, %c0_176] : memref<6x8x1xf32, #tpu.memory_space<vmem>>, vector<1x8x1xf32>
    %210 = vector.shape_cast %209 : vector<1x8x1xf32> to vector<8x1xf32>
    %cst_177 = arith.constant dense<0.000000e+00> : vector<8x1024xf32>
    %211 = tpu.matmul %208, %206, %cst_177 {dimension_numbers = #tpu.dot_dimension_numbers<[1], [0], [0], [1], [0, 0, 1, 1], [], []>} : vector<8x8xf32>, vector<8x1024xf32>, vector<8x1024xf32> -> vector<8x1024xf32>
    %212 = vector.broadcast %210 : vector<8x1xf32> to vector<8x1024xf32>
    %213 = arith.addf %211, %212 : vector<8x1024xf32>
    %c3_178 = arith.constant 3 : index
    %c0_179 = arith.constant 0 : index
    %c0_180 = arith.constant 0 : index
    %214 = vector.load %arg11[%c3_178, %c0_179, %c0_180] : memref<6x8x1xf32, #tpu.memory_space<vmem>>, vector<1x8x1xf32>
    %215 = vector.shape_cast %214 : vector<1x8x1xf32> to vector<8x1xf32>
    %216 = vector.broadcast %215 : vector<8x1xf32> to vector<8x1024xf32>
    %217 = arith.mulf %213, %216 : vector<8x1024xf32>
    %c3_181 = arith.constant 3 : index
    %c0_182 = arith.constant 0 : index
    %c0_183 = arith.constant 0 : index
    %218 = vector.load %arg12[%c3_181, %c0_182, %c0_183] : memref<6x8x1xf32, #tpu.memory_space<vmem>>, vector<1x8x1xf32>
    %219 = vector.shape_cast %218 : vector<1x8x1xf32> to vector<8x1xf32>
    %220 = vector.broadcast %219 : vector<8x1xf32> to vector<8x1024xf32>
    %221 = arith.addf %217, %220 : vector<8x1024xf32>
    %222 = arith.addf %221, %95 : vector<8x1024xf32>
    %cst_184 = arith.constant 0.000000e+00 : f32
    %223 = vector.broadcast %cst_184 : f32 to vector<8x1024xf32>
    %224 = arith.maximumf %222, %223 : vector<8x1024xf32>
    %c0_185 = arith.constant 0 : index
    %c0_186 = arith.constant 0 : index
    %c0_187 = arith.constant 0 : index
    %225 = vector.load %arg4[%c0_185, %c0_186, %c0_187] : memref<4x1x1024xf32, #tpu.memory_space<vmem>>, vector<1x1x1024xf32>
    %226 = vector.shape_cast %225 : vector<1x1x1024xf32> to vector<1x1024xf32>
    %cst_188 = arith.constant 0.000000e+00 : f32
    %227 = vector.broadcast %cst_188 : f32 to vector<1x1024xf32>
    %228 = arith.cmpf ogt, %226, %227 : vector<1x1024xf32>
    %c1023_i32_189 = arith.constant 1023 : i32
    %229 = tpu.dynamic_rotate %224 by %c1023_i32_189 dim 1 : vector<8x1024xf32>, i32 -> vector<8x1024xf32>
    %c15_i32_190 = arith.constant 15 : i32
    %230 = tpu.dynamic_rotate %224 by %c15_i32_190 dim 1 : vector<8x1024xf32>, i32 -> vector<8x1024xf32>
    %231 = vector.shape_cast %228 : vector<1x1024xi1> to vector<1x1024xi1>
    %232 = vector.broadcast %231 : vector<1x1024xi1> to vector<8x1024xi1>
    %233 = arith.select %232, %229, %230 : vector<8x1024xi1>, vector<8x1024xf32>
    %234 = arith.addf %224, %233 : vector<8x1024xf32>
    %c1_191 = arith.constant 1 : index
    %c0_192 = arith.constant 0 : index
    %c0_193 = arith.constant 0 : index
    %235 = vector.load %arg4[%c1_191, %c0_192, %c0_193] : memref<4x1x1024xf32, #tpu.memory_space<vmem>>, vector<1x1x1024xf32>
    %236 = vector.shape_cast %235 : vector<1x1x1024xf32> to vector<1x1024xf32>
    %cst_194 = arith.constant 0.000000e+00 : f32
    %237 = vector.broadcast %cst_194 : f32 to vector<1x1024xf32>
    %238 = arith.cmpf ogt, %236, %237 : vector<1x1024xf32>
    %c1022_i32 = arith.constant 1022 : i32
    %239 = tpu.dynamic_rotate %234 by %c1022_i32 dim 1 : vector<8x1024xf32>, i32 -> vector<8x1024xf32>
    %c14_i32 = arith.constant 14 : i32
    %240 = tpu.dynamic_rotate %234 by %c14_i32 dim 1 : vector<8x1024xf32>, i32 -> vector<8x1024xf32>
    %241 = vector.shape_cast %238 : vector<1x1024xi1> to vector<1x1024xi1>
    %242 = vector.broadcast %241 : vector<1x1024xi1> to vector<8x1024xi1>
    %243 = arith.select %242, %239, %240 : vector<8x1024xi1>, vector<8x1024xf32>
    %244 = arith.addf %234, %243 : vector<8x1024xf32>
    %c2_195 = arith.constant 2 : index
    %c0_196 = arith.constant 0 : index
    %c0_197 = arith.constant 0 : index
    %245 = vector.load %arg4[%c2_195, %c0_196, %c0_197] : memref<4x1x1024xf32, #tpu.memory_space<vmem>>, vector<1x1x1024xf32>
    %246 = vector.shape_cast %245 : vector<1x1x1024xf32> to vector<1x1024xf32>
    %cst_198 = arith.constant 0.000000e+00 : f32
    %247 = vector.broadcast %cst_198 : f32 to vector<1x1024xf32>
    %248 = arith.cmpf ogt, %246, %247 : vector<1x1024xf32>
    %c1020_i32 = arith.constant 1020 : i32
    %249 = tpu.dynamic_rotate %244 by %c1020_i32 dim 1 : vector<8x1024xf32>, i32 -> vector<8x1024xf32>
    %c12_i32 = arith.constant 12 : i32
    %250 = tpu.dynamic_rotate %244 by %c12_i32 dim 1 : vector<8x1024xf32>, i32 -> vector<8x1024xf32>
    %251 = vector.shape_cast %248 : vector<1x1024xi1> to vector<1x1024xi1>
    %252 = vector.broadcast %251 : vector<1x1024xi1> to vector<8x1024xi1>
    %253 = arith.select %252, %249, %250 : vector<8x1024xi1>, vector<8x1024xf32>
    %254 = arith.addf %244, %253 : vector<8x1024xf32>
    %c3_199 = arith.constant 3 : index
    %c0_200 = arith.constant 0 : index
    %c0_201 = arith.constant 0 : index
    %255 = vector.load %arg4[%c3_199, %c0_200, %c0_201] : memref<4x1x1024xf32, #tpu.memory_space<vmem>>, vector<1x1x1024xf32>
    %256 = vector.shape_cast %255 : vector<1x1x1024xf32> to vector<1x1024xf32>
    %cst_202 = arith.constant 0.000000e+00 : f32
    %257 = vector.broadcast %cst_202 : f32 to vector<1x1024xf32>
    %258 = arith.cmpf ogt, %256, %257 : vector<1x1024xf32>
    %c1016_i32 = arith.constant 1016 : i32
    %259 = tpu.dynamic_rotate %254 by %c1016_i32 dim 1 : vector<8x1024xf32>, i32 -> vector<8x1024xf32>
    %c8_i32 = arith.constant 8 : i32
    %260 = tpu.dynamic_rotate %254 by %c8_i32 dim 1 : vector<8x1024xf32>, i32 -> vector<8x1024xf32>
    %261 = vector.shape_cast %258 : vector<1x1024xi1> to vector<1x1024xi1>
    %262 = vector.broadcast %261 : vector<1x1024xi1> to vector<8x1024xi1>
    %263 = arith.select %262, %259, %260 : vector<8x1024xi1>, vector<8x1024xf32>
    %264 = arith.addf %254, %263 : vector<8x1024xf32>
    %cst_203 = arith.constant 6.250000e-02 : f32
    %265 = vector.broadcast %cst_203 : f32 to vector<8x1024xf32>
    %266 = arith.mulf %264, %265 : vector<8x1024xf32>
    %c0_204 = arith.constant 0 : index
    %c0_205 = arith.constant 0 : index
    %c0_206 = arith.constant 0 : index
    %267 = vector.load %arg5[%c0_204, %c0_205, %c0_206] : memref<4x1x1024xf32, #tpu.memory_space<vmem>>, vector<1x1x1024xf32>
    %268 = vector.shape_cast %267 : vector<1x1x1024xf32> to vector<1x1024xf32>
    %cst_207 = arith.constant 0.000000e+00 : f32
    %269 = vector.broadcast %cst_207 : f32 to vector<1x1024xf32>
    %270 = arith.cmpf ogt, %268, %269 : vector<1x1024xf32>
    %c1008_i32_208 = arith.constant 1008 : i32
    %271 = tpu.dynamic_rotate %224 by %c1008_i32_208 dim 1 : vector<8x1024xf32>, i32 -> vector<8x1024xf32>
    %c240_i32 = arith.constant 240 : i32
    %272 = tpu.dynamic_rotate %224 by %c240_i32 dim 1 : vector<8x1024xf32>, i32 -> vector<8x1024xf32>
    %273 = vector.shape_cast %270 : vector<1x1024xi1> to vector<1x1024xi1>
    %274 = vector.broadcast %273 : vector<1x1024xi1> to vector<8x1024xi1>
    %275 = arith.select %274, %271, %272 : vector<8x1024xi1>, vector<8x1024xf32>
    %276 = arith.addf %224, %275 : vector<8x1024xf32>
    %c1_209 = arith.constant 1 : index
    %c0_210 = arith.constant 0 : index
    %c0_211 = arith.constant 0 : index
    %277 = vector.load %arg5[%c1_209, %c0_210, %c0_211] : memref<4x1x1024xf32, #tpu.memory_space<vmem>>, vector<1x1x1024xf32>
    %278 = vector.shape_cast %277 : vector<1x1x1024xf32> to vector<1x1024xf32>
    %cst_212 = arith.constant 0.000000e+00 : f32
    %279 = vector.broadcast %cst_212 : f32 to vector<1x1024xf32>
    %280 = arith.cmpf ogt, %278, %279 : vector<1x1024xf32>
    %c992_i32 = arith.constant 992 : i32
    %281 = tpu.dynamic_rotate %276 by %c992_i32 dim 1 : vector<8x1024xf32>, i32 -> vector<8x1024xf32>
    %c224_i32 = arith.constant 224 : i32
    %282 = tpu.dynamic_rotate %276 by %c224_i32 dim 1 : vector<8x1024xf32>, i32 -> vector<8x1024xf32>
    %283 = vector.shape_cast %280 : vector<1x1024xi1> to vector<1x1024xi1>
    %284 = vector.broadcast %283 : vector<1x1024xi1> to vector<8x1024xi1>
    %285 = arith.select %284, %281, %282 : vector<8x1024xi1>, vector<8x1024xf32>
    %286 = arith.addf %276, %285 : vector<8x1024xf32>
    %c2_213 = arith.constant 2 : index
    %c0_214 = arith.constant 0 : index
    %c0_215 = arith.constant 0 : index
    %287 = vector.load %arg5[%c2_213, %c0_214, %c0_215] : memref<4x1x1024xf32, #tpu.memory_space<vmem>>, vector<1x1x1024xf32>
    %288 = vector.shape_cast %287 : vector<1x1x1024xf32> to vector<1x1024xf32>
    %cst_216 = arith.constant 0.000000e+00 : f32
    %289 = vector.broadcast %cst_216 : f32 to vector<1x1024xf32>
    %290 = arith.cmpf ogt, %288, %289 : vector<1x1024xf32>
    %c960_i32 = arith.constant 960 : i32
    %291 = tpu.dynamic_rotate %286 by %c960_i32 dim 1 : vector<8x1024xf32>, i32 -> vector<8x1024xf32>
    %c192_i32 = arith.constant 192 : i32
    %292 = tpu.dynamic_rotate %286 by %c192_i32 dim 1 : vector<8x1024xf32>, i32 -> vector<8x1024xf32>
    %293 = vector.shape_cast %290 : vector<1x1024xi1> to vector<1x1024xi1>
    %294 = vector.broadcast %293 : vector<1x1024xi1> to vector<8x1024xi1>
    %295 = arith.select %294, %291, %292 : vector<8x1024xi1>, vector<8x1024xf32>
    %296 = arith.addf %286, %295 : vector<8x1024xf32>
    %c3_217 = arith.constant 3 : index
    %c0_218 = arith.constant 0 : index
    %c0_219 = arith.constant 0 : index
    %297 = vector.load %arg5[%c3_217, %c0_218, %c0_219] : memref<4x1x1024xf32, #tpu.memory_space<vmem>>, vector<1x1x1024xf32>
    %298 = vector.shape_cast %297 : vector<1x1x1024xf32> to vector<1x1024xf32>
    %cst_220 = arith.constant 0.000000e+00 : f32
    %299 = vector.broadcast %cst_220 : f32 to vector<1x1024xf32>
    %300 = arith.cmpf ogt, %298, %299 : vector<1x1024xf32>
    %c896_i32 = arith.constant 896 : i32
    %301 = tpu.dynamic_rotate %296 by %c896_i32 dim 1 : vector<8x1024xf32>, i32 -> vector<8x1024xf32>
    %c128_i32 = arith.constant 128 : i32
    %302 = tpu.dynamic_rotate %296 by %c128_i32 dim 1 : vector<8x1024xf32>, i32 -> vector<8x1024xf32>
    %303 = vector.shape_cast %300 : vector<1x1024xi1> to vector<1x1024xi1>
    %304 = vector.broadcast %303 : vector<1x1024xi1> to vector<8x1024xi1>
    %305 = arith.select %304, %301, %302 : vector<8x1024xi1>, vector<8x1024xf32>
    %306 = arith.addf %296, %305 : vector<8x1024xf32>
    %cst_221 = arith.constant 6.250000e-02 : f32
    %307 = vector.broadcast %cst_221 : f32 to vector<8x1024xf32>
    %308 = arith.mulf %306, %307 : vector<8x1024xf32>
    %309 = arith.addf %266, %308 : vector<8x1024xf32>
    %c3_222 = arith.constant 3 : index
    %c0_223 = arith.constant 0 : index
    %c0_224 = arith.constant 0 : index
    %310 = vector.load %arg9[%c3_222, %c0_223, %c0_224] : memref<6x8x8xf32, #tpu.memory_space<vmem>>, vector<1x8x8xf32>
    %311 = vector.shape_cast %310 : vector<1x8x8xf32> to vector<8x8xf32>
    %c3_225 = arith.constant 3 : index
    %c0_226 = arith.constant 0 : index
    %c0_227 = arith.constant 0 : index
    %312 = vector.load %arg10[%c3_225, %c0_226, %c0_227] : memref<6x8x1xf32, #tpu.memory_space<vmem>>, vector<1x8x1xf32>
    %313 = vector.shape_cast %312 : vector<1x8x1xf32> to vector<8x1xf32>
    %cst_228 = arith.constant dense<0.000000e+00> : vector<8x1024xf32>
    %314 = tpu.matmul %311, %309, %cst_228 {dimension_numbers = #tpu.dot_dimension_numbers<[1], [0], [0], [1], [0, 0, 1, 1], [], []>} : vector<8x8xf32>, vector<8x1024xf32>, vector<8x1024xf32> -> vector<8x1024xf32>
    %315 = vector.broadcast %313 : vector<8x1xf32> to vector<8x1024xf32>
    %316 = arith.addf %314, %315 : vector<8x1024xf32>
    %cst_229 = arith.constant 0.000000e+00 : f32
    %317 = vector.broadcast %cst_229 : f32 to vector<8x1024xf32>
    %318 = arith.subf %317, %316 : vector<8x1024xf32>
    %319 = math.exp %318 : vector<8x1024xf32>
    %cst_230 = arith.constant 1.000000e+00 : f32
    %320 = vector.broadcast %cst_230 : f32 to vector<8x1024xf32>
    %321 = arith.addf %320, %319 : vector<8x1024xf32>
    %322 = tpu.reciprocal %321 {approx = true} : vector<8x1024xf32> -> vector<8x1024xf32>
    %323 = arith.mulf %224, %322 : vector<8x1024xf32>
    %c3_231 = arith.constant 3 : index
    %c4_232 = arith.constant 4 : index
    %c0_233 = arith.constant 0 : index
    %c0_234 = arith.constant 0 : index
    %324 = vector.load %arg3[%c3_231, %c4_232, %c0_233, %c0_234] : memref<5x9x8x1024xf32, #tpu.memory_space<vmem>>, vector<1x1x8x1024xf32>
    %325 = vector.shape_cast %324 : vector<1x1x8x1024xf32> to vector<8x1024xf32>
    %326 = arith.mulf %325, %323 : vector<8x1024xf32>
    %c3_235 = arith.constant 3 : index
    %c0_236 = arith.constant 0 : index
    %c0_237 = arith.constant 0 : index
    %c0_238 = arith.constant 0 : index
    %327 = vector.load %arg3[%c3_235, %c0_236, %c0_237, %c0_238] : memref<5x9x8x1024xf32, #tpu.memory_space<vmem>>, vector<1x1x8x1024xf32>
    %328 = vector.shape_cast %327 : vector<1x1x8x1024xf32> to vector<8x1024xf32>
    %c17_i32_239 = arith.constant 17 : i32
    %329 = tpu.dynamic_rotate %323 by %c17_i32_239 dim 1 : vector<8x1024xf32>, i32 -> vector<8x1024xf32>
    %330 = arith.mulf %328, %329 : vector<8x1024xf32>
    %c3_240 = arith.constant 3 : index
    %c1_241 = arith.constant 1 : index
    %c0_242 = arith.constant 0 : index
    %c0_243 = arith.constant 0 : index
    %331 = vector.load %arg3[%c3_240, %c1_241, %c0_242, %c0_243] : memref<5x9x8x1024xf32, #tpu.memory_space<vmem>>, vector<1x1x8x1024xf32>
    %332 = vector.shape_cast %331 : vector<1x1x8x1024xf32> to vector<8x1024xf32>
    %c16_i32_244 = arith.constant 16 : i32
    %333 = tpu.dynamic_rotate %323 by %c16_i32_244 dim 1 : vector<8x1024xf32>, i32 -> vector<8x1024xf32>
    %334 = arith.mulf %332, %333 : vector<8x1024xf32>
    %c3_245 = arith.constant 3 : index
    %c2_246 = arith.constant 2 : index
    %c0_247 = arith.constant 0 : index
    %c0_248 = arith.constant 0 : index
    %335 = vector.load %arg3[%c3_245, %c2_246, %c0_247, %c0_248] : memref<5x9x8x1024xf32, #tpu.memory_space<vmem>>, vector<1x1x8x1024xf32>
    %336 = vector.shape_cast %335 : vector<1x1x8x1024xf32> to vector<8x1024xf32>
    %c15_i32_249 = arith.constant 15 : i32
    %337 = tpu.dynamic_rotate %323 by %c15_i32_249 dim 1 : vector<8x1024xf32>, i32 -> vector<8x1024xf32>
    %338 = arith.mulf %336, %337 : vector<8x1024xf32>
    %339 = arith.addf %330, %338 : vector<8x1024xf32>
    %c3_250 = arith.constant 3 : index
    %c3_251 = arith.constant 3 : index
    %c0_252 = arith.constant 0 : index
    %c0_253 = arith.constant 0 : index
    %340 = vector.load %arg3[%c3_250, %c3_251, %c0_252, %c0_253] : memref<5x9x8x1024xf32, #tpu.memory_space<vmem>>, vector<1x1x8x1024xf32>
    %341 = vector.shape_cast %340 : vector<1x1x8x1024xf32> to vector<8x1024xf32>
    %c1_i32_254 = arith.constant 1 : i32
    %342 = tpu.dynamic_rotate %323 by %c1_i32_254 dim 1 : vector<8x1024xf32>, i32 -> vector<8x1024xf32>
    %343 = arith.mulf %341, %342 : vector<8x1024xf32>
    %344 = arith.addf %334, %343 : vector<8x1024xf32>
    %c3_255 = arith.constant 3 : index
    %c5_256 = arith.constant 5 : index
    %c0_257 = arith.constant 0 : index
    %c0_258 = arith.constant 0 : index
    %345 = vector.load %arg3[%c3_255, %c5_256, %c0_257, %c0_258] : memref<5x9x8x1024xf32, #tpu.memory_space<vmem>>, vector<1x1x8x1024xf32>
    %346 = vector.shape_cast %345 : vector<1x1x8x1024xf32> to vector<8x1024xf32>
    %c1023_i32_259 = arith.constant 1023 : i32
    %347 = tpu.dynamic_rotate %323 by %c1023_i32_259 dim 1 : vector<8x1024xf32>, i32 -> vector<8x1024xf32>
    %348 = arith.mulf %346, %347 : vector<8x1024xf32>
    %349 = arith.addf %344, %348 : vector<8x1024xf32>
    %c3_260 = arith.constant 3 : index
    %c6_261 = arith.constant 6 : index
    %c0_262 = arith.constant 0 : index
    %c0_263 = arith.constant 0 : index
    %350 = vector.load %arg3[%c3_260, %c6_261, %c0_262, %c0_263] : memref<5x9x8x1024xf32, #tpu.memory_space<vmem>>, vector<1x1x8x1024xf32>
    %351 = vector.shape_cast %350 : vector<1x1x8x1024xf32> to vector<8x1024xf32>
    %c1009_i32_264 = arith.constant 1009 : i32
    %352 = tpu.dynamic_rotate %323 by %c1009_i32_264 dim 1 : vector<8x1024xf32>, i32 -> vector<8x1024xf32>
    %353 = arith.mulf %351, %352 : vector<8x1024xf32>
    %354 = arith.addf %339, %353 : vector<8x1024xf32>
    %c3_265 = arith.constant 3 : index
    %c7_266 = arith.constant 7 : index
    %c0_267 = arith.constant 0 : index
    %c0_268 = arith.constant 0 : index
    %355 = vector.load %arg3[%c3_265, %c7_266, %c0_267, %c0_268] : memref<5x9x8x1024xf32, #tpu.memory_space<vmem>>, vector<1x1x8x1024xf32>
    %356 = vector.shape_cast %355 : vector<1x1x8x1024xf32> to vector<8x1024xf32>
    %c1008_i32_269 = arith.constant 1008 : i32
    %357 = tpu.dynamic_rotate %323 by %c1008_i32_269 dim 1 : vector<8x1024xf32>, i32 -> vector<8x1024xf32>
    %358 = arith.mulf %356, %357 : vector<8x1024xf32>
    %359 = arith.addf %349, %358 : vector<8x1024xf32>
    %c3_270 = arith.constant 3 : index
    %c8_271 = arith.constant 8 : index
    %c0_272 = arith.constant 0 : index
    %c0_273 = arith.constant 0 : index
    %360 = vector.load %arg3[%c3_270, %c8_271, %c0_272, %c0_273] : memref<5x9x8x1024xf32, #tpu.memory_space<vmem>>, vector<1x1x8x1024xf32>
    %361 = vector.shape_cast %360 : vector<1x1x8x1024xf32> to vector<8x1024xf32>
    %c1007_i32_274 = arith.constant 1007 : i32
    %362 = tpu.dynamic_rotate %323 by %c1007_i32_274 dim 1 : vector<8x1024xf32>, i32 -> vector<8x1024xf32>
    %363 = arith.mulf %361, %362 : vector<8x1024xf32>
    %364 = arith.addf %354, %363 : vector<8x1024xf32>
    %365 = arith.addf %326, %364 : vector<8x1024xf32>
    %c3_275 = arith.constant 3 : index
    %c0_276 = arith.constant 0 : index
    %c0_277 = arith.constant 0 : index
    %366 = vector.load %arg8[%c3_275, %c0_276, %c0_277] : memref<5x8x1xf32, #tpu.memory_space<vmem>>, vector<1x8x1xf32>
    %367 = vector.shape_cast %366 : vector<1x8x1xf32> to vector<8x1xf32>
    %368 = vector.broadcast %367 : vector<8x1xf32> to vector<8x1024xf32>
    %369 = arith.addf %359, %368 : vector<8x1024xf32>
    %370 = arith.addf %365, %369 : vector<8x1024xf32>
    %c4_278 = arith.constant 4 : index
    %c0_279 = arith.constant 0 : index
    %c0_280 = arith.constant 0 : index
    %371 = vector.load %arg9[%c4_278, %c0_279, %c0_280] : memref<6x8x8xf32, #tpu.memory_space<vmem>>, vector<1x8x8xf32>
    %372 = vector.shape_cast %371 : vector<1x8x8xf32> to vector<8x8xf32>
    %c4_281 = arith.constant 4 : index
    %c0_282 = arith.constant 0 : index
    %c0_283 = arith.constant 0 : index
    %373 = vector.load %arg10[%c4_281, %c0_282, %c0_283] : memref<6x8x1xf32, #tpu.memory_space<vmem>>, vector<1x8x1xf32>
    %374 = vector.shape_cast %373 : vector<1x8x1xf32> to vector<8x1xf32>
    %cst_284 = arith.constant dense<0.000000e+00> : vector<8x1024xf32>
    %375 = tpu.matmul %372, %370, %cst_284 {dimension_numbers = #tpu.dot_dimension_numbers<[1], [0], [0], [1], [0, 0, 1, 1], [], []>} : vector<8x8xf32>, vector<8x1024xf32>, vector<8x1024xf32> -> vector<8x1024xf32>
    %376 = vector.broadcast %374 : vector<8x1xf32> to vector<8x1024xf32>
    %377 = arith.addf %375, %376 : vector<8x1024xf32>
    %c4_285 = arith.constant 4 : index
    %c0_286 = arith.constant 0 : index
    %c0_287 = arith.constant 0 : index
    %378 = vector.load %arg11[%c4_285, %c0_286, %c0_287] : memref<6x8x1xf32, #tpu.memory_space<vmem>>, vector<1x8x1xf32>
    %379 = vector.shape_cast %378 : vector<1x8x1xf32> to vector<8x1xf32>
    %380 = vector.broadcast %379 : vector<8x1xf32> to vector<8x1024xf32>
    %381 = arith.mulf %377, %380 : vector<8x1024xf32>
    %c4_288 = arith.constant 4 : index
    %c0_289 = arith.constant 0 : index
    %c0_290 = arith.constant 0 : index
    %382 = vector.load %arg12[%c4_288, %c0_289, %c0_290] : memref<6x8x1xf32, #tpu.memory_space<vmem>>, vector<1x8x1xf32>
    %383 = vector.shape_cast %382 : vector<1x8x1xf32> to vector<8x1xf32>
    %384 = vector.broadcast %383 : vector<8x1xf32> to vector<8x1024xf32>
    %385 = arith.addf %381, %384 : vector<8x1024xf32>
    %cst_291 = arith.constant 0.000000e+00 : f32
    %386 = vector.broadcast %cst_291 : f32 to vector<8x1024xf32>
    %387 = arith.maximumf %385, %386 : vector<8x1024xf32>
    %c4_292 = arith.constant 4 : index
    %c4_293 = arith.constant 4 : index
    %c0_294 = arith.constant 0 : index
    %c0_295 = arith.constant 0 : index
    %388 = vector.load %arg3[%c4_292, %c4_293, %c0_294, %c0_295] : memref<5x9x8x1024xf32, #tpu.memory_space<vmem>>, vector<1x1x8x1024xf32>
    %389 = vector.shape_cast %388 : vector<1x1x8x1024xf32> to vector<8x1024xf32>
    %390 = arith.mulf %389, %387 : vector<8x1024xf32>
    %c4_296 = arith.constant 4 : index
    %c0_297 = arith.constant 0 : index
    %c0_298 = arith.constant 0 : index
    %c0_299 = arith.constant 0 : index
    %391 = vector.load %arg3[%c4_296, %c0_297, %c0_298, %c0_299] : memref<5x9x8x1024xf32, #tpu.memory_space<vmem>>, vector<1x1x8x1024xf32>
    %392 = vector.shape_cast %391 : vector<1x1x8x1024xf32> to vector<8x1024xf32>
    %c17_i32_300 = arith.constant 17 : i32
    %393 = tpu.dynamic_rotate %387 by %c17_i32_300 dim 1 : vector<8x1024xf32>, i32 -> vector<8x1024xf32>
    %394 = arith.mulf %392, %393 : vector<8x1024xf32>
    %c4_301 = arith.constant 4 : index
    %c1_302 = arith.constant 1 : index
    %c0_303 = arith.constant 0 : index
    %c0_304 = arith.constant 0 : index
    %395 = vector.load %arg3[%c4_301, %c1_302, %c0_303, %c0_304] : memref<5x9x8x1024xf32, #tpu.memory_space<vmem>>, vector<1x1x8x1024xf32>
    %396 = vector.shape_cast %395 : vector<1x1x8x1024xf32> to vector<8x1024xf32>
    %c16_i32_305 = arith.constant 16 : i32
    %397 = tpu.dynamic_rotate %387 by %c16_i32_305 dim 1 : vector<8x1024xf32>, i32 -> vector<8x1024xf32>
    %398 = arith.mulf %396, %397 : vector<8x1024xf32>
    %c4_306 = arith.constant 4 : index
    %c2_307 = arith.constant 2 : index
    %c0_308 = arith.constant 0 : index
    %c0_309 = arith.constant 0 : index
    %399 = vector.load %arg3[%c4_306, %c2_307, %c0_308, %c0_309] : memref<5x9x8x1024xf32, #tpu.memory_space<vmem>>, vector<1x1x8x1024xf32>
    %400 = vector.shape_cast %399 : vector<1x1x8x1024xf32> to vector<8x1024xf32>
    %c15_i32_310 = arith.constant 15 : i32
    %401 = tpu.dynamic_rotate %387 by %c15_i32_310 dim 1 : vector<8x1024xf32>, i32 -> vector<8x1024xf32>
    %402 = arith.mulf %400, %401 : vector<8x1024xf32>
    %403 = arith.addf %394, %402 : vector<8x1024xf32>
    %c4_311 = arith.constant 4 : index
    %c3_312 = arith.constant 3 : index
    %c0_313 = arith.constant 0 : index
    %c0_314 = arith.constant 0 : index
    %404 = vector.load %arg3[%c4_311, %c3_312, %c0_313, %c0_314] : memref<5x9x8x1024xf32, #tpu.memory_space<vmem>>, vector<1x1x8x1024xf32>
    %405 = vector.shape_cast %404 : vector<1x1x8x1024xf32> to vector<8x1024xf32>
    %c1_i32_315 = arith.constant 1 : i32
    %406 = tpu.dynamic_rotate %387 by %c1_i32_315 dim 1 : vector<8x1024xf32>, i32 -> vector<8x1024xf32>
    %407 = arith.mulf %405, %406 : vector<8x1024xf32>
    %408 = arith.addf %398, %407 : vector<8x1024xf32>
    %c4_316 = arith.constant 4 : index
    %c5_317 = arith.constant 5 : index
    %c0_318 = arith.constant 0 : index
    %c0_319 = arith.constant 0 : index
    %409 = vector.load %arg3[%c4_316, %c5_317, %c0_318, %c0_319] : memref<5x9x8x1024xf32, #tpu.memory_space<vmem>>, vector<1x1x8x1024xf32>
    %410 = vector.shape_cast %409 : vector<1x1x8x1024xf32> to vector<8x1024xf32>
    %c1023_i32_320 = arith.constant 1023 : i32
    %411 = tpu.dynamic_rotate %387 by %c1023_i32_320 dim 1 : vector<8x1024xf32>, i32 -> vector<8x1024xf32>
    %412 = arith.mulf %410, %411 : vector<8x1024xf32>
    %413 = arith.addf %408, %412 : vector<8x1024xf32>
    %c4_321 = arith.constant 4 : index
    %c6_322 = arith.constant 6 : index
    %c0_323 = arith.constant 0 : index
    %c0_324 = arith.constant 0 : index
    %414 = vector.load %arg3[%c4_321, %c6_322, %c0_323, %c0_324] : memref<5x9x8x1024xf32, #tpu.memory_space<vmem>>, vector<1x1x8x1024xf32>
    %415 = vector.shape_cast %414 : vector<1x1x8x1024xf32> to vector<8x1024xf32>
    %c1009_i32_325 = arith.constant 1009 : i32
    %416 = tpu.dynamic_rotate %387 by %c1009_i32_325 dim 1 : vector<8x1024xf32>, i32 -> vector<8x1024xf32>
    %417 = arith.mulf %415, %416 : vector<8x1024xf32>
    %418 = arith.addf %403, %417 : vector<8x1024xf32>
    %c4_326 = arith.constant 4 : index
    %c7_327 = arith.constant 7 : index
    %c0_328 = arith.constant 0 : index
    %c0_329 = arith.constant 0 : index
    %419 = vector.load %arg3[%c4_326, %c7_327, %c0_328, %c0_329] : memref<5x9x8x1024xf32, #tpu.memory_space<vmem>>, vector<1x1x8x1024xf32>
    %420 = vector.shape_cast %419 : vector<1x1x8x1024xf32> to vector<8x1024xf32>
    %c1008_i32_330 = arith.constant 1008 : i32
    %421 = tpu.dynamic_rotate %387 by %c1008_i32_330 dim 1 : vector<8x1024xf32>, i32 -> vector<8x1024xf32>
    %422 = arith.mulf %420, %421 : vector<8x1024xf32>
    %423 = arith.addf %413, %422 : vector<8x1024xf32>
    %c4_331 = arith.constant 4 : index
    %c8_332 = arith.constant 8 : index
    %c0_333 = arith.constant 0 : index
    %c0_334 = arith.constant 0 : index
    %424 = vector.load %arg3[%c4_331, %c8_332, %c0_333, %c0_334] : memref<5x9x8x1024xf32, #tpu.memory_space<vmem>>, vector<1x1x8x1024xf32>
    %425 = vector.shape_cast %424 : vector<1x1x8x1024xf32> to vector<8x1024xf32>
    %c1007_i32_335 = arith.constant 1007 : i32
    %426 = tpu.dynamic_rotate %387 by %c1007_i32_335 dim 1 : vector<8x1024xf32>, i32 -> vector<8x1024xf32>
    %427 = arith.mulf %425, %426 : vector<8x1024xf32>
    %428 = arith.addf %418, %427 : vector<8x1024xf32>
    %429 = arith.addf %390, %428 : vector<8x1024xf32>
    %c4_336 = arith.constant 4 : index
    %c0_337 = arith.constant 0 : index
    %c0_338 = arith.constant 0 : index
    %430 = vector.load %arg8[%c4_336, %c0_337, %c0_338] : memref<5x8x1xf32, #tpu.memory_space<vmem>>, vector<1x8x1xf32>
    %431 = vector.shape_cast %430 : vector<1x8x1xf32> to vector<8x1xf32>
    %432 = vector.broadcast %431 : vector<8x1xf32> to vector<8x1024xf32>
    %433 = arith.addf %423, %432 : vector<8x1024xf32>
    %434 = arith.addf %429, %433 : vector<8x1024xf32>
    %c5_339 = arith.constant 5 : index
    %c0_340 = arith.constant 0 : index
    %c0_341 = arith.constant 0 : index
    %435 = vector.load %arg9[%c5_339, %c0_340, %c0_341] : memref<6x8x8xf32, #tpu.memory_space<vmem>>, vector<1x8x8xf32>
    %436 = vector.shape_cast %435 : vector<1x8x8xf32> to vector<8x8xf32>
    %c5_342 = arith.constant 5 : index
    %c0_343 = arith.constant 0 : index
    %c0_344 = arith.constant 0 : index
    %437 = vector.load %arg10[%c5_342, %c0_343, %c0_344] : memref<6x8x1xf32, #tpu.memory_space<vmem>>, vector<1x8x1xf32>
    %438 = vector.shape_cast %437 : vector<1x8x1xf32> to vector<8x1xf32>
    %cst_345 = arith.constant dense<0.000000e+00> : vector<8x1024xf32>
    %439 = tpu.matmul %436, %434, %cst_345 {dimension_numbers = #tpu.dot_dimension_numbers<[1], [0], [0], [1], [0, 0, 1, 1], [], []>} : vector<8x8xf32>, vector<8x1024xf32>, vector<8x1024xf32> -> vector<8x1024xf32>
    %440 = vector.broadcast %438 : vector<8x1xf32> to vector<8x1024xf32>
    %441 = arith.addf %439, %440 : vector<8x1024xf32>
    %c5_346 = arith.constant 5 : index
    %c0_347 = arith.constant 0 : index
    %c0_348 = arith.constant 0 : index
    %442 = vector.load %arg11[%c5_346, %c0_347, %c0_348] : memref<6x8x1xf32, #tpu.memory_space<vmem>>, vector<1x8x1xf32>
    %443 = vector.shape_cast %442 : vector<1x8x1xf32> to vector<8x1xf32>
    %444 = vector.broadcast %443 : vector<8x1xf32> to vector<8x1024xf32>
    %445 = arith.mulf %441, %444 : vector<8x1024xf32>
    %c5_349 = arith.constant 5 : index
    %c0_350 = arith.constant 0 : index
    %c0_351 = arith.constant 0 : index
    %446 = vector.load %arg12[%c5_349, %c0_350, %c0_351] : memref<6x8x1xf32, #tpu.memory_space<vmem>>, vector<1x8x1xf32>
    %447 = vector.shape_cast %446 : vector<1x8x1xf32> to vector<8x1xf32>
    %448 = vector.broadcast %447 : vector<8x1xf32> to vector<8x1024xf32>
    %449 = arith.addf %445, %448 : vector<8x1024xf32>
    %450 = arith.addf %449, %323 : vector<8x1024xf32>
    %cst_352 = arith.constant 0.000000e+00 : f32
    %451 = vector.broadcast %cst_352 : f32 to vector<8x1024xf32>
    %452 = arith.maximumf %450, %451 : vector<8x1024xf32>
    %453 = arith.addf %80, %452 : vector<8x1024xf32>
    %c0_353 = arith.constant 0 : index
    %c0_354 = arith.constant 0 : index
    %454 = vector.load %arg13[%c0_353, %c0_354] : memref<32x8xf32, #tpu.memory_space<vmem>>, vector<32x8xf32>
    %c0_355 = arith.constant 0 : index
    %c0_356 = arith.constant 0 : index
    %455 = vector.load %arg14[%c0_355, %c0_356] : memref<32x1xf32, #tpu.memory_space<vmem>>, vector<32x1xf32>
    %cst_357 = arith.constant dense<0.000000e+00> : vector<32x1024xf32>
    %456 = tpu.matmul %454, %453, %cst_357 {dimension_numbers = #tpu.dot_dimension_numbers<[1], [0], [0], [1], [0, 0, 1, 1], [], []>} : vector<32x8xf32>, vector<8x1024xf32>, vector<32x1024xf32> -> vector<32x1024xf32>
    %457 = vector.broadcast %455 : vector<32x1xf32> to vector<32x1024xf32>
    %458 = arith.addf %456, %457 : vector<32x1024xf32>
    %c0_358 = arith.constant 0 : index
    %c0_359 = arith.constant 0 : index
    %c0_360 = arith.constant 0 : index
    %459 = vector.load %arg15[%c0_358, %c0_359, %c0_360] : memref<1x32x1024xf32, #tpu.memory_space<vmem>>, vector<1x32x1024xf32>
    %460 = vector.shape_cast %459 : vector<1x32x1024xf32> to vector<32x1024xf32>
    %461 = vector.shape_cast %458 : vector<32x1024xf32> to vector<1x32x1024xf32>
    tpu.vector_store %arg15[%c0_358, %c0_359, %c0_360], %461 {strides = array<i32>} : memref<1x32x1024xf32, #tpu.memory_space<vmem>>, vector<1x32x1024xf32>,
    return
  }
  func.func @transform_0(%arg0: i32) -> (i32, i32, i32) {
    %c0_i32 = arith.constant 0 : i32
    %c0_i32_0 = arith.constant 0 : i32
    %c0_i32_1 = arith.constant 0 : i32
    return %arg0, %c0_i32, %c0_i32_0 : i32, i32, i32
  }
  func.func @transform_1(%arg0: i32) -> (i32, i32, i32) {
    %c0_i32 = arith.constant 0 : i32
    %c0_i32_0 = arith.constant 0 : i32
    %c0_i32_1 = arith.constant 0 : i32
    return %arg0, %c0_i32, %c0_i32_0 : i32, i32, i32
  }
  func.func @transform_2(%arg0: i32) -> (i32, i32, i32, i32) {
    %c0_i32 = arith.constant 0 : i32
    %c0_i32_0 = arith.constant 0 : i32
    %c0_i32_1 = arith.constant 0 : i32
    %c0_i32_2 = arith.constant 0 : i32
    %c0_i32_3 = arith.constant 0 : i32
    return %c0_i32, %c0_i32_0, %c0_i32_1, %c0_i32_2 : i32, i32, i32, i32
  }
  func.func @transform_3(%arg0: i32) -> (i32, i32, i32) {
    %c0_i32 = arith.constant 0 : i32
    %c0_i32_0 = arith.constant 0 : i32
    %c0_i32_1 = arith.constant 0 : i32
    %c0_i32_2 = arith.constant 0 : i32
    return %c0_i32, %c0_i32_0, %c0_i32_1 : i32, i32, i32
  }
  func.func @transform_4(%arg0: i32) -> (i32, i32, i32) {
    %c0_i32 = arith.constant 0 : i32
    %c0_i32_0 = arith.constant 0 : i32
    %c0_i32_1 = arith.constant 0 : i32
    %c0_i32_2 = arith.constant 0 : i32
    return %c0_i32, %c0_i32_0, %c0_i32_1 : i32, i32, i32
  }
  func.func @transform_5(%arg0: i32) -> (i32, i32) {
    %c0_i32 = arith.constant 0 : i32
    %c0_i32_0 = arith.constant 0 : i32
    %c0_i32_1 = arith.constant 0 : i32
    return %c0_i32, %c0_i32_0 : i32, i32
  }
  func.func @transform_6(%arg0: i32) -> (i32, i32) {
    %c0_i32 = arith.constant 0 : i32
    %c0_i32_0 = arith.constant 0 : i32
    %c0_i32_1 = arith.constant 0 : i32
    return %c0_i32, %c0_i32_0 : i32, i32
  }
  func.func @transform_7(%arg0: i32) -> (i32, i32, i32) {
    %c0_i32 = arith.constant 0 : i32
    %c0_i32_0 = arith.constant 0 : i32
    %c0_i32_1 = arith.constant 0 : i32
    %c0_i32_2 = arith.constant 0 : i32
    return %c0_i32, %c0_i32_0, %c0_i32_1 : i32, i32, i32
  }
  func.func @transform_8(%arg0: i32) -> (i32, i32, i32) {
    %c0_i32 = arith.constant 0 : i32
    %c0_i32_0 = arith.constant 0 : i32
    %c0_i32_1 = arith.constant 0 : i32
    %c0_i32_2 = arith.constant 0 : i32
    return %c0_i32, %c0_i32_0, %c0_i32_1 : i32, i32, i32
  }
  func.func @transform_9(%arg0: i32) -> (i32, i32, i32) {
    %c0_i32 = arith.constant 0 : i32
    %c0_i32_0 = arith.constant 0 : i32
    %c0_i32_1 = arith.constant 0 : i32
    %c0_i32_2 = arith.constant 0 : i32
    return %c0_i32, %c0_i32_0, %c0_i32_1 : i32, i32, i32
  }
  func.func @transform_10(%arg0: i32) -> (i32, i32, i32) {
    %c0_i32 = arith.constant 0 : i32
    %c0_i32_0 = arith.constant 0 : i32
    %c0_i32_1 = arith.constant 0 : i32
    %c0_i32_2 = arith.constant 0 : i32
    return %c0_i32, %c0_i32_0, %c0_i32_1 : i32, i32, i32
  }
  func.func @transform_11(%arg0: i32) -> (i32, i32, i32) {
    %c0_i32 = arith.constant 0 : i32
    %c0_i32_0 = arith.constant 0 : i32
    %c0_i32_1 = arith.constant 0 : i32
    %c0_i32_2 = arith.constant 0 : i32
    return %c0_i32, %c0_i32_0, %c0_i32_1 : i32, i32, i32
  }
  func.func @transform_12(%arg0: i32) -> (i32, i32) {
    %c0_i32 = arith.constant 0 : i32
    %c0_i32_0 = arith.constant 0 : i32
    %c0_i32_1 = arith.constant 0 : i32
    return %c0_i32, %c0_i32_0 : i32, i32
  }
  func.func @transform_13(%arg0: i32) -> (i32, i32) {
    %c0_i32 = arith.constant 0 : i32
    %c0_i32_0 = arith.constant 0 : i32
    %c0_i32_1 = arith.constant 0 : i32
    return %c0_i32, %c0_i32_0 : i32, i32
  }
  func.func @transform_14(%arg0: i32) -> (i32, i32, i32) {
    %c0_i32 = arith.constant 0 : i32
    %c0_i32_0 = arith.constant 0 : i32
    %c0_i32_1 = arith.constant 0 : i32
    return %arg0, %c0_i32, %c0_i32_0 : i32, i32, i32
  }
}

</mosaic_0001>

<bundles_post_ra>
// kernel: ss_block_forward.1
= control target key start
LH: loop header
LB: loop body
LE: loop exit
PB: predicated region body
PF: predicated region fallthrough
CT: control target
= control target key end

     0   :  { %s7063_s29 = smov 0   ;;  %s12171_s0 = inlined_call_operand.vmem [shape: f32[2,8,1024], index: 0, kind: input, shape index: {}]   ;;  %s12172_s1 = inlined_call_operand.vmem [shape: f32[2,8,1024], index: 1, kind: input, shape index: {}]   ;;  %s12173_s2 = inlined_call_operand.vmem [shape: f32[5,9,8,1024], index: 2, kind: input, shape index: {}]   ;;  %s12174_s3 = inlined_call_operand.vmem [shape: f32[4,1,1024], index: 3, kind: input, shape index: {}]   ;;  %s12175_s4 = inlined_call_operand.vmem [shape: f32[4,1,1024], index: 4, kind: input, shape index: {}]   ;;  %s12176_s5 = inlined_call_operand.vmem [shape: f32[8,8], index: 5, kind: input, shape index: {}]   ;;  %s12177_s6 = inlined_call_operand.vmem [shape: f32[8,1], index: 6, kind: input, shape index: {}]   ;;  %s12178_s7 = inlined_call_operand.vmem [shape: f32[5,8,1], index: 7, kind: input, shape index: {}]   ;;  %s12179_s8 = inlined_call_operand.vmem [shape: f32[6,8,8], index: 8, kind: input, shape index: {}]   ;;  %s12180_s9 = inlined_call_operand.vmem [shape: f32[6,8,1], index: 9, kind: input, shape index: {}]   ;;  %s12181_s10 = inlined_call_operand.vmem [shape: f32[6,8,1], index: 10, kind: input, shape index: {}]   ;;  %s12182_s11 = inlined_call_operand.vmem [shape: f32[6,8,1], index: 11, kind: input, shape index: {}]   ;;  %s12183_s12 = inlined_call_operand.vmem [shape: f32[32,8], index: 12, kind: input, shape index: {}]   ;;  %s12184_s13 = inlined_call_operand.vmem [shape: f32[32,1], index: 13, kind: input, shape index: {}]   ;;  %s12185_s14 = inlined_call_operand.vmem [shape: f32[2,32,1024], index: 14, kind: output, shape index: {}]  }
   0x1   :  { %12247 = sst [smem:[#allocation24_spill]] %s12171_s0 }
   0x2   :  { %12248 = sst [smem:[#allocation25_spill]] %s12172_s1 }
   0x3 LB: > { %s6428_s30 = sadd.s32 4294967295, %s6968_s29   ;;  %p6432_p0 = scmp.ge.s32.totalorder %s6968_s29, 1  ;;  %s6968_s29 = sphi %s7063_s29, %s24_s29  }
   0x4   : > { %p422_p1 = scmp.lt.s32.totalorder %s6968_s29, 3 }
   0x6   : > { %p423_p2 = pnand %p6432_p0, %p422_p1 }
   0x8   : > { %426 = sbr.rel (%p423_p2) target bundleno = 3562 (0xdea), region = 76 }
   0xf   : > { %p473_p3 = scmp.lt.s32.totalorder %s6428_s30, 1  ;;  %v497_v0 = vld [vmem:[%s12177_s6] sm:$0xff]  ;;  %v12195_v1 = vmov 0.0   ;;  %v12192_v3 = vmov 0   ;;  %s12249_s0 = sld [smem:[#allocation24_spill]]  ;;  %vm503_vm0 = vcmask 64512  }
  0x10   : > { %571 = vmatprep.mubr.f32.mxu0 %v12195_v1  ;;  %642 = vmatprep.mubr.f32.mxu1 %v12195_v1  ;;  %v805_v2 = vld [vmem:[%s12182_s11] sm:$0xff]  ;;  %s12226_s15 = smov 127   ;;  %s12233_s16 = smov 17  }
  0x11   : > { %s12431_s30 = smov (!%p473_p3, %s6428_s30), 1  ;;  %6896 = vset.pattern.permute.xlu0 %v12192_v3  ;;  %6897 = vset.pattern.permute.xlu1 %v12192_v3  ;;  %v496_v4 = vld [vmem:[%s12176_s5] sm:$0xff]  ;;  %s12186_s17 = smov 113  }
  0x12   : > { %500 = vperm.xlu0 %6896, %v497_v0   ;;  %808 = vperm.xlu1 %6897, %v805_v2   ;;  %s6867_s19 = sshll.u32 %s12431_s30, 6  ;;  %v791_v13 = vld [vmem:[%s12181_s10] sm:$0xff]  ;;  %s12224_s18 = smov 16  }
  0x13   : > { %v1237_v14 = vld [vmem:[%s12178_s7] sm:$0xff]  ;;  %s12201_s20 = smov 112   ;;  %s12199_s21 = smov 15  }
  0x14   : > { %s12190_s23 = smov 111   ;;  %v1260_v2 = vld [vmem:[%s12180_s9] sm:$0xff]  ;;  %s12255_s1 = sld [smem:[#allocation25_spill]] }
  0x15   : > { %s477_s22 = scalar_lea.vmem %s12249_s0, %s6867_s19  ;;  %s12267_s26 = smov 113  }
  0x16   : > { %v489_v5 = vld [vmem:[%s477_s22 + $0x8] sm:$0xff]  ;;  %v491_v6 = vld [vmem:[%s477_s22 + $0x18] sm:$0xff]  ;;  %v488_v7 = vld [vmem:[%s477_s22] sm:$0xff]  ;;  %794 = vperm.xlu0 %6896, %v791_v13   ;;  %1240 = vperm.xlu1 %6897, %v1237_v14   ;;  %s12268_s27 = smov 111   ;;  %s6980_s0 = smov 126  }
  0x17   : > { %507 = vmatprep.subr.mxu0 %v489_v5  ;;  %578 = vmatprep.subr.mxu1 %v491_v6  ;;  %v490_v8 = vld [vmem:[%s477_s22 + $0x10] sm:$0xff]  ;;  %v493_v9 = vld [vmem:[%s477_s22 + $0x28] sm:$0xff]  ;;  %v495_v10 = vld [vmem:[%s477_s22 + $0x38] sm:$0xff]  ;;  %s6869_s24 = sshll.u32 %s12431_s30, 8 }
  0x18   : > { %508 = vmatpush1.msra.mxu0 %v488_v7  ;;  %579 = vmatpush1.msra.mxu1 %v490_v8  ;;  %v492_v11 = vld [vmem:[%s477_s22 + $0x20] sm:$0xff]  ;;  %v494_v12 = vld [vmem:[%s477_s22 + $0x30] sm:$0xff]  ;;  %s12188_s22 = smov 1   ;;  %v6512_v7 = vld [vmem:[%s12182_s11 + $0x8] sm:$0xff] }
  0x19   : > { %6439 = vmatmul.mubr.msk.f32.vlgmr.msra.gmra.mrb[0].mxu0 %vm503_vm0, %v496_v4  ;;  %6440 = vmatmul.mubr.msk.f32.vlgmr.msra.gmra.mrb[0].mxu1 %vm503_vm0, %v496_v4  ;;  %v6585_v8 = vld [vmem:[%s12178_s7 + $0x8] sm:$0xff] }
  0x1a   : > { %649 = vmatprep.subr.mxu0 %v493_v9  ;;  %720 = vmatprep.subr.mxu1 %v495_v10  ;;  %s7898_s25 = scalar_lea.vmem %s12255_s1, %s6867_s19  ;;  %s12266_s19 = smov 1  }
  0x1b   : > { %650 = vmatpush1.msra.mxu0 %v492_v11  ;;  %713 = vmatprep.mubr.f32.mxu0 %v12195_v1 }
  0x1c   : > { %721 = vmatpush1.msra.mxu1 %v494_v12  ;;  %784 = vmatprep.mubr.f32.mxu1 %v12195_v1 }
  0x1d   : > { %6441 = vmatmul.mubr.msk.f32.vlgmr.msra.gmra.mrb[2].mxu0 %vm503_vm0, %v496_v4  ;;  %6442 = vmatmul.mubr.msk.f32.vlgmr.msra.gmra.mrb[2].mxu1 %vm503_vm0, %v496_v4  ;;  %v6511_v4 = vld [vmem:[%s12181_s10 + $0x8] sm:$0xff] }
  0x1e   : > { %1404 = vmatprep.mubr.f32.mxu1 %v12195_v1  ;;  %1333 = vmatprep.mubr.f32.mxu0 %v12195_v1  ;;  %v6494_v1 = vld [vmem:[%s12173_s2 + $0x1d8] sm:$0xff] }
  0x91   : > { %v7106_v15 = vpop.permute.xlu0 %500  ;;  %v7112_v23 = vpop.permute.xlu1 %808 }
  0x95   : > { %v7110_v22 = vpop.permute.xlu0 %794  ;;  %v7270_v58 = vpop.permute.xlu1 %1240 }
  0xec   : > { %v573_v16 = vpop.f32.mrb[0].mxu0  ;;  %v644_v17 = vpop.f32.mrb[0].mxu1 }
  0xed   : > { %v574_v18 = vadd.f32 %v573_v16, %v7106_v15  ;;  %v645_v19 = vadd.f32 %v644_v17, %v7106_v15  ;;  %v575_v20 = vpop.f32.mrb[1].mxu0  ;;  %v646_v21 = vpop.f32.mrb[1].mxu1 }
  0xee   : > { %v576_v34 = vadd.f32 %v575_v20, %v7106_v15  ;;  %v647_v36 = vadd.f32 %v646_v21, %v7106_v15  ;;  %v12194_v21 = vlaneseq }
  0xef   : > { %v797_v24 = vmul.f32 %v7110_v22, %v574_v18  ;;  %v799_v25 = vmul.f32 %v7110_v22, %v645_v19 }
  0xf0   : > { %v715_v26 = vpop.f32.mrb[2].mxu0  ;;  %v786_v27 = vpop.f32.mrb[2].mxu1  ;;  %v798_v35 = vmul.f32 %v7110_v22, %v576_v34  ;;  %v800_v38 = vmul.f32 %v7110_v22, %v647_v36 }
  0xf1   : > { %v811_v28 = vadd.f32 %v7112_v23, %v797_v24  ;;  %v813_v29 = vadd.f32 %v7112_v23, %v799_v25  ;;  %v7118_v30 = vpop.f32.mrb[3].mxu0  ;;  %v7120_v31 = vpop.f32.mrb[3].mxu1  ;;  %v716_v42 = vadd.f32 %v715_v26, %v7106_v15  ;;  %v787_v44 = vadd.f32 %v786_v27, %v7106_v15  ;;  %v6468_v27 = vld [vmem:[%s12173_s2 + $0xc8] sm:$0xff] }
  0xf2   : > { %v812_v37 = vadd.f32 %v7112_v23, %v798_v35  ;;  %v814_v40 = vadd.f32 %v7112_v23, %v800_v38  ;;  %v789_v50 = vadd.f32 %v7120_v31, %v7106_v15  ;;  %v718_v52 = vadd.f32 %v7118_v30, %v7106_v15  ;;  %v6452_v31 = vld [vmem:[%s12173_s2 + $0x48] sm:$0xff] }
  0xf3   : > { %v7122_v32 = vmax.f32 %v811_v28, 0.0  ;;  %v7124_v33 = vmax.f32 %v813_v29, 0.0  ;;  %v801_v43 = vmul.f32 %v7110_v22, %v716_v42  ;;  %v803_v46 = vmul.f32 %v7110_v22, %v787_v44  ;;  %v6476_v35 = vld [vmem:[%s12173_s2 + $0x148] sm:$0xff] }
  0xf4   : > { %v7147_v39 = vmax.f32 %v812_v37, 0.0  ;;  %v7154_v41 = vmax.f32 %v814_v40, 0.0  ;;  %v804_v51 = vmul.f32 %v7110_v22, %v789_v50  ;;  %v802_v54 = vmul.f32 %v7110_v22, %v718_v52  ;;  %v6460_v38 = vld [vmem:[%s12173_s2 + $0x88] sm:$0xff] }
  0xf5   : > { %1042 = vrot.lane.b32.xlu0 %v7124_v33, %s12226_s15  ;;  %852 = vrot.lane.b32.xlu1 %v7122_v32, %s12233_s16  ;;  %v815_v45 = vadd.f32 %v7112_v23, %v801_v43  ;;  %v817_v48 = vadd.f32 %v7112_v23, %v803_v46  ;;  %v7345_v24 = vand.u32 127, %v12194_v21  ;;  %v845_v46 = vld [vmem:[%s12173_s2 + $0x8] sm:$0xff]  ;;  %v6486_v21 = vld [vmem:[%s12173_s2 + $0x198] sm:$0xff] }
  0xf6   : > { %v818_v53 = vadd.f32 %v7112_v23, %v804_v51  ;;  %v816_v56 = vadd.f32 %v7112_v23, %v802_v54  ;;  %v6492_v52 = vld [vmem:[%s12173_s2 + $0x1c8] sm:$0xff] }
  0xf7   : > { %v7205_v47 = vmax.f32 %v815_v45, 0.0  ;;  %v7212_v49 = vmax.f32 %v817_v48, 0.0  ;;  %vm1004_vm1 = vcmp.lt.s32.totalorder %v7345_v24, 1  ;;  %vm912_vm2 = vcmp.lt.s32.totalorder %v7345_v24, 16 }
  0xf8   : > { %v7245_v55 = vmax.f32 %v818_v53, 0.0  ;;  %v7256_v57 = vmax.f32 %v816_v56, 0.0  ;;  %vm1054_vm3 = vcmp.lt.s32.totalorder %v7345_v24, 127  ;;  %vm954_vm4 = vcmp.lt.s32.totalorder %v7345_v24, 15  ;;  %v6484_v56 = vld [vmem:[%s12173_s2 + $0x188] sm:$0xff] }
  0xf9   : > { %1092 = vrot.lane.b32.xlu0 %v7124_v33, %s12186_s17  ;;  %856 = vrot.lane.b32.xlu1 %v7124_v33, %s12233_s16  ;;  %vm870_vm5 = vcmp.lt.s32.totalorder %v7345_v24, 17  ;;  %vm12239_vm6 = vcmp.lt.s32.totalorder %v7345_v24, 112  ;;  %vm1104_vm7 = vcmp.lt.s32.totalorder %v7345_v24, 113  ;;  %vm1204_vm8 = vcmp.lt.s32.totalorder %v7345_v24, 111 }
  0xfa   : > { %12250 = vst [vmem:[#allocation2_spill] sm:$0xff] %v7245_v55  ;;  %12251 = vst [vmem:[#allocation3_spill] sm:$0xff] %v7256_v57 }
  0xfd   : > { %1038 = vrot.lane.b32.xlu0 %v7122_v32, %s12226_s15  ;;  %896 = vrot.lane.b32.xlu1 %v7122_v32, %s12224_s18 }
 0x101   : > { %1138 = vrot.lane.b32.xlu0 %v7122_v32, %s12201_s20  ;;  %900 = vrot.lane.b32.xlu1 %v7124_v33, %s12224_s18 }
 0x105   : > { %854 = vrot.lane.b32.xlu0 %v7147_v39, %s12233_s16  ;;  %938 = vrot.lane.b32.xlu1 %v7122_v32, %s12199_s21 }
 0x109   : > { %858 = vrot.lane.b32.xlu0 %v7154_v41, %s12233_s16  ;;  %942 = vrot.lane.b32.xlu1 %v7124_v33, %s12199_s21 }
 0x10d   : > { %898 = vrot.lane.b32.xlu0 %v7147_v39, %s12224_s18  ;;  %988 = vrot.lane.b32.xlu1 %v7122_v32, %s12188_s22 }
 0x111   : > { %902 = vrot.lane.b32.xlu0 %v7154_v41, %s12224_s18  ;;  %992 = vrot.lane.b32.xlu1 %v7124_v33, %s12188_s22 }
 0x115   : > { %940 = vrot.lane.b32.xlu0 %v7147_v39, %s12199_s21  ;;  %1088 = vrot.lane.b32.xlu1 %v7122_v32, %s12186_s17 }
 0x119   : > { %944 = vrot.lane.b32.xlu0 %v7154_v41, %s12199_s21  ;;  %1142 = vrot.lane.b32.xlu1 %v7124_v33, %s12201_s20 }
 0x11d   : > { %990 = vrot.lane.b32.xlu0 %v7147_v39, %s12188_s22  ;;  %1192 = vrot.lane.b32.xlu1 %v7124_v33, %s12190_s23 }
 0x121   : > { %994 = vrot.lane.b32.xlu0 %v7154_v41, %s12188_s22  ;;  %1188 = vrot.lane.b32.xlu1 %v7122_v32, %s12190_s23 }
 0x125   : > { %1140 = vrot.lane.b32.xlu0 %v7147_v39, %s12201_s20  ;;  %1040 = vrot.lane.b32.xlu1 %v7147_v39, %s12226_s15 }
 0x129   : > { %1144 = vrot.lane.b32.xlu0 %v7154_v41, %s12201_s20  ;;  %1044 = vrot.lane.b32.xlu1 %v7154_v41, %s12226_s15 }
 0x12d   : > { %1190 = vrot.lane.b32.xlu0 %v7147_v39, %s12190_s23  ;;  %1090 = vrot.lane.b32.xlu1 %v7147_v39, %s12186_s17 }
 0x131   : > { %1194 = vrot.lane.b32.xlu0 %v7154_v41, %s12190_s23  ;;  %1094 = vrot.lane.b32.xlu1 %v7154_v41, %s12186_s17 }
 0x135   : > { %1046 = vrot.lane.b32.xlu0 %v7205_v47, %s12226_s15  ;;  %904 = vrot.lane.b32.xlu1 %v7205_v47, %s12224_s18 }
 0x139   : > { %1096 = vrot.lane.b32.xlu0 %v7205_v47, %s12186_s17  ;;  %908 = vrot.lane.b32.xlu1 %v7212_v49, %s12224_s18 }
 0x13d   : > { %860 = vrot.lane.b32.xlu0 %v7205_v47, %s12233_s16  ;;  %996 = vrot.lane.b32.xlu1 %v7205_v47, %s12188_s22 }
 0x141   : > { %864 = vrot.lane.b32.xlu0 %v7212_v49, %s12233_s16  ;;  %1000 = vrot.lane.b32.xlu1 %v7212_v49, %s12188_s22 }
 0x145   : > { %946 = vrot.lane.b32.xlu0 %v7205_v47, %s12199_s21  ;;  %1146 = vrot.lane.b32.xlu1 %v7205_v47, %s12201_s20 }
 0x149   : > { %950 = vrot.lane.b32.xlu0 %v7212_v49, %s12199_s21  ;;  %1196 = vrot.lane.b32.xlu1 %v7205_v47, %s12190_s23 }
 0x14d   : > { %1100 = vrot.lane.b32.xlu0 %v7212_v49, %s12186_s17  ;;  %1050 = vrot.lane.b32.xlu1 %v7212_v49, %s12226_s15 }
 0x151   : > { %910 = vrot.lane.b32.xlu0 %v7245_v55, %s12224_s18  ;;  %1150 = vrot.lane.b32.xlu1 %v7212_v49, %s12201_s20 }
 0x155   : > { %1002 = vrot.lane.b32.xlu0 %v7245_v55, %s12188_s22  ;;  %866 = vrot.lane.b32.xlu1 %v7245_v55, %s12233_s16 }
 0x159   : > { %906 = vrot.lane.b32.xlu0 %v7256_v57, %s12224_s18  ;;  %952 = vrot.lane.b32.xlu1 %v7245_v55, %s12199_s21 }
 0x15d   : > { %998 = vrot.lane.b32.xlu0 %v7256_v57, %s12188_s22  ;;  %862 = vrot.lane.b32.xlu1 %v7256_v57, %s12233_s16  ;;  %s12290_s22 = smov 112  }
 0x161   : > { %1048 = vrot.lane.b32.xlu0 %v7256_v57, %s12226_s15  ;;  %948 = vrot.lane.b32.xlu1 %v7256_v57, %s12199_s21 }
 0x165   : > { %1052 = vrot.lane.b32.xlu0 %v7245_v55, %s12226_s15  ;;  %1098 = vrot.lane.b32.xlu1 %v7256_v57, %s12186_s17 }
 0x167   : > { %v7276_v59 = vpop.permute.xlu0 %1042  ;;  %v7278_v60 = vpop.permute.xlu1 %852 }
 0x169   : > { %1148 = vrot.lane.b32.xlu0 %v7256_v57, %s12201_s20  ;;  %1102 = vrot.lane.b32.xlu1 %v7245_v55, %s12186_s17  ;;  %s6982_s17 = smov 96  }
 0x16b   : > { %v7284_v61 = vpop.permute.xlu0 %1092  ;;  %v7286_v62 = vpop.permute.xlu1 %856 }
 0x16d   : > { %1152 = vrot.lane.b32.xlu0 %v7245_v55, %s12201_s20  ;;  %1198 = vrot.lane.b32.xlu1 %v7256_v57, %s12190_s23 }
 0x16f   : > { %v7292_v63 = vpop.permute.xlu0 %1038  ;;  %v7294_v0 = vpop.permute.xlu1 %896 }
 0x171   : > { %1200 = vrot.lane.b32.xlu0 %v7212_v49, %s12190_s23  ;;  %1202 = vrot.lane.b32.xlu1 %v7245_v55, %s12190_s23  ;;  %s12291_s23 = smov 15  }
 0x173   : > { %v7306_v5 = vpop.permute.xlu0 %1138  ;;  %v7308_v6 = vpop.permute.xlu1 %900 }
 0x175   : > { %1263 = vperm.xlu0 %6896, %v1260_v2   ;;  %1557 = vperm.xlu1 %6897, %v6511_v4  }
 0x177   : > { %v7316_v9 = vpop.permute.xlu0 %854  ;;  %v7318_v10 = vpop.permute.xlu1 %938 }
 0x178   : > { %v877_v48 = vsel %vm870_vm5, %v7278_v60, %v7316_v9 }
 0x179   : > { %1572 = vperm.xlu0 %6896, %v6512_v7   ;;  %2164 = vperm.xlu1 %6897, %v6585_v8   ;;  %v880_v4 = vmul.f32 %v877_v48, %v845_v46 }
 0x17b   : > { %v7320_v11 = vpop.permute.xlu0 %858  ;;  %v7322_v12 = vpop.permute.xlu1 %942 }
 0x17f   : > { %v7324_v13 = vpop.permute.xlu0 %898  ;;  %v7326_v14 = vpop.permute.xlu1 %988 }
 0x180   : > { %v919_v34 = vsel %vm912_vm2, %v7294_v0, %v7324_v13 }
 0x181   : > { %v922_v44 = vmul.f32 %v6452_v31, %v919_v34 }
 0x183   : > { %v7328_v15 = vpop.permute.xlu0 %902  ;;  %v7330_v16 = vpop.permute.xlu1 %992 }
 0x187   : > { %v7332_v17 = vpop.permute.xlu0 %940  ;;  %v7334_v18 = vpop.permute.xlu1 %1088 }
 0x188   : > { %v961_v40 = vsel %vm954_vm4, %v7318_v10, %v7332_v17 }
 0x189   : > { %v964_v50 = vmul.f32 %v6460_v38, %v961_v40  ;;  %v6444_v38 = vld [vmem:[%s12173_s2 + $0x108] sm:$0xff] }
 0x18a   : > { %v837_v46 = vmul.f32 %v6444_v38, %v7147_v39  ;;  %v960_v39 = vsel %vm954_vm4, %v7332_v17, %v7322_v12 }
 0x18b   : > { %v7336_v19 = vpop.permute.xlu0 %944  ;;  %v7338_v20 = vpop.permute.xlu1 %1142  ;;  %v972_v31 = vadd.f32 %v964_v50, %v880_v4 }
 0x18f   : > { %v7340_v22 = vpop.permute.xlu0 %990  ;;  %v7342_v23 = vpop.permute.xlu1 %1192 }
 0x190   : > { %v1011_v28 = vsel %vm1004_vm1, %v7326_v14, %v7340_v22  ;;  %v1010_v17 = vsel %vm1004_vm1, %v7340_v22, %v7330_v16  ;;  %v6453_v22 = vld [vmem:[%s12173_s2 + $0x50] sm:$0xff] }
 0x191   : > { %v1014_v37 = vmul.f32 %v6468_v27, %v1011_v28  ;;  %v6500_v27 = vld [vmem:[%s12173_s2 + $0x208] sm:$0xff] }
 0x193   : > { %v7347_v25 = vpop.permute.xlu0 %994  ;;  %v7349_v26 = vpop.permute.xlu1 %1188  ;;  %v1022_v51 = vadd.f32 %v1014_v37, %v922_v44 }
 0x197   : > { %v7361_v29 = vpop.permute.xlu0 %1140  ;;  %v7363_v30 = vpop.permute.xlu1 %1040 }
 0x198   : > { %v1060_v36 = vsel %vm1054_vm3, %v7363_v30, %v7276_v59  ;;  %v1160_v53 = vsel %vm12239_vm6, %v7361_v29, %v7338_v20 }
 0x199   : > { %v1064_v45 = vmul.f32 %v6476_v35, %v1060_v36  ;;  %v1164_v34 = vmul.f32 %v6492_v52, %v1160_v53 }
 0x19b   : > { %v7388_v42 = vpop.permute.xlu0 %1144  ;;  %v7390_v43 = vpop.permute.xlu1 %1044  ;;  %v1072_v7 = vadd.f32 %v1064_v45, %v1022_v51 }
 0x19d   : > { %v1172_v45 = vadd.f32 %v1164_v34, %v1072_v7  ;;  %v6461_v7 = vld [vmem:[%s12173_s2 + $0x90] sm:$0xff] }
 0x19e   : > { %v6469_v34 = vld [vmem:[%s12173_s2 + $0xd0] sm:$0xff] }
 0x19f   : > { %v7409_v54 = vpop.permute.xlu0 %1190  ;;  %v7414_v2 = vpop.permute.xlu1 %1090  ;;  %v1244_v52 = vadd.f32 %v7270_v58, %v1172_v45 }
 0x1a0   : > { %v1110_v8 = vsel %vm1104_vm7, %v7414_v2, %v7284_v61  ;;  %v1210_v28 = vsel %vm1204_vm8, %v7409_v54, %v7342_v23 }
 0x1a1   : > { %v1114_v35 = vmul.f32 %v6484_v56, %v1110_v8  ;;  %v1214_v40 = vmul.f32 %v6500_v27, %v1210_v28  ;;  %v846_v28 = vld [vmem:[%s12173_s2 + $0x10] sm:$0xff] }
 0x1a3   : > { %v7427_v36 = vpop.permute.xlu0 %1194  ;;  %v1095_v37 = vpop.permute.xlu1 %1094  ;;  %v1122_v44 = vadd.f32 %v1114_v35, %v972_v31  ;;  %v876_v31 = vsel %vm870_vm5, %v7316_v9, %v7286_v62  ;;  %v6485_v35 = vld [vmem:[%s12173_s2 + $0x190] sm:$0xff]  ;;  %v6470_v9 = vld [vmem:[%s12173_s2 + $0xd8] sm:$0xff] }
 0x1a4   : > { %v1109_v38 = vsel %vm1104_vm7, %v7284_v61, %v1095_v37  ;;  %v881_v45 = vmul.f32 %v876_v31, %v846_v28  ;;  %v918_v61 = vsel %vm912_vm2, %v7324_v13, %v7308_v6  ;;  %v6454_v13 = vld [vmem:[%s12173_s2 + $0x58] sm:$0xff] }
 0x1a5   : > { %v1222_v48 = vadd.f32 %v1214_v40, %v1122_v44  ;;  %v965_v40 = vmul.f32 %v6461_v7, %v960_v39  ;;  %v1009_v44 = vsel %vm1004_vm1, %v7330_v16, %v7347_v25  ;;  %v1059_v16 = vsel %vm1054_vm3, %v7276_v59, %v7390_v43  ;;  %v6478_v59 = vld [vmem:[%s12173_s2 + $0x158] sm:$0xff] }
 0x1a6   : > { %v1015_v7 = vmul.f32 %v6469_v34, %v1010_v17  ;;  %v1115_v39 = vmul.f32 %v6485_v35, %v1109_v38  ;;  %v847_v31 = vld [vmem:[%s12173_s2 + $0x18] sm:$0xff]  ;;  %v1016_v34 = vmul.f32 %v6470_v9, %v1009_v44  ;;  %v923_v17 = vmul.f32 %v6453_v22, %v918_v61 }
 0x1a7   : > { %v7433_v51 = vpop.permute.xlu0 %1046  ;;  %v7435_v3 = vpop.permute.xlu1 %904  ;;  %v1230_v50 = vadd.f32 %v1222_v48, %v837_v46  ;;  %v917_v46 = vsel %vm912_vm2, %v7308_v6, %v7328_v15  ;;  %v6477_v48 = vld [vmem:[%s12173_s2 + $0x150] sm:$0xff]  ;;  %v6462_v6 = vld [vmem:[%s12173_s2 + $0x98] sm:$0xff]  ;;  %v973_v35 = vadd.f32 %v965_v40, %v881_v45  ;;  %v1209_v40 = vsel %vm1204_vm8, %v7342_v23, %v7427_v36 }
 0x1a8   : > { %v1058_v28 = vsel %vm1054_vm3, %v7390_v43, %v7433_v51  ;;  %v1065_v38 = vmul.f32 %v6477_v48, %v1059_v16  ;;  %v924_v55 = vmul.f32 %v6454_v13, %v917_v46  ;;  %v1023_v22 = vadd.f32 %v1015_v7, %v923_v17  ;;  %v6493_v16 = vld [vmem:[%s12173_s2 + $0x1d0] sm:$0xff] }
 0x1a9   : > { %v1252_v53 = vadd.f32 %v1244_v52, %v1230_v50  ;;  %v1066_v9 = vmul.f32 %v6478_v59, %v1058_v28  ;;  %v1123_v61 = vadd.f32 %v1115_v39, %v973_v35  ;;  %v1159_v23 = vsel %vm12239_vm6, %v7338_v20, %v7388_v42  ;;  %v6502_v39 = vld [vmem:[%s12173_s2 + $0x218] sm:$0xff] }
 0x1aa   : > { %v1024_v48 = vadd.f32 %v1016_v34, %v924_v55  ;;  %v1165_v34 = vmul.f32 %v6493_v16, %v1159_v23 }
 0x1ab   : > { %v7438_v56 = vpop.permute.xlu0 %1096  ;;  %v7440_v4 = vpop.permute.xlu1 %908  ;;  %1269 = vmatprep.subr.mxu0 %v1252_v53  ;;  %v959_v53 = vsel %vm954_vm4, %v7322_v12, %v7336_v19  ;;  %v875_v12 = vsel %vm870_vm5, %v7286_v62, %v7320_v11  ;;  %v6501_v62 = vld [vmem:[%s12173_s2 + $0x210] sm:$0xff] }
 0x1ac   : > { %v1108_v43 = vsel %vm1104_vm7, %v1095_v37, %v7438_v56  ;;  %v966_v57 = vmul.f32 %v6462_v6, %v959_v53  ;;  %v882_v37 = vmul.f32 %v875_v12, %v847_v31  ;;  %v1073_v53 = vadd.f32 %v1065_v38, %v1023_v22  ;;  %v6445_v12 = vld [vmem:[%s12173_s2 + $0x110] sm:$0xff] }
 0x1ad   : > { %v1116_v13 = vmul.f32 %v6486_v21, %v1108_v43  ;;  %v1215_v7 = vmul.f32 %v6501_v62, %v1209_v40  ;;  %v1074_v28 = vadd.f32 %v1066_v9, %v1024_v48  ;;  %v838_v38 = vmul.f32 %v6445_v12, %v7124_v33  ;;  %v7587_v33 = vld [vmem:[%s12179_s8] sm:$0xff] }
 0x1ae   : > { %v974_v59 = vadd.f32 %v966_v57, %v882_v37  ;;  %v6446_v57 = vld [vmem:[%s12173_s2 + $0x118] sm:$0xff]  ;;  %v1173_v35 = vadd.f32 %v1165_v34, %v1073_v53  ;;  %v844_v34 = vld [vmem:[%s12173_s2] sm:$0xff] }
 0x1af   : > { %v7449_v8 = vpop.permute.xlu0 %860  ;;  %v7451_v27 = vpop.permute.xlu1 %996  ;;  %v1223_v20 = vadd.f32 %v1215_v7, %v1123_v61  ;;  %v839_v9 = vmul.f32 %v6446_v57, %v7154_v41  ;;  %v6467_v41 = vld [vmem:[%s12173_s2 + $0xc0] sm:$0xff] }
 0x1b0   : > { %v1124_v21 = vadd.f32 %v1116_v13, %v974_v59  ;;  %v1245_v61 = vadd.f32 %v7270_v58, %v1173_v35  ;;  %v6451_v13 = vld [vmem:[%s12173_s2 + $0x40] sm:$0xff]  ;;  %v12252_v59 = vmov 0.0  }
 0x1b1   : > { %v1231_v37 = vadd.f32 %v1223_v20, %v838_v38  ;;  %v6459_v20 = vld [vmem:[%s12173_s2 + $0x80] sm:$0xff] }
 0x1b3   : > { %v7498_v50 = vpop.permute.xlu0 %864  ;;  %v7500_v52 = vpop.permute.xlu1 %1000  ;;  %v1253_v23 = vadd.f32 %v1245_v61, %v1231_v37  ;;  %v916_v61 = vsel %vm912_vm2, %v7328_v15, %v7435_v3 }
 0x1b7   : > { %v7542_v44 = vpop.permute.xlu0 %946  ;;  %v7544_v45 = vpop.permute.xlu1 %1146 }
 0x1b8   : > { %v1158_v46 = vsel %vm12239_vm6, %v7388_v42, %v7544_v45 }
 0x1b9   : > { %v1166_v6 = vmul.f32 %v6494_v1, %v1158_v46 }
 0x1bb   : > { %v7560_v55 = vpop.permute.xlu0 %950  ;;  %v7562_v31 = vpop.permute.xlu1 %1196  ;;  %v1174_v42 = vadd.f32 %v1166_v6, %v1074_v28 }
 0x1bc   : > { %v1208_v1 = vsel %vm1204_vm8, %v7427_v36, %v7562_v31 }
 0x1bd   : > { %v1216_v17 = vmul.f32 %v6502_v39, %v1208_v1  ;;  %v1246_v36 = vadd.f32 %v7270_v58, %v1174_v42  ;;  %v1061_v1 = vsel %vm1054_vm3, %v7292_v63, %v7363_v30  ;;  %v6483_v42 = vld [vmem:[%s12173_s2 + $0x180] sm:$0xff]  ;;  %v1008_v30 = vsel %vm1004_vm1, %v7347_v25, %v7451_v27 }
 0x1be   : > { %v1161_v25 = vsel %vm12239_vm6, %v7306_v5, %v7361_v29  ;;  %v6443_v29 = vld [vmem:[%s12173_s2 + $0x100] sm:$0xff] }
 0x1bf   : > { %v1224_v43 = vadd.f32 %v1216_v17, %v1124_v21  ;;  %v7575_v62 = vpop.permute.xlu0 %1100  ;;  %v7577_v40 = vpop.permute.xlu1 %1050  ;;  %v6471_v17 = vld [vmem:[%s12173_s2 + $0xe0] sm:$0xff] }
 0x1c1   : > { %v1232_v22 = vadd.f32 %v1224_v43, %v839_v9  ;;  %v6463_v43 = vld [vmem:[%s12173_s2 + $0xa0] sm:$0xff] }
 0x1c3   : > { %v911_v46 = vpop.permute.xlu0 %910  ;;  %v7582_v48 = vpop.permute.xlu1 %1150  ;;  %v1254_v16 = vadd.f32 %v1246_v36, %v1232_v22  ;;  %v1211_v36 = vsel %vm1204_vm8, %v7349_v26, %v7409_v54  ;;  %v848_v54 = vld [vmem:[%s12173_s2 + $0x20] sm:$0xff] }
 0x1c4   : > { %v920_v6 = vsel %vm912_vm2, %v911_v46, %v7294_v0 }
 0x1c5   : > { %1340 = vmatprep.subr.mxu1 %v1254_v16  ;;  %v921_v12 = vmul.f32 %v6451_v13, %v920_v6  ;;  %v6491_v16 = vld [vmem:[%s12173_s2 + $0x1c0] sm:$0xff]  ;;  %v1017_v13 = vmul.f32 %v6471_v17, %v1008_v30  ;;  %v6458_v30 = vld [vmem:[%s12173_s2 + $0x78] sm:$0xff] }
 0x1c6   : > { %1341 = vmatpush1.msra.mxu1 %v1253_v23 }
 0x1c7   : > { %v1003_v53 = vpop.permute.xlu0 %1002  ;;  %6508 = vmatmul.mubr.msk.f32.vlgmr.msra.gmra.mrb[4].mxu1 %vm503_vm0, %v7587_v33  ;;  %v867_v7 = vpop.permute.xlu1 %866 }
 0x1c8   : > { %v1012_v39 = vsel %vm1004_vm1, %v1003_v53, %v7326_v14  ;;  %1546 = vmatprep.mubr.f32.mxu1 %v12252_v59  ;;  %v878_v0 = vsel %vm870_vm5, %v867_v7, %v7278_v60  ;;  %v6475_v14 = vld [vmem:[%s12173_s2 + $0x140] sm:$0xff]  ;;  %v1111_v60 = vsel %vm1104_vm7, %v7334_v18, %v7414_v2  ;;  %v958_v2 = vsel %vm954_vm4, %v7336_v19, %v7542_v44 }
 0x1c9   : > { %v1013_v28 = vmul.f32 %v6467_v41, %v1012_v39  ;;  %v879_v9 = vmul.f32 %v878_v0, %v844_v34  ;;  %v1063_v22 = vmul.f32 %v6475_v14, %v1061_v1  ;;  %v6455_v19 = vld [vmem:[%s12173_s2 + $0x60] sm:$0xff]  ;;  %v1113_v23 = vmul.f32 %v6483_v42, %v1111_v60 }
 0x1ca   : > { %v874_v41 = vsel %vm870_vm5, %v7320_v11, %v7449_v8  ;;  %v1005_v34 = vsel %vm1004_vm1, %v7500_v52, %v1003_v53  ;;  %v925_v11 = vmul.f32 %v6455_v19, %v916_v61  ;;  %v836_v42 = vmul.f32 %v6443_v29, %v7122_v32  ;;  %v6456_v61 = vld [vmem:[%s12173_s2 + $0x68] sm:$0xff]  ;;  %v6457_v29 = vld [vmem:[%s12173_s2 + $0x70] sm:$0xff] }
 0x1cb   : > { %v907_v57 = vpop.permute.xlu0 %906  ;;  %v953_v21 = vpop.permute.xlu1 %952  ;;  %v1021_v35 = vadd.f32 %v1013_v28, %v921_v12  ;;  %v967_v28 = vmul.f32 %v6463_v43, %v958_v2  ;;  %v6474_v12 = vld [vmem:[%s12173_s2 + $0xf8] sm:$0xff]  ;;  %v1163_v60 = vmul.f32 %v6491_v16, %v1161_v25  ;;  %v883_v17 = vmul.f32 %v874_v41, %v848_v54  ;;  %v6479_v41 = vld [vmem:[%s12173_s2 + $0x160] sm:$0xff] }
 0x1cc   : > { %v962_v38 = vsel %vm954_vm4, %v953_v21, %v7318_v10  ;;  %v6499_v10 = vld [vmem:[%s12173_s2 + $0x200] sm:$0xff]  ;;  %v913_v53 = vsel %vm912_vm2, %v7440_v4, %v911_v46  ;;  %v7697_v43 = vadd.f32 %v1017_v13, %v925_v11  ;;  %v1020_v32 = vmul.f32 %v6474_v12, %v1005_v34 }
 0x1cd   : > { %v963_v37 = vmul.f32 %v6459_v20, %v962_v38  ;;  %v1071_v0 = vadd.f32 %v1063_v22, %v1021_v35  ;;  %v6447_v20 = vld [vmem:[%s12173_s2 + $0x120] sm:$0xff]  ;;  %v1213_v14 = vmul.f32 %v6499_v10, %v1211_v36  ;;  %v6466_v35 = vld [vmem:[%s12173_s2 + $0xb8] sm:$0xff]  ;;  %v955_v38 = vsel %vm954_vm4, %v7560_v55, %v953_v21  ;;  %v6472_v36 = vld [vmem:[%s12173_s2 + $0xe8] sm:$0xff] }
 0x1ce   : > { %v7700_v25 = vmul.f32 %v6447_v20, %v7205_v47  ;;  %v7702_v22 = vadd.f32 %v967_v28, %v883_v17  ;;  %v851_v10 = vld [vmem:[%s12173_s2 + $0x38] sm:$0xff]  ;;  %v871_v21 = vsel %vm870_vm5, %v7498_v50, %v867_v7  ;;  %v928_v19 = vmul.f32 %v6458_v30, %v913_v53  ;;  %v849_v28 = vld [vmem:[%s12173_s2 + $0x28] sm:$0xff] }
 0x1cf   : > { %v971_v15 = vadd.f32 %v963_v37, %v879_v9  ;;  %v999_v6 = vpop.permute.xlu0 %998  ;;  %v863_v39 = vpop.permute.xlu1 %862  ;;  %v1171_v46 = vadd.f32 %v1163_v60, %v1071_v0  ;;  %v914_v7 = vsel %vm912_vm2, %v907_v57, %v7440_v4  ;;  %v915_v16 = vsel %vm912_vm2, %v7435_v3, %v907_v57  ;;  %v6480_v4 = vld [vmem:[%s12173_s2 + $0x168] sm:$0xff] }
 0x1d0   : > { %v1007_v47 = vsel %vm1004_vm1, %v7451_v27, %v999_v6  ;;  %v6473_v27 = vld [vmem:[%s12173_s2 + $0xf0] sm:$0xff]  ;;  %v1006_v54 = vsel %vm1004_vm1, %v999_v6, %v7500_v52  ;;  %v886_v52 = vmul.f32 %v871_v21, %v851_v10  ;;  %v873_v12 = vsel %vm870_vm5, %v7449_v8, %v863_v39  ;;  %v6464_v8 = vld [vmem:[%s12173_s2 + $0xa8] sm:$0xff] }
 0x1d1   : > { %v1121_v1 = vadd.f32 %v1113_v23, %v971_v15  ;;  %v970_v23 = vmul.f32 %v6466_v35, %v955_v38  ;;  %v7746_v15 = vadd.f32 %v1020_v32, %v928_v19  ;;  %v1018_v6 = vmul.f32 %v6472_v36, %v1007_v47  ;;  %v6496_v19 = vld [vmem:[%s12173_s2 + $0x1e8] sm:$0xff] }
 0x1d2   : > { %v926_v20 = vmul.f32 %v6456_v61, %v915_v16  ;;  %v1243_v11 = vadd.f32 %v7270_v58, %v1171_v46 }
 0x1d3   : > { %v1221_v2 = vadd.f32 %v1213_v14, %v1121_v1  ;;  %v1049_v9 = vpop.permute.xlu0 %1048  ;;  %v949_v37 = vpop.permute.xlu1 %948  ;;  %v927_v14 = vmul.f32 %v6457_v29, %v914_v7  ;;  %v1019_v1 = vmul.f32 %v6473_v27, %v1006_v54  ;;  %v7767_v53 = vadd.f32 %v970_v23, %v886_v52 }
 0x1d4   : > { %v1056_v3 = vsel %vm1054_vm3, %v1049_v9, %v7577_v40  ;;  %v1057_v57 = vsel %vm1054_vm3, %v7433_v51, %v1049_v9  ;;  %v872_v51 = vsel %vm870_vm5, %v863_v39, %v7498_v50  ;;  %v957_v30 = vsel %vm954_vm4, %v7542_v44, %v949_v37  ;;  %v6465_v39 = vld [vmem:[%s12173_s2 + $0xb0] sm:$0xff]  ;;  %v6482_v44 = vld [vmem:[%s12173_s2 + $0x178] sm:$0xff] }
 0x1d5   : > { %v1229_v13 = vadd.f32 %v1221_v2, %v836_v42  ;;  %v850_v42 = vld [vmem:[%s12173_s2 + $0x30] sm:$0xff]  ;;  %v1067_v60 = vmul.f32 %v6479_v41, %v1057_v57  ;;  %v1068_v17 = vmul.f32 %v6480_v4, %v1056_v3  ;;  %v884_v50 = vmul.f32 %v873_v12, %v849_v28  ;;  %v6503_v3 = vld [vmem:[%s12173_s2 + $0x220] sm:$0xff]  ;;  %v6498_v12 = vld [vmem:[%s12173_s2 + $0x1f8] sm:$0xff] }
 0x1d6   : > { %v956_v35 = vsel %vm954_vm4, %v949_v37, %v7560_v55  ;;  %v1026_v32 = vadd.f32 %v1018_v6, %v926_v20  ;;  %v6481_v2 = vld [vmem:[%s12173_s2 + $0x170] sm:$0xff]  ;;  %v6487_v55 = vld [vmem:[%s12173_s2 + $0x1a0] sm:$0xff]  ;;  %v885_v36 = vmul.f32 %v872_v51, %v850_v42  ;;  %v968_v47 = vmul.f32 %v6464_v8, %v957_v30  ;;  %v6490_v6 = vld [vmem:[%s12173_s2 + $0x1b8] sm:$0xff] }
 0x1d7   : > { %v1053_v34 = vpop.permute.xlu0 %1052  ;;  %v1099_v0 = vpop.permute.xlu1 %1098  ;;  %v1251_v38 = vadd.f32 %v1243_v11, %v1229_v13  ;;  %v1027_v61 = vadd.f32 %v1019_v1, %v927_v14  ;;  %v1075_v29 = vadd.f32 %v1067_v60, %v7697_v43  ;;  %v969_v16 = vmul.f32 %v6465_v39, %v956_v35  ;;  %v6489_v41 = vld [vmem:[%s12173_s2 + $0x1b0] sm:$0xff]  ;;  %v6495_v13 = vld [vmem:[%s12173_s2 + $0x1e0] sm:$0xff] }
 0x1d8   : > { %v1055_v9 = vsel %vm1054_vm3, %v7577_v40, %v1053_v34  ;;  %v1062_v46 = vsel %vm1054_vm3, %v1053_v34, %v7292_v63  ;;  %v1107_v37 = vsel %vm1104_vm7, %v7438_v56, %v1099_v0  ;;  %v6488_v40 = vld [vmem:[%s12173_s2 + $0x1a8] sm:$0xff]  ;;  %v1106_v63 = vsel %vm1104_vm7, %v1099_v0, %v7575_v62  ;;  %v6497_v43 = vld [vmem:[%s12173_s2 + $0x1f0] sm:$0xff] }
 0x1d9   : > { %1270 = vmatpush1.msra.mxu0 %v1251_v38  ;;  %v1076_v7 = vadd.f32 %v1068_v17, %v1026_v32  ;;  %v1069_v23 = vmul.f32 %v6481_v2, %v1055_v9  ;;  %v1070_v27 = vmul.f32 %v6482_v44, %v1062_v46  ;;  %v1117_v54 = vmul.f32 %v6487_v55, %v1107_v37  ;;  %v6449_v9 = vld [vmem:[%s12173_s2 + $0x130] sm:$0xff]  ;;  %v6448_v55 = vld [vmem:[%s12173_s2 + $0x128] sm:$0xff] }
 0x1da   : > { %6507 = vmatmul.mubr.msk.f32.vlgmr.msra.gmra.mrb[4].mxu0 %vm503_vm0, %v7587_v33  ;;  %v1118_v57 = vmul.f32 %v6488_v40, %v1106_v63  ;;  %v976_v20 = vadd.f32 %v968_v47, %v884_v50  ;;  %v6450_v47 = vld [vmem:[%s12173_s2 + $0x138] sm:$0xff] }
 0x1db   : > { %v1149_v10 = vpop.permute.xlu0 %1148  ;;  %v1103_v21 = vpop.permute.xlu1 %1102  ;;  %1475 = vmatprep.mubr.f32.mxu0 %v12252_v59  ;;  %v1125_v60 = vadd.f32 %v1117_v54, %v7702_v22  ;;  %v1077_v50 = vadd.f32 %v1069_v23, %v1027_v61  ;;  %v6506_v22 = vld [vmem:[%s12173_s2 + $0x238] sm:$0xff] }
 0x1dc   : > { %v1156_v56 = vsel %vm12239_vm6, %v1149_v10, %v7582_v48  ;;  %v1105_v4 = vsel %vm1104_vm7, %v7575_v62, %v1103_v21  ;;  %v1157_v52 = vsel %vm12239_vm6, %v7544_v45, %v1149_v10  ;;  %v1112_v28 = vsel %vm1104_vm7, %v1103_v21, %v7334_v18 }
 0x1dd   : > { %v1168_v62 = vmul.f32 %v6496_v19, %v1156_v56  ;;  %v977_v18 = vadd.f32 %v969_v16, %v885_v36  ;;  %v1119_v11 = vmul.f32 %v6489_v41, %v1105_v4  ;;  %v1167_v17 = vmul.f32 %v6495_v13, %v1157_v52  ;;  %v12253_v16 = vld [vmem:[#allocation3_spill] sm:$0xff]  ;;  %v12254_v41 = vld [vmem:[#allocation2_spill] sm:$0xff] }
 0x1de   : > { %v1120_v8 = vmul.f32 %v6490_v6, %v1112_v28  ;;  %v1126_v39 = vadd.f32 %v1118_v57, %v976_v20  ;;  %v841_v23 = vmul.f32 %v6448_v55, %v12253_v16  ;;  %v843_v4 = vmul.f32 %v6450_v47, %v12254_v41  ;;  %v1592_v16 = vld [vmem:[%s7898_s25 + $0x8] sm:$0xff] }
 0x1df   : > { %v1153_v34 = vpop.permute.xlu0 %1152  ;;  %v1199_v0 = vpop.permute.xlu1 %1198  ;;  %v1176_v35 = vadd.f32 %v1168_v62, %v1076_v7  ;;  %v1127_v37 = vadd.f32 %v1119_v11, %v977_v18  ;;  %v1175_v40 = vadd.f32 %v1167_v17, %v1075_v29  ;;  %v1593_v18 = vld [vmem:[%s7898_s25 + $0x10] sm:$0xff] }
 0x1e0   : > { %v1155_v45 = vsel %vm12239_vm6, %v7582_v48, %v1153_v34  ;;  %v1162_v14 = vsel %vm12239_vm6, %v1153_v34, %v7306_v5  ;;  %v1207_v51 = vsel %vm1204_vm8, %v7562_v31, %v1199_v0  ;;  %v6504_v48 = vld [vmem:[%s12173_s2 + $0x228] sm:$0xff]  ;;  %v6505_v5 = vld [vmem:[%s12173_s2 + $0x230] sm:$0xff]  ;;  %v1078_v31 = vadd.f32 %v1070_v27, %v7746_v15 }
 0x1e1   : > { %v1169_v1 = vmul.f32 %v6497_v43, %v1155_v45  ;;  %v1217_v42 = vmul.f32 %v6503_v3, %v1207_v51  ;;  %v1170_v30 = vmul.f32 %v6498_v12, %v1162_v14  ;;  %v1128_v63 = vadd.f32 %v1120_v8, %v7767_v53 }
 0x1e2   : > { %v1248_v29 = vadd.f32 %v7270_v58, %v1176_v35  ;;  %v1247_v53 = vadd.f32 %v7270_v58, %v1175_v40 }
 0x1e3   : > { %v1201_v38 = vpop.permute.xlu0 %1200  ;;  %v1203_v32 = vpop.permute.xlu1 %1202  ;;  %v1225_v2 = vadd.f32 %v1217_v42, %v1125_v60  ;;  %v1177_v10 = vadd.f32 %v1169_v1, %v1077_v50  ;;  %v1178_v19 = vadd.f32 %v1170_v30, %v1078_v31  ;;  %v1594_v42 = vld [vmem:[%s7898_s25 + $0x18] sm:$0xff] }
 0x1e4   : > { %v1206_v44 = vsel %vm1204_vm8, %v1199_v0, %v1201_v38  ;;  %v1205_v46 = vsel %vm1204_vm8, %v1201_v38, %v1203_v32  ;;  %v1212_v15 = vsel %vm1204_vm8, %v1203_v32, %v7349_v26  ;;  %v842_v26 = vmul.f32 %v6449_v9, %v7212_v49 }
 0x1e5   : > { %v1218_v21 = vmul.f32 %v6504_v48, %v1206_v44  ;;  %v1219_v36 = vmul.f32 %v6505_v5, %v1205_v46  ;;  %v1220_v56 = vmul.f32 %v6506_v22, %v1212_v15  ;;  %v1233_v27 = vadd.f32 %v1225_v2, %v7700_v25 }
 0x1e6   : > { %v1249_v43 = vadd.f32 %v7270_v58, %v1177_v10  ;;  %v1250_v52 = vadd.f32 %v7270_v58, %v1178_v19 }
 0x1e7   : > { %v1226_v61 = vadd.f32 %v1218_v21, %v1126_v39  ;;  %v1227_v7 = vadd.f32 %v1219_v36, %v1127_v37  ;;  %v1228_v54 = vadd.f32 %v1220_v56, %v1128_v63  ;;  %v1255_v28 = vadd.f32 %v1247_v53, %v1233_v27 }
 0x1e9   : > { %v1235_v3 = vadd.f32 %v1227_v7, %v842_v26  ;;  %v1234_v57 = vadd.f32 %v1226_v61, %v841_v23  ;;  %v1236_v13 = vadd.f32 %v1228_v54, %v843_v4  ;;  %v1591_v61 = vld [vmem:[%s7898_s25] sm:$0xff] }
 0x1eb   : > { %v1256_v49 = vadd.f32 %v1248_v29, %v1234_v57  ;;  %v1257_v62 = vadd.f32 %v1249_v43, %v1235_v3  ;;  %v1258_v6 = vadd.f32 %v1250_v52, %v1236_v13 }
 0x1ed   : > { %1411 = vmatprep.subr.mxu0 %v1256_v49  ;;  %1482 = vmatprep.subr.mxu1 %v1258_v6 }
 0x1ee   : > { %1412 = vmatpush1.msra.mxu0 %v1255_v28  ;;  %1483 = vmatpush1.msra.mxu1 %v1257_v62 }
 0x1ef   : > { %6509 = vmatmul.mubr.msk.f32.vlgmr.msra.gmra.mrb[6].mxu0 %vm503_vm0, %v7587_v33  ;;  %6510 = vmatmul.mubr.msk.f32.vlgmr.msra.gmra.mrb[6].mxu1 %vm503_vm0, %v7587_v33 }
 0x1f0   : > { %2259 = vmatprep.mubr.f32.mxu0 %v12252_v59  ;;  %2330 = vmatprep.mubr.f32.mxu1 %v12252_v59 }
 0x1f4   : > { %v7887_v58 = vpop.permute.xlu0 %1263  ;;  %v7890_v0 = vpop.permute.xlu1 %1557 }
 0x1f8   : > { %v7901_v45 = vpop.permute.xlu0 %1572 }
 0x29a   : > { %v1406_v25 = vpop.f32.mrb[4].mxu1 }
 0x29b   : > { %v1407_v12 = vadd.f32 %v1406_v25, %v7887_v58  ;;  %v1408_v34 = vpop.f32.mrb[5].mxu1 }
 0x29c   : > { %v1409_v20 = vadd.f32 %v1408_v34, %v7887_v58 }
 0x29d   : > { %v1562_v33 = vmul.f32 %v7890_v0, %v1407_v12 }
 0x29e   : > { %v1563_v14 = vmul.f32 %v7890_v0, %v1409_v20 }
 0x29f   : > { %v1577_v51 = vadd.f32 %v7901_v45, %v1562_v33 }
 0x2a0   : > { %v1578_v11 = vadd.f32 %v7901_v45, %v1563_v14 }
 0x2a1   : > { %v7907_v1 = vmax.f32 %v1577_v51, 0.0 }
 0x2a2   : > { %v7910_v60 = vmax.f32 %v1578_v11, 0.0 }
 0x2a3   : > { %12256 = vst [vmem:[#allocation3_spill] sm:$0xff] %v7907_v1  ;;  %v1601_v17 = vsub.f32 %v7907_v1, %v1593_v18 }
 0x2a4   : > { %12257 = vst [vmem:[#allocation2_spill] sm:$0xff] %v7910_v60  ;;  %v1602_v8 = vsub.f32 %v7910_v60, %v1594_v42 }
 0x2a5   : > { %v1609_v30 = vand.u32 2147483647, %v1601_v17 }
 0x2a6   : > { %v1610_v48 = vand.u32 2147483647, %v1602_v8 }
 0x2a7   : > { %v1627_v5 = vrot.slane %v1609_v30, 4 }
 0x2a8   : > { %v1633_v50 = vrot.slane %v1610_v48, 4 }
 0x2a9   : > { %v1628_v31 = vmax.f32 %v1609_v30, %v1627_v5 }
 0x2aa   : > { %v1634_v39 = vmax.f32 %v1610_v48, %v1633_v50 }
 0x2ab   : > { %v1629_v35 = vrot.slane %v1628_v31, 2 }
 0x2ac   : > { %v1635_v38 = vrot.slane %v1634_v39, 2 }
 0x2ad   : > { %v1630_v22 = vmax.f32 %v1628_v31, %v1629_v35  ;;  %v1335_v9 = vpop.f32.mrb[4].mxu0 }
 0x2ae   : > { %v1636_v32 = vmax.f32 %v1634_v39, %v1635_v38  ;;  %v1336_v15 = vadd.f32 %v1335_v9, %v7887_v58  ;;  %v1337_v55 = vpop.f32.mrb[5].mxu0 }
 0x2af   : > { %v1631_v2 = vrot.slane %v1630_v22, 1  ;;  %v1338_v10 = vadd.f32 %v1337_v55, %v7887_v58 }
 0x2b0   : > { %v1637_v44 = vrot.slane %v1636_v32, 1  ;;  %v1560_v36 = vmul.f32 %v7890_v0, %v1336_v15 }
 0x2b1   : > { %v1632_v46 = vmax.f32 %v1630_v22, %v1631_v2  ;;  %v1561_v40 = vmul.f32 %v7890_v0, %v1338_v10 }
 0x2b2   : > { %v1638_v37 = vmax.f32 %v1636_v32, %v1637_v44  ;;  %v1575_v19 = vadd.f32 %v7901_v45, %v1560_v36  ;;  %v1597_v32 = vld [vmem:[%s7898_s25 + $0x30] sm:$0xff] }
 0x2b3   : > { %v1665_v21 = vsub.f32 %v1609_v30, %v1632_v46  ;;  %v1576_v26 = vadd.f32 %v7901_v45, %v1561_v40  ;;  %v1598_v46 = vld [vmem:[%s7898_s25 + $0x38] sm:$0xff] }
 0x2b4   : > { %v1666_v47 = vsub.f32 %v1610_v48, %v1638_v37  ;;  %v7921_v7 = vmax.f32 %v1575_v19, 0.0 }
 0x2b5   : > { %v1675_v63 = vmul.f32 1.442695, %v1665_v21  ;;  %v7924_v23 = vmax.f32 %v1576_v26, 0.0 }
 0x2b6   : > { %v1677_v56 = vmul.f32 1.442695, %v1666_v47  ;;  %12258 = vst [vmem:[#allocation4_spill] sm:$0xff] %v7921_v7  ;;  %v1599_v27 = vsub.f32 %v7921_v7, %v1591_v61 }
 0x2b7   : > { %6898 = vpow2.f32 %v1675_v63  ;;  %12259 = vst [vmem:[#allocation5_spill] sm:$0xff] %v7924_v23  ;;  %v1600_v54 = vsub.f32 %v7924_v23, %v1592_v16 }
 0x2b8   : > { %6900 = vpow2.f32 %v1677_v56  ;;  %v1607_v41 = vand.u32 2147483647, %v1599_v27 }
 0x2b9   : > { %v1608_v4 = vand.u32 2147483647, %v1600_v54 }
 0x2ba   : > { %v1615_v43 = vrot.slane %v1607_v41, 4 }
 0x2bb   : > { %v1621_v3 = vrot.slane %v1608_v4, 4 }
 0x2bc   : > { %v1616_v57 = vmax.f32 %v1607_v41, %v1615_v43 }
 0x2bd   : > { %v1622_v29 = vmax.f32 %v1608_v4, %v1621_v3 }
 0x2be   : > { %v1617_v13 = vrot.slane %v1616_v57, 2 }
 0x2bf   : > { %v1623_v62 = vrot.slane %v1622_v29, 2 }
 0x2c0   : > { %v1618_v25 = vmax.f32 %v1616_v57, %v1617_v13 }
 0x2c1   : > { %v6899_v53 = vpop.eup %6898  ;;  %v1624_v33 = vmax.f32 %v1622_v29, %v1623_v62 }
 0x2c2   : > { %v7928_v52 = vpop.eup %6900  ;;  %v1699_v49 = vrot.slane %v6899_v53, 4  ;;  %v1477_v6 = vpop.f32.mrb[6].mxu0  ;;  %v1619_v11 = vrot.slane %v1618_v25, 1 }
 0x2c3   : > { %v1705_v28 = vrot.slane %v7928_v52, 4  ;;  %v1548_v12 = vpop.f32.mrb[6].mxu1  ;;  %v1479_v34 = vpop.f32.mrb[7].mxu0  ;;  %v1625_v8 = vrot.slane %v1624_v33, 1  ;;  %v1478_v47 = vadd.f32 %v1477_v6, %v7887_v58 }
 0x2c4   : > { %v1700_v20 = vadd.f32 %v6899_v53, %v1699_v49  ;;  %v1549_v14 = vadd.f32 %v1548_v12, %v7887_v58  ;;  %v1550_v51 = vpop.f32.mrb[7].mxu1  ;;  %v1620_v5 = vmax.f32 %v1618_v25, %v1619_v11  ;;  %v1595_v25 = vld [vmem:[%s7898_s25 + $0x20] sm:$0xff]  ;;  %v1480_v11 = vadd.f32 %v1479_v34, %v7887_v58 }
 0x2c5   : > { %v1706_v18 = vadd.f32 %v7928_v52, %v1705_v28  ;;  %v1551_v42 = vadd.f32 %v1550_v51, %v7887_v58  ;;  %v1626_v22 = vmax.f32 %v1624_v33, %v1625_v8  ;;  %v1564_v26 = vmul.f32 %v7890_v0, %v1478_v47 }
 0x2c6   : > { %v1701_v17 = vrot.slane %v1700_v20, 2  ;;  %v1566_v30 = vmul.f32 %v7890_v0, %v1549_v14  ;;  %v1663_v38 = vsub.f32 %v1607_v41, %v1620_v5  ;;  %v1565_v5 = vmul.f32 %v7890_v0, %v1480_v11 }
 0x2c7   : > { %v1707_v48 = vrot.slane %v1706_v18, 2  ;;  %v1567_v50 = vmul.f32 %v7890_v0, %v1551_v42  ;;  %v1664_v36 = vsub.f32 %v1608_v4, %v1626_v22  ;;  %v1579_v41 = vadd.f32 %v7901_v45, %v1564_v26 }
 0x2c8   : > { %v1702_v31 = vadd.f32 %v1701_v17, %v1700_v20  ;;  %v1581_v39 = vadd.f32 %v7901_v45, %v1566_v30  ;;  %v1671_v55 = vmul.f32 1.442695, %v1663_v38 }
 0x2c9   : > { %v1708_v35 = vadd.f32 %v1707_v48, %v1706_v18  ;;  %v1582_v2 = vadd.f32 %v7901_v45, %v1567_v50  ;;  %v1673_v61 = vmul.f32 1.442695, %v1664_v36  ;;  %v7955_v62 = vmax.f32 %v1579_v41, 0.0 }
 0x2ca   : > { %v1703_v44 = vrot.slane %v1702_v31, 1  ;;  %v7939_v9 = vmax.f32 %v1581_v39, 0.0  ;;  %6902 = vpow2.f32 %v1671_v55 }
 0x2cb   : > { %v1709_v15 = vrot.slane %v1708_v35, 1  ;;  %v7942_v37 = vmax.f32 %v1582_v2, 0.0  ;;  %12262 = vst [vmem:[#allocation8_spill] sm:$0xff] %v7955_v62  ;;  %v1603_v51 = vsub.f32 %v7955_v62, %v1595_v25 }
 0x2cc   : > { %12260 = vst [vmem:[#allocation6_spill] sm:$0xff] %v7939_v9  ;;  %v1704_v10 = vadd.f32 %v1703_v44, %v1702_v31  ;;  %v1605_v21 = vsub.f32 %v7939_v9, %v1597_v32  ;;  %v1596_v44 = vld [vmem:[%s7898_s25 + $0x28] sm:$0xff]  ;;  %s6986_s25 = smov 8  }
 0x2cd   : > { %12261 = vst [vmem:[#allocation7_spill] sm:$0xff] %v7942_v37  ;;  %v1606_v40 = vsub.f32 %v7942_v37, %v1598_v46  ;;  %v1710_v63 = vadd.f32 %v1709_v15, %v1708_v35  ;;  %v1611_v30 = vand.u32 2147483647, %v1603_v51 }
 0x2ce   : > { %6904 = vrcp.f32 %v1704_v10  ;;  %v1613_v19 = vand.u32 2147483647, %v1605_v21 }
 0x2cf   : > { %v7948_v16 = vand.u32 2147483647, %v1606_v40  ;;  %6906 = vrcp.f32 %v1710_v63  ;;  %v1639_v39 = vrot.slane %v1611_v30, 4 }
 0x2d0   : > { %v1651_v56 = vrot.slane %v1613_v19, 4  ;;  %6908 = vpow2.f32 %v1673_v61 }
 0x2d1   : > { %v1657_v4 = vrot.slane %v7948_v16, 4  ;;  %v1640_v22 = vmax.f32 %v1611_v30, %v1639_v39 }
 0x2d2   : > { %v1652_v27 = vmax.f32 %v1613_v19, %v1651_v56 }
 0x2d3   : > { %v1658_v6 = vmax.f32 %v7948_v16, %v1657_v4  ;;  %v1641_v46 = vrot.slane %v1640_v22, 2 }
 0x2d4   : > { %v1653_v54 = vrot.slane %v1652_v27, 2  ;;  %v7952_v3 = vpop.eup %6902 }
 0x2d5   : > { %v1687_v29 = vrot.slane %v7952_v3, 4  ;;  %v1659_v42 = vrot.slane %v1658_v6, 2  ;;  %v1642_v36 = vmax.f32 %v1640_v22, %v1641_v46 }
 0x2d6   : > { %v1654_v43 = vmax.f32 %v1652_v27, %v1653_v54 }
 0x2d7   : > { %v1688_v28 = vadd.f32 %v7952_v3, %v1687_v29  ;;  %v1660_v50 = vmax.f32 %v1658_v6, %v1659_v42  ;;  %v1643_v61 = vrot.slane %v1642_v36, 1 }
 0x2d8   : > { %v6905_v57 = vpop.eup %6904  ;;  %v1655_v13 = vrot.slane %v1654_v43, 1 }
 0x2d9   : > { %v1745_v49 = vmul.f32 %v6905_v57, %v6899_v53  ;;  %v6907_v33 = vpop.eup %6906  ;;  %v1689_v14 = vrot.slane %v1688_v28, 2  ;;  %v1661_v35 = vrot.slane %v1660_v50, 1  ;;  %v1644_v41 = vmax.f32 %v1642_v36, %v1643_v61 }
 0x2da   : > { %v1656_v12 = vmax.f32 %v1654_v43, %v1655_v13  ;;  %v7969_v17 = vpop.eup %6908  ;;  %v1746_v8 = vmul.f32 %v6907_v33, %v7928_v52  ;;  %v1580_v52 = vadd.f32 %v7901_v45, %v1565_v5 }
 0x2db   : > { %v7961_v20 = vmul.f32 %v1745_v49, %v7907_v1  ;;  %v1690_v53 = vadd.f32 %v1689_v14, %v1688_v28  ;;  %v1693_v34 = vrot.slane %v7969_v17, 4  ;;  %v1662_v2 = vmax.f32 %v1660_v50, %v1661_v35 }
 0x2dc   : > { %v1669_v18 = vsub.f32 %v1613_v19, %v1656_v12  ;;  %v7979_v31 = vmul.f32 %v1746_v8, %v7910_v60  ;;  %v7987_v32 = vmax.f32 %v1580_v52, 0.0  ;;  %v1667_v29 = vsub.f32 %v1611_v30, %v1644_v41 }
 0x2dd   : > { %12263 = vst [vmem:[#allocation9_spill] sm:$0xff] %v7961_v20  ;;  %1969 = vrot.lane.b32.xlu0 %v7961_v20, %s12226_s15  ;;  %1789 = vrot.lane.b32.xlu1 %v7961_v20, %s12233_s16  ;;  %v1691_v58 = vrot.slane %v1690_v53, 1  ;;  %v1694_v38 = vadd.f32 %v7969_v17, %v1693_v34  ;;  %v1670_v55 = vsub.f32 %v7948_v16, %v1662_v2 }
 0x2de   : > { %v1683_v48 = vmul.f32 1.442695, %v1669_v18  ;;  %12264 = vst [vmem:[#allocation10_spill] sm:$0xff] %v7979_v31  ;;  %12265 = vst [vmem:[#allocation11_spill] sm:$0xff] %v7987_v32  ;;  %v1604_v15 = vsub.f32 %v7987_v32, %v1596_v44  ;;  %v1679_v6 = vmul.f32 1.442695, %v1667_v29 }
 0x2df   : > { %v1692_v0 = vadd.f32 %v1691_v58, %v1690_v53  ;;  %v1695_v45 = vrot.slane %v1694_v38, 2  ;;  %v1685_v40 = vmul.f32 1.442695, %v1670_v55 }
 0x2e0   : > { %6910 = vpow2.f32 %v1683_v48  ;;  %v1612_v47 = vand.u32 2147483647, %v1604_v15 }
 0x2e1   : > { %2067 = vrot.lane.b32.xlu0 %v7961_v20, %s12201_s20  ;;  %1830 = vrot.lane.b32.xlu1 %v7961_v20, %s12224_s18  ;;  %6912 = vrcp.f32 %v1692_v0  ;;  %v1696_v10 = vadd.f32 %v1695_v45, %v1694_v38 }
 0x2e2   : > { %v1645_v26 = vrot.slane %v1612_v47, 4  ;;  %6914 = vpow2.f32 %v1685_v40 }
 0x2e3   : > { %v1697_v63 = vrot.slane %v1696_v10, 1 }
 0x2e4   : > { %v1646_v4 = vmax.f32 %v1612_v47, %v1645_v26 }
 0x2e5   : > { %1791 = vrot.lane.b32.xlu0 %v7979_v31, %s12233_s16  ;;  %1871 = vrot.lane.b32.xlu1 %v7961_v20, %s12199_s21  ;;  %v1698_v16 = vadd.f32 %v1697_v63, %v1696_v10 }
 0x2e6   : > { %v1647_v13 = vrot.slane %v1646_v4, 2 }
 0x2e7   : > { %6916 = vrcp.f32 %v1698_v16 }
 0x2e8   : > { %v1648_v28 = vmax.f32 %v1646_v4, %v1647_v13  ;;  %6918 = vpow2.f32 %v1679_v6  ;;  %v6592_v6 = vld [vmem:[%s12181_s10 + $0x10] sm:$0xff] }
 0x2e9   : > { %1832 = vrot.lane.b32.xlu0 %v7979_v31, %s12224_s18  ;;  %1920 = vrot.lane.b32.xlu1 %v7961_v20, %s12266_s19 }
 0x2ea   : > { %v8000_v21 = vpop.eup %6910  ;;  %v1649_v14 = vrot.slane %v1648_v28, 1 }
 0x2eb   : > { %v1723_v19 = vrot.slane %v8000_v21, 4  ;;  %v6913_v56 = vpop.eup %6912 }
 0x2ec   : > { %v1743_v54 = vmul.f32 %v6913_v56, %v7952_v3  ;;  %v6915_v49 = vpop.eup %6914  ;;  %v1650_v42 = vmax.f32 %v1648_v28, %v1649_v14 }
 0x2ed   : > { %1873 = vrot.lane.b32.xlu0 %v7979_v31, %s12199_s21  ;;  %2018 = vrot.lane.b32.xlu1 %v7961_v20, %s12267_s26  ;;  %v1724_v27 = vadd.f32 %v8000_v21, %v1723_v19  ;;  %v1729_v12 = vrot.slane %v6915_v49, 4 }
 0x2ee   : > { %v8018_v57 = vmul.f32 %v1743_v54, %v7921_v7  ;;  %v1668_v30 = vsub.f32 %v1612_v47, %v1650_v42 }
 0x2ef   : > { %v1725_v43 = vrot.slane %v1724_v27, 2  ;;  %v1730_v18 = vadd.f32 %v6915_v49, %v1729_v12  ;;  %v6593_v12 = vld [vmem:[%s12182_s11 + $0x10] sm:$0xff] }
 0x2f0   : > { %12269 = vst [vmem:[#allocation12_spill] sm:$0xff] %v8018_v57  ;;  %v1681_v5 = vmul.f32 1.442695, %v1668_v30 }
 0x2f1   : > { %1922 = vrot.lane.b32.xlu0 %v7979_v31, %s12266_s19  ;;  %2116 = vrot.lane.b32.xlu1 %v7961_v20, %s12268_s27  ;;  %v1726_v3 = vadd.f32 %v1725_v43, %v1724_v27  ;;  %v6917_v33 = vpop.eup %6916  ;;  %v1731_v53 = vrot.slane %v1730_v18, 2  ;;  %v8114_v27 = vpop.permute.xlu1 %2164 }
 0x2f2   : > { %v1744_v11 = vmul.f32 %v6917_v33, %v7969_v17  ;;  %v6919_v48 = vpop.eup %6918  ;;  %v6666_v33 = vld [vmem:[%s12178_s7 + $0x10] sm:$0xff] }
 0x2f3   : > { %v1727_v25 = vrot.slane %v1726_v3, 1  ;;  %v1732_v17 = vadd.f32 %v1731_v53, %v1730_v18  ;;  %v1711_v50 = vrot.slane %v6919_v48, 4 }
 0x2f4   : > { %v8038_v8 = vmul.f32 %v1744_v11, %v7924_v23 }
 0x2f5   : > { %2069 = vrot.lane.b32.xlu0 %v7979_v31, %s12201_s20  ;;  %1971 = vrot.lane.b32.xlu1 %v7979_v31, %s12226_s15  ;;  %v1728_v51 = vadd.f32 %v1727_v25, %v1726_v3  ;;  %v1733_v58 = vrot.slane %v1732_v17, 1  ;;  %v1712_v39 = vadd.f32 %v6919_v48, %v1711_v50 }
 0x2f6   : > { %12270 = vst [vmem:[#allocation13_spill] sm:$0xff] %v8038_v8 }
 0x2f7   : > { %6920 = vrcp.f32 %v1728_v51  ;;  %v1734_v52 = vadd.f32 %v1733_v58, %v1732_v17  ;;  %v1713_v0 = vrot.slane %v1712_v39, 2 }
 0x2f8   : > { %6922 = vpow2.f32 %v1681_v5 }
 0x2f9   : > { %2118 = vrot.lane.b32.xlu0 %v7979_v31, %s12268_s27  ;;  %2020 = vrot.lane.b32.xlu1 %v7979_v31, %s12267_s26  ;;  %6924 = vrcp.f32 %v1734_v52  ;;  %v1714_v22 = vadd.f32 %v1713_v0, %v1712_v39 }
 0x2fb   : > { %v1715_v45 = vrot.slane %v1714_v22, 1 }
 0x2fd   : > { %1826 = vrot.lane.b32.xlu0 %v8018_v57, %s12224_s18  ;;  %1785 = vrot.lane.b32.xlu1 %v8018_v57, %s12233_s16  ;;  %v1716_v15 = vadd.f32 %v1715_v45, %v1714_v22 }
 0x2ff   : > { %6926 = vrcp.f32 %v1716_v15  ;;  %v6538_v15 = vld [vmem:[%s12173_s2 + $0x2c8] sm:$0xff] }
 0x301   : > { %1916 = vrot.lane.b32.xlu0 %v8018_v57, %s12266_s19  ;;  %1867 = vrot.lane.b32.xlu1 %v8018_v57, %s12199_s21  ;;  %v6921_v34 = vpop.eup %6920 }
 0x302   : > { %v1749_v35 = vmul.f32 %v6921_v34, %v8000_v21  ;;  %v6923_v2 = vpop.eup %6922 }
 0x303   : > { %v1717_v44 = vrot.slane %v6923_v2, 4  ;;  %v6925_v46 = vpop.eup %6924 }
 0x304   : > { %v8058_v38 = vmul.f32 %v1749_v35, %v7939_v9  ;;  %v1750_v10 = vmul.f32 %v6925_v46, %v6915_v49  ;;  %v6587_v49 = vld [vmem:[%s12180_s9 + $0x8] sm:$0xff] }
 0x305   : > { %1965 = vrot.lane.b32.xlu0 %v8018_v57, %s12226_s15  ;;  %2014 = vrot.lane.b32.xlu1 %v8018_v57, %s12267_s26  ;;  %v1718_v55 = vadd.f32 %v6923_v2, %v1717_v44  ;;  %v6546_v44 = vld [vmem:[%s12173_s2 + $0x308] sm:$0xff] }
 0x306   : > { %12271 = vst [vmem:[#allocation14_spill] sm:$0xff] %v8058_v38  ;;  %v8077_v36 = vmul.f32 %v1750_v10, %v7942_v37  ;;  %v6530_v10 = vld [vmem:[%s12173_s2 + $0x288] sm:$0xff] }
 0x307   : > { %v1719_v21 = vrot.slane %v1718_v55, 2 }
 0x308   : > { %12272 = vst [vmem:[#allocation15_spill] sm:$0xff] %v8077_v36 }
 0x309   : > { %2063 = vrot.lane.b32.xlu0 %v8018_v57, %s12201_s20  ;;  %2112 = vrot.lane.b32.xlu1 %v8018_v57, %s12268_s27  ;;  %v1720_v47 = vadd.f32 %v1719_v21, %v1718_v55  ;;  %v6927_v63 = vpop.eup %6926 }
 0x30a   : > { %v1747_v56 = vmul.f32 %v6927_v63, %v6919_v48  ;;  %v6554_v63 = vld [vmem:[%s12173_s2 + $0x388] sm:$0xff] }
 0x30b   : > { %v1721_v40 = vrot.slane %v1720_v47, 1 }
 0x30c   : > { %v8096_v61 = vmul.f32 %v1747_v56, %v7955_v62 }
 0x30d   : > { %1828 = vrot.lane.b32.xlu0 %v8038_v8, %s12224_s18  ;;  %1787 = vrot.lane.b32.xlu1 %v8038_v8, %s12233_s16  ;;  %v1722_v19 = vadd.f32 %v1721_v40, %v1720_v47  ;;  %v6522_v47 = vld [vmem:[%s12173_s2 + $0x248] sm:$0xff] }
 0x30e   : > { %12273 = vst [vmem:[#allocation16_spill] sm:$0xff] %v8096_v61 }
 0x30f   : > { %6928 = vrcp.f32 %v1722_v19 }
 0x311   : > { %1918 = vrot.lane.b32.xlu0 %v8038_v8, %s12266_s19  ;;  %1869 = vrot.lane.b32.xlu1 %v8038_v8, %s12199_s21 }
 0x315   : > { %1967 = vrot.lane.b32.xlu0 %v8038_v8, %s12226_s15  ;;  %2016 = vrot.lane.b32.xlu1 %v8038_v8, %s12267_s26 }
 0x319   : > { %2065 = vrot.lane.b32.xlu0 %v8038_v8, %s12201_s20  ;;  %2114 = vrot.lane.b32.xlu1 %v8038_v8, %s12268_s27  ;;  %v6929_v26 = vpop.eup %6928 }
 0x31a   : > { %v1748_v16 = vmul.f32 %v6929_v26, %v6923_v2 }
 0x31c   : > { %v8117_v54 = vmul.f32 %v1748_v16, %v7987_v32  ;;  %v6562_v16 = vld [vmem:[%s12173_s2 + $0x3c8] sm:$0xff] }
 0x31d   : > { %1797 = vrot.lane.b32.xlu0 %v8058_v38, %s12233_s16  ;;  %1838 = vrot.lane.b32.xlu1 %v8058_v38, %s12224_s18 }
 0x31e   : > { %12274 = vst [vmem:[#allocation17_spill] sm:$0xff] %v8117_v54 }
 0x321   : > { %1879 = vrot.lane.b32.xlu0 %v8058_v38, %s12199_s21  ;;  %1928 = vrot.lane.b32.xlu1 %v8058_v38, %s12266_s19 }
 0x325   : > { %1977 = vrot.lane.b32.xlu0 %v8058_v38, %s12226_s15  ;;  %2026 = vrot.lane.b32.xlu1 %v8058_v38, %s12267_s26 }
 0x329   : > { %2075 = vrot.lane.b32.xlu0 %v8058_v38, %s12201_s20  ;;  %2124 = vrot.lane.b32.xlu1 %v8058_v38, %s12268_s27 }
 0x32d   : > { %1799 = vrot.lane.b32.xlu0 %v8077_v36, %s12233_s16  ;;  %1840 = vrot.lane.b32.xlu1 %v8077_v36, %s12224_s18 }
 0x331   : > { %1881 = vrot.lane.b32.xlu0 %v8077_v36, %s12199_s21  ;;  %1930 = vrot.lane.b32.xlu1 %v8077_v36, %s12266_s19 }
 0x335   : > { %1979 = vrot.lane.b32.xlu0 %v8077_v36, %s12226_s15  ;;  %2028 = vrot.lane.b32.xlu1 %v8077_v36, %s12267_s26 }
 0x339   : > { %2077 = vrot.lane.b32.xlu0 %v8077_v36, %s12201_s20  ;;  %2126 = vrot.lane.b32.xlu1 %v8077_v36, %s12268_s27 }
 0x33d   : > { %1973 = vrot.lane.b32.xlu0 %v8096_v61, %s12226_s15  ;;  %2071 = vrot.lane.b32.xlu1 %v8096_v61, %s12201_s20 }
 0x341   : > { %2022 = vrot.lane.b32.xlu0 %v8096_v61, %s12267_s26  ;;  %2120 = vrot.lane.b32.xlu1 %v8096_v61, %s12268_s27 }
 0x345   : > { %1793 = vrot.lane.b32.xlu0 %v8096_v61, %s12233_s16  ;;  %1834 = vrot.lane.b32.xlu1 %v8096_v61, %s12224_s18 }
 0x349   : > { %1875 = vrot.lane.b32.xlu0 %v8096_v61, %s12199_s21  ;;  %1924 = vrot.lane.b32.xlu1 %v8096_v61, %s12266_s19 }
 0x34d   : > { %1795 = vrot.lane.b32.xlu0 %v8117_v54, %s12233_s16  ;;  %1836 = vrot.lane.b32.xlu1 %v8117_v54, %s12224_s18  ;;  %s12289_s18 = smov 16  }
 0x34f   : > { %v8123_v41 = vpop.permute.xlu0 %1969  ;;  %v8125_v4 = vpop.permute.xlu1 %1789 }
 0x351   : > { %1877 = vrot.lane.b32.xlu0 %v8117_v54, %s12199_s21  ;;  %1926 = vrot.lane.b32.xlu1 %v8117_v54, %s12266_s19  ;;  %s6981_s21 = smov 14  }
 0x353   : > { %v8131_v43 = vpop.permute.xlu0 %2067  ;;  %v8133_v29 = vpop.permute.xlu1 %1830 }
 0x355   : > { %1975 = vrot.lane.b32.xlu0 %v8117_v54, %s12226_s15  ;;  %2024 = vrot.lane.b32.xlu1 %v8117_v54, %s12267_s26  ;;  %s12288_s15 = smov 127  }
 0x357   : > { %v8139_v13 = vpop.permute.xlu0 %1791  ;;  %v8141_v3 = vpop.permute.xlu1 %1871 }
 0x358   : > { %12275 = vst [vmem:[#allocation18_spill] sm:$0xff] %v8139_v13 }
 0x359   : > { %2073 = vrot.lane.b32.xlu0 %v8117_v54, %s12201_s20  ;;  %2122 = vrot.lane.b32.xlu1 %v8117_v54, %s12268_s27  ;;  %s6983_s20 = smov 124  }
 0x35b   : > { %v8153_v28 = vpop.permute.xlu0 %1832  ;;  %v8155_v25 = vpop.permute.xlu1 %1920 }
 0x35c   : > { %12276 = vst [vmem:[#allocation19_spill] sm:$0xff] %v8153_v28 }
 0x35d   : > { %2189 = vperm.xlu0 %6896, %v6587_v49   ;;  %2483 = vperm.xlu1 %6897, %v6592_v6  }
 0x35f   : > { %v8163_v14 = vpop.permute.xlu0 %1873  ;;  %v8165_v51 = vpop.permute.xlu1 %2018 }
 0x360   : > { %12277 = vst [vmem:[#allocation20_spill] sm:$0xff] %v8163_v14 }
 0x361   : > { %2498 = vperm.xlu0 %6896, %v6593_v12   ;;  %2922 = vperm.xlu1 %6897, %v6666_v33  }
 0x363   : > { %v8167_v18 = vpop.permute.xlu0 %1922  ;;  %v8169_v11 = vpop.permute.xlu1 %2116 }
 0x364   : > { %12278 = vst [vmem:[#allocation21_spill] sm:$0xff] %v8167_v18 }
 0x367   : > { %v8171_v42 = vpop.permute.xlu0 %2069  ;;  %v8173_v53 = vpop.permute.xlu1 %1971 }
 0x36b   : > { %v8175_v30 = vpop.permute.xlu0 %2118  ;;  %v8177_v17 = vpop.permute.xlu1 %2020 }
 0x36f   : > { %v8179_v48 = vpop.permute.xlu0 %1826  ;;  %v8181_v5 = vpop.permute.xlu1 %1785 }
 0x373   : > { %v8183_v50 = vpop.permute.xlu0 %1916  ;;  %v8185_v58 = vpop.permute.xlu1 %1867 }
 0x377   : > { %v8187_v34 = vpop.permute.xlu0 %1965  ;;  %v8189_v39 = vpop.permute.xlu1 %2014 }
 0x37b   : > { %v8191_v52 = vpop.permute.xlu0 %2063  ;;  %v8193_v35 = vpop.permute.xlu1 %2112 }
 0x37f   : > { %v8195_v0 = vpop.permute.xlu0 %1828  ;;  %v8197_v22 = vpop.permute.xlu1 %1787 }
 0x380   : > { %v1848_v21 = vsel %vm912_vm2, %v8179_v48, %v8195_v0  ;;  %v1807_v40 = vsel %vm870_vm5, %v8181_v5, %v8197_v22 }
 0x381   : > { %v1851_v33 = vmul.f32 %v6530_v10, %v1848_v21  ;;  %v1810_v9 = vmul.f32 %v6522_v47, %v1807_v40  ;;  %v6514_v47 = vld [vmem:[%s12173_s2 + $0x348] sm:$0xff] }
 0x383   : > { %v8199_v2 = vpop.permute.xlu0 %1918  ;;  %v8201_v45 = vpop.permute.xlu1 %1869 }
 0x384   : > { %v1938_v46 = vsel %vm1004_vm1, %v8183_v50, %v8199_v2  ;;  %v1889_v55 = vsel %vm954_vm4, %v8185_v58, %v8201_v45 }
 0x385   : > { %v1941_v19 = vmul.f32 %v6546_v44, %v1938_v46  ;;  %v1892_v56 = vmul.f32 %v6538_v15, %v1889_v55  ;;  %v6570_v44 = vld [vmem:[%s12173_s2 + $0x408] sm:$0xff] }
 0x386   : > { %v6578_v46 = vld [vmem:[%s12173_s2 + $0x448] sm:$0xff] }
 0x387   : > { %v1968_v26 = vpop.permute.xlu0 %1967  ;;  %v2017_v49 = vpop.permute.xlu1 %2016  ;;  %v1949_v15 = vadd.f32 %v1941_v19, %v1851_v33  ;;  %v1900_v55 = vadd.f32 %v1892_v56, %v1810_v9  ;;  %v1769_v33 = vmul.f32 %v6514_v47, %v8038_v8  ;;  %v6548_v47 = vld [vmem:[%s12173_s2 + $0x318] sm:$0xff]  ;;  %v1887_v8 = vsel %vm954_vm4, %v8141_v3, %v8163_v14 }
 0x388   : > { %v1986_v6 = vsel %vm1054_vm3, %v1968_v26, %v8123_v41  ;;  %v2035_v12 = vsel %vm1104_vm7, %v2017_v49, %v8165_v51 }
 0x389   : > { %v1990_v62 = vmul.f32 %v6554_v63, %v1986_v6  ;;  %v2039_v37 = vmul.f32 %v6562_v16, %v2035_v12 }
 0x38b   : > { %v8249_v32 = vpop.permute.xlu0 %2065  ;;  %v8251_v1 = vpop.permute.xlu1 %2114  ;;  %v1998_v40 = vadd.f32 %v1990_v62, %v1949_v15  ;;  %v2047_v9 = vadd.f32 %v2039_v37, %v1900_v55  ;;  %v6524_v15 = vld [vmem:[%s12173_s2 + $0x258] sm:$0xff]  ;;  %v1805_v55 = vsel %vm870_vm5, %v8125_v4, %v8139_v13 }
 0x38c   : > { %v2084_v10 = vsel %vm12239_vm6, %v8249_v32, %v8131_v43  ;;  %v2133_v21 = vsel %vm1204_vm8, %v8251_v1, %v8169_v11 }
 0x38d   : > { %v2088_v63 = vmul.f32 %v6570_v44, %v2084_v10  ;;  %v2137_v19 = vmul.f32 %v6578_v46, %v2133_v21  ;;  %v1846_v21 = vsel %vm912_vm2, %v8133_v29, %v8153_v28  ;;  %v6553_v28 = vld [vmem:[%s12173_s2 + $0x380] sm:$0xff] }
 0x38f   : > { %v2096_v56 = vadd.f32 %v2088_v63, %v1998_v40  ;;  %v2145_v16 = vadd.f32 %v2137_v19, %v2047_v9  ;;  %v8264_v6 = vpop.permute.xlu0 %1797  ;;  %v8266_v12 = vpop.permute.xlu1 %1838  ;;  %v1936_v40 = vsel %vm1004_vm1, %v8155_v25, %v8167_v18  ;;  %v6521_v9 = vld [vmem:[%s12173_s2 + $0x240] sm:$0xff]  ;;  %v8313_v63 = vmul.f32 %v6524_v15, %v1805_v55 }
 0x390   : > { %v6545_v15 = vld [vmem:[%s12173_s2 + $0x300] sm:$0xff]  ;;  %v1943_v13 = vmul.f32 %v6548_v47, %v1936_v40  ;;  %v6547_v47 = vld [vmem:[%s12173_s2 + $0x310] sm:$0xff] }
 0x391   : > { %v2153_v60 = vadd.f32 %v2145_v16, %v1769_v33  ;;  %v2168_v7 = vadd.f32 %v8114_v27, %v2096_v56  ;;  %v6529_v56 = vld [vmem:[%s12173_s2 + $0x280] sm:$0xff] }
 0x392   : > { %v6537_v33 = vld [vmem:[%s12173_s2 + $0x2c0] sm:$0xff] }
 0x393   : > { %v8270_v23 = vpop.permute.xlu0 %1879  ;;  %v8272_v54 = vpop.permute.xlu1 %1928  ;;  %v2176_v61 = vadd.f32 %v2168_v7, %v2153_v60  ;;  %v6513_v7 = vld [vmem:[%s12173_s2 + $0x340] sm:$0xff] }
 0x394   : > { %v8333_v55 = vmul.f32 %v6513_v7, %v8018_v57  ;;  %v1987_v7 = vsel %vm1054_vm3, %v8187_v34, %v1968_v26  ;;  %v6540_v26 = vld [vmem:[%s12173_s2 + $0x2d8] sm:$0xff] }
 0x395   : > { %2195 = vmatprep.subr.mxu0 %v2176_v61  ;;  %v6532_v61 = vld [vmem:[%s12173_s2 + $0x298] sm:$0xff] }
 0x397   : > { %v8274_v37 = vpop.permute.xlu0 %1977  ;;  %v8276_v62 = vpop.permute.xlu1 %2026 }
 0x39b   : > { %v8278_v44 = vpop.permute.xlu0 %2075  ;;  %v8280_v46 = vpop.permute.xlu1 %2124 }
 0x39c   : > { %12279 = vst [vmem:[#allocation22_spill] sm:$0xff] %v8280_v46  ;;  %v6569_v46 = vld [vmem:[%s12173_s2 + $0x400] sm:$0xff] }
 0x39f   : > { %v8289_v10 = vpop.permute.xlu0 %1799  ;;  %v8291_v60 = vpop.permute.xlu1 %1840 }
 0x3a0   : > { %v1808_v19 = vsel %vm870_vm5, %v8289_v10, %v8181_v5  ;;  %v1849_v16 = vsel %vm912_vm2, %v8291_v60, %v8179_v48  ;;  %v1853_v5 = vmul.f32 %v6532_v61, %v1846_v21  ;;  %v1937_v48 = vsel %vm1004_vm1, %v8199_v2, %v8155_v25  ;;  %v6561_v61 = vld [vmem:[%s12173_s2 + $0x3c0] sm:$0xff] }
 0x3a1   : > { %v2036_v21 = vsel %vm1104_vm7, %v8189_v39, %v2017_v49  ;;  %v1809_v40 = vmul.f32 %v6521_v9, %v1808_v19  ;;  %v1850_v57 = vmul.f32 %v6529_v56, %v1849_v16  ;;  %v2085_v9 = vsel %vm12239_vm6, %v8191_v52, %v8249_v32  ;;  %v6577_v19 = vld [vmem:[%s12173_s2 + $0x440] sm:$0xff] }
 0x3a2   : > { %v2038_v56 = vmul.f32 %v6561_v61, %v2036_v21 }
 0x3a3   : > { %v1882_v38 = vpop.permute.xlu0 %1881  ;;  %v1931_v18 = vpop.permute.xlu1 %1930 }
 0x3a4   : > { %v1890_v25 = vsel %vm954_vm4, %v1882_v38, %v8185_v58  ;;  %v1939_v2 = vsel %vm1004_vm1, %v1931_v18, %v8183_v50  ;;  %v1847_v58 = vsel %vm912_vm2, %v8195_v0, %v8133_v29  ;;  %v1888_v50 = vsel %vm954_vm4, %v8201_v45, %v8141_v3  ;;  %v6531_v3 = vld [vmem:[%s12173_s2 + $0x290] sm:$0xff] }
 0x3a5   : > { %v1891_v14 = vmul.f32 %v6537_v33, %v1890_v25  ;;  %v1940_v49 = vmul.f32 %v6545_v15, %v1939_v2  ;;  %v2134_v29 = vsel %vm1204_vm8, %v8193_v35, %v8251_v1  ;;  %v6539_v0 = vld [vmem:[%s12173_s2 + $0x2d0] sm:$0xff]  ;;  %v1989_v45 = vmul.f32 %v6553_v28, %v1987_v7 }
 0x3a6   : > { %v8399_v25 = vmul.f32 %v6540_v26, %v1887_v8  ;;  %v6571_v1 = vld [vmem:[%s12173_s2 + $0x410] sm:$0xff]  ;;  %v2083_v2 = vsel %vm12239_vm6, %v8131_v43, %v8171_v42  ;;  %v1942_v28 = vmul.f32 %v6547_v47, %v1937_v48  ;;  %v2136_v7 = vmul.f32 %v6577_v19, %v2134_v29 }
 0x3a7   : > { %v1899_v32 = vadd.f32 %v1891_v14, %v1809_v40  ;;  %v1948_v16 = vadd.f32 %v1940_v49, %v1850_v57  ;;  %v8395_v33 = vpop.permute.xlu0 %1979  ;;  %v8397_v15 = vpop.permute.xlu1 %2028  ;;  %v1806_v57 = vsel %vm870_vm5, %v8197_v22, %v8125_v4  ;;  %v6523_v8 = vld [vmem:[%s12173_s2 + $0x250] sm:$0xff]  ;;  %v2087_v14 = vmul.f32 %v6569_v46, %v2085_v9 }
 0x3a8   : > { %v6555_v26 = vld [vmem:[%s12173_s2 + $0x390] sm:$0xff]  ;;  %v1985_v43 = vsel %vm1054_vm3, %v8123_v41, %v8173_v53  ;;  %v2034_v22 = vsel %vm1104_vm7, %v8165_v51, %v8177_v17  ;;  %v1852_v46 = vmul.f32 %v6531_v3, %v1847_v58  ;;  %v1893_v48 = vmul.f32 %v6539_v0, %v1888_v50  ;;  %v6528_v0 = vld [vmem:[%s12173_s2 + $0x278] sm:$0xff] }
 0x3a9   : > { %v2046_v61 = vadd.f32 %v2038_v56, %v1899_v32  ;;  %v1997_v21 = vadd.f32 %v1989_v45, %v1948_v16  ;;  %v6563_v4 = vld [vmem:[%s12173_s2 + $0x3d0] sm:$0xff]  ;;  %v1951_v47 = vadd.f32 %v1943_v13, %v1853_v5  ;;  %v8429_v40 = vmul.f32 %v6571_v1, %v2083_v2  ;;  %v6544_v56 = vld [vmem:[%s12173_s2 + $0x2f8] sm:$0xff] }
 0x3aa   : > { %v1811_v41 = vmul.f32 %v6523_v8, %v1806_v57  ;;  %v1950_v45 = vadd.f32 %v1942_v28, %v1852_v46  ;;  %v1883_v51 = vsel %vm954_vm4, %v8270_v23, %v1882_v38  ;;  %v6552_v13 = vld [vmem:[%s12173_s2 + $0x338] sm:$0xff]  ;;  %v1932_v5 = vsel %vm1004_vm1, %v8272_v54, %v1931_v18 }
 0x3ab   : > { %v2144_v49 = vadd.f32 %v2136_v7, %v2046_v61  ;;  %v2095_v9 = vadd.f32 %v2087_v14, %v1997_v21  ;;  %v8431_v19 = vpop.permute.xlu0 %2077  ;;  %v8433_v29 = vpop.permute.xlu1 %2126  ;;  %v1991_v58 = vmul.f32 %v6555_v26, %v1985_v43  ;;  %v2132_v50 = vsel %vm1204_vm8, %v8169_v11, %v8175_v30  ;;  %v6536_v18 = vld [vmem:[%s12173_s2 + $0x2b8] sm:$0xff]  ;;  %v6579_v61 = vld [vmem:[%s12173_s2 + $0x450] sm:$0xff] }
 0x3ac   : > { %v2040_v3 = vmul.f32 %v6563_v4, %v2034_v22  ;;  %v1801_v38 = vsel %vm870_vm5, %v8264_v6, %v8289_v10  ;;  %v1901_v32 = vadd.f32 %v1893_v48, %v1811_v41  ;;  %v1842_v11 = vsel %vm912_vm2, %v8266_v12, %v8291_v60  ;;  %v6556_v16 = vld [vmem:[%s12173_s2 + $0x398] sm:$0xff] }
 0x3ad   : > { %v2152_v1 = vadd.f32 %v2144_v49, %v8333_v55  ;;  %v2167_v2 = vadd.f32 %v8114_v27, %v2095_v9  ;;  %v1898_v57 = vmul.f32 %v6544_v56, %v1883_v51  ;;  %v1947_v10 = vmul.f32 %v6552_v13, %v1932_v5  ;;  %v6560_v28 = vld [vmem:[%s12173_s2 + $0x3b8] sm:$0xff] }
 0x3ae   : > { %v1988_v8 = vsel %vm1054_vm3, %v8395_v33, %v8187_v34  ;;  %v6568_v60 = vld [vmem:[%s12173_s2 + $0x3f8] sm:$0xff]  ;;  %v2037_v55 = vsel %vm1104_vm7, %v8397_v15, %v8189_v39  ;;  %v1999_v21 = vadd.f32 %v1991_v58, %v1950_v45  ;;  %v1816_v26 = vmul.f32 %v6528_v0, %v1801_v38  ;;  %v8498_v39 = vld [vmem:[%s12179_s8 + $0x8] sm:$0xff] }
 0x3af   : > { %v8484_v14 = vpop.permute.xlu0 %1973  ;;  %v8486_v7 = vpop.permute.xlu1 %2071  ;;  %v2175_v43 = vadd.f32 %v2167_v2, %v2152_v1  ;;  %v1857_v4 = vmul.f32 %v6536_v18, %v1842_v11  ;;  %v6576_v22 = vld [vmem:[%s12173_s2 + $0x438] sm:$0xff]  ;;  %v2086_v46 = vsel %vm12239_vm6, %v8431_v19, %v8191_v52  ;;  %v2135_v48 = vsel %vm1204_vm8, %v8433_v29, %v8193_v35 }
 0x3b0   : > { %v1984_v34 = vsel %vm1054_vm3, %v8173_v53, %v8484_v14  ;;  %v6584_v53 = vld [vmem:[%s12173_s2 + $0x478] sm:$0xff]  ;;  %v2048_v9 = vadd.f32 %v2040_v3, %v1901_v32  ;;  %v1996_v41 = vmul.f32 %v6560_v28, %v1988_v8  ;;  %v2045_v45 = vmul.f32 %v6568_v60, %v2037_v55 }
 0x3b1   : > { %v1992_v49 = vmul.f32 %v6556_v16, %v1984_v34  ;;  %v6572_v56 = vld [vmem:[%s12173_s2 + $0x418] sm:$0xff]  ;;  %v2082_v52 = vsel %vm12239_vm6, %v8171_v42, %v8486_v7  ;;  %2196 = vmatpush1.msra.mxu0 %v2175_v43  ;;  %v2138_v13 = vmul.f32 %v6579_v61, %v2132_v50  ;;  %v1906_v35 = vadd.f32 %v1898_v57, %v1816_v26 }
 0x3b2   : > { %v6564_v51 = vld [vmem:[%s12173_s2 + $0x3d8] sm:$0xff]  ;;  %v1955_v5 = vadd.f32 %v1947_v10, %v1857_v4  ;;  %6588 = vmatmul.mubr.msk.f32.vlgmr.msra.gmra.mrb[8].mxu0 %vm503_vm0, %v8498_v39  ;;  %v2094_v38 = vmul.f32 %v6576_v22, %v2086_v46  ;;  %v2143_v32 = vmul.f32 %v6584_v53, %v2135_v48  ;;  %v1902_v18 = vadd.f32 %v8399_v25, %v8313_v63 }
 0x3b3   : > { %v2000_v58 = vadd.f32 %v1992_v49, %v1951_v47  ;;  %v8526_v3 = vpop.permute.xlu0 %2022  ;;  %v8528_v0 = vpop.permute.xlu1 %2120  ;;  %v6580_v50 = vld [vmem:[%s12173_s2 + $0x458] sm:$0xff]  ;;  %2401 = vmatprep.mubr.f32.mxu0 %v12252_v59  ;;  %v2090_v11 = vmul.f32 %v6572_v56, %v2082_v52  ;;  %v2097_v1 = vadd.f32 %v8429_v40, %v1999_v21  ;;  %v2146_v2 = vadd.f32 %v2138_v13, %v2048_v9  ;;  %v6559_v56 = vld [vmem:[%s12173_s2 + $0x3b0] sm:$0xff] }
 0x3b4   : > { %v2033_v42 = vsel %vm1104_vm7, %v8177_v17, %v8526_v3  ;;  %v2131_v47 = vsel %vm1204_vm8, %v8175_v30, %v8528_v0  ;;  %v6515_v17 = vld [vmem:[%s12173_s2 + $0x350] sm:$0xff]  ;;  %v2004_v57 = vadd.f32 %v1996_v41, %v1955_v5  ;;  %v2053_v10 = vadd.f32 %v2045_v45, %v1906_v35  ;;  %v6516_v30 = vld [vmem:[%s12173_s2 + $0x358] sm:$0xff] }
 0x3b5   : > { %v2041_v16 = vmul.f32 %v6564_v51, %v2033_v42  ;;  %v2098_v28 = vadd.f32 %v2090_v11, %v2000_v58  ;;  %v2139_v60 = vmul.f32 %v6580_v50, %v2131_v47  ;;  %v6520_v25 = vld [vmem:[%s12173_s2 + $0x378] sm:$0xff]  ;;  %v1770_v40 = vmul.f32 %v6515_v17, %v7961_v20  ;;  %v6519_v45 = vld [vmem:[%s12173_s2 + $0x370] sm:$0xff]  ;;  %v12281_v50 = vld [vmem:[#allocation19_spill] sm:$0xff] }
 0x3b6   : > { %v2102_v61 = vadd.f32 %v2094_v38, %v2004_v57  ;;  %v2151_v26 = vadd.f32 %v2143_v32, %v2053_v10  ;;  %v1771_v34 = vmul.f32 %v6516_v30, %v7979_v31  ;;  %v2169_v4 = vadd.f32 %v8114_v27, %v2097_v1  ;;  %v6567_v13 = vld [vmem:[%s12173_s2 + $0x3f0] sm:$0xff]  ;;  %v12280_v38 = vld [vmem:[#allocation22_spill] sm:$0xff]  ;;  %v6534_v30 = vld [vmem:[%s12173_s2 + $0x2a8] sm:$0xff] }
 0x3b7   : > { %v2049_v8 = vadd.f32 %v2041_v16, %v1902_v18  ;;  %v1794_v55 = vpop.permute.xlu0 %1793  ;;  %v1835_v63 = vpop.permute.xlu1 %1834  ;;  %v2154_v43 = vadd.f32 %v2146_v2, %v1770_v40  ;;  %v1775_v22 = vmul.f32 %v6520_v25, %v8077_v36  ;;  %v2170_v49 = vadd.f32 %v8114_v27, %v2098_v28  ;;  %v6575_v5 = vld [vmem:[%s12173_s2 + $0x430] sm:$0xff]  ;;  %v12282_v18 = vld [vmem:[#allocation21_spill] sm:$0xff]  ;;  %v12283_v17 = vld [vmem:[#allocation14_spill] sm:$0xff] }
 0x3b8   : > { %v2174_v41 = vadd.f32 %v8114_v27, %v2102_v61  ;;  %v1981_v52 = vsel %vm1054_vm3, %v8274_v37, %v8395_v33  ;;  %v2030_v35 = vsel %vm1104_vm7, %v8276_v62, %v8397_v15  ;;  %v2079_v58 = vsel %vm12239_vm6, %v8278_v44, %v8431_v19  ;;  %v6583_v33 = vld [vmem:[%s12173_s2 + $0x470] sm:$0xff]  ;;  %v6533_v15 = vld [vmem:[%s12173_s2 + $0x2a0] sm:$0xff]  ;;  %v6659_v36 = vld [vmem:[%s12173_s2 + $0x688] sm:$0xff] }
 0x3b9   : > { %v2147_v21 = vadd.f32 %v2139_v60, %v2049_v8  ;;  %v2159_v9 = vadd.f32 %v2151_v26, %v1775_v22  ;;  %v2128_v32 = vsel %vm1204_vm8, %v12280_v38, %v8433_v29  ;;  %v2177_v42 = vadd.f32 %v2169_v4, %v2154_v43  ;;  %v6549_v19 = vld [vmem:[%s12173_s2 + $0x320] sm:$0xff]  ;;  %v6527_v57 = vld [vmem:[%s12173_s2 + $0x270] sm:$0xff]  ;;  %v6550_v4 = vld [vmem:[%s12173_s2 + $0x328] sm:$0xff] }
 0x3ba   : > { %v1845_v47 = vsel %vm912_vm2, %v12281_v50, %v1835_v63  ;;  %v8604_v1 = vmul.f32 %v6519_v45, %v12283_v17  ;;  %v1995_v2 = vmul.f32 %v6559_v56, %v1981_v52  ;;  %v2044_v60 = vmul.f32 %v6567_v13, %v2030_v35  ;;  %v12284_v26 = vld [vmem:[#allocation18_spill] sm:$0xff]  ;;  %v6543_v43 = vld [vmem:[%s12173_s2 + $0x2f0] sm:$0xff]  ;;  %v6542_v52 = vld [vmem:[%s12173_s2 + $0x2e8] sm:$0xff] }
 0x3bb   : > { %v1876_v46 = vpop.permute.xlu0 %1875  ;;  %v1925_v53 = vpop.permute.xlu1 %1924  ;;  %v2155_v48 = vadd.f32 %v2147_v21, %v1771_v34  ;;  %v2182_v8 = vadd.f32 %v2174_v41, %v2159_v9  ;;  %v2093_v25 = vmul.f32 %v6575_v5, %v2079_v58  ;;  %v2142_v61 = vmul.f32 %v6583_v33, %v2128_v32  ;;  %v6551_v22 = vld [vmem:[%s12173_s2 + $0x330] sm:$0xff]  ;;  %v6526_v35 = vld [vmem:[%s12173_s2 + $0x268] sm:$0xff] }
 0x3bc   : > { %v1935_v11 = vsel %vm1004_vm1, %v12282_v18, %v1925_v53  ;;  %v1804_v40 = vsel %vm870_vm5, %v12284_v26, %v1794_v55  ;;  %v1854_v21 = vmul.f32 %v6533_v15, %v1845_v47 }
 0x3bd   : > { %v2178_v51 = vadd.f32 %v2170_v49, %v2155_v48  ;;  %v1944_v34 = vmul.f32 %v6549_v19, %v1935_v11  ;;  %v6525_v48 = vld [vmem:[%s12173_s2 + $0x260] sm:$0xff]  ;;  %v12285_v49 = vld [vmem:[#allocation20_spill] sm:$0xff] }
 0x3be   : > { %v1886_v9 = vsel %vm954_vm4, %v12285_v49, %v1876_v46  ;;  %v1813_v47 = vmul.f32 %v6525_v48, %v1804_v40 }
 0x3bf   : > { %v1796_v16 = vpop.permute.xlu0 %1795  ;;  %2266 = vmatprep.subr.mxu1 %v2178_v51  ;;  %v1837_v29 = vpop.permute.xlu1 %1836  ;;  %v1952_v18 = vadd.f32 %v1944_v34, %v1854_v21 }
 0x3c0   : > { %v1802_v10 = vsel %vm870_vm5, %v1796_v16, %v8264_v6  ;;  %v1844_v28 = vsel %vm912_vm2, %v1835_v63, %v1837_v29  ;;  %2267 = vmatpush1.msra.mxu1 %v2177_v42  ;;  %v6535_v6 = vld [vmem:[%s12173_s2 + $0x2b0] sm:$0xff]  ;;  %v1843_v63 = vsel %vm912_vm2, %v1837_v29, %v8266_v12  ;;  %v6541_v12 = vld [vmem:[%s12173_s2 + $0x2e0] sm:$0xff]  ;;  %v1803_v41 = vsel %vm870_vm5, %v1794_v55, %v1796_v16 }
 0x3c1   : > { %6589 = vmatmul.mubr.msk.f32.vlgmr.msra.gmra.mrb[8].mxu1 %vm503_vm0, %v8498_v39  ;;  %2408 = vmatprep.subr.mxu1 %v2182_v8  ;;  %v1815_v45 = vmul.f32 %v6527_v57, %v1802_v10  ;;  %v1855_v56 = vmul.f32 %v6534_v30, %v1844_v28  ;;  %v1856_v32 = vmul.f32 %v6535_v6, %v1843_v63  ;;  %v6565_v10 = vld [vmem:[%s12173_s2 + $0x3e0] sm:$0xff]  ;;  %v6566_v30 = vld [vmem:[%s12173_s2 + $0x3e8] sm:$0xff] }
 0x3c2   : > { %2472 = vmatprep.mubr.f32.mxu1 %v12252_v59  ;;  %v1895_v19 = vmul.f32 %v6541_v12, %v1886_v9 }
 0x3c3   : > { %v1878_v51 = vpop.permute.xlu0 %1877  ;;  %v1927_v13 = vpop.permute.xlu1 %1926 }
 0x3c4   : > { %v1884_v5 = vsel %vm954_vm4, %v1878_v51, %v8270_v23  ;;  %v1885_v58 = vsel %vm954_vm4, %v1876_v46, %v1878_v51  ;;  %v1933_v55 = vsel %vm1004_vm1, %v1927_v13, %v8272_v54  ;;  %v1934_v33 = vsel %vm1004_vm1, %v1925_v53, %v1927_v13  ;;  %v6557_v23 = vld [vmem:[%s12173_s2 + $0x3a0] sm:$0xff]  ;;  %v6558_v46 = vld [vmem:[%s12173_s2 + $0x3a8] sm:$0xff] }
 0x3c5   : > { %v1897_v42 = vmul.f32 %v6543_v43, %v1884_v5  ;;  %v1945_v15 = vmul.f32 %v6550_v4, %v1934_v33  ;;  %v1946_v50 = vmul.f32 %v6551_v22, %v1933_v55  ;;  %v1896_v11 = vmul.f32 %v6542_v52, %v1885_v58 }
 0x3c6   : > { %v1814_v54 = vmul.f32 %v6526_v35, %v1803_v41  ;;  %v1903_v4 = vadd.f32 %v1895_v19, %v1813_v47  ;;  %v6582_v41 = vld [vmem:[%s12173_s2 + $0x468] sm:$0xff] }
 0x3c7   : > { %v1905_v16 = vadd.f32 %v1897_v42, %v1815_v45  ;;  %v1953_v29 = vadd.f32 %v1945_v15, %v1855_v56  ;;  %v1954_v53 = vadd.f32 %v1946_v50, %v1856_v32  ;;  %v1976_v57 = vpop.permute.xlu0 %1975  ;;  %v2025_v28 = vpop.permute.xlu1 %2024  ;;  %v12286_v50 = vld [vmem:[#allocation16_spill] sm:$0xff] }
 0x3c8   : > { %v1982_v8 = vsel %vm1054_vm3, %v1976_v57, %v8274_v37  ;;  %v1983_v26 = vsel %vm1054_vm3, %v8484_v14, %v1976_v57  ;;  %v2031_v40 = vsel %vm1104_vm7, %v2025_v28, %v8276_v62  ;;  %v2032_v6 = vsel %vm1104_vm7, %v8526_v3, %v2025_v28  ;;  %v6573_v14 = vld [vmem:[%s12173_s2 + $0x420] sm:$0xff]  ;;  %v6574_v62 = vld [vmem:[%s12173_s2 + $0x428] sm:$0xff] }
 0x3c9   : > { %v2052_v21 = vadd.f32 %v2044_v60, %v1905_v16  ;;  %v2003_v34 = vadd.f32 %v1995_v2, %v1954_v53  ;;  %v1993_v63 = vmul.f32 %v6557_v23, %v1983_v26  ;;  %v1994_v43 = vmul.f32 %v6558_v46, %v1982_v8  ;;  %v6581_v2 = vld [vmem:[%s12173_s2 + $0x460] sm:$0xff] }
 0x3ca   : > { %v1904_v22 = vadd.f32 %v1896_v11, %v1814_v54  ;;  %v2042_v48 = vmul.f32 %v6565_v10, %v2032_v6  ;;  %v2043_v37 = vmul.f32 %v6566_v30, %v2031_v40  ;;  %v12287_v11 = vld [vmem:[#allocation17_spill] sm:$0xff] }
 0x3cb   : > { %v2150_v12 = vadd.f32 %v2142_v61, %v2052_v21  ;;  %v2101_v49 = vadd.f32 %v2093_v25, %v2003_v34  ;;  %v2001_v9 = vadd.f32 %v1993_v63, %v1952_v18  ;;  %v2002_v3 = vadd.f32 %v1994_v43, %v1953_v29  ;;  %v2074_v60 = vpop.permute.xlu0 %2073  ;;  %v2123_v45 = vpop.permute.xlu1 %2122  ;;  %v6517_v61 = vld [vmem:[%s12173_s2 + $0x360] sm:$0xff] }
 0x3cc   : > { %v2050_v56 = vadd.f32 %v2042_v48, %v1903_v4  ;;  %v2051_v52 = vadd.f32 %v2043_v37, %v1904_v22  ;;  %v2080_v51 = vsel %vm12239_vm6, %v2074_v60, %v8278_v44  ;;  %v2081_v25 = vsel %vm12239_vm6, %v8486_v7, %v2074_v60  ;;  %v6518_v44 = vld [vmem:[%s12173_s2 + $0x368] sm:$0xff] }
 0x3cd   : > { %v2091_v13 = vmul.f32 %v6573_v14, %v2081_v25  ;;  %v2092_v35 = vmul.f32 %v6574_v62, %v2080_v51  ;;  %v2129_v5 = vsel %vm1204_vm8, %v2123_v45, %v12280_v38  ;;  %v2130_v58 = vsel %vm1204_vm8, %v8528_v0, %v2123_v45 }
 0x3ce   : > { %v2140_v55 = vmul.f32 %v6581_v2, %v2130_v58  ;;  %v2141_v7 = vmul.f32 %v6582_v41, %v2129_v5  ;;  %v2158_v33 = vadd.f32 %v2150_v12, %v8604_v1  ;;  %v2173_v32 = vadd.f32 %v8114_v27, %v2101_v49 }
 0x3cf   : > { %v2099_v42 = vadd.f32 %v2091_v13, %v2001_v9  ;;  %v2100_v15 = vadd.f32 %v2092_v35, %v2002_v3  ;;  %v1772_v47 = vmul.f32 %v6517_v61, %v12286_v50  ;;  %v1773_v23 = vmul.f32 %v6518_v44, %v12287_v11 }
 0x3d0   : > { %v2148_v19 = vadd.f32 %v2140_v55, %v2050_v56  ;;  %v2149_v38 = vadd.f32 %v2141_v7, %v2051_v52  ;;  %v2181_v18 = vadd.f32 %v2173_v32, %v2158_v33 }
 0x3d1   : > { %v2171_v0 = vadd.f32 %v8114_v27, %v2099_v42  ;;  %v2172_v46 = vadd.f32 %v8114_v27, %v2100_v15 }
 0x3d2   : > { %v2156_v54 = vadd.f32 %v2148_v19, %v1772_v47  ;;  %2409 = vmatpush1.msra.mxu1 %v2181_v18  ;;  %v2157_v16 = vadd.f32 %v2149_v38, %v1773_v23  ;;  %v6673_v23 = vld [vmem:[%s12181_s10 + $0x18] sm:$0xff] }
 0x3d3   : > { %6591 = vmatmul.mubr.msk.f32.vlgmr.msra.gmra.mrb[10].mxu1 %vm503_vm0, %v8498_v39 }
 0x3d4   : > { %v2180_v1 = vadd.f32 %v2172_v46, %v2157_v16  ;;  %v2179_v29 = vadd.f32 %v2171_v0, %v2156_v54  ;;  %3088 = vmatprep.mubr.f32.mxu1 %v12252_v59  ;;  %v6668_v54 = vld [vmem:[%s12180_s9 + $0x10] sm:$0xff] }
 0x3d6   : > { %2337 = vmatprep.subr.mxu0 %v2180_v1 }
 0x3d7   : > { %2338 = vmatpush1.msra.mxu0 %v2179_v29  ;;  %v6674_v29 = vld [vmem:[%s12182_s11 + $0x18] sm:$0xff] }
 0x3d8   : > { %6590 = vmatmul.mubr.msk.f32.vlgmr.msra.gmra.mrb[10].mxu0 %vm503_vm0, %v8498_v39 }
 0x3d9   : > { %3017 = vmatprep.mubr.f32.mxu0 %v12252_v59 }
 0x3dc   : > { %v8731_v53 = vpop.permute.xlu0 %2189  ;;  %v8734_v30 = vpop.permute.xlu1 %2483 }
 0x3e0   : > { %v8737_v8 = vpop.permute.xlu0 %2498  ;;  %v8887_v42 = vpop.permute.xlu1 %2922 }
 0x485   : > { %v2261_v27 = vpop.f32.mrb[8].mxu0 }
 0x486   : > { %v2262_v57 = vadd.f32 %v2261_v27, %v8731_v53  ;;  %v2263_v10 = vpop.f32.mrb[9].mxu0 }
 0x487   : > { %v2264_v4 = vadd.f32 %v2263_v10, %v8731_v53 }
 0x488   : > { %v2486_v28 = vmul.f32 %v8734_v30, %v2262_v57 }
 0x489   : > { %v2487_v22 = vmul.f32 %v8734_v30, %v2264_v4 }
 0x48a   : > { %v2501_v26 = vadd.f32 %v8737_v8, %v2486_v28 }
 0x48b   : > { %v2502_v14 = vadd.f32 %v8737_v8, %v2487_v22 }
 0x48c   : > { %v8740_v40 = vmax.f32 %v2501_v26, 0.0 }
 0x48d   : > { %v8770_v49 = vmax.f32 %v2502_v14, 0.0 }
 0x48e   : > { %2543 = vrot.lane.b32.xlu1 %v8740_v40, %s12233_s16 }
 0x494   : > { %v2332_v39 = vpop.f32.mrb[8].mxu1 }
 0x495   : > { %v2333_v6 = vadd.f32 %v2332_v39, %v8731_v53  ;;  %v2334_v21 = vpop.f32.mrb[9].mxu1 }
 0x496   : > { %v2335_v48 = vadd.f32 %v2334_v21, %v8731_v53 }
 0x497   : > { %v2488_v34 = vmul.f32 %v8734_v30, %v2333_v6 }
 0x498   : > { %v2489_v62 = vmul.f32 %v8734_v30, %v2335_v48 }
 0x499   : > { %v2503_v63 = vadd.f32 %v8737_v8, %v2488_v34 }
 0x49a   : > { %v2504_v9 = vadd.f32 %v8737_v8, %v2489_v62 }
 0x49b   : > { %v8747_v43 = vmax.f32 %v2503_v63, 0.0 }
 0x49c   : > { %v8777_v2 = vmax.f32 %v2504_v9, 0.0  ;;  %v6611_v9 = vld [vmem:[%s12173_s2 + $0x4c8] sm:$0xff] }
 0x49d   : > { %2727 = vrot.lane.b32.xlu0 %v8747_v43, %s12288_s15  ;;  %2547 = vrot.lane.b32.xlu1 %v8747_v43, %s12233_s16 }
 0x4a1   : > { %2776 = vrot.lane.b32.xlu0 %v8747_v43, %s12267_s26  ;;  %2584 = vrot.lane.b32.xlu1 %v8740_v40, %s12289_s18 }
 0x4a5   : > { %2723 = vrot.lane.b32.xlu0 %v8740_v40, %s12288_s15  ;;  %2588 = vrot.lane.b32.xlu1 %v8747_v43, %s12289_s18 }
 0x4a6   : > { %v2474_v37 = vpop.f32.mrb[10].mxu1 }
 0x4a7   : > { %v2476_v12 = vpop.f32.mrb[11].mxu1  ;;  %v2475_v45 = vadd.f32 %v2474_v37, %v8731_v53  ;;  %v6627_v37 = vld [vmem:[%s12173_s2 + $0x548] sm:$0xff] }
 0x4a8   : > { %v2477_v35 = vadd.f32 %v2476_v12, %v8731_v53 }
 0x4a9   : > { %2821 = vrot.lane.b32.xlu0 %v8740_v40, %s12290_s22  ;;  %2625 = vrot.lane.b32.xlu1 %v8740_v40, %s12291_s23  ;;  %v2492_v52 = vmul.f32 %v8734_v30, %v2475_v45  ;;  %v6635_v45 = vld [vmem:[%s12173_s2 + $0x5c8] sm:$0xff] }
 0x4aa   : > { %v2493_v5 = vmul.f32 %v8734_v30, %v2477_v35  ;;  %v6651_v35 = vld [vmem:[%s12173_s2 + $0x648] sm:$0xff] }
 0x4ab   : > { %v2403_v3 = vpop.f32.mrb[10].mxu0  ;;  %v2507_v25 = vadd.f32 %v8737_v8, %v2492_v52 }
 0x4ac   : > { %v2405_v60 = vpop.f32.mrb[11].mxu0  ;;  %v2404_v41 = vadd.f32 %v2403_v3, %v8731_v53  ;;  %v2508_v58 = vadd.f32 %v8737_v8, %v2493_v5 }
 0x4ad   : > { %2545 = vrot.lane.b32.xlu0 %v8770_v49, %s12233_s16  ;;  %2629 = vrot.lane.b32.xlu1 %v8747_v43, %s12291_s23  ;;  %v8831_v13 = vmax.f32 %v2507_v25, 0.0  ;;  %v2406_v44 = vadd.f32 %v2405_v60, %v8731_v53  ;;  %v6619_v60 = vld [vmem:[%s12173_s2 + $0x508] sm:$0xff] }
 0x4ae   : > { %v2490_v56 = vmul.f32 %v8734_v30, %v2404_v41  ;;  %v8865_v55 = vmax.f32 %v2508_v58, 0.0  ;;  %v6643_v58 = vld [vmem:[%s12173_s2 + $0x608] sm:$0xff] }
 0x4af   : > { %12293 = vst [vmem:[#allocation19_spill] sm:$0xff] %v8831_v13  ;;  %v2491_v7 = vmul.f32 %v8734_v30, %v2406_v44 }
 0x4b0   : > { %v2505_v51 = vadd.f32 %v8737_v8, %v2490_v56  ;;  %12294 = vst [vmem:[#allocation21_spill] sm:$0xff] %v8865_v55 }
 0x4b1   : > { %2549 = vrot.lane.b32.xlu0 %v8777_v2, %s12233_s16  ;;  %2674 = vrot.lane.b32.xlu1 %v8740_v40, %s12266_s19  ;;  %v2506_v33 = vadd.f32 %v8737_v8, %v2491_v7 }
 0x4b2   : > { %v8825_v61 = vmax.f32 %v2505_v51, 0.0  ;;  %v6603_v51 = vld [vmem:[%s12173_s2 + $0x488] sm:$0xff] }
 0x4b3   : > { %v8877_v32 = vmax.f32 %v2506_v33, 0.0 }
 0x4b4   : > { %12292 = vst [vmem:[#allocation22_spill] sm:$0xff] %v8825_v61 }
 0x4b5   : > { %2586 = vrot.lane.b32.xlu0 %v8770_v49, %s12289_s18  ;;  %2678 = vrot.lane.b32.xlu1 %v8747_v43, %s12266_s19  ;;  %12295 = vst [vmem:[#allocation18_spill] sm:$0xff] %v8877_v32 }
 0x4b9   : > { %2590 = vrot.lane.b32.xlu0 %v8777_v2, %s12289_s18  ;;  %2772 = vrot.lane.b32.xlu1 %v8740_v40, %s12267_s26 }
 0x4bd   : > { %2627 = vrot.lane.b32.xlu0 %v8770_v49, %s12291_s23  ;;  %2825 = vrot.lane.b32.xlu1 %v8747_v43, %s12290_s22 }
 0x4c1   : > { %2631 = vrot.lane.b32.xlu0 %v8777_v2, %s12291_s23  ;;  %2874 = vrot.lane.b32.xlu1 %v8747_v43, %s12268_s27 }
 0x4c5   : > { %2676 = vrot.lane.b32.xlu0 %v8770_v49, %s12266_s19  ;;  %2870 = vrot.lane.b32.xlu1 %v8740_v40, %s12268_s27 }
 0x4c9   : > { %2680 = vrot.lane.b32.xlu0 %v8777_v2, %s12266_s19  ;;  %2725 = vrot.lane.b32.xlu1 %v8770_v49, %s12288_s15 }
 0x4cd   : > { %2823 = vrot.lane.b32.xlu0 %v8770_v49, %s12290_s22  ;;  %2729 = vrot.lane.b32.xlu1 %v8777_v2, %s12288_s15 }
 0x4d1   : > { %2827 = vrot.lane.b32.xlu0 %v8777_v2, %s12290_s22  ;;  %2774 = vrot.lane.b32.xlu1 %v8770_v49, %s12267_s26 }
 0x4d5   : > { %2872 = vrot.lane.b32.xlu0 %v8770_v49, %s12268_s27  ;;  %2778 = vrot.lane.b32.xlu1 %v8777_v2, %s12267_s26 }
 0x4d9   : > { %2876 = vrot.lane.b32.xlu0 %v8777_v2, %s12268_s27  ;;  %2592 = vrot.lane.b32.xlu1 %v8825_v61, %s12289_s18 }
 0x4dd   : > { %2731 = vrot.lane.b32.xlu0 %v8825_v61, %s12288_s15  ;;  %2596 = vrot.lane.b32.xlu1 %v8831_v13, %s12289_s18 }
 0x4e1   : > { %2780 = vrot.lane.b32.xlu0 %v8825_v61, %s12267_s26  ;;  %2682 = vrot.lane.b32.xlu1 %v8825_v61, %s12266_s19 }
 0x4e5   : > { %2551 = vrot.lane.b32.xlu0 %v8825_v61, %s12233_s16  ;;  %2686 = vrot.lane.b32.xlu1 %v8831_v13, %s12266_s19 }
 0x4e9   : > { %2555 = vrot.lane.b32.xlu0 %v8831_v13, %s12233_s16  ;;  %2829 = vrot.lane.b32.xlu1 %v8825_v61, %s12290_s22 }
 0x4ed   : > { %2633 = vrot.lane.b32.xlu0 %v8825_v61, %s12291_s23  ;;  %2878 = vrot.lane.b32.xlu1 %v8825_v61, %s12268_s27 }
 0x4f1   : > { %2637 = vrot.lane.b32.xlu0 %v8831_v13, %s12291_s23  ;;  %2735 = vrot.lane.b32.xlu1 %v8831_v13, %s12288_s15 }
 0x4f5   : > { %2784 = vrot.lane.b32.xlu0 %v8831_v13, %s12267_s26  ;;  %2833 = vrot.lane.b32.xlu1 %v8831_v13, %s12290_s22 }
 0x4f9   : > { %2598 = vrot.lane.b32.xlu0 %v8865_v55, %s12289_s18  ;;  %2557 = vrot.lane.b32.xlu1 %v8865_v55, %s12233_s16 }
 0x4fd   : > { %2688 = vrot.lane.b32.xlu0 %v8865_v55, %s12266_s19  ;;  %2639 = vrot.lane.b32.xlu1 %v8865_v55, %s12291_s23 }
 0x500   : > { %v8893_v15 = vpop.permute.xlu1 %2543 }
 0x501   : > { %2594 = vrot.lane.b32.xlu0 %v8877_v32, %s12289_s18  ;;  %2553 = vrot.lane.b32.xlu1 %v8877_v32, %s12233_s16  ;;  %s6985_s16 = smov 64  }
 0x505   : > { %2684 = vrot.lane.b32.xlu0 %v8877_v32, %s12266_s19  ;;  %2635 = vrot.lane.b32.xlu1 %v8877_v32, %s12291_s23 }
 0x509   : > { %2733 = vrot.lane.b32.xlu0 %v8877_v32, %s12288_s15  ;;  %2782 = vrot.lane.b32.xlu1 %v8877_v32, %s12267_s26 }
 0x50d   : > { %2737 = vrot.lane.b32.xlu0 %v8865_v55, %s12288_s15  ;;  %2786 = vrot.lane.b32.xlu1 %v8865_v55, %s12267_s26 }
 0x50f   : > { %v8899_v47 = vpop.permute.xlu0 %2727  ;;  %v8901_v19 = vpop.permute.xlu1 %2547 }
 0x511   : > { %2831 = vrot.lane.b32.xlu0 %v8877_v32, %s12290_s22  ;;  %2880 = vrot.lane.b32.xlu1 %v8877_v32, %s12268_s27  ;;  %v6653_v32 = vld [vmem:[%s12173_s2 + $0x658] sm:$0xff] }
 0x513   : > { %v8907_v38 = vpop.permute.xlu0 %2776  ;;  %v8909_v18 = vpop.permute.xlu1 %2584 }
 0x515   : > { %2835 = vrot.lane.b32.xlu0 %v8865_v55, %s12290_s22  ;;  %2884 = vrot.lane.b32.xlu1 %v8865_v55, %s12268_s27 }
 0x517   : > { %v8918_v0 = vpop.permute.xlu0 %2723  ;;  %v8920_v46 = vpop.permute.xlu1 %2588 }
 0x519   : > { %2882 = vrot.lane.b32.xlu0 %v8831_v13, %s12268_s27  ;;  %3241 = vperm.xlu1 %6897, %v6673_v23  }
 0x51b   : > { %v8927_v16 = vpop.permute.xlu0 %2821  ;;  %v8929_v1 = vpop.permute.xlu1 %2625 }
 0x51d   : > { %2947 = vperm.xlu0 %6896, %v6668_v54  }
 0x51f   : > { %v8934_v53 = vpop.permute.xlu0 %2545  ;;  %v8936_v27 = vpop.permute.xlu1 %2629 }
 0x520   : > { %v2565_v25 = vsel %vm870_vm5, %v8893_v15, %v8934_v53 }
 0x521   : > { %3256 = vperm.xlu0 %6896, %v6674_v29  }
 0x523   : > { %v8938_v57 = vpop.permute.xlu0 %2549  ;;  %v8940_v10 = vpop.permute.xlu1 %2674 }
 0x527   : > { %v8942_v30 = vpop.permute.xlu0 %2586  ;;  %v8944_v28 = vpop.permute.xlu1 %2678 }
 0x528   : > { %v2606_v3 = vsel %vm912_vm2, %v8909_v18, %v8942_v30 }
 0x529   : > { %v2609_v44 = vmul.f32 %v6611_v9, %v2606_v3 }
 0x52b   : > { %v8946_v8 = vpop.permute.xlu0 %2590  ;;  %v8948_v26 = vpop.permute.xlu1 %2772 }
 0x52f   : > { %v2628_v39 = vpop.permute.xlu0 %2627  ;;  %v8950_v6 = vpop.permute.xlu1 %2825 }
 0x530   : > { %v2647_v41 = vsel %vm954_vm4, %v8929_v1, %v2628_v39 }
 0x531   : > { %v2650_v7 = vmul.f32 %v6619_v60, %v2647_v41 }
 0x533   : > { %v8952_v21 = vpop.permute.xlu0 %2631  ;;  %v8954_v34 = vpop.permute.xlu1 %2874 }
 0x537   : > { %v8956_v63 = vpop.permute.xlu0 %2676  ;;  %v8958_v4 = vpop.permute.xlu1 %2870 }
 0x538   : > { %v2696_v14 = vsel %vm1004_vm1, %v8940_v10, %v8956_v63 }
 0x539   : > { %v2699_v52 = vmul.f32 %v6627_v37, %v2696_v14  ;;  %v2568_v37 = vmul.f32 %v6603_v51, %v2565_v25 }
 0x53b   : > { %v8960_v22 = vpop.permute.xlu0 %2680  ;;  %v8962_v48 = vpop.permute.xlu1 %2725  ;;  %v2707_v14 = vadd.f32 %v2699_v52, %v2609_v44  ;;  %v2658_v9 = vadd.f32 %v2650_v7, %v2568_v37 }
 0x53c   : > { %v2744_v56 = vsel %vm1054_vm3, %v8962_v48, %v8899_v47 }
 0x53d   : > { %v2748_v33 = vmul.f32 %v6635_v45, %v2744_v56  ;;  %v6595_v56 = vld [vmem:[%s12173_s2 + $0x588] sm:$0xff] }
 0x53e   : > { %v2527_v44 = vmul.f32 %v6595_v56, %v8770_v49  ;;  %v6620_v49 = vld [vmem:[%s12173_s2 + $0x510] sm:$0xff] }
 0x53f   : > { %v8971_v62 = vpop.permute.xlu0 %2823  ;;  %v8973_v12 = vpop.permute.xlu1 %2729  ;;  %v2756_v3 = vadd.f32 %v2748_v33, %v2707_v14 }
 0x540   : > { %v2842_v5 = vsel %vm12239_vm6, %v8971_v62, %v8950_v6 }
 0x541   : > { %v2846_v11 = vmul.f32 %v6651_v35, %v2842_v5 }
 0x543   : > { %v9012_v23 = vpop.permute.xlu0 %2827  ;;  %v9014_v54 = vpop.permute.xlu1 %2774  ;;  %v2854_v52 = vadd.f32 %v2846_v11, %v2756_v3  ;;  %v2564_v11 = vsel %vm870_vm5, %v8934_v53, %v8901_v19  ;;  %v6629_v3 = vld [vmem:[%s12173_s2 + $0x558] sm:$0xff]  ;;  %v6612_v53 = vld [vmem:[%s12173_s2 + $0x4d0] sm:$0xff] }
 0x544   : > { %v2793_v29 = vsel %vm1104_vm7, %v9014_v54, %v8907_v38 }
 0x545   : > { %v2797_v50 = vmul.f32 %v6643_v58, %v2793_v29  ;;  %v2926_v33 = vadd.f32 %v8887_v42, %v2854_v52  ;;  %v2605_v52 = vsel %vm912_vm2, %v8942_v30, %v8920_v46 }
 0x547   : > { %v9023_v60 = vpop.permute.xlu0 %2872  ;;  %v2779_v41 = vpop.permute.xlu1 %2778  ;;  %v2805_v51 = vadd.f32 %v2797_v50, %v2658_v9  ;;  %v2646_v9 = vsel %vm954_vm4, %v2628_v39, %v8936_v27  ;;  %v6628_v39 = vld [vmem:[%s12173_s2 + $0x550] sm:$0xff] }
 0x548   : > { %v2891_v45 = vsel %vm1204_vm8, %v9023_v60, %v8954_v34 }
 0x549   : > { %v2895_v25 = vmul.f32 %v6659_v36, %v2891_v45  ;;  %v6604_v36 = vld [vmem:[%s12173_s2 + $0x490] sm:$0xff]  ;;  %v2694_v45 = vsel %vm1004_vm1, %v8944_v28, %v8960_v22 }
 0x54a   : > { %v2569_v56 = vmul.f32 %v6604_v36, %v2564_v11  ;;  %v2701_v11 = vmul.f32 %v6629_v3, %v2694_v45  ;;  %v2610_v3 = vmul.f32 %v6612_v53, %v2605_v52  ;;  %v6652_v53 = vld [vmem:[%s12173_s2 + $0x650] sm:$0xff]  ;;  %v2841_v52 = vsel %vm12239_vm6, %v8950_v6, %v9012_v23 }
 0x54b   : > { %v2903_v35 = vadd.f32 %v2895_v25, %v2805_v51  ;;  %v9032_v5 = vpop.permute.xlu0 %2876  ;;  %v9034_v58 = vpop.permute.xlu1 %2592  ;;  %v2695_v51 = vsel %vm1004_vm1, %v8956_v63, %v8944_v28  ;;  %v6644_v25 = vld [vmem:[%s12173_s2 + $0x610] sm:$0xff]  ;;  %v2604_v28 = vsel %vm912_vm2, %v8920_v46, %v8946_v8  ;;  %v2651_v63 = vmul.f32 %v6620_v49, %v2646_v9 }
 0x54c   : > { %v2563_v46 = vsel %vm870_vm5, %v8901_v19, %v8938_v57  ;;  %v6636_v49 = vld [vmem:[%s12173_s2 + $0x5d0] sm:$0xff]  ;;  %v2890_v31 = vsel %vm1204_vm8, %v8954_v34, %v9032_v5  ;;  %v6605_v19 = vld [vmem:[%s12173_s2 + $0x498] sm:$0xff]  ;;  %v2700_v45 = vmul.f32 %v6628_v39, %v2695_v51  ;;  %v2847_v55 = vmul.f32 %v6652_v53, %v2841_v52 }
 0x54d   : > { %v2911_v7 = vadd.f32 %v2903_v35, %v2527_v44  ;;  %v2792_v35 = vsel %vm1104_vm7, %v8907_v38, %v2779_v41  ;;  %v2645_v38 = vsel %vm954_vm4, %v8936_v27, %v8952_v21  ;;  %v2743_v27 = vsel %vm1054_vm3, %v8899_v47, %v8973_v12  ;;  %v6660_v9 = vld [vmem:[%s12173_s2 + $0x690] sm:$0xff]  ;;  %v6645_v47 = vld [vmem:[%s12173_s2 + $0x618] sm:$0xff] }
 0x54e   : > { %v2798_v20 = vmul.f32 %v6644_v25, %v2792_v35  ;;  %v2749_v35 = vmul.f32 %v6636_v49, %v2743_v27  ;;  %v2896_v61 = vmul.f32 %v6660_v9, %v2890_v31  ;;  %v6596_v31 = vld [vmem:[%s12173_s2 + $0x590] sm:$0xff] }
 0x54f   : > { %v9038_v29 = vpop.permute.xlu0 %2731  ;;  %v9040_v37 = vpop.permute.xlu1 %2596  ;;  %v2934_v14 = vadd.f32 %v2926_v33, %v2911_v7  ;;  %v6613_v7 = vld [vmem:[%s12173_s2 + $0x4d8] sm:$0xff] }
 0x550   : > { %12296 = vst [vmem:[#allocation20_spill] sm:$0xff] %v9038_v29  ;;  %v6621_v33 = vld [vmem:[%s12173_s2 + $0x518] sm:$0xff]  ;;  %v2742_v36 = vsel %vm1054_vm3, %v8973_v12, %v9038_v29  ;;  %v2611_v34 = vmul.f32 %v6613_v7, %v2604_v28  ;;  %v2570_v28 = vmul.f32 %v6605_v19, %v2563_v46  ;;  %v2708_v29 = vadd.f32 %v2700_v45, %v2610_v3 }
 0x551   : > { %2953 = vmatprep.subr.mxu0 %v2934_v14  ;;  %v6637_v14 = vld [vmem:[%s12173_s2 + $0x5d8] sm:$0xff]  ;;  %v2652_v13 = vmul.f32 %v6621_v33, %v2645_v38  ;;  %v2528_v19 = vmul.f32 %v6596_v31, %v8747_v43  ;;  %v9188_v43 = vld [vmem:[%s12179_s8 + $0x10] sm:$0xff]  ;;  %v6642_v31 = vld [vmem:[%s12173_s2 + $0x600] sm:$0xff] }
 0x552   : > { %v2750_v39 = vmul.f32 %v6637_v14, %v2742_v36  ;;  %v2709_v33 = vadd.f32 %v2701_v11, %v2611_v34  ;;  %v6661_v14 = vld [vmem:[%s12173_s2 + $0x698] sm:$0xff]  ;;  %v2757_v46 = vadd.f32 %v2749_v35, %v2708_v29 }
 0x553   : > { %v9042_v17 = vpop.permute.xlu0 %2780  ;;  %v9044_v50 = vpop.permute.xlu1 %2682  ;;  %v2660_v36 = vadd.f32 %v2652_v13, %v2570_v28  ;;  %v6597_v13 = vld [vmem:[%s12173_s2 + $0x598] sm:$0xff] }
 0x554   : > { %12297 = vst [vmem:[#allocation23_spill] sm:$0xff] %v9042_v17  ;;  %v2791_v12 = vsel %vm1104_vm7, %v2779_v41, %v9042_v17  ;;  %v2659_v41 = vadd.f32 %v2651_v63, %v2569_v56  ;;  %v2758_v56 = vadd.f32 %v2750_v39, %v2709_v33  ;;  %v2855_v9 = vadd.f32 %v2847_v55, %v2757_v46  ;;  %v6626_v33 = vld [vmem:[%s12173_s2 + $0x540] sm:$0xff] }
 0x555   : > { %v2799_v38 = vmul.f32 %v6645_v47, %v2791_v12 }
 0x556   : > { %v2806_v6 = vadd.f32 %v2798_v20, %v2659_v41  ;;  %v2927_v34 = vadd.f32 %v8887_v42, %v2855_v9  ;;  %v6610_v41 = vld [vmem:[%s12173_s2 + $0x4c0] sm:$0xff]  ;;  %v2693_v9 = vsel %vm1004_vm1, %v8960_v22, %v9044_v50 }
 0x557   : > { %v9086_v44 = vpop.permute.xlu0 %2551  ;;  %v9088_v30 = vpop.permute.xlu1 %2686 }
 0x558   : > { %v2904_v11 = vadd.f32 %v2896_v61, %v2806_v6  ;;  %v2529_v61 = vmul.f32 %v6597_v13, %v8777_v2  ;;  %v2745_v6 = vsel %vm1054_vm3, %v8918_v0, %v8962_v48 }
 0x55a   : > { %v2912_v47 = vadd.f32 %v2904_v11, %v2528_v19 }
 0x55b   : > { %v9148_v51 = vpop.permute.xlu0 %2555  ;;  %v9150_v25 = vpop.permute.xlu1 %2829 }
 0x55c   : > { %v2840_v7 = vsel %vm12239_vm6, %v9012_v23, %v9150_v25  ;;  %v2935_v52 = vadd.f32 %v2927_v34, %v2912_v47  ;;  %v6614_v34 = vld [vmem:[%s12173_s2 + $0x4e0] sm:$0xff] }
 0x55d   : > { %v2848_v17 = vmul.f32 %v6653_v32, %v2840_v7  ;;  %v2807_v32 = vadd.f32 %v2799_v38, %v2660_v36  ;;  %v6602_v7 = vld [vmem:[%s12173_s2 + $0x480] sm:$0xff] }
 0x55e   : > { %v6618_v38 = vld [vmem:[%s12173_s2 + $0x500] sm:$0xff] }
 0x55f   : > { %v9162_v63 = vpop.permute.xlu0 %2633  ;;  %v9164_v23 = vpop.permute.xlu1 %2878  ;;  %v2856_v49 = vadd.f32 %v2848_v17, %v2758_v56  ;;  %v2794_v56 = vsel %vm1104_vm7, %v8948_v26, %v9014_v54  ;;  %v6658_v54 = vld [vmem:[%s12173_s2 + $0x680] sm:$0xff] }
 0x560   : > { %v2889_v20 = vsel %vm1204_vm8, %v9032_v5, %v9164_v23 }
 0x561   : > { %v2897_v27 = vmul.f32 %v6661_v14, %v2889_v20  ;;  %v2928_v5 = vadd.f32 %v8887_v42, %v2856_v49 }
 0x563   : > { %v2905_v3 = vadd.f32 %v2897_v27, %v2807_v32  ;;  %v9174_v45 = vpop.permute.xlu0 %2637  ;;  %v9176_v29 = vpop.permute.xlu1 %2735  ;;  %v2796_v27 = vmul.f32 %v6642_v31, %v2794_v56  ;;  %v6622_v31 = vld [vmem:[%s12173_s2 + $0x520] sm:$0xff]  ;;  %v2644_v56 = vsel %vm954_vm4, %v8952_v21, %v9162_v63  ;;  %v6609_v21 = vld [vmem:[%s12173_s2 + $0x4b8] sm:$0xff] }
 0x565   : > { %v2913_v12 = vadd.f32 %v2905_v3, %v2529_v61 }
 0x567   : > { %v9181_v53 = vpop.permute.xlu0 %2784  ;;  %v9183_v17 = vpop.permute.xlu1 %2833  ;;  %v2936_v55 = vadd.f32 %v2928_v5, %v2913_v12  ;;  %v6594_v5 = vld [vmem:[%s12173_s2 + $0x580] sm:$0xff] }
 0x569   : > { %3024 = vmatprep.subr.mxu1 %v2936_v55  ;;  %v2603_v55 = vsel %vm912_vm2, %v8946_v8, %v9034_v58  ;;  %v2562_v8 = vsel %vm870_vm5, %v8938_v57, %v9086_v44  ;;  %v6617_v57 = vld [vmem:[%s12173_s2 + $0x4f8] sm:$0xff] }
 0x56a   : > { %3025 = vmatpush1.msra.mxu1 %v2935_v52 }
 0x56b   : > { %v2599_v2 = vpop.permute.xlu0 %2598  ;;  %6670 = vmatmul.mubr.msk.f32.vlgmr.msra.gmra.mrb[12].mxu1 %vm503_vm0, %v9188_v43  ;;  %v2558_v39 = vpop.permute.xlu1 %2557 }
 0x56c   : > { %3230 = vmatprep.mubr.f32.mxu1 %v12252_v59  ;;  %v2607_v35 = vsel %vm912_vm2, %v2599_v2, %v8909_v18  ;;  %v2566_v28 = vsel %vm870_vm5, %v2558_v39, %v8893_v15  ;;  %v6634_v18 = vld [vmem:[%s12173_s2 + $0x5c0] sm:$0xff]  ;;  %v2843_v15 = vsel %vm12239_vm6, %v8927_v16, %v8971_v62 }
 0x56d   : > { %v6650_v62 = vld [vmem:[%s12173_s2 + $0x640] sm:$0xff]  ;;  %v2608_v11 = vmul.f32 %v6610_v41, %v2607_v35  ;;  %v2567_v20 = vmul.f32 %v6602_v7, %v2566_v28  ;;  %v2747_v49 = vmul.f32 %v6634_v18, %v2745_v6  ;;  %v6601_v35 = vld [vmem:[%s12173_s2 + $0x5b8] sm:$0xff]  ;;  %v2526_v18 = vmul.f32 %v6594_v5, %v8740_v40 }
 0x56e   : > { %v2845_v12 = vmul.f32 %v6650_v62, %v2843_v15  ;;  %v2612_v6 = vmul.f32 %v6614_v34, %v2603_v55  ;;  %v6606_v15 = vld [vmem:[%s12173_s2 + $0x4a0] sm:$0xff]  ;;  %v6633_v40 = vld [vmem:[%s12173_s2 + $0x578] sm:$0xff]  ;;  %v2559_v62 = vsel %vm870_vm5, %v9148_v51, %v2558_v39  ;;  %v6616_v55 = vld [vmem:[%s12173_s2 + $0x4f0] sm:$0xff] }
 0x56f   : > { %v2689_v14 = vpop.permute.xlu0 %2688  ;;  %v2640_v36 = vpop.permute.xlu1 %2639  ;;  %v2574_v5 = vmul.f32 %v6609_v21, %v2559_v62 }
 0x570   : > { %v2697_v48 = vsel %vm1004_vm1, %v2689_v14, %v8940_v10  ;;  %v2648_v46 = vsel %vm954_vm4, %v2640_v36, %v8929_v1  ;;  %v2892_v10 = vsel %vm1204_vm8, %v8958_v4, %v9023_v60  ;;  %v6630_v1 = vld [vmem:[%s12173_s2 + $0x560] sm:$0xff] }
 0x571   : > { %v2698_v13 = vmul.f32 %v6626_v33, %v2697_v48  ;;  %v2649_v32 = vmul.f32 %v6618_v38, %v2648_v46  ;;  %v2894_v60 = vmul.f32 %v6658_v54, %v2892_v10  ;;  %v2702_v41 = vmul.f32 %v6630_v1, %v2693_v9 }
 0x572   : > { %v2690_v48 = vsel %vm1004_vm1, %v9088_v30, %v2689_v14  ;;  %v2600_v46 = vsel %vm912_vm2, %v9040_v37, %v2599_v2  ;;  %v6625_v14 = vld [vmem:[%s12173_s2 + $0x538] sm:$0xff]  ;;  %v2571_v10 = vmul.f32 %v6606_v15, %v2562_v8  ;;  %v6638_v15 = vld [vmem:[%s12173_s2 + $0x5e0] sm:$0xff] }
 0x573   : > { %v2706_v19 = vadd.f32 %v2698_v13, %v2608_v11  ;;  %v2657_v3 = vadd.f32 %v2649_v32, %v2567_v20  ;;  %v2595_v61 = vpop.permute.xlu0 %2594  ;;  %v2554_v47 = vpop.permute.xlu1 %2553  ;;  %v2641_v11 = vsel %vm954_vm4, %v9174_v45, %v2640_v36  ;;  %v12298_v20 = vld [vmem:[#allocation21_spill] sm:$0xff]  ;;  %v9307_v2 = vadd.f32 %v2702_v41, %v2612_v6  ;;  %v6631_v32 = vld [vmem:[%s12173_s2 + $0x568] sm:$0xff]  ;;  %v6632_v36 = vld [vmem:[%s12173_s2 + $0x570] sm:$0xff] }
 0x574   : > { %v9305_v13 = vmul.f32 %v6601_v35, %v12298_v20  ;;  %v2705_v1 = vmul.f32 %v6633_v40, %v2690_v48  ;;  %v2602_v34 = vsel %vm912_vm2, %v9034_v58, %v2595_v61  ;;  %v6623_v41 = vld [vmem:[%s12173_s2 + $0x528] sm:$0xff]  ;;  %v6646_v20 = vld [vmem:[%s12173_s2 + $0x620] sm:$0xff] }
 0x575   : > { %v2755_v22 = vadd.f32 %v2747_v49, %v2706_v19  ;;  %v2804_v52 = vadd.f32 %v2796_v27, %v2657_v3  ;;  %v2653_v27 = vmul.f32 %v6622_v31, %v2644_v56  ;;  %v6607_v35 = vld [vmem:[%s12173_s2 + $0x4a8] sm:$0xff] }
 0x577   : > { %v2853_v7 = vadd.f32 %v2845_v12, %v2755_v22  ;;  %v2902_v28 = vadd.f32 %v2894_v60, %v2804_v52  ;;  %v2685_v33 = vpop.permute.xlu0 %2684  ;;  %v2636_v38 = vpop.permute.xlu1 %2635  ;;  %v2615_v12 = vmul.f32 %v6617_v57, %v2600_v46  ;;  %v2656_v60 = vmul.f32 %v6625_v14, %v2641_v11 }
 0x578   : > { %v2692_v39 = vsel %vm1004_vm1, %v9044_v50, %v2685_v33  ;;  %v2691_v9 = vsel %vm1004_vm1, %v2685_v33, %v9088_v30  ;;  %v6615_v50 = vld [vmem:[%s12173_s2 + $0x4e8] sm:$0xff]  ;;  %v2601_v30 = vsel %vm912_vm2, %v2595_v61, %v9040_v37  ;;  %v2560_v22 = vsel %vm870_vm5, %v2554_v47, %v9148_v51  ;;  %v6608_v37 = vld [vmem:[%s12173_s2 + $0x4b0] sm:$0xff] }
 0x579   : > { %v2910_v49 = vadd.f32 %v2902_v28, %v2526_v18  ;;  %v2925_v54 = vadd.f32 %v8887_v42, %v2853_v7  ;;  %v2703_v52 = vmul.f32 %v6631_v32, %v2692_v39  ;;  %v2643_v58 = vsel %vm954_vm4, %v9162_v63, %v2636_v38  ;;  %v6624_v7 = vld [vmem:[%s12173_s2 + $0x530] sm:$0xff]  ;;  %v12300_v32 = vld [vmem:[#allocation23_spill] sm:$0xff] }
 0x57a   : > { %v2561_v51 = vsel %vm870_vm5, %v9086_v44, %v2554_v47  ;;  %v2704_v61 = vmul.f32 %v6632_v36, %v2691_v9  ;;  %v2642_v63 = vsel %vm954_vm4, %v2636_v38, %v9174_v45  ;;  %v9358_v33 = vadd.f32 %v2653_v27, %v2571_v10  ;;  %v12299_v44 = vld [vmem:[#allocation20_spill] sm:$0xff]  ;;  %v6639_v45 = vld [vmem:[%s12173_s2 + $0x5e8] sm:$0xff] }
 0x57b   : > { %v2734_v19 = vpop.permute.xlu0 %2733  ;;  %v2783_v3 = vpop.permute.xlu1 %2782  ;;  %v2933_v28 = vadd.f32 %v2925_v54, %v2910_v49  ;;  %v9360_v18 = vadd.f32 %v2705_v1, %v2615_v12  ;;  %v2613_v6 = vmul.f32 %v6615_v50, %v2602_v34  ;;  %v2664_v56 = vadd.f32 %v2656_v60, %v2574_v5  ;;  %v6641_v49 = vld [vmem:[%s12173_s2 + $0x5f8] sm:$0xff]  ;;  %v6647_v27 = vld [vmem:[%s12173_s2 + $0x628] sm:$0xff]  ;;  %v6640_v36 = vld [vmem:[%s12173_s2 + $0x5f0] sm:$0xff] }
 0x57c   : > { %v2741_v47 = vsel %vm1054_vm3, %v12299_v44, %v2734_v19  ;;  %v2614_v40 = vmul.f32 %v6616_v55, %v2601_v30  ;;  %v2654_v48 = vmul.f32 %v6623_v41, %v2643_v58  ;;  %v2740_v38 = vsel %vm1054_vm3, %v2734_v19, %v9176_v29  ;;  %v6655_v34 = vld [vmem:[%s12173_s2 + $0x668] sm:$0xff] }
 0x57d   : > { %2954 = vmatpush1.msra.mxu0 %v2933_v28  ;;  %v2572_v57 = vmul.f32 %v6607_v35, %v2561_v51  ;;  %v2573_v46 = vmul.f32 %v6608_v37, %v2560_v22  ;;  %v2711_v21 = vadd.f32 %v2703_v52, %v2613_v6  ;;  %v2655_v62 = vmul.f32 %v6624_v7, %v2642_v63 }
 0x57e   : > { %6669 = vmatmul.mubr.msk.f32.vlgmr.msra.gmra.mrb[12].mxu0 %vm503_vm0, %v9188_v43  ;;  %v2712_v14 = vadd.f32 %v2704_v61, %v2614_v40  ;;  %v2751_v11 = vmul.f32 %v6638_v15, %v2741_v47  ;;  %v2790_v39 = vsel %vm1104_vm7, %v12300_v32, %v2783_v3  ;;  %v2752_v10 = vmul.f32 %v6639_v45, %v2740_v38  ;;  %v6657_v61 = vld [vmem:[%s12173_s2 + $0x678] sm:$0xff] }
 0x57f   : > { %v2738_v8 = vpop.permute.xlu0 %2737  ;;  %v2787_v31 = vpop.permute.xlu1 %2786  ;;  %3159 = vmatprep.mubr.f32.mxu0 %v12252_v59  ;;  %v2789_v1 = vsel %vm1104_vm7, %v2783_v3, %v9181_v53  ;;  %v2662_v60 = vadd.f32 %v2654_v48, %v2572_v57  ;;  %v6648_v3 = vld [vmem:[%s12173_s2 + $0x630] sm:$0xff]  ;;  %v2663_v30 = vadd.f32 %v2655_v62, %v2573_v46  ;;  %v2800_v22 = vmul.f32 %v6646_v20, %v2790_v39 }
 0x580   : > { %v2746_v54 = vsel %vm1054_vm3, %v2738_v8, %v8918_v0  ;;  %v2739_v9 = vsel %vm1054_vm3, %v9176_v29, %v2738_v8  ;;  %v6649_v0 = vld [vmem:[%s12173_s2 + $0x638] sm:$0xff]  ;;  %v2795_v19 = vsel %vm1104_vm7, %v2787_v31, %v8948_v26  ;;  %v2788_v50 = vsel %vm1104_vm7, %v9181_v53, %v2787_v31  ;;  %v6654_v29 = vld [vmem:[%s12173_s2 + $0x660] sm:$0xff]  ;;  %v6600_v39 = vld [vmem:[%s12173_s2 + $0x5b0] sm:$0xff] }
 0x581   : > { %v2754_v52 = vmul.f32 %v6641_v49, %v2746_v54  ;;  %v6662_v53 = vld [vmem:[%s12173_s2 + $0x6a0] sm:$0xff]  ;;  %v2759_v58 = vadd.f32 %v2751_v11, %v9307_v2  ;;  %v2801_v35 = vmul.f32 %v6647_v27, %v2789_v1  ;;  %v2753_v37 = vmul.f32 %v6640_v36, %v2739_v9 }
 0x582   : > { %v2803_v51 = vmul.f32 %v6649_v0, %v2795_v19  ;;  %v2760_v7 = vadd.f32 %v2752_v10, %v2711_v21  ;;  %v2802_v63 = vmul.f32 %v6648_v3, %v2788_v50  ;;  %v2808_v40 = vadd.f32 %v2800_v22, %v9358_v33  ;;  %v6598_v33 = vld [vmem:[%s12173_s2 + $0x5a0] sm:$0xff]  ;;  %v6599_v10 = vld [vmem:[%s12173_s2 + $0x5a8] sm:$0xff] }
 0x583   : > { %v2832_v12 = vpop.permute.xlu0 %2831  ;;  %v2881_v5 = vpop.permute.xlu1 %2880  ;;  %v2762_v48 = vadd.f32 %v2754_v52, %v9360_v18  ;;  %v2809_v57 = vadd.f32 %v2801_v35, %v2662_v60  ;;  %v2761_v46 = vadd.f32 %v2753_v37, %v2712_v14  ;;  %v12301_v0 = vld [vmem:[#allocation22_spill] sm:$0xff]  ;;  %v12302_v60 = vld [vmem:[#allocation19_spill] sm:$0xff] }
 0x584   : > { %v2838_v26 = vsel %vm12239_vm6, %v2832_v12, %v9183_v17  ;;  %v2839_v55 = vsel %vm12239_vm6, %v9150_v25, %v2832_v12  ;;  %v2888_v41 = vsel %vm1204_vm8, %v9164_v23, %v2881_v5  ;;  %v6656_v25 = vld [vmem:[%s12173_s2 + $0x670] sm:$0xff]  ;;  %v6665_v23 = vld [vmem:[%s12173_s2 + $0x6b8] sm:$0xff]  ;;  %v2811_v21 = vadd.f32 %v2803_v51, %v2664_v56 }
 0x585   : > { %v2849_v28 = vmul.f32 %v6654_v29, %v2839_v55  ;;  %v2850_v6 = vmul.f32 %v6655_v34, %v2838_v26  ;;  %v2898_v44 = vmul.f32 %v6662_v53, %v2888_v41  ;;  %v2810_v11 = vadd.f32 %v2802_v63, %v2663_v30  ;;  %v12303_v34 = vld [vmem:[#allocation18_spill] sm:$0xff] }
 0x586   : > { %v2530_v19 = vmul.f32 %v6598_v33, %v12301_v0  ;;  %v2532_v3 = vmul.f32 %v6600_v39, %v12302_v60  ;;  %v2531_v26 = vmul.f32 %v6599_v10, %v12303_v34  ;;  %v12308_v60 = vld [vmem:[#allocation14_spill] sm:$0xff] }
 0x587   : > { %v2836_v15 = vpop.permute.xlu0 %2835  ;;  %v2885_v2 = vpop.permute.xlu1 %2884  ;;  %v2858_v20 = vadd.f32 %v2850_v6, %v2760_v7  ;;  %v2906_v14 = vadd.f32 %v2898_v44, %v2808_v40 }
 0x588   : > { %v2837_v47 = vsel %vm12239_vm6, %v9183_v17, %v2836_v15  ;;  %v2844_v8 = vsel %vm12239_vm6, %v2836_v15, %v8927_v16  ;;  %v2893_v31 = vsel %vm1204_vm8, %v2885_v2, %v8958_v4  ;;  %v6663_v17 = vld [vmem:[%s12173_s2 + $0x6a8] sm:$0xff]  ;;  %v6664_v16 = vld [vmem:[%s12173_s2 + $0x6b0] sm:$0xff]  ;;  %v2857_v4 = vadd.f32 %v2849_v28, %v2759_v58 }
 0x589   : > { %v2851_v45 = vmul.f32 %v6656_v25, %v2837_v47  ;;  %v2852_v38 = vmul.f32 %v6657_v61, %v2844_v8  ;;  %v2901_v62 = vmul.f32 %v6665_v23, %v2893_v31  ;;  %v2914_v55 = vadd.f32 %v2906_v14, %v2530_v19  ;;  %v12305_v47 = vld [vmem:[#allocation10_spill] sm:$0xff] }
 0x58a   : > { %v2930_v41 = vadd.f32 %v8887_v42, %v2858_v20 }
 0x58b   : > { %v2860_v18 = vadd.f32 %v2852_v38, %v2762_v48  ;;  %v2883_v32 = vpop.permute.xlu0 %2882  ;;  %v2909_v56 = vadd.f32 %v2901_v62, %v2811_v21  ;;  %v2859_v27 = vadd.f32 %v2851_v45, %v2761_v46 }
 0x58c   : > { %v2886_v49 = vsel %vm1204_vm8, %v2883_v32, %v2885_v2  ;;  %v2887_v54 = vsel %vm1204_vm8, %v2881_v5, %v2883_v32  ;;  %v2929_v5 = vadd.f32 %v8887_v42, %v2857_v4  ;;  %v12304_v2 = vld [vmem:[#allocation9_spill] sm:$0xff] }
 0x58d   : > { %v2899_v1 = vmul.f32 %v6663_v17, %v2887_v54  ;;  %v2900_v36 = vmul.f32 %v6664_v16, %v2886_v49  ;;  %v2932_v9 = vadd.f32 %v8887_v42, %v2860_v18  ;;  %v2917_v12 = vadd.f32 %v2909_v56, %v9305_v13  ;;  %v12306_v17 = vld [vmem:[#allocation12_spill] sm:$0xff] }
 0x58e   : > { %v2931_v22 = vadd.f32 %v8887_v42, %v2859_v27  ;;  %v2937_v13 = vadd.f32 %v2929_v5, %v2914_v55  ;;  %v12310_v5 = vld [vmem:[#allocation16_spill] sm:$0xff] }
 0x58f   : > { %v2907_v50 = vadd.f32 %v2899_v1, %v2809_v57  ;;  %v2908_v29 = vadd.f32 %v2900_v36, %v2810_v11  ;;  %v2940_v30 = vadd.f32 %v2932_v9, %v2917_v12  ;;  %v12307_v11 = vld [vmem:[#allocation13_spill] sm:$0xff] }
 0x591   : > { %v2916_v52 = vadd.f32 %v2908_v29, %v2532_v3  ;;  %v2915_v53 = vadd.f32 %v2907_v50, %v2531_v26  ;;  %3166 = vmatprep.subr.mxu1 %v2940_v30  ;;  %v12309_v29 = vld [vmem:[#allocation15_spill] sm:$0xff] }
 0x593   : > { %v2938_v58 = vadd.f32 %v2930_v41, %v2915_v53  ;;  %v2939_v35 = vadd.f32 %v2931_v22, %v2916_v52  ;;  %v12311_v22 = vld [vmem:[#allocation17_spill] sm:$0xff] }
 0x595   : > { %3095 = vmatprep.subr.mxu0 %v2938_v58  ;;  %3167 = vmatpush1.msra.mxu1 %v2939_v35 }
 0x596   : > { %3096 = vmatpush1.msra.mxu0 %v2937_v13  ;;  %6672 = vmatmul.mubr.msk.f32.vlgmr.msra.gmra.mrb[14].mxu1 %vm503_vm0, %v9188_v43  ;;  %v3283_v13 = vld [vmem:[%s12174_s3] sm:$0xff] }
 0x597   : > { %6671 = vmatmul.mubr.msk.f32.vlgmr.msra.gmra.mrb[14].mxu0 %vm503_vm0, %v9188_v43  ;;  %4204 = vmatprep.mubr.f32.mxu1 %v12252_v59  ;;  %vm3284_vm9 = vcmp.gt.f32.partialorder %v3283_v13, 0.0 }
 0x598   : > { %4133 = vmatprep.mubr.f32.mxu0 %v12252_v59  ;;  %v3242_v61 = vpop.permute.xlu1 %3241 }
 0x59c   : > { %v2948_v37 = vpop.permute.xlu0 %2947 }
 0x5a0   : > { %v3257_v28 = vpop.permute.xlu0 %3256 }
 0x63e   : > { %v3090_v51 = vpop.f32.mrb[12].mxu1 }
 0x63f   : > { %v3091_v42 = vadd.f32 %v3090_v51, %v2948_v37  ;;  %v3092_v25 = vpop.f32.mrb[13].mxu1 }
 0x640   : > { %v3093_v7 = vadd.f32 %v3092_v25, %v2948_v37 }
 0x641   : > { %v3246_v63 = vmul.f32 %v3242_v61, %v3091_v42 }
 0x642   : > { %v3247_v6 = vmul.f32 %v3242_v61, %v3093_v7 }
 0x643   : > { %v3261_v15 = vadd.f32 %v3257_v28, %v3246_v63  ;;  %v12313_v63 = vmov 0  }
 0x644   : > { %v3262_v23 = vadd.f32 %v3257_v28, %v3247_v6 }
 0x645   : > { %v3269_v44 = vadd.f32 %v3261_v15, %v12304_v2 }
 0x646   : > { %v3270_v8 = vadd.f32 %v3262_v23, %v12305_v47 }
 0x647   : > { %v9487_v43 = vmax.f32 %v3269_v44, 0.0 }
 0x648   : > { %v9489_v31 = vmax.f32 %v3270_v8, 0.0 }
 0x649   : > { %3289 = vrot.lane.b32.xlu1 %v9487_v43, %s12288_s15 }
 0x64a   : > { %3291 = vrot.lane.b32.xlu0 %v9489_v31, %s12288_s15 }
 0x64d   : > { %3313 = vrot.lane.b32.xlu1 %v9487_v43, %s12291_s23 }
 0x64e   : > { %3315 = vrot.lane.b32.xlu0 %v9489_v31, %s12291_s23 }
 0x651   : > { %v3019_v40 = vpop.f32.mrb[12].mxu0 }
 0x652   : > { %v3020_v48 = vadd.f32 %v3019_v40, %v2948_v37  ;;  %v3021_v45 = vpop.f32.mrb[13].mxu0 }
 0x653   : > { %v3022_v38 = vadd.f32 %v3021_v45, %v2948_v37 }
 0x654   : > { %v3244_v57 = vmul.f32 %v3242_v61, %v3020_v48 }
 0x655   : > { %v3245_v46 = vmul.f32 %v3242_v61, %v3022_v38 }
 0x656   : > { %v3259_v21 = vadd.f32 %v3257_v28, %v3244_v57 }
 0x657   : > { %v3260_v62 = vadd.f32 %v3257_v28, %v3245_v46 }
 0x658   : > { %v3267_v16 = vadd.f32 %v3259_v21, %v12306_v17 }
 0x659   : > { %v3268_v4 = vadd.f32 %v3260_v62, %v12307_v11 }
 0x65a   : > { %v9501_v20 = vmax.f32 %v3267_v16, 0.0 }
 0x65b   : > { %v9503_v33 = vmax.f32 %v3268_v4, 0.0 }
 0x65c   : > { %3285 = vrot.lane.b32.xlu1 %v9501_v20, %s12288_s15 }
 0x65d   : > { %3287 = vrot.lane.b32.xlu0 %v9503_v33, %s12288_s15 }
 0x660   : > { %3309 = vrot.lane.b32.xlu1 %v9501_v20, %s12291_s23 }
 0x661   : > { %3311 = vrot.lane.b32.xlu0 %v9503_v33, %s12291_s23 }
 0x669   : > { %v3232_v18 = vpop.f32.mrb[14].mxu1 }
 0x66a   : > { %v3233_v32 = vadd.f32 %v3232_v18, %v2948_v37  ;;  %v3161_v14 = vpop.f32.mrb[14].mxu0  ;;  %v3234_v56 = vpop.f32.mrb[15].mxu1 }
 0x66b   : > { %v3162_v39 = vadd.f32 %v3161_v14, %v2948_v37  ;;  %v3235_v49 = vadd.f32 %v3234_v56, %v2948_v37  ;;  %v3163_v54 = vpop.f32.mrb[15].mxu0 }
 0x66c   : > { %v3250_v10 = vmul.f32 %v3242_v61, %v3233_v32  ;;  %v3164_v27 = vadd.f32 %v3163_v54, %v2948_v37  ;;  %v12312_v37 = vlaneseq }
 0x66d   : > { %v3248_v1 = vmul.f32 %v3242_v61, %v3162_v39  ;;  %v3251_v36 = vmul.f32 %v3242_v61, %v3235_v49 }
 0x66e   : > { %v3265_v9 = vadd.f32 %v3257_v28, %v3250_v10  ;;  %v3249_v0 = vmul.f32 %v3242_v61, %v3164_v27  ;;  %v3335_v51 = vshrl.u32 %v12312_v37, 7 }
 0x66f   : > { %v3263_v19 = vadd.f32 %v3257_v28, %v3248_v1  ;;  %v3266_v12 = vadd.f32 %v3257_v28, %v3251_v36 }
 0x670   : > { %v3273_v3 = vadd.f32 %v3265_v9, %v12308_v60  ;;  %v3264_v50 = vadd.f32 %v3257_v28, %v3249_v0  ;;  %v9561_v25 = vsub.s32 1, %v3335_v51  ;;  %v9563_v61 = vsub.s32 2, %v3335_v51 }
 0x671   : > { %v3274_v34 = vadd.f32 %v3266_v12, %v12309_v29  ;;  %v3271_v55 = vadd.f32 %v3263_v19, %v12310_v5  ;;  %v9566_v28 = vsel %vm3284_vm9, 1, %v12313_v63  ;;  %v9594_v16 = vsub.s32 3, %v3335_v51 }
 0x672   : > { %v9515_v26 = vmax.f32 %v3273_v3, 0.0  ;;  %v3272_v52 = vadd.f32 %v3264_v50, %v12311_v22  ;;  %v3341_v15 = vrot.slane %v9566_v28, %v9561_v25  ;;  %v3345_v23 = vrot.slane %v9566_v28, %v9563_v61 }
 0x673   : > { %v9518_v30 = vmax.f32 %v3274_v34, 0.0  ;;  %v9525_v53 = vmax.f32 %v3271_v55, 0.0  ;;  %v9596_v4 = vsub.s32 0, %v3335_v51  ;;  %v9598_v18 = vsub.s32 7, %v3335_v51 }
 0x674   : > { %3297 = vrot.lane.b32.xlu1 %v9515_v26, %s12288_s15  ;;  %v9527_v41 = vmax.f32 %v3272_v52, 0.0  ;;  %vm3367_vm10 = vcmp.eq.s32.totalorder %v3341_v15, 1  ;;  %vm3368_vm11 = vcmp.eq.s32.totalorder %v3345_v23, 1  ;;  %v3349_v14 = vrot.slane %v9566_v28, %v9594_v16 }
 0x675   : > { %3299 = vrot.lane.b32.xlu0 %v9518_v30, %s12288_s15  ;;  %v3337_v39 = vrot.slane %v9566_v28, %v9596_v4  ;;  %v3365_v49 = vrot.slane %v9566_v28, %v9598_v18  ;;  %v9606_v54 = vsub.s32 4, %v3335_v51  ;;  %v9616_v0 = vsub.s32 5, %v3335_v51 }
 0x676   : > { %vm9608_vm12 = vcmp.eq.s32.totalorder %v3349_v14, 1  ;;  %v9618_v19 = vsub.s32 6, %v3335_v51 }
 0x677   : > { %vm3366_vm13 = vcmp.eq.s32.totalorder %v3337_v39, 1  ;;  %vm3373_vm14 = vcmp.eq.s32.totalorder %v3365_v49, 1  ;;  %v3353_v9 = vrot.slane %v9566_v28, %v9606_v54  ;;  %v3357_v51 = vrot.slane %v9566_v28, %v9616_v0 }
 0x678   : > { %3293 = vrot.lane.b32.xlu1 %v9525_v53, %s12288_s15 }
 0x679   : > { %3295 = vrot.lane.b32.xlu0 %v9527_v41, %s12288_s15  ;;  %vm9638_vm15 = vcmp.eq.s32.totalorder %v3353_v9, 1  ;;  %vm9659_vm9 = vcmp.eq.s32.totalorder %v3357_v51, 1 }
 0x67c   : > { %3317 = vrot.lane.b32.xlu1 %v9525_v53, %s12291_s23 }
 0x67d   : > { %3319 = vrot.lane.b32.xlu0 %v9527_v41, %s12291_s23 }
 0x680   : > { %3321 = vrot.lane.b32.xlu1 %v9515_v26, %s12291_s23 }
 0x681   : > { %3323 = vrot.lane.b32.xlu0 %v9518_v30, %s12291_s23 }
 0x684   : > { %3730 = vrot.lane.b32.xlu1 %v9501_v20, %s12290_s22 }
 0x685   : > { %3732 = vrot.lane.b32.xlu0 %v9503_v33, %s12290_s22 }
 0x688   : > { %3734 = vrot.lane.b32.xlu1 %v9487_v43, %s12290_s22 }
 0x689   : > { %3736 = vrot.lane.b32.xlu0 %v9489_v31, %s12290_s22 }
 0x68c   : > { %3738 = vrot.lane.b32.xlu1 %v9525_v53, %s12290_s22 }
 0x68d   : > { %3744 = vrot.lane.b32.xlu0 %v9518_v30, %s12290_s22 }
 0x690   : > { %3742 = vrot.lane.b32.xlu1 %v9515_v26, %s12290_s22 }
 0x691   : > { %3740 = vrot.lane.b32.xlu0 %v9527_v41, %s12290_s22 }
 0x6bb   : > { %v3290_v58 = vpop.permute.xlu1 %3289 }
 0x6bc   : > { %v3292_v35 = vpop.permute.xlu0 %3291 }
 0x6bd   : > { %v3305_v8 = vsel %vm1054_vm3, %v3290_v58, %v3292_v35 }
 0x6bf   : > { %v3314_v42 = vpop.permute.xlu1 %3313 }
 0x6c0   : > { %v3316_v7 = vpop.permute.xlu0 %3315 }
 0x6c1   : > { %v3329_v55 = vsel %vm954_vm4, %v3314_v42, %v3316_v7 }
 0x6ce   : > { %v3286_v6 = vpop.permute.xlu1 %3285 }
 0x6cf   : > { %v3288_v2 = vpop.permute.xlu0 %3287 }
 0x6d0   : > { %v3306_v40 = vsel %vm1054_vm3, %v3288_v2, %v3290_v58  ;;  %v3307_v36 = vsel %vm1054_vm3, %v3286_v6, %v3288_v2 }
 0x6d2   : > { %v3310_v44 = vpop.permute.xlu1 %3309 }
 0x6d3   : > { %v3312_v47 = vpop.permute.xlu0 %3311 }
 0x6d4   : > { %v3330_v48 = vsel %vm954_vm4, %v3312_v47, %v3314_v42  ;;  %v3331_v45 = vsel %vm954_vm4, %v3310_v44, %v3312_v47  ;;  %v3361_v42 = vrot.slane %v9566_v28, %v9618_v19 }
 0x6d5   : > { %v3375_v38 = vsel %vm3367_vm10, %v3306_v40, %v3331_v45  ;;  %v3376_v57 = vsel %vm3368_vm11, %v3305_v8, %v3330_v48  ;;  %v3728_v40 = vld [vmem:[%s12175_s4] sm:$0xff] }
 0x6d6   : > { %v9581_v46 = vadd.f32 %v3375_v38, %v9503_v33  ;;  %v9584_v21 = vadd.f32 %v3376_v57, %v9487_v43  ;;  %vm9665_vm10 = vcmp.eq.s32.totalorder %v3361_v42, 1  ;;  %vm3729_vm11 = vcmp.gt.f32.partialorder %v3728_v40, 0.0 }
 0x6d8   : > { %3397 = vrot.lane.b32.xlu1 %v9584_v21, %s6980_s0  ;;  %3395 = vrot.lane.b32.xlu0 %v9581_v46, %s6980_s0 }
 0x6dc   : > { %3422 = vrot.lane.b32.xlu1 %v9584_v21, %s6981_s21  ;;  %3420 = vrot.lane.b32.xlu0 %v9581_v46, %s6981_s21 }
 0x6e6   : > { %v3298_v62 = vpop.permute.xlu1 %3297 }
 0x6e7   : > { %v3300_v17 = vpop.permute.xlu0 %3299 }
 0x6e8   : > { %v3308_v60 = vsel %vm1054_vm3, %v3300_v17, %v3286_v6  ;;  %v3301_v48 = vsel %vm1054_vm3, %v3298_v62, %v3300_v17 }
 0x6ea   : > { %v3294_v11 = vpop.permute.xlu1 %3293 }
 0x6eb   : > { %v3296_v32 = vpop.permute.xlu0 %3295  ;;  %v3304_v3 = vsel %vm1054_vm3, %v3292_v35, %v3294_v11 }
 0x6ec   : > { %v3377_v35 = vsel %vm9608_vm12, %v3304_v3, %v3329_v55  ;;  %v3303_v23 = vsel %vm1054_vm3, %v3294_v11, %v3296_v32  ;;  %v3302_v45 = vsel %vm1054_vm3, %v3296_v32, %v3298_v62  ;;  %v3754_v32 = vsel %vm3729_vm11, 1, %v12313_v63 }
 0x6ed   : > { %v9653_v15 = vadd.f32 %v3377_v35, %v9489_v31  ;;  %v3762_v39 = vrot.slane %v3754_v32, %v9561_v25  ;;  %v3758_v49 = vrot.slane %v3754_v32, %v9596_v4  ;;  %v3774_v35 = vrot.slane %v3754_v32, %v9606_v54 }
 0x6ee   : > { %v3318_v56 = vpop.permute.xlu1 %3317  ;;  %v3778_v51 = vrot.slane %v3754_v32, %v9616_v0 }
 0x6ef   : > { %v3320_v10 = vpop.permute.xlu0 %3319  ;;  %v3328_v37 = vsel %vm954_vm4, %v3316_v7, %v3318_v56  ;;  %vm9708_vm12 = vcmp.eq.s32.totalorder %v3762_v39, 1 }
 0x6f0   : > { %v3378_v2 = vsel %vm9638_vm15, %v3303_v23, %v3328_v37  ;;  %v3327_v28 = vsel %vm954_vm4, %v3318_v56, %v3320_v10 }
 0x6f1   : > { %v9683_v38 = vadd.f32 %v3378_v2, %v9525_v53  ;;  %v3379_v57 = vsel %vm9659_vm9, %v3302_v45, %v3327_v28  ;;  %v3786_v28 = vrot.slane %v3754_v32, %v9598_v18  ;;  %vm3791_vm9 = vcmp.eq.s32.totalorder %v3774_v35, 1 }
 0x6f2   : > { %v3322_v1 = vpop.permute.xlu1 %3321  ;;  %v9694_v62 = vadd.f32 %v3379_v57, %v9527_v41 }
 0x6f3   : > { %v3324_v12 = vpop.permute.xlu0 %3323  ;;  %v3326_v8 = vsel %vm954_vm4, %v3320_v10, %v3322_v1 }
 0x6f4   : > { %v3325_v50 = vsel %vm954_vm4, %v3322_v1, %v3324_v12  ;;  %v3332_v29 = vsel %vm954_vm4, %v3324_v12, %v3310_v44  ;;  %v3380_v11 = vsel %vm9665_vm10, %v3301_v48, %v3326_v8  ;;  %v3766_v1 = vrot.slane %v3754_v32, %v9563_v61 }
 0x6f5   : > { %v3374_v34 = vsel %vm3366_vm13, %v3307_v36, %v3332_v29  ;;  %v3381_v5 = vsel %vm3373_vm14, %v3308_v60, %v3325_v50  ;;  %v9697_v17 = vadd.f32 %v3380_v11, %v9515_v26  ;;  %v3770_v36 = vrot.slane %v3754_v32, %v9594_v16 }
 0x6f6   : > { %v9631_v22 = vadd.f32 %v3374_v34, %v9501_v20  ;;  %v9634_v52 = vadd.f32 %v3381_v5, %v9518_v30  ;;  %v3731_v58 = vpop.permute.xlu1 %3730  ;;  %vm9714_vm13 = vcmp.eq.s32.totalorder %v3758_v49, 1  ;;  %vm9728_vm14 = vcmp.eq.s32.totalorder %v3766_v1, 1  ;;  %v6675_v1 = vld [vmem:[%s12174_s3 + $0x8] sm:$0xff] }
 0x6f7   : > { %v3733_v6 = vpop.permute.xlu0 %3732  ;;  %vm9739_vm15 = vcmp.eq.s32.totalorder %v3770_v36, 1  ;;  %v3782_v44 = vrot.slane %v3754_v32, %v9618_v19  ;;  %vm3792_vm10 = vcmp.eq.s32.totalorder %v3778_v51, 1 }
 0x6f8   : > { %3393 = vrot.lane.b32.xlu1 %v9631_v22, %s6980_s0  ;;  %3407 = vrot.lane.b32.xlu0 %v9634_v52, %s6980_s0  ;;  %v3752_v50 = vsel %vm12239_vm6, %v3731_v58, %v3733_v6 }
 0x6f9   : > { %vm3793_vm11 = vcmp.eq.s32.totalorder %v3782_v44, 1 }
 0x6fa   : > { %v3735_v7 = vpop.permute.xlu1 %3734 }
 0x6fb   : > { %v3737_v14 = vpop.permute.xlu0 %3736  ;;  %v3751_v29 = vsel %vm12239_vm6, %v3733_v6, %v3735_v7 }
 0x6fc   : > { %3418 = vrot.lane.b32.xlu1 %v9631_v22, %s6981_s21  ;;  %3399 = vrot.lane.b32.xlu0 %v9653_v15, %s6980_s0  ;;  %v3750_v13 = vsel %vm12239_vm6, %v3735_v7, %v3737_v14 }
 0x6fd   : > { %v3797_v7 = vsel %vm9728_vm14, %v3750_v13, %v3752_v50  ;;  %vm3409_vm14 = vcmp.lt.s32.totalorder %v7345_v24, 126 }
 0x6fe   : > { %v3739_v56 = vpop.permute.xlu1 %3738  ;;  %v9769_v40 = vadd.f32 %v3797_v7, %v9487_v43 }
 0x6ff   : > { %v3745_v10 = vpop.permute.xlu0 %3744  ;;  %v3749_v37 = vsel %vm12239_vm6, %v3737_v14, %v3739_v56 }
 0x700   : > { %3401 = vrot.lane.b32.xlu1 %v9683_v38, %s6980_s0  ;;  %3424 = vrot.lane.b32.xlu0 %v9653_v15, %s6981_s21  ;;  %v3753_v12 = vsel %vm12239_vm6, %v3745_v10, %v3731_v58  ;;  %v3798_v2 = vsel %vm9739_vm15, %v3749_v37, %v3751_v29 }
 0x701   : > { %v3796_v5 = vsel %vm9708_vm12, %v3751_v29, %v3753_v12  ;;  %v9772_v48 = vadd.f32 %v3798_v2, %v9489_v31  ;;  %vm3794_vm12 = vcmp.eq.s32.totalorder %v3786_v28, 1 }
 0x702   : > { %v3743_v27 = vpop.permute.xlu1 %3742  ;;  %v9751_v6 = vadd.f32 %v3796_v5, %v9503_v33 }
 0x703   : > { %v3746_v3 = vsel %vm12239_vm6, %v3743_v27, %v3745_v10  ;;  %v3741_v42 = vpop.permute.xlu0 %3740 }
 0x704   : > { %3405 = vrot.lane.b32.xlu1 %v9697_v17, %s6980_s0  ;;  %3403 = vrot.lane.b32.xlu0 %v9694_v62, %s6980_s0  ;;  %v3795_v55 = vsel %vm9714_vm13, %v3752_v50, %v3746_v3  ;;  %v3747_v47 = vsel %vm12239_vm6, %v3741_v42, %v3743_v27  ;;  %v3748_v8 = vsel %vm12239_vm6, %v3739_v56, %v3741_v42  ;;  %vm3392_vm13 = vcmp.gt.f32.partialorder %v6675_v1, 0.0  ;;  %s6984_s0 = smov 12  }
 0x705   : > { %v9754_v23 = vadd.f32 %v3795_v55, %v9501_v20  ;;  %v3799_v45 = vsel %vm3791_vm9, %v3748_v8, %v3750_v13  ;;  %v3800_v57 = vsel %vm3792_vm10, %v3747_v47, %v3749_v37  ;;  %v3801_v56 = vsel %vm3793_vm11, %v3746_v3, %v3748_v8 }
 0x706   : > { %v9777_v11 = vadd.f32 %v3799_v45, %v9525_v53  ;;  %v9780_v14 = vadd.f32 %v3800_v57, %v9527_v41  ;;  %v3802_v32 = vsel %vm3794_vm12, %v3753_v12, %v3747_v47  ;;  %v9785_v39 = vadd.f32 %v3801_v56, %v9515_v26 }
 0x707   : > { %v9788_v49 = vadd.f32 %v3802_v32, %v9518_v30  ;;  %v9800_v12 = vsel %vm3392_vm13, 1, %v12313_v63  ;;  %vm3434_vm9 = vcmp.lt.s32.totalorder %v7345_v24, 14 }
 0x708   : > { %3426 = vrot.lane.b32.xlu1 %v9683_v38, %s6981_s21  ;;  %3428 = vrot.lane.b32.xlu0 %v9694_v62, %s6981_s21  ;;  %v3451_v60 = vrot.slane %v9800_v12, %v9561_v25  ;;  %v3459_v35 = vrot.slane %v9800_v12, %v9594_v16  ;;  %v3447_v8 = vrot.slane %v9800_v12, %v9596_v4 }
 0x709   : > { %v3475_v1 = vrot.slane %v9800_v12, %v9598_v18 }
 0x70a   : > { %vm3477_vm15 = vcmp.eq.s32.totalorder %v3451_v60, 1  ;;  %vm3479_vm10 = vcmp.eq.s32.totalorder %v3459_v35, 1  ;;  %vm3476_vm12 = vcmp.eq.s32.totalorder %v3447_v8, 1  ;;  %v3471_v35 = vrot.slane %v9800_v12, %v9618_v19 }
 0x70b   : > { %vm9857_vm13 = vcmp.eq.s32.totalorder %v3475_v1, 1  ;;  %v6678_v1 = vld [vmem:[%s12175_s4 + $0x8] sm:$0xff] }
 0x70c   : > { %3430 = vrot.lane.b32.xlu1 %v9697_v17, %s6981_s21  ;;  %3432 = vrot.lane.b32.xlu0 %v9634_v52, %s6981_s21 }
 0x710   : > { %3816 = vrot.lane.b32.xlu0 %v9751_v6, %s6982_s17  ;;  %3814 = vrot.lane.b32.xlu1 %v9754_v23, %s6982_s17 }
 0x714   : > { %3820 = vrot.lane.b32.xlu0 %v9772_v48, %s6982_s17  ;;  %3818 = vrot.lane.b32.xlu1 %v9769_v40, %s6982_s17 }
 0x718   : > { %3824 = vrot.lane.b32.xlu0 %v9780_v14, %s6982_s17  ;;  %3822 = vrot.lane.b32.xlu1 %v9777_v11, %s6982_s17 }
 0x71c   : > { %3828 = vrot.lane.b32.xlu0 %v9788_v49, %s6982_s17  ;;  %3826 = vrot.lane.b32.xlu1 %v9785_v39, %s6982_s17  ;;  %s12393_s17 = smov 17  }
 0x74a   : > { %v3396_v10 = vpop.permute.xlu0 %3395  ;;  %v3398_v27 = vpop.permute.xlu1 %3397 }
 0x74b   : > { %v3415_v5 = vsel %vm3409_vm14, %v3396_v10, %v3398_v27 }
 0x74e   : > { %v9795_v36 = vpop.permute.xlu0 %3420  ;;  %v9797_v9 = vpop.permute.xlu1 %3422 }
 0x76a   : > { %v3408_v3 = vpop.permute.xlu0 %3407  ;;  %v3394_v50 = vpop.permute.xlu1 %3393 }
 0x76b   : > { %v3417_v8 = vsel %vm3409_vm14, %v3408_v3, %v3394_v50 }
 0x76e   : > { %v3400_v29 = vpop.permute.xlu0 %3399  ;;  %v3419_v34 = vpop.permute.xlu1 %3418 }
 0x76f   : > { %v3441_v55 = vsel %vm3434_vm9, %v3419_v34, %v9795_v36 }
 0x770   : > { %v3485_v13 = vsel %vm3477_vm15, %v3415_v5, %v3441_v55  ;;  %v3455_v5 = vrot.slane %v9800_v12, %v9563_v61 }
 0x771   : > { %v9814_v58 = vadd.f32 %v3485_v13, %v9581_v46  ;;  %v3467_v46 = vrot.slane %v9800_v12, %v9616_v0 }
 0x772   : > { %v9816_v37 = vpop.permute.xlu0 %3424  ;;  %v9818_v51 = vpop.permute.xlu1 %3401  ;;  %vm9879_vm15 = vcmp.eq.s32.totalorder %v3455_v5, 1  ;;  %v3440_v5 = vsel %vm3434_vm9, %v9795_v36, %v9797_v9 }
 0x773   : > { %v3439_v42 = vsel %vm3434_vm9, %v9797_v9, %v9816_v37  ;;  %v3413_v7 = vsel %vm3409_vm14, %v3400_v29, %v9818_v51  ;;  %3505 = vrot.lane.b32.xlu0 %v9814_v58, %s6983_s20  ;;  %vm3481_vm11 = vcmp.eq.s32.totalorder %v3467_v46, 1 }
 0x774   : > { %v3487_v2 = vsel %vm3479_vm10, %v3413_v7, %v3439_v42  ;;  %v3416_v42 = vsel %vm3409_vm14, %v3394_v50, %v3396_v10  ;;  %v3414_v50 = vsel %vm3409_vm14, %v3398_v27, %v3400_v29  ;;  %vm9885_vm10 = vcmp.eq.s32.totalorder %v3471_v35, 1 }
 0x775   : > { %v9834_v47 = vadd.f32 %v3487_v2, %v9653_v15 }
 0x776   : > { %v3404_v44 = vpop.permute.xlu0 %3403  ;;  %v3406_v28 = vpop.permute.xlu1 %3405 }
 0x777   : > { %3530 = vrot.lane.b32.xlu0 %v9814_v58, %s6984_s0  ;;  %v3411_v56 = vsel %vm3409_vm14, %v3404_v44, %v3406_v28  ;;  %v3410_v27 = vsel %vm3409_vm14, %v3406_v28, %v3408_v3 }
 0x77a   : > { %v3429_v45 = vpop.permute.xlu0 %3428  ;;  %v3427_v57 = vpop.permute.xlu1 %3426 }
 0x77b   : > { %v3437_v32 = vsel %vm3434_vm9, %v3427_v57, %v3429_v45  ;;  %3509 = vrot.lane.b32.xlu0 %v9834_v47, %s6983_s20 }
 0x77c   : > { %v3489_v15 = vsel %vm3481_vm11, %v3411_v56, %v3437_v32  ;;  %vm3813_vm11 = vcmp.gt.f32.partialorder %v6678_v1, 0.0 }
 0x77d   : > { %v9847_v60 = vadd.f32 %v3489_v15, %v9694_v62 }
 0x77e   : > { %v3433_v55 = vpop.permute.xlu0 %3432  ;;  %v3431_v13 = vpop.permute.xlu1 %3430 }
 0x77f   : > { %v3442_v7 = vsel %vm3434_vm9, %v3433_v55, %v3419_v34  ;;  %v3435_v62 = vsel %vm3434_vm9, %v3431_v13, %v3433_v55  ;;  %3513 = vrot.lane.b32.xlu0 %v9847_v60, %s6983_s20  ;;  %v3436_v55 = vsel %vm3434_vm9, %v3429_v45, %v3431_v13  ;;  %v3486_v45 = vsel %vm9879_vm15, %v3414_v50, %v3440_v5 }
 0x780   : > { %v3484_v2 = vsel %vm3476_vm12, %v3416_v42, %v3442_v7  ;;  %v3491_v10 = vsel %vm9857_vm13, %v3417_v8, %v3435_v62  ;;  %v3490_v35 = vsel %vm9885_vm10, %v3410_v27, %v3436_v55  ;;  %v3463_v7 = vrot.slane %v9800_v12, %v9606_v54 }
 0x781   : > { %v9868_v56 = vadd.f32 %v3484_v2, %v9631_v22  ;;  %v9902_v29 = vadd.f32 %v3491_v10, %v9634_v52  ;;  %v9915_v52 = vsel %vm3813_vm11, 1, %v12313_v63  ;;  %v9918_v36 = vadd.f32 %v3486_v45, %v9584_v21 }
 0x782   : > { %v9872_v34 = vpop.permute.xlu0 %3816  ;;  %v9874_v32 = vpop.permute.xlu1 %3814  ;;  %v9921_v9 = vadd.f32 %v3490_v35, %v9697_v17  ;;  %v3847_v3 = vrot.slane %v9915_v52, %v9561_v25  ;;  %vm9925_vm12 = vcmp.eq.s32.totalorder %v3463_v7, 1  ;;  %v3438_v62 = vsel %vm3434_vm9, %v9816_v37, %v3427_v57 }
 0x783   : > { %3503 = vrot.lane.b32.xlu1 %v9868_v56, %s6983_s20  ;;  %3534 = vrot.lane.b32.xlu0 %v9834_v47, %s6984_s0  ;;  %v3855_v21 = vrot.slane %v9915_v52, %v9594_v16  ;;  %v3412_v17 = vsel %vm3409_vm14, %v9818_v51, %v3404_v44  ;;  %vm3830_vm15 = vcmp.lt.s32.totalorder %v7345_v24, 96  ;;  %v3863_v57 = vrot.slane %v9915_v52, %v9616_v0 }
 0x784   : > { %vm3873_vm13 = vcmp.eq.s32.totalorder %v3847_v3, 1  ;;  %v3488_v2 = vsel %vm9925_vm12, %v3412_v17, %v3438_v62  ;;  %v3871_v5 = vrot.slane %v9915_v52, %v9598_v18  ;;  %v3851_v45 = vrot.slane %v9915_v52, %v9563_v61 }
 0x785   : > { %vm9949_vm9 = vcmp.eq.s32.totalorder %v3855_v21, 1  ;;  %v9963_v50 = vadd.f32 %v3488_v2, %v9683_v38  ;;  %vm3877_vm14 = vcmp.eq.s32.totalorder %v3863_v57, 1  ;;  %v3843_v3 = vrot.slane %v9915_v52, %v9596_v4  ;;  %v6676_v57 = vld [vmem:[%s12174_s3 + $0x10] sm:$0xff] }
 0x786   : > { %v3821_v13 = vpop.permute.xlu0 %3820  ;;  %v3819_v42 = vpop.permute.xlu1 %3818  ;;  %vm3879_vm10 = vcmp.eq.s32.totalorder %v3871_v5, 1  ;;  %vm3874_vm11 = vcmp.eq.s32.totalorder %v3851_v45, 1 }
 0x787   : > { %3528 = vrot.lane.b32.xlu1 %v9868_v56, %s6984_s0  ;;  %3542 = vrot.lane.b32.xlu0 %v9902_v29, %s6984_s0  ;;  %v3836_v8 = vsel %vm3830_vm15, %v9872_v34, %v3819_v42  ;;  %vm3872_vm12 = vcmp.eq.s32.totalorder %v3843_v3, 1 }
 0x78a   : > { %v3825_v28 = vpop.permute.xlu0 %3824  ;;  %v3823_v12 = vpop.permute.xlu1 %3822 }
 0x78b   : > { %3507 = vrot.lane.b32.xlu1 %v9918_v36, %s6983_s20  ;;  %3540 = vrot.lane.b32.xlu0 %v9921_v9, %s6984_s0  ;;  %v3834_v51 = vsel %vm3830_vm15, %v3821_v13, %v3823_v12 }
 0x78c   : > { %v3883_v55 = vsel %vm9949_vm9, %v3834_v51, %v3836_v8 }
 0x78d   : > { %v9979_v38 = vadd.f32 %v3883_v55, %v9772_v48  ;;  %v3835_v48 = vsel %vm3830_vm15, %v3819_v42, %v3821_v13  ;;  %v3859_v13 = vrot.slane %v9915_v52, %v9606_v54 }
 0x78e   : > { %v3829_v37 = vpop.permute.xlu0 %3828  ;;  %v3827_v15 = vpop.permute.xlu1 %3826 }
 0x78f   : > { %v3838_v44 = vsel %vm3830_vm15, %v3829_v37, %v9874_v32  ;;  %3532 = vrot.lane.b32.xlu1 %v9918_v36, %s6984_s0  ;;  %3538 = vrot.lane.b32.xlu0 %v9847_v60, %s6984_s0  ;;  %v3832_v27 = vsel %vm3830_vm15, %v3825_v28, %v3827_v15  ;;  %v3831_v42 = vsel %vm3830_vm15, %v3827_v15, %v3829_v37 }
 0x790   : > { %v3881_v1 = vsel %vm3873_vm13, %v3836_v8, %v3838_v44  ;;  %v3887_v7 = vsel %vm3879_vm10, %v3838_v44, %v3832_v27  ;;  %vm3876_vm13 = vcmp.eq.s32.totalorder %v3859_v13, 1 }
 0x791   : > { %v9966_v22 = vadd.f32 %v3881_v1, %v9751_v6  ;;  %v3885_v6 = vsel %vm3877_vm14, %v3832_v27, %v3834_v51  ;;  %v10003_v46 = vadd.f32 %v3887_v7, %v9788_v49  ;;  %v3833_v49 = vsel %vm3830_vm15, %v3823_v12, %v3825_v28 }
 0x792   : > { %v9988_v35 = vadd.f32 %v3885_v6, %v9780_v14  ;;  %v3837_v14 = vsel %vm3830_vm15, %v9874_v32, %v9872_v34  ;;  %v3867_v32 = vrot.slane %v9915_v52, %v9618_v19  ;;  %v3884_v2 = vsel %vm3876_vm13, %v3833_v49, %v3835_v48 }
 0x793   : > { %3511 = vrot.lane.b32.xlu1 %v9963_v50, %s6983_s20  ;;  %3901 = vrot.lane.b32.xlu0 %v9966_v22, %s6985_s16  ;;  %v3882_v62 = vsel %vm3874_vm11, %v3835_v48, %v3837_v14  ;;  %v3880_v34 = vsel %vm3872_vm12, %v3837_v14, %v3831_v42  ;;  %vm3502_vm15 = vcmp.gt.f32.partialorder %v6676_v57, 0.0  ;;  %vm3544_vm14 = vcmp.lt.s32.totalorder %v7345_v24, 12 }
 0x794   : > { %v10014_v21 = vadd.f32 %v3882_v62, %v9769_v40  ;;  %v10023_v17 = vadd.f32 %v3880_v34, %v9754_v23  ;;  %vm3878_vm9 = vcmp.eq.s32.totalorder %v3867_v32, 1  ;;  %v10028_v40 = vadd.f32 %v3884_v2, %v9777_v11 }
 0x795   : > { %v3886_v37 = vsel %vm3878_vm9, %v3831_v42, %v3833_v49  ;;  %v3553_v10 = vsel %vm3502_vm15, 1, %v12313_v63  ;;  %vm3519_vm11 = vcmp.lt.s32.totalorder %v7345_v24, 124 }
 0x796   : > { %v10033_v52 = vadd.f32 %v3886_v37, %v9785_v39  ;;  %v3561_v51 = vrot.slane %v3553_v10, %v9561_v25  ;;  %v3565_v44 = vrot.slane %v3553_v10, %v9563_v61  ;;  %v3569_v45 = vrot.slane %v3553_v10, %v9594_v16 }
 0x797   : > { %3536 = vrot.lane.b32.xlu1 %v9963_v50, %s6984_s0  ;;  %3905 = vrot.lane.b32.xlu0 %v9979_v38, %s6985_s16  ;;  %v3557_v48 = vrot.slane %v3553_v10, %v9596_v4  ;;  %v3573_v42 = vrot.slane %v3553_v10, %v9606_v54  ;;  %s12104_s0 = scalar_lea.vmem %s12185_s14, %s6869_s24 }
 0x798   : > { %vm3587_vm10 = vcmp.eq.s32.totalorder %v3561_v51, 1  ;;  %vm3588_vm12 = vcmp.eq.s32.totalorder %v3565_v44, 1  ;;  %vm3589_vm13 = vcmp.eq.s32.totalorder %v3569_v45, 1 }
 0x799   : > { %vm10068_vm9 = vcmp.eq.s32.totalorder %v3557_v48, 1  ;;  %vm3590_vm15 = vcmp.eq.s32.totalorder %v3573_v42, 1 }
 0x79b   : > { %3517 = vrot.lane.b32.xlu1 %v9902_v29, %s6983_s20  ;;  %3909 = vrot.lane.b32.xlu0 %v9988_v35, %s6985_s16 }
 0x79f   : > { %3515 = vrot.lane.b32.xlu1 %v9921_v9, %s6983_s20  ;;  %3913 = vrot.lane.b32.xlu0 %v10003_v46, %s6985_s16  ;;  %s6987_s20 = smov 120  }
 0x7a3   : > { %3903 = vrot.lane.b32.xlu1 %v10014_v21, %s6985_s16 }
 0x7a7   : > { %3899 = vrot.lane.b32.xlu1 %v10023_v17, %s6985_s16 }
 0x7ab   : > { %3907 = vrot.lane.b32.xlu1 %v10028_v40, %s6985_s16 }
 0x7af   : > { %3911 = vrot.lane.b32.xlu1 %v10033_v52, %s6985_s16 }
 0x7e5   : > { %v3506_v23 = vpop.permute.xlu0 %3505 }
 0x7e9   : > { %v3531_v28 = vpop.permute.xlu0 %3530 }
 0x7ed   : > { %v3510_v12 = vpop.permute.xlu0 %3509 }
 0x7f1   : > { %v10040_v8 = vpop.permute.xlu0 %3513 }
 0x7f5   : > { %v3504_v11 = vpop.permute.xlu1 %3503  ;;  %v3535_v1 = vpop.permute.xlu0 %3534 }
 0x7f9   : > { %v3529_v39 = vpop.permute.xlu1 %3528 }
 0x7fa   : > { %v3551_v55 = vsel %vm3544_vm14, %v3529_v39, %v3531_v28 }
 0x7fd   : > { %v3508_v15 = vpop.permute.xlu1 %3507 }
 0x7fe   : > { %v3525_v5 = vsel %vm3519_vm11, %v3506_v23, %v3508_v15  ;;  %v3524_v3 = vsel %vm3519_vm11, %v3508_v15, %v3510_v12 }
 0x7ff   : > { %v3595_v27 = vsel %vm3587_vm10, %v3525_v5, %v3551_v55 }
 0x800   : > { %v10052_v6 = vadd.f32 %v3595_v27, %v9814_v58  ;;  %v3543_v58 = vpop.permute.xlu0 %3542 }
 0x801   : > { %v3533_v7 = vpop.permute.xlu1 %3532  ;;  %v3552_v32 = vsel %vm3544_vm14, %v3543_v58, %v3529_v39 }
 0x802   : > { %v3550_v14 = vsel %vm3544_vm14, %v3531_v28, %v3533_v7  ;;  %3640 = vrot.lane.b32.xlu0 %v10052_v6, %s6986_s25  ;;  %3615 = vrot.lane.b32.xlu1 %v10052_v6, %s6987_s20  ;;  %v3549_v2 = vsel %vm3544_vm14, %v3533_v7, %v3535_v1  ;;  %v3526_v28 = vsel %vm3519_vm11, %v3504_v11, %v3506_v23 }
 0x803   : > { %v3596_v62 = vsel %vm3588_vm12, %v3524_v3, %v3550_v14  ;;  %v3594_v51 = vsel %vm10068_vm9, %v3526_v28, %v3552_v32  ;;  %v3585_v23 = vrot.slane %v3553_v10, %v9598_v18  ;;  %v3581_v7 = vrot.slane %v3553_v10, %v9618_v19  ;;  %v6679_v28 = vld [vmem:[%s12175_s4 + $0x10] sm:$0xff] }
 0x804   : > { %v10065_v13 = vadd.f32 %v3596_v62, %v9918_v36  ;;  %v3541_v15 = vpop.permute.xlu0 %3540  ;;  %v10096_v55 = vadd.f32 %v3594_v51, %v9868_v56  ;;  %v3577_v56 = vrot.slane %v3553_v10, %v9616_v0  ;;  %vm3915_vm9 = vcmp.lt.s32.totalorder %v7345_v24, 64 }
 0x805   : > { %v3512_v34 = vpop.permute.xlu1 %3511  ;;  %vm10101_vm10 = vcmp.eq.s32.totalorder %v3585_v23, 1 }
 0x806   : > { %v3523_v37 = vsel %vm3519_vm11, %v3510_v12, %v3512_v34  ;;  %3617 = vrot.lane.b32.xlu0 %v10065_v13, %s6987_s20  ;;  %v3522_v44 = vsel %vm3519_vm11, %v3512_v34, %v10040_v8  ;;  %vm3591_vm12 = vcmp.eq.s32.totalorder %v3577_v56, 1  ;;  %v6677_v56 = vld [vmem:[%s12174_s3 + $0x18] sm:$0xff] }
 0x807   : > { %v3597_v36 = vsel %vm3589_vm13, %v3523_v37, %v3549_v2  ;;  %vm3592_vm13 = vcmp.eq.s32.totalorder %v3581_v7, 1 }
 0x808   : > { %v10083_v57 = vadd.f32 %v3597_v36, %v9834_v47  ;;  %v3539_v48 = vpop.permute.xlu0 %3538 }
 0x809   : > { %v3537_v39 = vpop.permute.xlu1 %3536  ;;  %v3546_v10 = vsel %vm3544_vm14, %v3539_v48, %v3541_v15 }
 0x80a   : > { %v3548_v12 = vsel %vm3544_vm14, %v3535_v1, %v3537_v39  ;;  %3619 = vrot.lane.b32.xlu1 %v10083_v57, %s6987_s20 }
 0x80b   : > { %v3598_v47 = vsel %vm3590_vm15, %v3522_v44, %v3548_v12  ;;  %v6680_v12 = vld [vmem:[%s12175_s4 + $0x18] sm:$0xff] }
 0x80c   : > { %v10099_v5 = vadd.f32 %v3598_v47, %v9963_v50  ;;  %v3545_v50 = vsel %vm3544_vm14, %v3541_v15, %v3543_v58  ;;  %v3547_v58 = vsel %vm3544_vm14, %v3537_v39, %v3539_v48  ;;  %v3902_v2 = vpop.permute.xlu0 %3901  ;;  %vm3898_vm14 = vcmp.gt.f32.partialorder %v6679_v28, 0.0 }
 0x80d   : > { %v3518_v27 = vpop.permute.xlu1 %3517  ;;  %v10165_v44 = vsel %vm3898_vm14, 1, %v12313_v63  ;;  %vm3612_vm14 = vcmp.gt.f32.partialorder %v6677_v56, 0.0 }
 0x80e   : > { %v3527_v1 = vsel %vm3519_vm11, %v3518_v27, %v3504_v11  ;;  %3638 = vrot.lane.b32.xlu1 %v10096_v55, %s6986_s25  ;;  %3621 = vrot.lane.b32.xlu0 %v10099_v5, %s6987_s20  ;;  %v3928_v23 = vrot.slane %v10165_v44, %v9596_v4  ;;  %v3932_v15 = vrot.slane %v10165_v44, %v9561_v25 }
 0x80f   : > { %v3601_v3 = vsel %vm10101_vm10, %v3527_v1, %v3545_v50  ;;  %v3944_v45 = vrot.slane %v10165_v44, %v9606_v54  ;;  %v3940_v7 = vrot.slane %v10165_v44, %v9594_v16 }
 0x810   : > { %v10131_v42 = vadd.f32 %v3601_v3, %v9902_v29  ;;  %v6759_v29 = vld [vmem:[%s12178_s7 + $0x18] sm:$0xff]  ;;  %v3906_v36 = vpop.permute.xlu0 %3905  ;;  %vm10184_vm15 = vcmp.eq.s32.totalorder %v3928_v23, 1  ;;  %vm10192_vm10 = vcmp.eq.s32.totalorder %v3932_v15, 1 }
 0x811   : > { %v3516_v14 = vpop.permute.xlu1 %3515 }
 0x812   : > { %v3520_v11 = vsel %vm3519_vm11, %v3516_v14, %v3518_v27  ;;  %v3521_v62 = vsel %vm3519_vm11, %v10040_v8, %v3516_v14  ;;  %3642 = vrot.lane.b32.xlu1 %v10065_v13, %s6986_s25  ;;  %3644 = vrot.lane.b32.xlu0 %v10083_v57, %s6986_s25  ;;  %v3936_v27 = vrot.slane %v10165_v44, %v9563_v61  ;;  %vm3983_vm11 = vcmp.gt.f32.partialorder %v6680_v12, 0.0 }
 0x813   : > { %v3599_v34 = vsel %vm3591_vm12, %v3521_v62, %v3547_v58  ;;  %v3600_v49 = vsel %vm3592_vm13, %v3520_v11, %v3546_v10  ;;  %v10197_v14 = vsel %vm3983_vm11, 1, %v12313_v63  ;;  %vm10205_vm13 = vcmp.eq.s32.totalorder %v3944_v45, 1 }
 0x814   : > { %v10138_v8 = vadd.f32 %v3599_v34, %v9847_v60  ;;  %v10141_v32 = vadd.f32 %v3600_v49, %v9921_v9  ;;  %v6682_v60 = vld [vmem:[%s12180_s9 + $0x18] sm:$0xff]  ;;  %v3910_v39 = vpop.permute.xlu0 %3909  ;;  %vm10199_vm12 = vcmp.eq.s32.totalorder %v3936_v27, 1  ;;  %v3956_v34 = vrot.slane %v10165_v44, %v9598_v18 }
 0x815   : > { %v3904_v9 = vpop.permute.xlu1 %3903  ;;  %vm10224_vm11 = vcmp.eq.s32.totalorder %v3940_v7, 1  ;;  %v4000_v15 = vrot.slane %v10197_v14, %v9594_v16  ;;  %v10241_v7 = vsel %vm3612_vm14, 1, %v12313_v63  ;;  %v3996_v50 = vrot.slane %v10197_v14, %v9563_v61 }
 0x816   : > { %3613 = vrot.lane.b32.xlu1 %v10096_v55, %s6987_s20  ;;  %3652 = vrot.lane.b32.xlu0 %v10131_v42, %s6986_s25  ;;  %v3920_v28 = vsel %vm3915_vm9, %v3904_v9, %v3906_v36  ;;  %v3671_v10 = vrot.slane %v10241_v7, %v9561_v25  ;;  %vm3654_vm14 = vcmp.lt.s32.totalorder %v7345_v24, 8  ;;  %v4012_v63 = vrot.slane %v10197_v14, %v9618_v19 }
 0x818   : > { %v3914_v1 = vpop.permute.xlu0 %3913 }
 0x819   : > { %v3900_v37 = vpop.permute.xlu1 %3899 }
 0x81a   : > { %3623 = vrot.lane.b32.xlu1 %v10138_v8, %s6987_s20  ;;  %3625 = vrot.lane.b32.xlu0 %v10141_v32, %s6987_s20  ;;  %v3922_v62 = vsel %vm3915_vm9, %v3900_v37, %v3902_v2  ;;  %v3923_v27 = vsel %vm3915_vm9, %v3914_v1, %v3900_v37 }
 0x81b   : > { %v3967_v45 = vsel %vm10199_vm12, %v3920_v28, %v3922_v62 }
 0x81d   : > { %v3908_v51 = vpop.permute.xlu1 %3907 }
 0x81e   : > { %3627 = vrot.lane.b32.xlu1 %v10131_v42, %s6987_s20  ;;  %3646 = vrot.lane.b32.xlu0 %v10099_v5, %s6986_s25  ;;  %v10211_v58 = vsel %vm3915_vm9, %v3908_v51, %v3910_v39  ;;  %v10230_v23 = vsel %vm3915_vm9, %v3906_v36, %v3908_v51  ;;  %v3921_v36 = vsel %vm3915_vm9, %v3902_v2, %v3904_v9 }
 0x81f   : > { %v3969_v51 = vsel %vm10205_vm13, %v10211_v58, %v3920_v28  ;;  %v3975_v2 = vadd.f32 %v3967_v45, %v10014_v21  ;;  %vm3629_vm13 = vcmp.lt.s32.totalorder %v7345_v24, 120 }
 0x821   : > { %v3912_v47 = vpop.permute.xlu1 %3911 }
 0x822   : > { %3648 = vrot.lane.b32.xlu1 %v10138_v8, %s6986_s25  ;;  %3650 = vrot.lane.b32.xlu0 %v10141_v32, %s6986_s25  ;;  %v10190_v48 = vsel %vm3915_vm9, %v3912_v47, %v3914_v1  ;;  %v3968_v1 = vsel %vm10224_vm11, %v10230_v23, %v3921_v36  ;;  %v10262_v11 = vsel %vm3915_vm9, %v3910_v39, %v3912_v47  ;;  %vm10280_vm9 = vcmp.eq.s32.totalorder %v4000_v15, 1 }
 0x823   : > { %v3965_v49 = vsel %vm10184_vm15, %v3922_v62, %v10190_v48  ;;  %vm10256_vm15 = vcmp.eq.s32.totalorder %v3956_v34, 1  ;;  %v3948_v62 = vrot.slane %v10165_v44, %v9616_v0  ;;  %v10276_v34 = vadd.f32 %v3969_v51, %v10028_v40 }
 0x824   : > { %v10251_v37 = vadd.f32 %v3965_v49, %v10023_v17  ;;  %v3966_v17 = vsel %vm10192_vm10, %v3921_v36, %v3923_v27  ;;  %v3952_v39 = vrot.slane %v10165_v44, %v9618_v19  ;;  %vm10284_vm10 = vcmp.eq.s32.totalorder %v3996_v50, 1 }
 0x825   : > { %v10289_v3 = vadd.f32 %v3968_v1, %v9979_v38  ;;  %v3988_v44 = vrot.slane %v10197_v14, %v9596_v4  ;;  %v3974_v28 = vadd.f32 %v3966_v17, %v9966_v22  ;;  %v3675_v38 = vrot.slane %v10241_v7, %v9563_v61 }
 0x826   : > { %4063 = vperm.xlu1 %6897, %v6682_v60   ;;  %4806 = vperm.xlu0 %6896, %v6759_v29   ;;  %v3992_v29 = vrot.slane %v10197_v14, %v9561_v25  ;;  %v3972_v25 = vsel %vm10256_vm15, %v3923_v27, %v10262_v11  ;;  %vm10304_vm11 = vcmp.eq.s32.totalorder %v3671_v10, 1  ;;  %v3679_v15 = vrot.slane %v10241_v7, %v9594_v16 }
 0x827   : > { %v10311_v27 = vadd.f32 %v3972_v25, %v10003_v46  ;;  %v4028_v36 = vsel %vm10280_vm9, %v10276_v34, %v3975_v2  ;;  %v4027_v16 = vsel %vm10284_vm10, %v10289_v3, %v3974_v28  ;;  %vm10327_vm15 = vcmp.eq.s32.totalorder %v3988_v44, 1 }
 0x828   : > { %vm10264_vm12 = vcmp.eq.s32.totalorder %v3992_v29, 1  ;;  %vm10335_vm9 = vcmp.eq.s32.totalorder %v3952_v39, 1  ;;  %vm10341_vm6 = vcmp.eq.s32.totalorder %v3675_v38, 1  ;;  %vm10345_vm10 = vcmp.eq.s32.totalorder %v3679_v15, 1 }
 0x829   : > { %v4026_v40 = vsel %vm10264_vm12, %v3975_v2, %v10251_v37  ;;  %vm10331_vm12 = vcmp.eq.s32.totalorder %v3948_v62, 1  ;;  %v3667_v62 = vrot.slane %v10241_v7, %v9596_v4  ;;  %v4036_v39 = vadd.f32 %v4028_v36, %v10289_v3 }
 0x82a   : > { %v4034_v50 = vadd.f32 %v4026_v40, %v3974_v28  ;;  %v4035_v38 = vadd.f32 %v4027_v16, %v3975_v2  ;;  %v4025_v12 = vsel %vm10327_vm15, %v3974_v28, %v10311_v27  ;;  %v4008_v28 = vrot.slane %v10197_v14, %v9616_v0 }
 0x82b   : > { %v3971_v16 = vsel %vm10335_vm9, %v10190_v48, %v10211_v58  ;;  %v4044_v17 = vmul.f32 0.0625, %v4036_v39  ;;  %v3970_v48 = vsel %vm10331_vm12, %v10262_v11, %v10230_v23  ;;  %v10408_v23 = vld [vmem:[%s12179_s8 + $0x18] sm:$0xff]  ;;  %vm10425_vm12 = vcmp.eq.s32.totalorder %v4012_v63, 1 }
 0x82c   : > { %v4042_v44 = vmul.f32 0.0625, %v4034_v50  ;;  %v4043_v10 = vmul.f32 0.0625, %v4035_v38  ;;  %v3978_v1 = vadd.f32 %v3970_v48, %v9988_v35 }
 0x874   : > { %v10218_v60 = vpop.permute.xlu0 %3640  ;;  %v10238_v56 = vpop.permute.xlu1 %3615 }
 0x878   : > { %v3618_v47 = vpop.permute.xlu0 %3617 }
 0x879   : > { %v3635_v61 = vsel %vm3629_vm13, %v10238_v56, %v3618_v47 }
 0x87c   : > { %v3620_v49 = vpop.permute.xlu1 %3619 }
 0x87d   : > { %v3634_v21 = vsel %vm3629_vm13, %v3618_v47, %v3620_v49 }
 0x880   : > { %v10313_v45 = vpop.permute.xlu0 %3621  ;;  %v3639_v22 = vpop.permute.xlu1 %3638 }
 0x881   : > { %v3661_v51 = vsel %vm3654_vm14, %v3639_v22, %v10218_v60  ;;  %v3633_v15 = vsel %vm3629_vm13, %v3620_v49, %v10313_v45  ;;  %v4016_v49 = vrot.slane %v10197_v14, %v9598_v18 }
 0x882   : > { %v3705_v9 = vsel %vm10304_vm11, %v3635_v61, %v3661_v51  ;;  %vm10375_vm11 = vcmp.eq.s32.totalorder %v3667_v62, 1 }
 0x883   : > { %v3713_v29 = vadd.f32 %v3705_v9, %v10052_v6  ;;  %vm10417_vm15 = vcmp.eq.s32.totalorder %v4016_v49, 1 }
 0x884   : > { %v3645_v25 = vpop.permute.xlu0 %3644  ;;  %v3643_v40 = vpop.permute.xlu1 %3642 }
 0x885   : > { %v3659_v4 = vsel %vm3654_vm14, %v3643_v40, %v3645_v25  ;;  %v3660_v6 = vsel %vm3654_vm14, %v10218_v60, %v3643_v40  ;;  %v3721_v47 = vmul.f32 0.0625, %v3713_v29  ;;  %v4033_v29 = vadd.f32 %v4025_v12, %v10251_v37 }
 0x886   : > { %v3706_v50 = vsel %vm10341_vm6, %v3634_v21, %v3660_v6  ;;  %v3707_v2 = vsel %vm10345_vm10, %v3633_v15, %v3659_v4  ;;  %vm10410_vm6 = vcmp.eq.s32.totalorder %v4008_v28, 1  ;;  %v3695_v6 = vrot.slane %v10241_v7, %v9598_v18 }
 0x887   : > { %v3714_v36 = vadd.f32 %v3706_v50, %v10065_v13  ;;  %v4050_v60 = vadd.f32 %v4042_v44, %v3721_v47  ;;  %v3715_v51 = vadd.f32 %v3707_v2, %v10083_v57  ;;  %v3979_v44 = vadd.f32 %v3971_v16, %v10033_v52 }
 0x888   : > { %v10384_v46 = vpop.permute.xlu0 %3652  ;;  %v3614_v9 = vpop.permute.xlu1 %3613  ;;  %v4041_v4 = vmul.f32 0.0625, %v4033_v29  ;;  %v3687_v47 = vrot.slane %v10241_v7, %v9616_v0 }
 0x889   : > { %v3722_v13 = vmul.f32 0.0625, %v3714_v36  ;;  %v3662_v62 = vsel %vm3654_vm14, %v10384_v46, %v3639_v22  ;;  %v3636_v57 = vsel %vm3629_vm13, %v3614_v9, %v10238_v56  ;;  %4069 = vmatprep.subr.mxu0 %v4050_v60  ;;  %v3723_v21 = vmul.f32 0.0625, %v3715_v51 }
 0x88a   : > { %v3704_v58 = vsel %vm10375_vm11, %v3636_v57, %v3662_v62  ;;  %v3683_v56 = vrot.slane %v10241_v7, %v9606_v54  ;;  %v4030_v0 = vsel %vm10410_vm6, %v3979_v44, %v10276_v34  ;;  %v4032_v28 = vsel %vm10417_vm15, %v10251_v37, %v3979_v44 }
 0x88b   : > { %v3712_v39 = vadd.f32 %v3704_v58, %v10096_v55  ;;  %v4052_v22 = vadd.f32 %v4044_v17, %v3723_v21  ;;  %v4051_v40 = vadd.f32 %v4043_v10, %v3722_v13  ;;  %v4004_v55 = vrot.slane %v10197_v14, %v9606_v54 }
 0x88c   : > { %v3626_v38 = vpop.permute.xlu0 %3625  ;;  %v3624_v12 = vpop.permute.xlu1 %3623  ;;  %vm10431_vm9 = vcmp.eq.s32.totalorder %v3683_v56, 1  ;;  %v3691_v14 = vrot.slane %v10241_v7, %v9618_v19  ;;  %v4031_v36 = vsel %vm10425_vm12, %v10311_v27, %v3978_v1  ;;  %vm10460_vm11 = vcmp.eq.s32.totalorder %v3695_v6, 1 }
 0x88d   : > { %v3720_v15 = vmul.f32 0.0625, %v3712_v39  ;;  %4140 = vmatprep.subr.mxu1 %v4052_v22  ;;  %vm10443_vm10 = vcmp.eq.s32.totalorder %v4004_v55, 1  ;;  %v3632_v19 = vsel %vm3629_vm13, %v10313_v45, %v3624_v12  ;;  %vm10464_vm6 = vcmp.eq.s32.totalorder %v3687_v47, 1 }
 0x88e   : > { %4141 = vmatpush1.msra.mxu1 %v4051_v40  ;;  %vm10468_vm15 = vcmp.eq.s32.totalorder %v3691_v14, 1  ;;  %v4038_v60 = vadd.f32 %v4030_v0, %v3978_v1  ;;  %v4040_v51 = vadd.f32 %v4032_v28, %v10311_v27  ;;  %v4029_v16 = vsel %vm10443_vm10, %v3978_v1, %v10289_v3 }
 0x88f   : > { %6684 = vmatmul.mubr.msk.f32.vlgmr.msra.gmra.mrb[16].mxu1 %vm503_vm0, %v10408_v23  ;;  %v4049_v35 = vadd.f32 %v4041_v4, %v3720_v15  ;;  %v3631_v17 = vsel %vm3629_vm13, %v3624_v12, %v3626_v38  ;;  %v4039_v57 = vadd.f32 %v4031_v36, %v3979_v44 }
 0x890   : > { %v3647_v2 = vpop.permute.xlu0 %3646  ;;  %v3628_v18 = vpop.permute.xlu1 %3627  ;;  %4346 = vmatprep.mubr.f32.mxu1 %v12252_v59  ;;  %v4046_v56 = vmul.f32 0.0625, %v4038_v60  ;;  %v4048_v44 = vmul.f32 0.0625, %v4040_v51 }
 0x891   : > { %v3658_v7 = vsel %vm3654_vm14, %v3645_v25, %v3647_v2  ;;  %4070 = vmatpush1.msra.mxu0 %v4049_v35  ;;  %v3630_v29 = vsel %vm3629_vm13, %v3626_v38, %v3628_v18  ;;  %v3637_v27 = vsel %vm3629_vm13, %v3628_v18, %v3614_v9  ;;  %v4037_v9 = vadd.f32 %v4029_v16, %v10276_v34 }
 0x892   : > { %v3708_v37 = vsel %vm10431_vm9, %v3632_v19, %v3658_v7  ;;  %6683 = vmatmul.mubr.msk.f32.vlgmr.msra.gmra.mrb[16].mxu0 %vm503_vm0, %v10408_v23  ;;  %v4047_v55 = vmul.f32 0.0625, %v4039_v57  ;;  %vm12399_vm13 = vcmp.lt.s32.totalorder %v7345_v24, 112 }
 0x893   : > { %4275 = vmatprep.mubr.f32.mxu0 %v12252_v59  ;;  %v3716_v10 = vadd.f32 %v3708_v37, %v10099_v5  ;;  %v4045_v1 = vmul.f32 0.0625, %v4037_v9  ;;  %vm12401_vm12 = vmmov %vm12399_vm13 }
 0x894   : > { %v3651_v13 = vpop.permute.xlu0 %3650  ;;  %v3649_v62 = vpop.permute.xlu1 %3648  ;;  %vm12402_vm9 = vmmov %vm12401_vm12 }
 0x895   : > { %v3655_v3 = vsel %vm3654_vm14, %v3651_v13, %v10384_v46  ;;  %v3656_v21 = vsel %vm3654_vm14, %v3649_v62, %v3651_v13  ;;  %v3657_v48 = vsel %vm3654_vm14, %v3647_v2, %v3649_v62  ;;  %v3724_v40 = vmul.f32 0.0625, %v3716_v10  ;;  %vm12400_vm14 = vmmov %vm12399_vm13 }
 0x896   : > { %v3711_v5 = vsel %vm10460_vm11, %v3637_v27, %v3655_v3  ;;  %v3709_v58 = vsel %vm10464_vm6, %v3631_v17, %v3657_v48  ;;  %v3710_v63 = vsel %vm10468_vm15, %v3630_v29, %v3656_v21  ;;  %vm12403_vm10 = vmmov %vm12402_vm9 }
 0x897   : > { %v3718_v39 = vadd.f32 %v3710_v63, %v10141_v32  ;;  %v3717_v46 = vadd.f32 %v3709_v58, %v10138_v8  ;;  %v3719_v22 = vadd.f32 %v3711_v5, %v10131_v42  ;;  %v4053_v6 = vadd.f32 %v4045_v1, %v3724_v40  ;;  %vm12404_vm11 = vmmov %vm12402_vm9 }
 0x898   : > { %vm12405_vm6 = vmmov %vm12402_vm9 }
 0x899   : > { %v3726_v38 = vmul.f32 0.0625, %v3718_v39  ;;  %v3725_v12 = vmul.f32 0.0625, %v3717_v46  ;;  %v3727_v11 = vmul.f32 0.0625, %v3719_v22  ;;  %vm12406_vm15 = vmmov %vm12405_vm6 }
 0x89b   : > { %v4054_v15 = vadd.f32 %v4046_v56, %v3725_v12  ;;  %v4056_v4 = vadd.f32 %v4048_v44, %v3727_v11  ;;  %v4055_v52 = vadd.f32 %v4047_v55, %v3726_v38 }
 0x89d   : > { %4211 = vmatprep.subr.mxu0 %v4054_v15  ;;  %4282 = vmatprep.subr.mxu1 %v4056_v4 }
 0x89e   : > { %4212 = vmatpush1.msra.mxu0 %v4053_v6  ;;  %4283 = vmatpush1.msra.mxu1 %v4055_v52 }
 0x89f   : > { %6685 = vmatmul.mubr.msk.f32.vlgmr.msra.gmra.mrb[18].mxu0 %vm503_vm0, %v10408_v23  ;;  %6686 = vmatmul.mubr.msk.f32.vlgmr.msra.gmra.mrb[18].mxu1 %vm503_vm0, %v10408_v23 }
 0x8a0   : > { %4972 = vmatprep.mubr.f32.mxu1 %v12252_v59  ;;  %4901 = vmatprep.mubr.f32.mxu0 %v12252_v59 }
 0x8a5   : > { %v10507_v42 = vpop.permute.xlu1 %4063 }
 0x962   : > { %v4206_v8 = vpop.f32.mrb[16].mxu1 }
 0x963   : > { %v4207_v32 = vadd.f32 %v4206_v8, %v10507_v42  ;;  %v4208_v34 = vpop.f32.mrb[17].mxu1 }
 0x964   : > { %v4209_v23 = vadd.f32 %v4208_v34, %v10507_v42 }
 0x965   : > { %v4355_v47 = vsub.f32 0.0, %v4207_v32  ;;  %v4135_v50 = vpop.f32.mrb[16].mxu0 }
 0x966   : > { %v4136_v54 = vadd.f32 %v4135_v50, %v10507_v42  ;;  %v4137_v35 = vpop.f32.mrb[17].mxu0  ;;  %v4356_v61 = vsub.f32 0.0, %v4209_v23 }
 0x967   : > { %v4365_v14 = vmul.f32 1.442695, %v4355_v47  ;;  %v4138_v60 = vadd.f32 %v4137_v35, %v10507_v42 }
 0x968   : > { %v4353_v2 = vsub.f32 0.0, %v4136_v54  ;;  %v4367_v25 = vmul.f32 1.442695, %v4356_v61 }
 0x969   : > { %6930 = vpow2.f32 %v4365_v14  ;;  %v4354_v10 = vsub.f32 0.0, %v4138_v60 }
 0x96a   : > { %v4361_v18 = vmul.f32 1.442695, %v4353_v2 }
 0x96b   : > { %v4363_v13 = vmul.f32 1.442695, %v4354_v10 }
 0x96c   : > { %6932 = vpow2.f32 %v4361_v18  ;;  %v6766_v18 = vld [vmem:[%s12181_s10 + $0x20] sm:$0xff] }
 0x972   : > { %v4277_v0 = vpop.f32.mrb[18].mxu0  ;;  %v4348_v28 = vpop.f32.mrb[18].mxu1 }
 0x973   : > { %v6931_v49 = vpop.eup %6930  ;;  %v10512_v19 = vpop.f32.mrb[19].mxu0  ;;  %v4349_v57 = vadd.f32 %v4348_v28, %v10507_v42  ;;  %v4278_v21 = vadd.f32 %v4277_v0, %v10507_v42  ;;  %v6761_v0 = vld [vmem:[%s12180_s9 + $0x20] sm:$0xff] }
 0x974   : > { %v10514_v7 = vpop.f32.mrb[19].mxu1  ;;  %v4379_v36 = vadd.f32 1.0, %v6931_v49  ;;  %v4280_v12 = vadd.f32 %v10512_v19, %v10507_v42  ;;  %v6840_v49 = vld [vmem:[%s12178_s7 + $0x20] sm:$0xff] }
 0x975   : > { %v4359_v48 = vsub.f32 0.0, %v4349_v57  ;;  %v4357_v58 = vsub.f32 0.0, %v4278_v21  ;;  %v4351_v56 = vadd.f32 %v10514_v7, %v10507_v42  ;;  %v6767_v7 = vld [vmem:[%s12182_s11 + $0x20] sm:$0xff] }
 0x976   : > { %v6933_v37 = vpop.eup %6932  ;;  %6934 = vrcp.f32 %v4379_v36  ;;  %v4358_v15 = vsub.f32 0.0, %v4280_v12  ;;  %v6704_v12 = vld [vmem:[%s12173_s2 + $0x708] sm:$0xff] }
 0x977   : > { %v4377_v45 = vadd.f32 1.0, %v6933_v37  ;;  %v4373_v63 = vmul.f32 1.442695, %v4359_v48  ;;  %v4369_v9 = vmul.f32 1.442695, %v4357_v58  ;;  %v4360_v44 = vsub.f32 0.0, %v4351_v56 }
 0x978   : > { %v4371_v52 = vmul.f32 1.442695, %v4358_v15  ;;  %v6712_v58 = vld [vmem:[%s12173_s2 + $0x748] sm:$0xff] }
 0x979   : > { %6936 = vrcp.f32 %v4377_v45  ;;  %v4375_v11 = vmul.f32 1.442695, %v4360_v44 }
 0x97a   : > { %6938 = vpow2.f32 %v4367_v25 }
 0x97b   : > { %6940 = vpow2.f32 %v4363_v13 }
 0x980   : > { %v6935_v51 = vpop.eup %6934 }
 0x981   : > { %v10518_v16 = vmul.f32 %v6935_v51, %v9487_v43 }
 0x983   : > { %12392 = vst [vmem:[#allocation21_spill] sm:$0xff] %v10518_v16  ;;  %v6937_v17 = vpop.eup %6936  ;;  %4431 = vrot.lane.b32.xlu0 %v10518_v16, %s12393_s17 }
 0x984   : > { %v10523_v29 = vmul.f32 %v6937_v17, %v9501_v20  ;;  %v6939_v62 = vpop.eup %6938 }
 0x985   : > { %v4380_v43 = vadd.f32 1.0, %v6939_v62  ;;  %v6941_v20 = vpop.eup %6940 }
 0x986   : > { %12394 = vst [vmem:[#allocation20_spill] sm:$0xff] %v10523_v29  ;;  %4468 = vrot.lane.b32.xlu1 %v10523_v29, %s12289_s18  ;;  %v4378_v27 = vadd.f32 1.0, %v6941_v20 }
 0x987   : > { %4472 = vrot.lane.b32.xlu0 %v10518_v16, %s12289_s18  ;;  %6942 = vrcp.f32 %v4380_v43 }
 0x988   : > { %6944 = vrcp.f32 %v4378_v27 }
 0x989   : > { %6946 = vpow2.f32 %v4373_v63 }
 0x98a   : > { %4558 = vrot.lane.b32.xlu1 %v10523_v29, %s12266_s19  ;;  %6948 = vpow2.f32 %v4369_v9 }
 0x98b   : > { %4513 = vrot.lane.b32.xlu0 %v10518_v16, %s12291_s23 }
 0x98e   : > { %4611 = vrot.lane.b32.xlu1 %v10518_v16, %s12288_s15 }
 0x98f   : > { %4562 = vrot.lane.b32.xlu0 %v10518_v16, %s12266_s19 }
 0x991   : > { %v6943_v3 = vpop.eup %6942 }
 0x992   : > { %4607 = vrot.lane.b32.xlu1 %v10523_v29, %s12288_s15  ;;  %v10552_v5 = vmul.f32 %v6943_v3, %v9489_v31  ;;  %v6945_v39 = vpop.eup %6944 }
 0x993   : > { %4427 = vrot.lane.b32.xlu0 %v10523_v29, %s12393_s17  ;;  %v10567_v31 = vmul.f32 %v6945_v39, %v9503_v33  ;;  %v6947_v46 = vpop.eup %6946  ;;  %v6696_v39 = vld [vmem:[%s12173_s2 + $0x6c8] sm:$0xff] }
 0x994   : > { %12395 = vst [vmem:[#allocation23_spill] sm:$0xff] %v10552_v5  ;;  %v6949_v22 = vpop.eup %6948  ;;  %v4383_v40 = vadd.f32 1.0, %v6947_v46 }
 0x995   : > { %12396 = vst [vmem:[#allocation22_spill] sm:$0xff] %v10567_v31  ;;  %v4381_v33 = vadd.f32 1.0, %v6949_v22  ;;  %v6720_v22 = vld [vmem:[%s12173_s2 + $0x788] sm:$0xff] }
 0x996   : > { %4709 = vrot.lane.b32.xlu1 %v10518_v16, %s12290_s22  ;;  %6950 = vrcp.f32 %v4383_v40 }
 0x997   : > { %4509 = vrot.lane.b32.xlu0 %v10523_v29, %s12291_s23  ;;  %6952 = vrcp.f32 %v4381_v33  ;;  %v6736_v33 = vld [vmem:[%s12173_s2 + $0x848] sm:$0xff] }
 0x998   : > { %6954 = vpow2.f32 %v4375_v11 }
 0x999   : > { %6956 = vpow2.f32 %v4371_v52 }
 0x99a   : > { %4705 = vrot.lane.b32.xlu1 %v10523_v29, %s12290_s22 }
 0x99b   : > { %4660 = vrot.lane.b32.xlu0 %v10518_v16, %s12267_s26 }
 0x99e   : > { %4433 = vrot.lane.b32.xlu1 %v10552_v5, %s12393_s17 }
 0x99f   : > { %4656 = vrot.lane.b32.xlu0 %v10523_v29, %s12267_s26 }
 0x9a0   : > { %v6951_v38 = vpop.eup %6950 }
 0x9a1   : > { %v6953_v55 = vpop.eup %6952  ;;  %v10598_v1 = vmul.f32 %v6951_v38, %v9515_v26 }
 0x9a2   : > { %4474 = vrot.lane.b32.xlu1 %v10552_v5, %s12289_s18  ;;  %v10605_v4 = vmul.f32 %v6953_v55, %v9525_v53  ;;  %v6955_v26 = vpop.eup %6954  ;;  %v6728_v55 = vld [vmem:[%s12173_s2 + $0x808] sm:$0xff] }
 0x9a3   : > { %4758 = vrot.lane.b32.xlu0 %v10518_v16, %s12268_s27  ;;  %v4384_v53 = vadd.f32 1.0, %v6955_v26  ;;  %v6957_v6 = vpop.eup %6956 }
 0x9a4   : > { %v4382_v42 = vadd.f32 1.0, %v6957_v6 }
 0x9a5   : > { %6958 = vrcp.f32 %v4384_v53 }
 0x9a6   : > { %4515 = vrot.lane.b32.xlu1 %v10552_v5, %s12291_s23  ;;  %6960 = vrcp.f32 %v4382_v42  ;;  %v6752_v42 = vld [vmem:[%s12173_s2 + $0x8c8] sm:$0xff] }
 0x9a7   : > { %4754 = vrot.lane.b32.xlu0 %v10523_v29, %s12268_s27 }
 0x9aa   : > { %4564 = vrot.lane.b32.xlu1 %v10552_v5, %s12266_s19 }
 0x9ab   : > { %4429 = vrot.lane.b32.xlu0 %v10567_v31, %s12393_s17 }
 0x9ae   : > { %4470 = vrot.lane.b32.xlu1 %v10567_v31, %s12289_s18 }
 0x9af   : > { %4511 = vrot.lane.b32.xlu0 %v10567_v31, %s12291_s23  ;;  %v6959_v8 = vpop.eup %6958 }
 0x9b0   : > { %v10636_v32 = vmul.f32 %v6959_v8, %v9518_v30  ;;  %v6961_v34 = vpop.eup %6960  ;;  %v10657_v30 = vpop.permute.xlu0 %4806 }
 0x9b1   : > { %v10647_v47 = vmul.f32 %v6961_v34, %v9527_v41 }
 0x9b2   : > { %4560 = vrot.lane.b32.xlu1 %v10567_v31, %s12266_s19  ;;  %12397 = vst [vmem:[#allocation19_spill] sm:$0xff] %v10636_v32 }
 0x9b3   : > { %4613 = vrot.lane.b32.xlu0 %v10552_v5, %s12288_s15  ;;  %12398 = vst [vmem:[#allocation18_spill] sm:$0xff] %v10647_v47 }
 0x9b6   : > { %4609 = vrot.lane.b32.xlu1 %v10567_v31, %s12288_s15 }
 0x9b7   : > { %4662 = vrot.lane.b32.xlu0 %v10552_v5, %s12267_s26 }
 0x9ba   : > { %4711 = vrot.lane.b32.xlu1 %v10552_v5, %s12290_s22 }
 0x9bb   : > { %4658 = vrot.lane.b32.xlu0 %v10567_v31, %s12267_s26 }
 0x9be   : > { %4760 = vrot.lane.b32.xlu1 %v10552_v5, %s12268_s27 }
 0x9bf   : > { %4756 = vrot.lane.b32.xlu0 %v10567_v31, %s12268_s27 }
 0x9c2   : > { %4707 = vrot.lane.b32.xlu1 %v10567_v31, %s12290_s22 }
 0x9c3   : > { %4480 = vrot.lane.b32.xlu0 %v10598_v1, %s12289_s18 }
 0x9c6   : > { %4615 = vrot.lane.b32.xlu1 %v10605_v4, %s12288_s15 }
 0x9c7   : > { %4570 = vrot.lane.b32.xlu0 %v10598_v1, %s12266_s19 }
 0x9ca   : > { %4664 = vrot.lane.b32.xlu1 %v10605_v4, %s12267_s26 }
 0x9cb   : > { %4713 = vrot.lane.b32.xlu0 %v10605_v4, %s12290_s22 }
 0x9ce   : > { %4439 = vrot.lane.b32.xlu1 %v10598_v1, %s12393_s17 }
 0x9cf   : > { %4762 = vrot.lane.b32.xlu0 %v10605_v4, %s12268_s27 }
 0x9d2   : > { %4521 = vrot.lane.b32.xlu1 %v10598_v1, %s12291_s23 }
 0x9d3   : > { %4476 = vrot.lane.b32.xlu0 %v10605_v4, %s12289_s18 }
 0x9d6   : > { %4435 = vrot.lane.b32.xlu1 %v10605_v4, %s12393_s17 }
 0x9d7   : > { %4566 = vrot.lane.b32.xlu0 %v10605_v4, %s12266_s19 }
 0x9da   : > { %4517 = vrot.lane.b32.xlu1 %v10605_v4, %s12291_s23 }
 0x9db   : > { %4668 = vrot.lane.b32.xlu0 %v10598_v1, %s12267_s26 }
 0x9de   : > { %4619 = vrot.lane.b32.xlu1 %v10598_v1, %s12288_s15 }
 0x9df   : > { %4766 = vrot.lane.b32.xlu0 %v10598_v1, %s12268_s27 }
 0x9e2   : > { %4717 = vrot.lane.b32.xlu1 %v10598_v1, %s12290_s22 }
 0x9e3   : > { %4482 = vrot.lane.b32.xlu0 %v10636_v32, %s12289_s18 }
 0x9e6   : > { %4441 = vrot.lane.b32.xlu1 %v10636_v32, %s12393_s17 }
 0x9e7   : > { %4572 = vrot.lane.b32.xlu0 %v10636_v32, %s12266_s19 }
 0x9ea   : > { %4523 = vrot.lane.b32.xlu1 %v10636_v32, %s12291_s23 }
 0x9eb   : > { %4478 = vrot.lane.b32.xlu0 %v10647_v47, %s12289_s18 }
 0x9ee   : > { %4437 = vrot.lane.b32.xlu1 %v10647_v47, %s12393_s17 }
 0x9ef   : > { %4568 = vrot.lane.b32.xlu0 %v10647_v47, %s12266_s19 }
 0x9f2   : > { %4519 = vrot.lane.b32.xlu1 %v10647_v47, %s12291_s23 }
 0x9f3   : > { %4670 = vrot.lane.b32.xlu0 %v10636_v32, %s12267_s26 }
 0x9f5   : > { %v10663_v41 = vpop.permute.xlu0 %4431 }
 0x9f6   : > { %4621 = vrot.lane.b32.xlu1 %v10636_v32, %s12288_s15 }
 0x9f7   : > { %4666 = vrot.lane.b32.xlu0 %v10647_v47, %s12267_s26 }
 0x9f8   : > { %v10669_v50 = vpop.permute.xlu1 %4468 }
 0x9f9   : > { %v10671_v54 = vpop.permute.xlu0 %4472 }
 0x9fa   : > { %4617 = vrot.lane.b32.xlu1 %v10647_v47, %s12288_s15 }
 0x9fb   : > { %4768 = vrot.lane.b32.xlu0 %v10636_v32, %s12268_s27 }
 0x9fc   : > { %v10677_v35 = vpop.permute.xlu1 %4558 }
 0x9fd   : > { %v10679_v14 = vpop.permute.xlu0 %4513 }
 0x9fe   : > { %4719 = vrot.lane.b32.xlu1 %v10636_v32, %s12290_s22 }
 0x9ff   : > { %4764 = vrot.lane.b32.xlu0 %v10647_v47, %s12268_s27 }
 0xa00   : > { %v10685_v2 = vpop.permute.xlu1 %4611 }
 0xa01   : > { %v10690_v23 = vpop.permute.xlu0 %4562 }
 0xa02   : > { %4715 = vrot.lane.b32.xlu1 %v10647_v47, %s12290_s22 }
 0xa03   : > { %5125 = vperm.xlu0 %6896, %v6766_v18  }
 0xa04   : > { %v10697_v28 = vpop.permute.xlu1 %4607 }
 0xa05   : > { %v10702_v19 = vpop.permute.xlu0 %4427 }
 0xa06   : > { %4831 = vperm.xlu1 %6897, %v6761_v0  }
 0xa07   : > { %5564 = vperm.xlu0 %6896, %v6840_v49  }
 0xa08   : > { %v10707_v36 = vpop.permute.xlu1 %4709 }
 0xa09   : > { %v10709_v37 = vpop.permute.xlu0 %4509 }
 0xa0a   : > { %5140 = vperm.xlu1 %6897, %v6767_v7  }
 0xa0c   : > { %v10711_v61 = vpop.permute.xlu1 %4705 }
 0xa0d   : > { %v10713_v45 = vpop.permute.xlu0 %4660 }
 0xa10   : > { %v10715_v25 = vpop.permute.xlu1 %4433 }
 0xa11   : > { %v10717_v60 = vpop.permute.xlu0 %4656 }
 0xa14   : > { %v10719_v51 = vpop.permute.xlu1 %4474 }
 0xa15   : > { %v10721_v17 = vpop.permute.xlu0 %4758 }
 0xa18   : > { %v10723_v10 = vpop.permute.xlu1 %4515 }
 0xa19   : > { %v10725_v13 = vpop.permute.xlu0 %4754 }
 0xa1c   : > { %v10727_v62 = vpop.permute.xlu1 %4564 }
 0xa1d   : > { %v4430_v43 = vpop.permute.xlu0 %4429 }
 0xa1e   : > { %v4449_v46 = vsel %vm870_vm5, %v10702_v19, %v4430_v43 }
 0xa1f   : > { %v4452_v52 = vmul.f32 %v6696_v39, %v4449_v46 }
 0xa20   : > { %v4471_v20 = vpop.permute.xlu1 %4470 }
 0xa21   : > { %v4512_v57 = vpop.permute.xlu0 %4511  ;;  %v4490_v11 = vsel %vm912_vm2, %v10669_v50, %v4471_v20 }
 0xa22   : > { %v4531_v63 = vsel %vm954_vm4, %v10709_v37, %v4512_v57  ;;  %v4493_v34 = vmul.f32 %v6704_v12, %v4490_v11  ;;  %v6713_v12 = vld [vmem:[%s12173_s2 + $0x750] sm:$0xff]  ;;  %v4530_v11 = vsel %vm954_vm4, %v4512_v57, %v10679_v14  ;;  %v6722_v57 = vld [vmem:[%s12173_s2 + $0x798] sm:$0xff] }
 0xa23   : > { %v4534_v44 = vmul.f32 %v6712_v58, %v4531_v63  ;;  %v6744_v58 = vld [vmem:[%s12173_s2 + $0x888] sm:$0xff] }
 0xa24   : > { %v4561_v27 = vpop.permute.xlu1 %4560 }
 0xa25   : > { %v10729_v3 = vpop.permute.xlu0 %4613  ;;  %v4580_v40 = vsel %vm1004_vm1, %v10677_v35, %v4561_v27  ;;  %v4542_v18 = vadd.f32 %v4534_v44, %v4452_v52 }
 0xa26   : > { %v4583_v26 = vmul.f32 %v6720_v22, %v4580_v40  ;;  %v6688_v22 = vld [vmem:[%s12173_s2 + $0x7c8] sm:$0xff]  ;;  %v6706_v40 = vld [vmem:[%s12173_s2 + $0x718] sm:$0xff] }
 0xa28   : > { %v10731_v21 = vpop.permute.xlu1 %4609  ;;  %v4591_v63 = vadd.f32 %v4583_v26, %v4493_v34  ;;  %v4447_v26 = vsel %vm870_vm5, %v10663_v41, %v10715_v25  ;;  %v4411_v34 = vmul.f32 %v6688_v22, %v10567_v31  ;;  %v6737_v22 = vld [vmem:[%s12173_s2 + $0x850] sm:$0xff] }
 0xa29   : > { %v10733_v48 = vpop.permute.xlu0 %4662  ;;  %v4628_v15 = vsel %vm1054_vm3, %v10731_v21, %v10685_v2 }
 0xa2a   : > { %v4632_v0 = vmul.f32 %v6728_v55, %v4628_v15 }
 0xa2c   : > { %v10741_v9 = vpop.permute.xlu1 %4711  ;;  %v4640_v55 = vadd.f32 %v4632_v0, %v4591_v63  ;;  %v4578_v0 = vsel %vm1004_vm1, %v10690_v23, %v10727_v62  ;;  %v6714_v63 = vld [vmem:[%s12173_s2 + $0x758] sm:$0xff] }
 0xa2d   : > { %v10758_v56 = vpop.permute.xlu0 %4658 }
 0xa2e   : > { %v4677_v38 = vsel %vm1104_vm7, %v10758_v56, %v10713_v45 }
 0xa2f   : > { %v4681_v53 = vmul.f32 %v6736_v33, %v4677_v38  ;;  %v4488_v33 = vsel %vm912_vm2, %v10671_v54, %v10719_v51 }
 0xa30   : > { %v10777_v6 = vpop.permute.xlu1 %4760 }
 0xa31   : > { %v10782_v8 = vpop.permute.xlu0 %4756  ;;  %v4689_v39 = vadd.f32 %v4681_v53, %v4542_v18  ;;  %v6721_v53 = vld [vmem:[%s12173_s2 + $0x790] sm:$0xff]  ;;  %v4495_v18 = vmul.f32 %v6706_v40, %v4488_v33  ;;  %v4676_v40 = vsel %vm1104_vm7, %v10713_v45, %v10733_v48 }
 0xa32   : > { %v4775_v49 = vsel %vm1204_vm8, %v10782_v8, %v10721_v17  ;;  %v6729_v45 = vld [vmem:[%s12173_s2 + $0x810] sm:$0xff] }
 0xa33   : > { %v4779_v7 = vmul.f32 %v6752_v42, %v4775_v49  ;;  %v4579_v42 = vsel %vm1004_vm1, %v4561_v27, %v10690_v23  ;;  %v6697_v49 = vld [vmem:[%s12173_s2 + $0x6d0] sm:$0xff]  ;;  %v4448_v27 = vsel %vm870_vm5, %v4430_v43, %v10663_v41  ;;  %v4529_v23 = vsel %vm954_vm4, %v10679_v14, %v10723_v10 }
 0xa34   : > { %v10791_v46 = vpop.permute.xlu1 %4707  ;;  %v4489_v41 = vsel %vm912_vm2, %v4471_v20, %v10671_v54  ;;  %v4535_v43 = vmul.f32 %v6713_v12, %v4530_v11  ;;  %v4584_v14 = vmul.f32 %v6721_v53, %v4579_v42  ;;  %v4585_v11 = vmul.f32 %v6722_v57, %v4578_v0  ;;  %v6753_v53 = vld [vmem:[%s12173_s2 + $0x8d0] sm:$0xff]  ;;  %v6698_v42 = vld [vmem:[%s12173_s2 + $0x6d8] sm:$0xff] }
 0xa35   : > { %v4726_v44 = vsel %vm12399_vm13, %v10791_v46, %v10707_v36  ;;  %v10807_v38 = vpop.permute.xlu0 %4480  ;;  %v4787_v15 = vadd.f32 %v4779_v7, %v4689_v39  ;;  %v6705_v39 = vld [vmem:[%s12173_s2 + $0x710] sm:$0xff]  ;;  %v4682_v0 = vmul.f32 %v6737_v22, %v4676_v40  ;;  %vm12408_vm13 = vmmov %vm12405_vm6 }
 0xa36   : > { %v4730_v52 = vmul.f32 %v6744_v58, %v4726_v44  ;;  %v6730_v44 = vld [vmem:[%s12173_s2 + $0x818] sm:$0xff]  ;;  %v4494_v57 = vmul.f32 %v6705_v39, %v4489_v41 }
 0xa37   : > { %v4795_v20 = vadd.f32 %v4787_v15, %v4411_v34  ;;  %v4774_v15 = vsel %vm1204_vm8, %v10721_v17, %v10777_v6  ;;  %v4536_v34 = vmul.f32 %v6714_v63, %v4529_v23  ;;  %v6745_v17 = vld [vmem:[%s12173_s2 + $0x890] sm:$0xff]  ;;  %v4725_v63 = vsel %vm12400_vm14, %v10707_v36, %v10741_v9  ;;  %vm12409_vm14 = vmmov %vm12405_vm6 }
 0xa38   : > { %v4738_v7 = vadd.f32 %v4730_v52, %v4640_v55  ;;  %v10839_v58 = vpop.permute.xlu1 %4615  ;;  %v4453_v55 = vmul.f32 %v6697_v49, %v4448_v27  ;;  %v4627_v52 = vsel %vm1054_vm3, %v10685_v2, %v10729_v3  ;;  %v6738_v2 = vld [vmem:[%s12173_s2 + $0x858] sm:$0xff]  ;;  %v4592_v22 = vadd.f32 %v4584_v14, %v4494_v57 }
 0xa39   : > { %v10861_v33 = vpop.permute.xlu0 %4570  ;;  %v4626_v54 = vsel %vm1054_vm3, %v10729_v3, %v10839_v58  ;;  %v6746_v49 = vld [vmem:[%s12173_s2 + $0x898] sm:$0xff]  ;;  %v4633_v40 = vmul.f32 %v6729_v45, %v4627_v52  ;;  %v4731_v31 = vmul.f32 %v6745_v17, %v4725_v63  ;;  %v6689_v45 = vld [vmem:[%s12173_s2 + $0x7d0] sm:$0xff] }
 0xa3a   : > { %v4810_v12 = vadd.f32 %v10657_v30, %v4738_v7  ;;  %v4543_v7 = vadd.f32 %v4535_v43, %v4453_v55  ;;  %v4634_v23 = vmul.f32 %v6730_v44, %v4626_v54  ;;  %v4780_v43 = vmul.f32 %v6753_v53, %v4774_v15  ;;  %v6690_v53 = vld [vmem:[%s12173_s2 + $0x7d8] sm:$0xff] }
 0xa3b   : > { %v4593_v55 = vadd.f32 %v4585_v11, %v4495_v18 }
 0xa3c   : > { %v10891_v3 = vpop.permute.xlu1 %4664  ;;  %v4818_v27 = vadd.f32 %v4810_v12, %v4795_v20  ;;  %v4454_v12 = vmul.f32 %v6698_v42, %v4447_v26  ;;  %v4690_v54 = vadd.f32 %v4682_v0, %v4543_v7  ;;  %v4641_v26 = vadd.f32 %v4633_v40, %v4592_v22 }
 0xa3d   : > { %v4675_v39 = vsel %vm1104_vm7, %v10733_v48, %v10891_v3  ;;  %v10907_v41 = vpop.permute.xlu0 %4713  ;;  %v6754_v48 = vld [vmem:[%s12173_s2 + $0x8d8] sm:$0xff]  ;;  %v4642_v52 = vadd.f32 %v4634_v23, %v4593_v55  ;;  %v4412_v0 = vmul.f32 %v6689_v45, %v10518_v16  ;;  %v4413_v7 = vmul.f32 %v6690_v53, %v10552_v5 }
 0xa3e   : > { %v4724_v20 = vsel %vm12401_vm12, %v10741_v9, %v10907_v41  ;;  %4837 = vmatprep.subr.mxu0 %v4818_v27  ;;  %v4683_v36 = vmul.f32 %v6738_v2, %v4675_v39  ;;  %v4544_v14 = vadd.f32 %v4536_v34, %v4454_v12  ;;  %v4788_v18 = vadd.f32 %v4780_v43, %v4690_v54  ;;  %v10945_v43 = vld [vmem:[%s12179_s8 + $0x20] sm:$0xff]  ;;  %vm12410_vm12 = vmmov %vm12405_vm6 }
 0xa3f   : > { %v4732_v44 = vmul.f32 %v6746_v49, %v4724_v20  ;;  %v4739_v57 = vadd.f32 %v4731_v31, %v4641_v26  ;;  %v6687_v26 = vld [vmem:[%s12173_s2 + $0x7c0] sm:$0xff] }
 0xa40   : > { %v10913_v47 = vpop.permute.xlu1 %4439  ;;  %v4691_v15 = vadd.f32 %v4683_v36, %v4544_v14  ;;  %v4796_v17 = vadd.f32 %v4788_v18, %v4412_v0  ;;  %v6727_v18 = vld [vmem:[%s12173_s2 + $0x800] sm:$0xff] }
 0xa41   : > { %v10921_v9 = vpop.permute.xlu0 %4762  ;;  %v4740_v42 = vadd.f32 %v4732_v44, %v4642_v52  ;;  %v4811_v23 = vadd.f32 %v10657_v30, %v4739_v57  ;;  %v6719_v52 = vld [vmem:[%s12173_s2 + $0x780] sm:$0xff] }
 0xa42   : > { %v4773_v11 = vsel %vm1204_vm8, %v10777_v6, %v10921_v9  ;;  %v6711_v0 = vld [vmem:[%s12173_s2 + $0x740] sm:$0xff] }
 0xa43   : > { %v4781_v34 = vmul.f32 %v6754_v48, %v4773_v11  ;;  %v4812_v6 = vadd.f32 %v10657_v30, %v4740_v42  ;;  %v4819_v40 = vadd.f32 %v4811_v23, %v4796_v17  ;;  %v6703_v48 = vld [vmem:[%s12173_s2 + $0x700] sm:$0xff]  ;;  %v4629_v11 = vsel %vm1054_vm3, %v10697_v28, %v10731_v21  ;;  %v6726_v23 = vld [vmem:[%s12173_s2 + $0x7b8] sm:$0xff] }
 0xa44   : > { %v10931_v2 = vpop.permute.xlu1 %4521  ;;  %v6695_v42 = vld [vmem:[%s12173_s2 + $0x6c0] sm:$0xff]  ;;  %v10992_v21 = vmul.f32 %v6687_v26, %v10523_v29  ;;  %v6694_v29 = vld [vmem:[%s12173_s2 + $0x7f8] sm:$0xff] }
 0xa45   : > { %v4789_v49 = vadd.f32 %v4781_v34, %v4691_v15  ;;  %v10933_v27 = vpop.permute.xlu0 %4476 }
 0xa46   : > { %v4487_v26 = vsel %vm912_vm2, %v10719_v51, %v10933_v27 }
 0xa47   : > { %v4797_v63 = vadd.f32 %v4789_v49, %v4413_v7  ;;  %v4631_v49 = vmul.f32 %v6727_v18, %v4629_v11  ;;  %v4776_v7 = vsel %vm1204_vm8, %v10725_v13, %v10782_v8  ;;  %v6693_v11 = vld [vmem:[%s12173_s2 + $0x7f0] sm:$0xff] }
 0xa48   : > { %v10938_v39 = vpop.permute.xlu1 %4435 }
 0xa49   : > { %v10940_v22 = vpop.permute.xlu0 %4566  ;;  %v4820_v31 = vadd.f32 %v4812_v6, %v4797_v63  ;;  %v6735_v6 = vld [vmem:[%s12173_s2 + $0x840] sm:$0xff] }
 0xa4a   : > { %v4577_v17 = vsel %vm1004_vm1, %v10727_v62, %v10940_v22 }
 0xa4b   : > { %4908 = vmatprep.subr.mxu1 %v4820_v31 }
 0xa4c   : > { %v10947_v20 = vpop.permute.xlu1 %4517  ;;  %4909 = vmatpush1.msra.mxu1 %v4819_v40 }
 0xa4d   : > { %6763 = vmatmul.mubr.msk.f32.vlgmr.msra.gmra.mrb[20].mxu1 %vm503_vm0, %v10945_v43  ;;  %v10951_v12 = vpop.permute.xlu0 %4668  ;;  %v4528_v8 = vsel %vm954_vm4, %v10723_v10, %v10947_v20  ;;  %v4727_v10 = vsel %vm12402_vm9, %v10711_v61, %v10791_v46  ;;  %v6699_v46 = vld [vmem:[%s12173_s2 + $0x6e0] sm:$0xff]  ;;  %vm12411_vm9 = vmmov %vm12405_vm6 }
 0xa4e   : > { %5114 = vmatprep.mubr.f32.mxu1 %v12252_v59 }
 0xa50   : > { %v10954_v55 = vpop.permute.xlu1 %4619 }
 0xa51   : > { %v10956_v36 = vpop.permute.xlu0 %4766 }
 0xa54   : > { %v10958_v44 = vpop.permute.xlu1 %4717 }
 0xa55   : > { %v4483_v54 = vpop.permute.xlu0 %4482 }
 0xa56   : > { %v4491_v14 = vsel %vm912_vm2, %v4483_v54, %v10669_v50 }
 0xa57   : > { %v4492_v15 = vmul.f32 %v6703_v48, %v4491_v14  ;;  %v6743_v14 = vld [vmem:[%s12173_s2 + $0x880] sm:$0xff] }
 0xa58   : > { %v4442_v45 = vpop.permute.xlu1 %4441 }
 0xa59   : > { %v4573_v53 = vpop.permute.xlu0 %4572  ;;  %v4450_v34 = vsel %vm870_vm5, %v4442_v45, %v10702_v19  ;;  %v6723_v19 = vld [vmem:[%s12173_s2 + $0x7a0] sm:$0xff] }
 0xa5a   : > { %v4581_v50 = vsel %vm1004_vm1, %v4573_v53, %v10677_v35  ;;  %v4678_v35 = vsel %vm1104_vm7, %v10717_v60, %v10758_v56  ;;  %v6715_v56 = vld [vmem:[%s12173_s2 + $0x760] sm:$0xff]  ;;  %v4574_v62 = vsel %vm1004_vm1, %v10861_v33, %v4573_v53  ;;  %v4586_v51 = vmul.f32 %v6723_v19, %v4577_v17  ;;  %v6702_v17 = vld [vmem:[%s12173_s2 + $0x6f8] sm:$0xff] }
 0xa5b   : > { %v4582_v57 = vmul.f32 %v6719_v52, %v4581_v50  ;;  %v6707_v52 = vld [vmem:[%s12173_s2 + $0x720] sm:$0xff]  ;;  %v4446_v50 = vsel %vm870_vm5, %v10715_v25, %v10938_v39  ;;  %v4729_v25 = vmul.f32 %v6743_v14, %v4727_v10  ;;  %v6718_v14 = vld [vmem:[%s12173_s2 + $0x778] sm:$0xff] }
 0xa5c   : > { %v4524_v63 = vpop.permute.xlu1 %4523  ;;  %v6751_v53 = vld [vmem:[%s12173_s2 + $0x8c0] sm:$0xff]  ;;  %v4496_v19 = vmul.f32 %v6707_v52, %v4487_v26 }
 0xa5d   : > { %v4590_v31 = vadd.f32 %v4582_v57, %v4492_v15  ;;  %v4532_v40 = vsel %vm954_vm4, %v4524_v63, %v10709_v37  ;;  %v4479_v48 = vpop.permute.xlu0 %4478  ;;  %v4451_v37 = vmul.f32 %v6695_v42, %v4450_v34  ;;  %v6710_v15 = vld [vmem:[%s12173_s2 + $0x738] sm:$0xff]  ;;  %v4484_v42 = vsel %vm912_vm2, %v10807_v38, %v4483_v54 }
 0xa5e   : > { %v4533_v18 = vmul.f32 %v6711_v0, %v4532_v40  ;;  %v4680_v57 = vmul.f32 %v6735_v6, %v4678_v35  ;;  %v4537_v0 = vmul.f32 %v6715_v56, %v4528_v8  ;;  %v4589_v40 = vmul.f32 %v6726_v23, %v4574_v62 }
 0xa5f   : > { %v4639_v34 = vadd.f32 %v4631_v49, %v4590_v31  ;;  %v4443_v54 = vsel %vm870_vm5, %v10913_v47, %v4442_v45  ;;  %v11071_v35 = vmul.f32 %v6693_v11, %v10598_v1  ;;  %v4778_v6 = vmul.f32 %v6751_v53, %v4776_v7  ;;  %v6717_v45 = vld [vmem:[%s12173_s2 + $0x770] sm:$0xff] }
 0xa60   : > { %v4541_v5 = vadd.f32 %v4533_v18, %v4451_v37  ;;  %v4438_v16 = vpop.permute.xlu1 %4437  ;;  %v4455_v56 = vmul.f32 %v6699_v46, %v4446_v50  ;;  %v4499_v8 = vmul.f32 %v6710_v15, %v4484_v42  ;;  %v11073_v62 = vadd.f32 %v4586_v51, %v4496_v19  ;;  %v6709_v11 = vld [vmem:[%s12173_s2 + $0x730] sm:$0xff] }
 0xa61   : > { %v4569_v49 = vpop.permute.xlu0 %4568  ;;  %v4737_v31 = vadd.f32 %v4729_v25, %v4639_v34  ;;  %v4525_v10 = vsel %vm954_vm4, %v10931_v2, %v4524_v63  ;;  %v11085_v7 = vmul.f32 %v6694_v29, %v10636_v32  ;;  %v4485_v63 = vsel %vm912_vm2, %v4479_v48, %v10807_v38  ;;  %v6701_v29 = vld [vmem:[%s12173_s2 + $0x6f0] sm:$0xff] }
 0xa62   : > { %v4688_v23 = vadd.f32 %v4680_v57, %v4541_v5  ;;  %v11087_v52 = vadd.f32 %v4537_v0, %v4455_v56  ;;  %v4458_v5 = vmul.f32 %v6702_v17, %v4443_v54  ;;  %v11089_v26 = vadd.f32 %v4589_v40, %v4499_v8  ;;  %v6725_v46 = vld [vmem:[%s12173_s2 + $0x7b0] sm:$0xff]  ;;  %v6708_v40 = vld [vmem:[%s12173_s2 + $0x728] sm:$0xff] }
 0xa63   : > { %v4444_v53 = vsel %vm870_vm5, %v4438_v16, %v10913_v47  ;;  %v4575_v50 = vsel %vm1004_vm1, %v4569_v49, %v10861_v33  ;;  %v4540_v15 = vmul.f32 %v6718_v14, %v4525_v10  ;;  %v4486_v42 = vsel %vm912_vm2, %v10933_v27, %v4479_v48  ;;  %v6724_v47 = vld [vmem:[%s12173_s2 + $0x7a8] sm:$0xff]  ;;  %v6741_v27 = vld [vmem:[%s12173_s2 + $0x870] sm:$0xff] }
 0xa64   : > { %v4786_v37 = vadd.f32 %v4778_v6, %v4688_v23  ;;  %v4520_v18 = vpop.permute.xlu1 %4519  ;;  %v4576_v34 = vsel %vm1004_vm1, %v10940_v22, %v4569_v49  ;;  %v6716_v33 = vld [vmem:[%s12173_s2 + $0x768] sm:$0xff]  ;;  %v4809_v22 = vadd.f32 %v10657_v30, %v4737_v31  ;;  %v4498_v25 = vmul.f32 %v6709_v11, %v4485_v63  ;;  %v6733_v8 = vld [vmem:[%s12173_s2 + $0x830] sm:$0xff] }
 0xa65   : > { %v4526_v38 = vsel %vm954_vm4, %v4520_v18, %v10931_v2  ;;  %v4671_v51 = vpop.permute.xlu0 %4670  ;;  %v4527_v2 = vsel %vm954_vm4, %v10947_v20, %v4520_v18  ;;  %v4457_v19 = vmul.f32 %v6701_v29, %v4444_v53  ;;  %v4588_v17 = vmul.f32 %v6725_v46, %v4575_v50  ;;  %v6742_v20 = vld [vmem:[%s12173_s2 + $0x878] sm:$0xff]  ;;  %v6740_v63 = vld [vmem:[%s12173_s2 + $0x868] sm:$0xff] }
 0xa66   : > { %v4539_v57 = vmul.f32 %v6717_v45, %v4526_v38  ;;  %v4672_v48 = vsel %vm1104_vm7, %v10951_v12, %v4671_v51  ;;  %v4794_v0 = vadd.f32 %v4786_v37, %v10992_v21  ;;  %v4679_v54 = vsel %vm1104_vm7, %v4671_v51, %v10717_v60  ;;  %v6700_v21 = vld [vmem:[%s12173_s2 + $0x6e8] sm:$0xff]  ;;  %v6734_v37 = vld [vmem:[%s12173_s2 + $0x838] sm:$0xff]  ;;  %v6731_v51 = vld [vmem:[%s12173_s2 + $0x820] sm:$0xff] }
 0xa67   : > { %v4445_v6 = vsel %vm870_vm5, %v10938_v39, %v4438_v16  ;;  %v4587_v56 = vmul.f32 %v6724_v47, %v4576_v34  ;;  %v4538_v14 = vmul.f32 %v6716_v33, %v4527_v2  ;;  %v4686_v45 = vmul.f32 %v6741_v27, %v4672_v48  ;;  %v6739_v39 = vld [vmem:[%s12173_s2 + $0x860] sm:$0xff] }
 0xa68   : > { %v4622_v49 = vpop.permute.xlu1 %4621  ;;  %v4817_v60 = vadd.f32 %v4809_v22, %v4794_v0  ;;  %v4547_v10 = vadd.f32 %v4539_v57, %v4457_v19  ;;  %v4497_v18 = vmul.f32 %v6708_v40, %v4486_v42  ;;  %v4687_v11 = vmul.f32 %v6742_v20, %v4679_v54  ;;  %v6758_v57 = vld [vmem:[%s12173_s2 + $0x8f8] sm:$0xff] }
 0xa69   : > { %v4623_v23 = vsel %vm1054_vm3, %v10954_v55, %v4622_v49  ;;  %v4667_v31 = vpop.permute.xlu0 %4666  ;;  %v4630_v16 = vsel %vm1054_vm3, %v4622_v49, %v10697_v28  ;;  %v4548_v28 = vadd.f32 %v4540_v15, %v4458_v5  ;;  %v4456_v46 = vmul.f32 %v6700_v21, %v4445_v6  ;;  %v6757_v15 = vld [vmem:[%s12173_s2 + $0x8f0] sm:$0xff]  ;;  %v6750_v19 = vld [vmem:[%s12173_s2 + $0x8b8] sm:$0xff] }
 0xa6a   : > { %v4673_v29 = vsel %vm1104_vm7, %v4667_v31, %v10951_v12  ;;  %v4674_v53 = vsel %vm1104_vm7, %v10891_v3, %v4667_v31  ;;  %4838 = vmatpush1.msra.mxu0 %v4817_v60  ;;  %v4596_v50 = vadd.f32 %v4588_v17, %v4498_v25  ;;  %v4637_v38 = vmul.f32 %v6733_v8, %v4623_v23  ;;  %v6732_v12 = vld [vmem:[%s12173_s2 + $0x828] sm:$0xff]  ;;  %v6749_v25 = vld [vmem:[%s12173_s2 + $0x8b0] sm:$0xff]  ;;  %v6755_v23 = vld [vmem:[%s12173_s2 + $0x8e0] sm:$0xff] }
 0xa6b   : > { %6762 = vmatmul.mubr.msk.f32.vlgmr.msra.gmra.mrb[20].mxu0 %vm503_vm0, %v10945_v43  ;;  %v4638_v47 = vmul.f32 %v6734_v37, %v4630_v16  ;;  %v4684_v34 = vmul.f32 %v6739_v39, %v4674_v53  ;;  %v4595_v2 = vadd.f32 %v4587_v56, %v4497_v18  ;;  %v4546_v27 = vadd.f32 %v4538_v14, %v4456_v46  ;;  %v6747_v39 = vld [vmem:[%s12173_s2 + $0x8a0] sm:$0xff]  ;;  %v6748_v18 = vld [vmem:[%s12173_s2 + $0x8a8] sm:$0xff] }
 0xa6c   : > { %v4618_v42 = vpop.permute.xlu1 %4617  ;;  %5043 = vmatprep.mubr.f32.mxu0 %v12252_v59  ;;  %v4694_v48 = vadd.f32 %v4686_v45, %v4547_v10  ;;  %v4685_v0 = vmul.f32 %v6740_v63, %v4673_v29  ;;  %v4645_v17 = vadd.f32 %v4637_v38, %v4596_v50  ;;  %v6691_v29 = vld [vmem:[%s12173_s2 + $0x7e0] sm:$0xff]  ;;  %v6692_v38 = vld [vmem:[%s12173_s2 + $0x7e8] sm:$0xff] }
 0xa6d   : > { %v4624_v3 = vsel %vm1054_vm3, %v4618_v42, %v10954_v55  ;;  %v4625_v5 = vsel %vm1054_vm3, %v10839_v58, %v4618_v42  ;;  %v4769_v33 = vpop.permute.xlu0 %4768  ;;  %v4695_v55 = vadd.f32 %v4687_v11, %v4548_v28  ;;  %v4646_v6 = vadd.f32 %v4638_v47, %v11089_v26 }
 0xa6e   : > { %v4635_v22 = vmul.f32 %v6731_v51, %v4625_v5  ;;  %v4770_v58 = vsel %vm1204_vm8, %v10956_v36, %v4769_v33  ;;  %v4777_v40 = vsel %vm1204_vm8, %v4769_v33, %v10725_v13  ;;  %v4636_v20 = vmul.f32 %v6732_v12, %v4624_v3 }
 0xa6f   : > { %v4784_v54 = vmul.f32 %v6757_v15, %v4770_v58  ;;  %v4785_v49 = vmul.f32 %v6758_v57, %v4777_v40  ;;  %v4692_v56 = vadd.f32 %v4684_v34, %v11087_v52  ;;  %v4693_v60 = vadd.f32 %v4685_v0, %v4546_v27  ;;  %v6756_v52 = vld [vmem:[%s12173_s2 + $0x8e8] sm:$0xff] }
 0xa70   : > { %v4720_v21 = vpop.permute.xlu1 %4719  ;;  %v4643_v26 = vadd.f32 %v4635_v22, %v11073_v62  ;;  %v4644_v11 = vadd.f32 %v4636_v20, %v4595_v2 }
 0xa71   : > { %v4721_v13 = vsel %vm12403_vm10, %v10958_v44, %v4720_v21  ;;  %v4728_v8 = vsel %vm12404_vm11, %v4720_v21, %v10711_v61  ;;  %v4765_v31 = vpop.permute.xlu0 %4764  ;;  %v4792_v14 = vadd.f32 %v4784_v54, %v4694_v48  ;;  %v4793_v37 = vadd.f32 %v4785_v49, %v4695_v55  ;;  %vm12412_vm10 = vmmov %vm12405_vm6 }
 0xa72   : > { %v4735_v10 = vmul.f32 %v6749_v25, %v4721_v13  ;;  %v4736_v45 = vmul.f32 %v6750_v19, %v4728_v8  ;;  %v4771_v61 = vsel %vm1204_vm8, %v4765_v31, %v10956_v36  ;;  %v4772_v16 = vsel %vm1204_vm8, %v10921_v9, %v4765_v31  ;;  %vm12413_vm11 = vmmov %vm12405_vm6 }
 0xa73   : > { %v4782_v36 = vmul.f32 %v6755_v23, %v4772_v16  ;;  %v4800_v28 = vadd.f32 %v4792_v14, %v11071_v35  ;;  %v4783_v9 = vmul.f32 %v6756_v52, %v4771_v61  ;;  %v4414_v35 = vmul.f32 %v6691_v29, %v10605_v4 }
 0xa74   : > { %v4743_v63 = vadd.f32 %v4735_v10, %v4645_v17  ;;  %v4744_v62 = vadd.f32 %v4736_v45, %v4646_v6  ;;  %v4716_v53 = vpop.permute.xlu1 %4715  ;;  %v4801_v3 = vadd.f32 %v4793_v37, %v11085_v7 }
 0xa75   : > { %v4722_v46 = vsel %vm12405_vm6, %v4716_v53, %v10958_v44  ;;  %v4723_v50 = vsel %vm12406_vm15, %v10907_v41, %v4716_v53  ;;  %v4790_v42 = vadd.f32 %v4782_v36, %v4692_v56  ;;  %v4791_v12 = vadd.f32 %v4783_v9, %v4693_v60  ;;  %v12407_v41 = vld [vmem:[#allocation18_spill] sm:$0xff] }
 0xa76   : > { %v4815_v51 = vadd.f32 %v10657_v30, %v4743_v63  ;;  %v4733_v47 = vmul.f32 %v6747_v39, %v4723_v50  ;;  %v4734_v34 = vmul.f32 %v6748_v18, %v4722_v46  ;;  %v4816_v44 = vadd.f32 %v10657_v30, %v4744_v62 }
 0xa77   : > { %v4415_v33 = vmul.f32 %v6692_v38, %v12407_v41  ;;  %v4798_v27 = vadd.f32 %v4790_v42, %v4414_v35 }
 0xa78   : > { %v4741_v5 = vadd.f32 %v4733_v47, %v4643_v26  ;;  %v4742_v15 = vadd.f32 %v4734_v34, %v4644_v11  ;;  %v4823_v57 = vadd.f32 %v4815_v51, %v4800_v28  ;;  %v4824_v2 = vadd.f32 %v4816_v44, %v4801_v3 }
 0xa79   : > { %v4799_v0 = vadd.f32 %v4791_v12, %v4415_v33  ;;  %v6842_v33 = vld [vmem:[%s12180_s9 + $0x28] sm:$0xff] }
 0xa7a   : > { %v4813_v48 = vadd.f32 %v10657_v30, %v4741_v5  ;;  %v4814_v55 = vadd.f32 %v10657_v30, %v4742_v15  ;;  %5050 = vmatprep.subr.mxu1 %v4824_v2  ;;  %v6847_v2 = vld [vmem:[%s12181_s10 + $0x28] sm:$0xff] }
 0xa7b   : > { %5051 = vmatpush1.msra.mxu1 %v4823_v57 }
 0xa7c   : > { %v4822_v22 = vadd.f32 %v4814_v55, %v4799_v0  ;;  %v4821_v58 = vadd.f32 %v4813_v48, %v4798_v27  ;;  %6765 = vmatmul.mubr.msk.f32.vlgmr.msra.gmra.mrb[22].mxu1 %vm503_vm0, %v10945_v43  ;;  %v6779_v0 = vld [vmem:[%s12173_s2 + $0x918] sm:$0xff] }
 0xa7d   : > { %5730 = vmatprep.mubr.f32.mxu1 %v12252_v59 }
 0xa7e   : > { %4979 = vmatprep.subr.mxu0 %v4822_v22  ;;  %v6795_v22 = vld [vmem:[%s12173_s2 + $0x998] sm:$0xff] }
 0xa7f   : > { %4980 = vmatpush1.msra.mxu0 %v4821_v58  ;;  %v6848_v58 = vld [vmem:[%s12182_s11 + $0x28] sm:$0xff] }
 0xa80   : > { %6764 = vmatmul.mubr.msk.f32.vlgmr.msra.gmra.mrb[22].mxu0 %vm503_vm0, %v10945_v43 }
 0xa81   : > { %5659 = vmatprep.mubr.f32.mxu0 %v12252_v59 }
 0xa82   : > { %v11263_v19 = vpop.permute.xlu0 %5125 }
 0xa85   : > { %v11260_v7 = vpop.permute.xlu1 %4831 }
 0xa86   : > { %v11418_v35 = vpop.permute.xlu0 %5564 }
 0xa89   : > { %v11267_v54 = vpop.permute.xlu1 %5140 }
 0xb20   : > { %v4974_v40 = vpop.f32.mrb[20].mxu1 }
 0xb21   : > { %v4975_v30 = vadd.f32 %v4974_v40, %v11260_v7  ;;  %v4976_v25 = vpop.f32.mrb[21].mxu1 }
 0xb22   : > { %v4977_v20 = vadd.f32 %v4976_v25, %v11260_v7 }
 0xb23   : > { %v5130_v17 = vmul.f32 %v11263_v19, %v4975_v30 }
 0xb24   : > { %v5131_v43 = vmul.f32 %v11263_v19, %v4977_v20 }
 0xb25   : > { %v5145_v49 = vadd.f32 %v11267_v54, %v5130_v17  ;;  %v6787_v17 = vld [vmem:[%s12173_s2 + $0x958] sm:$0xff] }
 0xb26   : > { %v5146_v6 = vadd.f32 %v11267_v54, %v5131_v43  ;;  %v5938_v43 = vld [vmem:[%s12184_s13 + $0x8] sm:$0xff] }
 0xb27   : > { %v11270_v21 = vmax.f32 %v5145_v49, 0.0  ;;  %v6803_v49 = vld [vmem:[%s12173_s2 + $0x9d8] sm:$0xff] }
 0xb28   : > { %v11282_v56 = vmax.f32 %v5146_v6, 0.0  ;;  %v5939_v6 = vld [vmem:[%s12184_s13 + $0x10] sm:$0xff] }
 0xb29   : > { %5369 = vrot.lane.b32.xlu1 %v11270_v21, %s12288_s15  ;;  %5189 = vrot.lane.b32.xlu0 %v11270_v21, %s12393_s17 }
 0xb2d   : > { %5418 = vrot.lane.b32.xlu1 %v11270_v21, %s12267_s26  ;;  %5230 = vrot.lane.b32.xlu0 %v11270_v21, %s12289_s18 }
 0xb31   : > { %5191 = vrot.lane.b32.xlu1 %v11282_v56, %s12393_s17  ;;  %5271 = vrot.lane.b32.xlu0 %v11270_v21, %s12291_s23 }
 0xb35   : > { %5232 = vrot.lane.b32.xlu1 %v11282_v56, %s12289_s18  ;;  %5320 = vrot.lane.b32.xlu0 %v11270_v21, %s12266_s19 }
 0xb39   : > { %5273 = vrot.lane.b32.xlu1 %v11282_v56, %s12291_s23  ;;  %5467 = vrot.lane.b32.xlu0 %v11270_v21, %s12290_s22 }
 0xb3d   : > { %5322 = vrot.lane.b32.xlu1 %v11282_v56, %s12266_s19  ;;  %5516 = vrot.lane.b32.xlu0 %v11270_v21, %s12268_s27 }
 0xb3e   : > { %v4903_v13 = vpop.f32.mrb[20].mxu0 }
 0xb3f   : > { %v4904_v8 = vadd.f32 %v4903_v13, %v11260_v7  ;;  %v4905_v23 = vpop.f32.mrb[21].mxu0 }
 0xb40   : > { %v4906_v60 = vadd.f32 %v4905_v23, %v11260_v7 }
 0xb41   : > { %5469 = vrot.lane.b32.xlu1 %v11282_v56, %s12290_s22  ;;  %5371 = vrot.lane.b32.xlu0 %v11282_v56, %s12288_s15  ;;  %v5128_v31 = vmul.f32 %v11263_v19, %v4904_v8 }
 0xb42   : > { %v5129_v45 = vmul.f32 %v11263_v19, %v4906_v60 }
 0xb43   : > { %v5143_v14 = vadd.f32 %v11267_v54, %v5128_v31 }
 0xb44   : > { %v5144_v52 = vadd.f32 %v11267_v54, %v5129_v45  ;;  %v5940_v45 = vld [vmem:[%s12184_s13 + $0x18] sm:$0xff] }
 0xb45   : > { %5518 = vrot.lane.b32.xlu1 %v11282_v56, %s12268_s27  ;;  %5420 = vrot.lane.b32.xlu0 %v11282_v56, %s12267_s26  ;;  %v11312_v10 = vmax.f32 %v5143_v14, 0.0 }
 0xb46   : > { %v11324_v26 = vmax.f32 %v5144_v52, 0.0 }
 0xb49   : > { %5365 = vrot.lane.b32.xlu1 %v11312_v10, %s12288_s15  ;;  %5185 = vrot.lane.b32.xlu0 %v11312_v10, %s12393_s17 }
 0xb4d   : > { %5463 = vrot.lane.b32.xlu1 %v11312_v10, %s12290_s22  ;;  %5226 = vrot.lane.b32.xlu0 %v11312_v10, %s12289_s18 }
 0xb4f   : > { %v5116_v37 = vpop.f32.mrb[22].mxu1 }
 0xb50   : > { %v5118_v61 = vpop.f32.mrb[23].mxu1  ;;  %v5117_v18 = vadd.f32 %v5116_v37, %v11260_v7 }
 0xb51   : > { %5187 = vrot.lane.b32.xlu1 %v11324_v26, %s12393_s17  ;;  %5267 = vrot.lane.b32.xlu0 %v11312_v10, %s12291_s23  ;;  %v5119_v29 = vadd.f32 %v5118_v61, %v11260_v7 }
 0xb52   : > { %v5134_v11 = vmul.f32 %v11263_v19, %v5117_v18 }
 0xb53   : > { %v5045_v16 = vpop.f32.mrb[22].mxu0  ;;  %v5135_v36 = vmul.f32 %v11263_v19, %v5119_v29 }
 0xb54   : > { %v5047_v39 = vpop.f32.mrb[23].mxu0  ;;  %v5149_v63 = vadd.f32 %v11267_v54, %v5134_v11  ;;  %v5046_v9 = vadd.f32 %v5045_v16, %v11260_v7 }
 0xb55   : > { %5228 = vrot.lane.b32.xlu1 %v11324_v26, %s12289_s18  ;;  %5316 = vrot.lane.b32.xlu0 %v11312_v10, %s12266_s19  ;;  %v5150_v53 = vadd.f32 %v11267_v54, %v5135_v36  ;;  %v5048_v51 = vadd.f32 %v5047_v39, %v11260_v7  ;;  %v5937_v7 = vld [vmem:[%s12184_s13] sm:$0xff] }
 0xb56   : > { %v11353_v62 = vmax.f32 %v5149_v63, 0.0  ;;  %v5132_v46 = vmul.f32 %v11263_v19, %v5046_v9 }
 0xb57   : > { %v11370_v28 = vmax.f32 %v5150_v53, 0.0  ;;  %v5133_v42 = vmul.f32 %v11263_v19, %v5048_v51 }
 0xb58   : > { %v5147_v50 = vadd.f32 %v11267_v54, %v5132_v46 }
 0xb59   : > { %5269 = vrot.lane.b32.xlu1 %v11324_v26, %s12291_s23  ;;  %5414 = vrot.lane.b32.xlu0 %v11312_v10, %s12267_s26  ;;  %v5148_v47 = vadd.f32 %v11267_v54, %v5133_v42  ;;  %v6794_v42 = vld [vmem:[%s12173_s2 + $0x990] sm:$0xff] }
 0xb5a   : > { %v11391_v38 = vmax.f32 %v5147_v50, 0.0  ;;  %v6778_v50 = vld [vmem:[%s12173_s2 + $0x910] sm:$0xff] }
 0xb5b   : > { %v11412_v34 = vmax.f32 %v5148_v47, 0.0 }
 0xb5d   : > { %5318 = vrot.lane.b32.xlu1 %v11324_v26, %s12266_s19  ;;  %5512 = vrot.lane.b32.xlu0 %v11312_v10, %s12268_s27 }
 0xb61   : > { %5465 = vrot.lane.b32.xlu1 %v11324_v26, %s12290_s22  ;;  %5367 = vrot.lane.b32.xlu0 %v11324_v26, %s12288_s15 }
 0xb65   : > { %5514 = vrot.lane.b32.xlu1 %v11324_v26, %s12268_s27  ;;  %5416 = vrot.lane.b32.xlu0 %v11324_v26, %s12267_s26 }
 0xb69   : > { %5197 = vrot.lane.b32.xlu1 %v11353_v62, %s12393_s17  ;;  %5238 = vrot.lane.b32.xlu0 %v11353_v62, %s12289_s18 }
 0xb6d   : > { %5279 = vrot.lane.b32.xlu1 %v11353_v62, %s12291_s23  ;;  %5328 = vrot.lane.b32.xlu0 %v11353_v62, %s12266_s19 }
 0xb71   : > { %5426 = vrot.lane.b32.xlu1 %v11353_v62, %s12267_s26  ;;  %5377 = vrot.lane.b32.xlu0 %v11353_v62, %s12288_s15 }
 0xb75   : > { %5240 = vrot.lane.b32.xlu1 %v11370_v28, %s12289_s18  ;;  %5475 = vrot.lane.b32.xlu0 %v11353_v62, %s12290_s22 }
 0xb79   : > { %5330 = vrot.lane.b32.xlu1 %v11370_v28, %s12266_s19  ;;  %5199 = vrot.lane.b32.xlu0 %v11370_v28, %s12393_s17 }
 0xb7d   : > { %5379 = vrot.lane.b32.xlu1 %v11370_v28, %s12288_s15  ;;  %5281 = vrot.lane.b32.xlu0 %v11370_v28, %s12291_s23 }
 0xb81   : > { %5477 = vrot.lane.b32.xlu1 %v11370_v28, %s12290_s22  ;;  %5428 = vrot.lane.b32.xlu0 %v11370_v28, %s12267_s26 }
 0xb85   : > { %5373 = vrot.lane.b32.xlu1 %v11391_v38, %s12288_s15  ;;  %5471 = vrot.lane.b32.xlu0 %v11391_v38, %s12290_s22 }
 0xb89   : > { %5422 = vrot.lane.b32.xlu1 %v11391_v38, %s12267_s26  ;;  %5520 = vrot.lane.b32.xlu0 %v11391_v38, %s12268_s27 }
 0xb8d   : > { %5193 = vrot.lane.b32.xlu1 %v11391_v38, %s12393_s17  ;;  %5234 = vrot.lane.b32.xlu0 %v11391_v38, %s12289_s18 }
 0xb91   : > { %5275 = vrot.lane.b32.xlu1 %v11391_v38, %s12291_s23  ;;  %5324 = vrot.lane.b32.xlu0 %v11391_v38, %s12266_s19 }
 0xb95   : > { %5236 = vrot.lane.b32.xlu1 %v11412_v34, %s12289_s18  ;;  %5195 = vrot.lane.b32.xlu0 %v11412_v34, %s12393_s17 }
 0xb99   : > { %5326 = vrot.lane.b32.xlu1 %v11412_v34, %s12266_s19  ;;  %5277 = vrot.lane.b32.xlu0 %v11412_v34, %s12291_s23 }
 0xb9b   : > { %v11424_v12 = vpop.permute.xlu1 %5369  ;;  %v5190_v3 = vpop.permute.xlu0 %5189 }
 0xb9d   : > { %5375 = vrot.lane.b32.xlu1 %v11412_v34, %s12288_s15  ;;  %5424 = vrot.lane.b32.xlu0 %v11412_v34, %s12267_s26 }
 0xb9f   : > { %v11430_v44 = vpop.permute.xlu1 %5418  ;;  %v11432_v5 = vpop.permute.xlu0 %5230 }
 0xba1   : > { %5473 = vrot.lane.b32.xlu1 %v11412_v34, %s12290_s22  ;;  %5522 = vrot.lane.b32.xlu0 %v11412_v34, %s12268_s27 }
 0xba3   : > { %v11438_v15 = vpop.permute.xlu1 %5191  ;;  %v5272_v57 = vpop.permute.xlu0 %5271 }
 0xba4   : > { %v5205_v55 = vsel %vm870_vm5, %v5190_v3, %v11438_v15 }
 0xba5   : > { %5524 = vrot.lane.b32.xlu1 %v11353_v62, %s12268_s27  ;;  %5526 = vrot.lane.b32.xlu0 %v11370_v28, %s12268_s27  ;;  %v5212_v19 = vmul.f32 %v6779_v0, %v5205_v55 }
 0xba7   : > { %v11450_v27 = vpop.permute.xlu1 %5232  ;;  %v11452_v48 = vpop.permute.xlu0 %5320 }
 0xba8   : > { %v5246_v54 = vsel %vm912_vm2, %v11432_v5, %v11450_v27 }
 0xba9   : > { %5589 = vperm.xlu1 %6897, %v6842_v33   ;;  %5883 = vperm.xlu0 %6896, %v6847_v2   ;;  %v5253_v60 = vmul.f32 %v6787_v17, %v5246_v54  ;;  %v6818_v2 = vld [vmem:[%s12173_s2 + $0xa90] sm:$0xff]  ;;  %v6801_v54 = vld [vmem:[%s12173_s2 + $0x9c8] sm:$0xff] }
 0xbab   : > { %v11469_v40 = vpop.permute.xlu1 %5273  ;;  %v11471_v30 = vpop.permute.xlu0 %5467 }
 0xbac   : > { %v5287_v25 = vsel %vm954_vm4, %v5272_v57, %v11469_v40 }
 0xbad   : > { %v5294_v20 = vmul.f32 %v6795_v22, %v5287_v25  ;;  %5898 = vperm.xlu1 %6897, %v6848_v58   ;;  %5943 = vperm.xlu0 %6896, %v5937_v7   ;;  %v6786_v25 = vld [vmem:[%s12173_s2 + $0x950] sm:$0xff] }
 0xbaf   : > { %v11492_v13 = vadd.f32 %v5294_v20, %v5212_v19  ;;  %v11494_v8 = vpop.permute.xlu1 %5322  ;;  %v11496_v23 = vpop.permute.xlu0 %5516 }
 0xbb0   : > { %v5336_v31 = vsel %vm1004_vm1, %v11452_v48, %v11494_v8 }
 0xbb1   : > { %v5343_v14 = vmul.f32 %v6803_v49, %v5336_v31  ;;  %5948 = vperm.xlu1 %6897, %v5938_v43   ;;  %5953 = vperm.xlu0 %6896, %v5939_v6   ;;  %v6810_v6 = vld [vmem:[%s12173_s2 + $0xa50] sm:$0xff] }
 0xbb3   : > { %v11505_v52 = vadd.f32 %v5343_v14, %v5253_v60  ;;  %v11507_v37 = vpop.permute.xlu1 %5469  ;;  %v11509_v61 = vpop.permute.xlu0 %5371 }
 0xbb5   : > { %5958 = vperm.xlu1 %6897, %v5940_v45   ;;  %v6785_v45 = vld [vmem:[%s12173_s2 + $0x948] sm:$0xff] }
 0xbb7   : > { %v11511_v16 = vpop.permute.xlu1 %5518  ;;  %v11513_v39 = vpop.permute.xlu0 %5420 }
 0xbb8   : > { %v5434_v0 = vsel %vm1104_vm7, %v11430_v44, %v11513_v39  ;;  %v5532_v22 = vsel %vm1204_vm8, %v11496_v23, %v11511_v16 }
 0xbb9   : > { %v5440_v17 = vmul.f32 %v6818_v2, %v5434_v0  ;;  %v6770_v0 = vld [vmem:[%s12173_s2 + $0xa10] sm:$0xff] }
 0xbbb   : > { %v11515_v18 = vpop.permute.xlu1 %5365  ;;  %v11517_v11 = vpop.permute.xlu0 %5185 }
 0xbbf   : > { %v11519_v63 = vpop.permute.xlu1 %5463  ;;  %v11521_v29 = vpop.permute.xlu0 %5226 }
 0xbc3   : > { %v5188_v36 = vpop.permute.xlu1 %5187  ;;  %v11523_v53 = vpop.permute.xlu0 %5267 }
 0xbc4   : > { %v5206_v51 = vsel %vm870_vm5, %v5188_v36, %v5190_v3  ;;  %v6834_v3 = vld [vmem:[%s12173_s2 + $0xb10] sm:$0xff] }
 0xbc5   : > { %v5211_v58 = vmul.f32 %v6778_v50, %v5206_v51  ;;  %v5538_v31 = vmul.f32 %v6834_v3, %v5532_v22 }
 0xbc7   : > { %v5229_v9 = vpop.permute.xlu1 %5228  ;;  %v11525_v46 = vpop.permute.xlu0 %5316 }
 0xbc8   : > { %v5247_v19 = vsel %vm912_vm2, %v5229_v9, %v11432_v5  ;;  %v5385_v5 = vsel %vm1054_vm3, %v11424_v12, %v11509_v61  ;;  %v5248_v50 = vsel %vm912_vm2, %v11521_v29, %v5229_v9  ;;  %v6793_v9 = vld [vmem:[%s12173_s2 + $0x988] sm:$0xff] }
 0xbc9   : > { %v5252_v51 = vmul.f32 %v6786_v25, %v5247_v19 }
 0xbcb   : > { %v5270_v47 = vpop.permute.xlu1 %5269  ;;  %v11535_v33 = vpop.permute.xlu0 %5414 }
 0xbcc   : > { %v5288_v55 = vsel %vm954_vm4, %v5270_v47, %v5272_v57  ;;  %v6802_v57 = vld [vmem:[%s12173_s2 + $0x9d0] sm:$0xff]  ;;  %v5289_v3 = vsel %vm954_vm4, %v11523_v53, %v5270_v47  ;;  %v5251_v47 = vmul.f32 %v6785_v45, %v5248_v50 }
 0xbcd   : > { %v5293_v7 = vmul.f32 %v6794_v42, %v5288_v55  ;;  %v5483_v55 = vsel %vm12408_vm13, %v11471_v30, %v11507_v37 }
 0xbcf   : > { %v5301_v20 = vadd.f32 %v5293_v7, %v5211_v58  ;;  %v5319_v49 = vpop.permute.xlu1 %5318  ;;  %v11565_v43 = vpop.permute.xlu0 %5512  ;;  %v5391_v58 = vmul.f32 %v6810_v6, %v5385_v5  ;;  %v5170_v6 = vmul.f32 %v6770_v0, %v11270_v21 }
 0xbd0   : > { %v5337_v60 = vsel %vm1004_vm1, %v5319_v49, %v11452_v48  ;;  %v5338_v14 = vsel %vm1004_vm1, %v11525_v46, %v5319_v49  ;;  %v6826_v48 = vld [vmem:[%s12173_s2 + $0xad0] sm:$0xff]  ;;  %v5207_v49 = vsel %vm870_vm5, %v11517_v11, %v5188_v36 }
 0xbd1   : > { %v5448_v42 = vadd.f32 %v5440_v17, %v5301_v20  ;;  %v5342_v2 = vmul.f32 %v6802_v57, %v5337_v60  ;;  %v5341_v22 = vmul.f32 %v6801_v54, %v5338_v14  ;;  %v6809_v57 = vld [vmem:[%s12173_s2 + $0xa48] sm:$0xff]  ;;  %v5489_v5 = vmul.f32 %v6826_v48, %v5483_v55 }
 0xbd2   : > { %v6777_v20 = vld [vmem:[%s12173_s2 + $0x908] sm:$0xff] }
 0xbd3   : > { %v5546_v7 = vadd.f32 %v5538_v31, %v5448_v42  ;;  %v5350_v25 = vadd.f32 %v5342_v2, %v5252_v51  ;;  %v11602_v19 = vpop.permute.xlu1 %5465  ;;  %v5368_v17 = vpop.permute.xlu0 %5367  ;;  %v5292_v31 = vmul.f32 %v6793_v9, %v5289_v3  ;;  %v5349_v14 = vadd.f32 %v5341_v22, %v5251_v47  ;;  %v6825_v51 = vld [vmem:[%s12173_s2 + $0xac8] sm:$0xff] }
 0xbd4   : > { %v5386_v54 = vsel %vm1054_vm3, %v5368_v17, %v11424_v12  ;;  %v5484_v36 = vsel %vm12409_vm14, %v11602_v19, %v11471_v30  ;;  %v6817_v12 = vld [vmem:[%s12173_s2 + $0xa88] sm:$0xff]  ;;  %v5210_v21 = vmul.f32 %v6777_v20, %v5207_v49 }
 0xbd5   : > { %v5399_v60 = vadd.f32 %v5391_v58, %v5350_v25  ;;  %v5390_v45 = vmul.f32 %v6809_v57, %v5386_v54  ;;  %v5554_v50 = vadd.f32 %v5546_v7, %v5170_v6  ;;  %v6833_v55 = vld [vmem:[%s12173_s2 + $0xb08] sm:$0xff]  ;;  %v5488_v22 = vmul.f32 %v6825_v51, %v5484_v36 }
 0xbd6   : > { %v5300_v3 = vadd.f32 %v5292_v31, %v5210_v21  ;;  %v6769_v7 = vld [vmem:[%s12173_s2 + $0xa08] sm:$0xff] }
 0xbd7   : > { %v5497_v42 = vadd.f32 %v5489_v5, %v5399_v60  ;;  %v5515_v2 = vpop.permute.xlu1 %5514  ;;  %v5417_v0 = vpop.permute.xlu0 %5416  ;;  %v5398_v48 = vadd.f32 %v5390_v45, %v5349_v14 }
 0xbd8   : > { %v5533_v9 = vsel %vm1204_vm8, %v5515_v2, %v11496_v23  ;;  %v5435_v30 = vsel %vm1104_vm7, %v5417_v0, %v11430_v44  ;;  %v5169_v44 = vmul.f32 %v6769_v7, %v11324_v26  ;;  %v6784_v26 = vld [vmem:[%s12173_s2 + $0x940] sm:$0xff] }
 0xbd9   : > { %v5439_v58 = vmul.f32 %v6817_v12, %v5435_v30  ;;  %v5569_v25 = vadd.f32 %v11418_v35, %v5497_v42  ;;  %v5496_v57 = vadd.f32 %v5488_v22, %v5398_v48  ;;  %v5537_v20 = vmul.f32 %v6833_v55, %v5533_v9  ;;  %v6800_v42 = vld [vmem:[%s12173_s2 + $0x9c0] sm:$0xff] }
 0xbda   : > { %v6808_v9 = vld [vmem:[%s12173_s2 + $0xa40] sm:$0xff]  ;;  %v5387_v30 = vsel %vm1054_vm3, %v11515_v18, %v5368_v17 }
 0xbdb   : > { %v5447_v49 = vadd.f32 %v5439_v58, %v5300_v3  ;;  %v11640_v47 = vpop.permute.xlu1 %5197  ;;  %v11642_v54 = vpop.permute.xlu0 %5238  ;;  %v11644_v23 = vadd.f32 %v5569_v25, %v5554_v50  ;;  %v5568_v14 = vadd.f32 %v11418_v35, %v5496_v57  ;;  %v6807_v3 = vld [vmem:[%s12173_s2 + $0x9f8] sm:$0xff]  ;;  %v5485_v57 = vsel %vm12410_vm12, %v11519_v63, %v11602_v19 }
 0xbdc   : > { %v6791_v58 = vld [vmem:[%s12173_s2 + $0x978] sm:$0xff]  ;;  %v5534_v19 = vsel %vm1204_vm8, %v11565_v43, %v5515_v2 }
 0xbdd   : > { %v5545_v6 = vadd.f32 %v5537_v20, %v5447_v49  ;;  %v6776_v20 = vld [vmem:[%s12173_s2 + $0x900] sm:$0xff]  ;;  %v6815_v49 = vld [vmem:[%s12173_s2 + $0xa78] sm:$0xff] }
 0xbdf   : > { %v11647_v5 = vpop.permute.xlu1 %5279  ;;  %v11649_v31 = vpop.permute.xlu0 %5328  ;;  %v5553_v60 = vadd.f32 %v5545_v6, %v5169_v44  ;;  %v6792_v6 = vld [vmem:[%s12173_s2 + $0x980] sm:$0xff]  ;;  %v5389_v44 = vmul.f32 %v6808_v9, %v5387_v30 }
 0xbe0   : > { %v6832_v9 = vld [vmem:[%s12173_s2 + $0xb00] sm:$0xff] }
 0xbe1   : > { %v5576_v51 = vadd.f32 %v5568_v14, %v5553_v60 }
 0xbe3   : > { %v11652_v36 = vpop.permute.xlu1 %5426  ;;  %5595 = vmatprep.subr.mxu0 %v5576_v51  ;;  %v11654_v45 = vpop.permute.xlu0 %5377 }
 0xbe7   : > { %v5241_v12 = vpop.permute.xlu1 %5240  ;;  %v11656_v21 = vpop.permute.xlu0 %5475 }
 0xbe8   : > { %v5249_v50 = vsel %vm912_vm2, %v5241_v12, %v11521_v29  ;;  %v5242_v17 = vsel %vm912_vm2, %v11642_v54, %v5241_v12 }
 0xbe9   : > { %v5250_v7 = vmul.f32 %v6784_v26, %v5249_v50  ;;  %v6816_v26 = vld [vmem:[%s12173_s2 + $0xa80] sm:$0xff]  ;;  %v5436_v50 = vsel %vm1104_vm7, %v11535_v33, %v5417_v0  ;;  %v6831_v0 = vld [vmem:[%s12173_s2 + $0xaf8] sm:$0xff] }
 0xbeb   : > { %v5331_v48 = vpop.permute.xlu1 %5330  ;;  %v11667_v55 = vpop.permute.xlu0 %5199 }
 0xbec   : > { %v5332_v29 = vsel %vm1004_vm1, %v11649_v31, %v5331_v48  ;;  %v5339_v22 = vsel %vm1004_vm1, %v5331_v48, %v11525_v46  ;;  %v5208_v46 = vsel %vm870_vm5, %v11667_v55, %v11517_v11  ;;  %v6824_v11 = vld [vmem:[%s12173_s2 + $0xac0] sm:$0xff] }
 0xbed   : > { %v5340_v25 = vmul.f32 %v6800_v42, %v5339_v22  ;;  %v5347_v60 = vmul.f32 %v6807_v3, %v5332_v29  ;;  %v5257_v42 = vmul.f32 %v6791_v58, %v5242_v17  ;;  %v5209_v3 = vmul.f32 %v6776_v20, %v5208_v46  ;;  %v6768_v20 = vld [vmem:[%s12173_s2 + $0xa00] sm:$0xff] }
 0xbee   : > { %v5487_v58 = vmul.f32 %v6824_v11, %v5485_v57  ;;  %v5438_v17 = vmul.f32 %v6816_v26, %v5436_v50  ;;  %v6811_v57 = vld [vmem:[%s12173_s2 + $0xa58] sm:$0xff] }
 0xbef   : > { %v5348_v14 = vadd.f32 %v5340_v25, %v5250_v7  ;;  %v11710_v51 = vpop.permute.xlu1 %5379  ;;  %v11712_v12 = vpop.permute.xlu0 %5281 }
 0xbf0   : > { %v5388_v2 = vsel %vm1054_vm3, %v11710_v51, %v11515_v18  ;;  %v5290_v48 = vsel %vm954_vm4, %v11712_v12, %v11523_v53  ;;  %v5355_v18 = vadd.f32 %v5347_v60, %v5257_v42  ;;  %v5536_v53 = vmul.f32 %v6832_v9, %v5534_v19 }
 0xbf1   : > { %v5397_v30 = vadd.f32 %v5389_v44, %v5348_v14  ;;  %v5396_v29 = vmul.f32 %v6815_v49, %v5388_v2  ;;  %v5291_v22 = vmul.f32 %v6792_v6, %v5290_v48  ;;  %v6827_v2 = vld [vmem:[%s12173_s2 + $0xad8] sm:$0xff] }
 0xbf3   : > { %v5299_v7 = vadd.f32 %v5291_v22, %v5209_v3  ;;  %v5478_v25 = vpop.permute.xlu1 %5477  ;;  %v11737_v32 = vpop.permute.xlu0 %5428  ;;  %v5495_v46 = vadd.f32 %v5487_v58, %v5397_v30  ;;  %v5404_v49 = vadd.f32 %v5396_v29, %v5355_v18  ;;  %v11778_v29 = vld [vmem:[%s12179_s8 + $0x28] sm:$0xff]  ;;  %v6835_v22 = vld [vmem:[%s12173_s2 + $0xb18] sm:$0xff] }
 0xbf4   : > { %v5486_v41 = vsel %vm12411_vm9, %v5478_v25, %v11519_v63  ;;  %v5168_v63 = vmul.f32 %v6768_v20, %v11312_v10  ;;  %v6819_v10 = vld [vmem:[%s12173_s2 + $0xa98] sm:$0xff] }
 0xbf5   : > { %v5446_v6 = vadd.f32 %v5438_v17, %v5299_v7  ;;  %v5494_v44 = vmul.f32 %v6831_v0, %v5486_v41  ;;  %v5567_v42 = vadd.f32 %v11418_v35, %v5495_v46  ;;  %v6771_v17 = vld [vmem:[%s12173_s2 + $0xa18] sm:$0xff] }
 0xbf7   : > { %v5544_v60 = vadd.f32 %v5536_v53, %v5446_v6  ;;  %v11748_v14 = vadd.f32 %v5494_v44, %v5404_v49  ;;  %v11750_v19 = vpop.permute.xlu1 %5373  ;;  %v11752_v11 = vpop.permute.xlu0 %5471 }
 0xbf8   : > { %v5384_v26 = vsel %vm1054_vm3, %v11509_v61, %v11750_v19  ;;  %v5482_v48 = vsel %vm12412_vm10, %v11507_v37, %v11752_v11 }
 0xbf9   : > { %v5392_v50 = vmul.f32 %v6811_v57, %v5384_v26  ;;  %v5552_v41 = vadd.f32 %v5544_v60, %v5168_v63  ;;  %v5490_v0 = vmul.f32 %v6827_v2, %v5482_v48  ;;  %v6783_v63 = vld [vmem:[%s12173_s2 + $0x938] sm:$0xff]  ;;  %v6814_v26 = vld [vmem:[%s12173_s2 + $0xa70] sm:$0xff] }
 0xbfa   : > { %v6830_v2 = vld [vmem:[%s12173_s2 + $0xaf0] sm:$0xff] }
 0xbfb   : > { %v5400_v9 = vadd.f32 %v5392_v50, %v11505_v52  ;;  %v11771_v61 = vpop.permute.xlu1 %5422  ;;  %v11773_v30 = vpop.permute.xlu0 %5520  ;;  %v5575_v3 = vadd.f32 %v5567_v42, %v5552_v41  ;;  %v6799_v50 = vld [vmem:[%s12173_s2 + $0x9b8] sm:$0xff]  ;;  %v5283_v41 = vsel %vm954_vm4, %v11647_v5, %v11712_v12  ;;  %v6822_v48 = vld [vmem:[%s12173_s2 + $0xab0] sm:$0xff]  ;;  %v5430_v12 = vsel %vm1104_vm7, %v11652_v36, %v11737_v32 }
 0xbfc   : > { %v5433_v37 = vsel %vm1104_vm7, %v11513_v39, %v11771_v61  ;;  %v5531_v52 = vsel %vm1204_vm8, %v11511_v16, %v11773_v30  ;;  %v5171_v16 = vmul.f32 %v6771_v17, %v11282_v56  ;;  %v5381_v56 = vsel %vm1054_vm3, %v11654_v45, %v11710_v51 }
 0xbfd   : > { %v5441_v58 = vmul.f32 %v6819_v10, %v5433_v37  ;;  %5596 = vmatpush1.msra.mxu0 %v5575_v3  ;;  %v5498_v39 = vadd.f32 %v5490_v0, %v5400_v9  ;;  %v5539_v7 = vmul.f32 %v6835_v22, %v5531_v52  ;;  %v5479_v51 = vsel %vm12413_vm11, %v11656_v21, %v5478_v25  ;;  %v6780_v3 = vld [vmem:[%s12173_s2 + $0x920] sm:$0xff] }
 0xbfe   : > { %6843 = vmatmul.mubr.msk.f32.vlgmr.msra.gmra.mrb[24].mxu0 %vm503_vm0, %v11778_v29  ;;  %v11837_v9 = vmul.f32 %v6814_v26, %v5381_v56  ;;  %v6796_v25 = vld [vmem:[%s12173_s2 + $0x9a0] sm:$0xff]  ;;  %v11871_v17 = vmul.f32 %v6830_v2, %v5479_v51  ;;  %v6781_v51 = vld [vmem:[%s12173_s2 + $0x928] sm:$0xff] }
 0xbff   : > { %v5449_v18 = vadd.f32 %v5441_v58, %v11492_v13  ;;  %v5194_v53 = vpop.permute.xlu1 %5193  ;;  %v5235_v20 = vpop.permute.xlu0 %5234  ;;  %5801 = vmatprep.mubr.f32.mxu0 %v12252_v59  ;;  %v5570_v57 = vadd.f32 %v11418_v35, %v5498_v39  ;;  %v5201_v13 = vsel %vm870_vm5, %v11640_v47, %v11667_v55  ;;  %v6788_v52 = vld [vmem:[%s12173_s2 + $0x960] sm:$0xff]  ;;  %v11879_v39 = vmul.f32 %v6822_v48, %v5430_v12  ;;  %v6797_v48 = vld [vmem:[%s12173_s2 + $0x9a8] sm:$0xff] }
 0xc00   : > { %v11835_v10 = vmul.f32 %v6783_v63, %v5201_v13  ;;  %v5204_v22 = vsel %vm870_vm5, %v11438_v15, %v5194_v53  ;;  %v5245_v0 = vsel %vm912_vm2, %v11450_v27, %v5235_v20  ;;  %v6806_v15 = vld [vmem:[%s12173_s2 + $0x9f0] sm:$0xff]  ;;  %v11877_v27 = vsel %vm1104_vm7, %v11737_v32, %v11535_v33  ;;  %v6812_v2 = vld [vmem:[%s12173_s2 + $0xa60] sm:$0xff] }
 0xc01   : > { %v5547_v46 = vadd.f32 %v5539_v7, %v5449_v18  ;;  %v5254_v63 = vmul.f32 %v6788_v52, %v5245_v0 }
 0xc03   : > { %v5276_v49 = vpop.permute.xlu1 %5275  ;;  %v5325_v6 = vpop.permute.xlu0 %5324  ;;  %v5555_v44 = vadd.f32 %v5547_v46, %v5171_v16 }
 0xc04   : > { %v5286_v37 = vsel %vm954_vm4, %v11469_v40, %v5276_v49  ;;  %v6790_v40 = vld [vmem:[%s12173_s2 + $0x970] sm:$0xff]  ;;  %v5335_v18 = vsel %vm1004_vm1, %v11494_v8, %v5325_v6 }
 0xc05   : > { %v5578_v60 = vadd.f32 %v5570_v57, %v5555_v44  ;;  %v5295_v16 = vmul.f32 %v6796_v25, %v5286_v37  ;;  %v6805_v44 = vld [vmem:[%s12173_s2 + $0x9e8] sm:$0xff]  ;;  %v6798_v57 = vld [vmem:[%s12173_s2 + $0x9b0] sm:$0xff] }
 0xc06   : > { %v6813_v37 = vld [vmem:[%s12173_s2 + $0xa68] sm:$0xff] }
 0xc07   : > { %v5237_v42 = vpop.permute.xlu1 %5236  ;;  %5666 = vmatprep.subr.mxu1 %v5578_v60  ;;  %v5196_v55 = vpop.permute.xlu0 %5195  ;;  %v5213_v60 = vmul.f32 %v6780_v3, %v5204_v22 }
 0xc08   : > { %5667 = vmatpush1.msra.mxu1 %v11644_v23  ;;  %v11850_v23 = vmul.f32 %v6799_v50, %v5283_v41  ;;  %v5243_v58 = vsel %vm912_vm2, %v5237_v42, %v11642_v54  ;;  %v6804_v54 = vld [vmem:[%s12173_s2 + $0x9e0] sm:$0xff]  ;;  %v6782_v50 = vld [vmem:[%s12173_s2 + $0x930] sm:$0xff]  ;;  %v5203_v41 = vsel %vm870_vm5, %v5194_v53, %v5196_v55 }
 0xc09   : > { %6844 = vmatmul.mubr.msk.f32.vlgmr.msra.gmra.mrb[24].mxu1 %vm503_vm0, %v11778_v29  ;;  %v5256_v13 = vmul.f32 %v6790_v40, %v5243_v58  ;;  %v5344_v56 = vmul.f32 %v6804_v54, %v5335_v18  ;;  %v6820_v53 = vld [vmem:[%s12173_s2 + $0xaa0] sm:$0xff]  ;;  %v5303_v25 = vadd.f32 %v5295_v16, %v5213_v60  ;;  %v5214_v18 = vmul.f32 %v6781_v51, %v5203_v41 }
 0xc0a   : > { %5872 = vmatprep.mubr.f32.mxu1 %v12252_v59  ;;  %v6836_v16 = vld [vmem:[%s12173_s2 + $0xb20] sm:$0xff] }
 0xc0b   : > { %v5327_v7 = vpop.permute.xlu1 %5326  ;;  %v5278_v46 = vpop.permute.xlu0 %5277 }
 0xc0c   : > { %v5333_v32 = vsel %vm1004_vm1, %v5327_v7, %v11649_v31  ;;  %v5334_v33 = vsel %vm1004_vm1, %v5325_v6, %v5327_v7  ;;  %v5284_v8 = vsel %vm954_vm4, %v5278_v46, %v11647_v5  ;;  %v6789_v31 = vld [vmem:[%s12173_s2 + $0x968] sm:$0xff]  ;;  %v5244_v6 = vsel %vm912_vm2, %v5235_v20, %v5237_v42  ;;  %vm12414_vm1 = vmmov %vm12405_vm6 }
 0xc0d   : > { %v5346_v26 = vmul.f32 %v6806_v15, %v5333_v32  ;;  %v5202_v5 = vsel %vm870_vm5, %v5196_v55, %v11640_v47  ;;  %v5345_v20 = vmul.f32 %v6805_v44, %v5334_v33  ;;  %v5285_v47 = vsel %vm954_vm4, %v5276_v49, %v5278_v46  ;;  %v6821_v15 = vld [vmem:[%s12173_s2 + $0xaa8] sm:$0xff]  ;;  %vm12415_vm2 = vmmov %vm12414_vm1 }
 0xc0e   : > { %v5297_v12 = vmul.f32 %v6798_v57, %v5284_v8  ;;  %v5255_v0 = vmul.f32 %v6789_v31, %v5244_v6  ;;  %v5215_v40 = vmul.f32 %v6782_v50, %v5202_v5  ;;  %v5296_v7 = vmul.f32 %v6797_v48, %v5285_v47  ;;  %v6839_v48 = vld [vmem:[%s12173_s2 + $0xb38] sm:$0xff] }
 0xc0f   : > { %v5354_v42 = vadd.f32 %v5346_v26, %v5256_v13  ;;  %v5376_v3 = vpop.permute.xlu1 %5375  ;;  %v5425_v55 = vpop.permute.xlu0 %5424  ;;  %v5306_v5 = vadd.f32 %v11850_v23, %v11835_v10  ;;  %v6772_v10 = vld [vmem:[%s12173_s2 + $0xa20] sm:$0xff] }
 0xc10   : > { %v5382_v22 = vsel %vm1054_vm3, %v5376_v3, %v11654_v45  ;;  %v5383_v49 = vsel %vm1054_vm3, %v11750_v19, %v5376_v3  ;;  %v5432_v52 = vsel %vm1104_vm7, %v11771_v61, %v5425_v55  ;;  %v5431_v54 = vsel %vm1104_vm7, %v5425_v55, %v11652_v36  ;;  %v6828_v19 = vld [vmem:[%s12173_s2 + $0xae0] sm:$0xff]  ;;  %v6829_v61 = vld [vmem:[%s12173_s2 + $0xae8] sm:$0xff]  ;;  %v6823_v36 = vld [vmem:[%s12173_s2 + $0xab8] sm:$0xff] }
 0xc11   : > { %v5393_v58 = vmul.f32 %v6812_v2, %v5383_v49  ;;  %v5352_v45 = vadd.f32 %v5344_v56, %v5254_v63  ;;  %v5442_v46 = vmul.f32 %v6820_v53, %v5432_v52  ;;  %v5353_v44 = vadd.f32 %v5345_v20, %v5255_v0  ;;  %v6773_v55 = vld [vmem:[%s12173_s2 + $0xa28] sm:$0xff]  ;;  %v6775_v52 = vld [vmem:[%s12173_s2 + $0xa38] sm:$0xff] }
 0xc12   : > { %v5403_v32 = vadd.f32 %v11837_v9, %v5354_v42  ;;  %v5305_v33 = vadd.f32 %v5297_v12, %v5215_v40  ;;  %v5394_v57 = vmul.f32 %v6813_v37, %v5382_v22  ;;  %v5443_v63 = vmul.f32 %v6821_v15, %v5431_v54 }
 0xc13   : > { %v5474_v8 = vpop.permute.xlu1 %5473  ;;  %v5523_v60 = vpop.permute.xlu0 %5522  ;;  %v5401_v31 = vadd.f32 %v5393_v58, %v5352_v45  ;;  %v5445_v41 = vmul.f32 %v6823_v36, %v11877_v27  ;;  %v5304_v2 = vadd.f32 %v5296_v7, %v5214_v18  ;;  %v5450_v51 = vadd.f32 %v5442_v46, %v5303_v25 }
 0xc14   : > { %v5480_v13 = vsel %vm12414_vm1, %v5474_v8, %v11656_v21  ;;  %v5481_v26 = vsel %vm12415_vm2, %v11752_v11, %v5474_v8  ;;  %v5530_v56 = vsel %vm1204_vm8, %v11773_v30, %v5523_v60  ;;  %v6837_v21 = vld [vmem:[%s12173_s2 + $0xb28] sm:$0xff]  ;;  %v6838_v11 = vld [vmem:[%s12173_s2 + $0xb30] sm:$0xff]  ;;  %v5501_v30 = vadd.f32 %v11871_v17, %v5403_v32 }
 0xc15   : > { %v5491_v6 = vmul.f32 %v6828_v19, %v5481_v26  ;;  %v5492_v9 = vmul.f32 %v6829_v61, %v5480_v13  ;;  %v5540_v50 = vmul.f32 %v6836_v16, %v5530_v56  ;;  %v5402_v20 = vadd.f32 %v5394_v57, %v5353_v44  ;;  %v6774_v17 = vld [vmem:[%s12173_s2 + $0xa30] sm:$0xff] }
 0xc16   : > { %v5452_v27 = vadd.f32 %v11879_v39, %v5305_v33  ;;  %v5451_v25 = vadd.f32 %v5443_v63, %v5304_v2  ;;  %v5453_v0 = vadd.f32 %v5445_v41, %v5306_v5  ;;  %v5172_v40 = vmul.f32 %v6772_v10, %v11391_v38 }
 0xc17   : > { %v5499_v42 = vadd.f32 %v5491_v6, %v5401_v31  ;;  %v5525_v23 = vpop.permute.xlu1 %5524  ;;  %v5527_v47 = vpop.permute.xlu0 %5526  ;;  %v5548_v12 = vadd.f32 %v5540_v50, %v5450_v51  ;;  %v5500_v37 = vadd.f32 %v5492_v9, %v5402_v20  ;;  %v5174_v24 = vmul.f32 %v6774_v17, %v11353_v62  ;;  %v12416_v31 = vld [vmem:[#allocation20_spill] sm:$0xff]  ;;  %v12417_v9 = vld [vmem:[#allocation22_spill] sm:$0xff]  ;;  %v12420_v17 = vld [vmem:[#allocation21_spill] sm:$0xff] }
 0xc18   : > { %v5529_v3 = vsel %vm1204_vm8, %v5523_v60, %v5525_v23  ;;  %v5528_v53 = vsel %vm1204_vm8, %v5525_v23, %v5527_v47  ;;  %v5535_v39 = vsel %vm1204_vm8, %v5527_v47, %v11565_v43  ;;  %v5173_v54 = vmul.f32 %v6773_v55, %v11412_v34  ;;  %v12031_v23 = vld [vmem:[%s12183_s12] sm:$0xff] }
 0xc19   : > { %v5541_v22 = vmul.f32 %v6837_v21, %v5529_v3  ;;  %v5542_v49 = vmul.f32 %v6838_v11, %v5528_v53  ;;  %v5543_v58 = vmul.f32 %v6839_v48, %v5535_v39  ;;  %v5571_v45 = vadd.f32 %v11418_v35, %v5499_v42  ;;  %v12418_v11 = vld [vmem:[#allocation5_spill] sm:$0xff]  ;;  %v12419_v42 = vld [vmem:[#allocation4_spill] sm:$0xff]  ;;  %v5934_v3 = vld [vmem:[%s12183_s12 + $0x8] sm:$0xff] }
 0xc1a   : > { %v5556_v18 = vadd.f32 %v5548_v12, %v5172_v40  ;;  %v5175_v46 = vmul.f32 %v6775_v52, %v11370_v28  ;;  %v5572_v16 = vadd.f32 %v11418_v35, %v5500_v37  ;;  %v5573_v36 = vadd.f32 %v11418_v35, %v5501_v30  ;;  %v12421_v39 = vld [vmem:[#allocation23_spill] sm:$0xff]  ;;  %v5935_v37 = vld [vmem:[%s12183_s12 + $0x10] sm:$0xff] }
 0xc1b   : > { %v5549_v15 = vadd.f32 %v5541_v22, %v5451_v25  ;;  %v5550_v43 = vadd.f32 %v5542_v49, %v5452_v27  ;;  %v5551_v7 = vadd.f32 %v5543_v58, %v5453_v0  ;;  %v5574_v44 = vadd.f32 %v11418_v35, %v11748_v14  ;;  %v12422_v49 = vld [vmem:[#allocation2_spill] sm:$0xff]  ;;  %v12423_v0 = vld [vmem:[#allocation3_spill] sm:$0xff]  ;;  %v5936_v58 = vld [vmem:[%s12183_s12 + $0x18] sm:$0xff] }
 0xc1c   : > { %v5579_v34 = vadd.f32 %v5571_v45, %v5556_v18 }
 0xc1d   : > { %v5558_v19 = vadd.f32 %v5550_v43, %v5174_v24  ;;  %v5557_v61 = vadd.f32 %v5549_v15, %v5173_v54  ;;  %v5559_v38 = vadd.f32 %v5551_v7, %v5175_v46 }
 0xc1f   : > { %v5580_v62 = vadd.f32 %v5572_v16, %v5557_v61  ;;  %v5581_v32 = vadd.f32 %v5573_v36, %v5558_v19  ;;  %v5582_v33 = vadd.f32 %v5574_v44, %v5559_v38 }
 0xc21   : > { %5737 = vmatprep.subr.mxu0 %v5580_v62  ;;  %5808 = vmatprep.subr.mxu1 %v5582_v33 }
 0xc22   : > { %5738 = vmatpush1.msra.mxu0 %v5579_v34  ;;  %5809 = vmatpush1.msra.mxu1 %v5581_v32 }
 0xc23   : > { %6845 = vmatmul.mubr.msk.f32.vlgmr.msra.gmra.mrb[26].mxu0 %vm503_vm0, %v11778_v29  ;;  %6846 = vmatmul.mubr.msk.f32.vlgmr.msra.gmra.mrb[26].mxu1 %vm503_vm0, %v11778_v29 }
 0xc24   : > { %6037 = vmatprep.mubr.f32.mxu0 %v12252_v59  ;;  %6126 = vmatprep.mubr.f32.mxu1 %v12252_v59 }
 0xc28   : > { %v5590_v28 = vpop.permute.xlu1 %5589  ;;  %v12016_v8 = vpop.permute.xlu0 %5883 }
 0xc2c   : > { %v12019_v13 = vpop.permute.xlu1 %5898 }
 0xcd1   : > { %v5661_v35 = vpop.f32.mrb[24].mxu0 }
 0xcd2   : > { %v5662_v14 = vadd.f32 %v5661_v35, %v5590_v28  ;;  %v5663_v57 = vpop.f32.mrb[25].mxu0 }
 0xcd3   : > { %v5664_v60 = vadd.f32 %v5663_v57, %v5590_v28  ;;  %v12425_v57 = vld [vmem:[#allocation19_spill] sm:$0xff] }
 0xcd4   : > { %v5886_v63 = vmul.f32 %v12016_v8, %v5662_v14 }
 0xcd5   : > { %v5887_v26 = vmul.f32 %v12016_v8, %v5664_v60 }
 0xcd6   : > { %v5901_v56 = vadd.f32 %v12019_v13, %v5886_v63 }
 0xcd7   : > { %v5902_v29 = vadd.f32 %v12019_v13, %v5887_v26 }
 0xcd8   : > { %v5909_v6 = vadd.f32 %v5901_v56, %v12416_v31  ;;  %v12427_v31 = vld [vmem:[#allocation7_spill] sm:$0xff] }
 0xcd9   : > { %v5910_v50 = vadd.f32 %v5902_v29, %v12417_v9  ;;  %v12426_v29 = vld [vmem:[#allocation11_spill] sm:$0xff]  ;;  %v12428_v9 = vld [vmem:[#allocation8_spill] sm:$0xff] }
 0xcda   : > { %v5917_v5 = vmax.f32 %v5909_v6, 0.0 }
 0xcdb   : > { %v5918_v41 = vmax.f32 %v5910_v50, 0.0 }
 0xcdc   : > { %v5732_v2 = vpop.f32.mrb[24].mxu1  ;;  %v5925_v10 = vadd.f32 %v5917_v5, %v12419_v42 }
 0xcdd   : > { %v5733_v51 = vadd.f32 %v5732_v2, %v5590_v28  ;;  %v5734_v21 = vpop.f32.mrb[25].mxu1  ;;  %v5926_v30 = vadd.f32 %v5918_v41, %v12418_v11 }
 0xcde   : > { %v5735_v20 = vadd.f32 %v5734_v21, %v5590_v28 }
 0xcdf   : > { %v5888_v27 = vmul.f32 %v12016_v8, %v5733_v51  ;;  %5973 = vmatprep.subr.mxu0 %v5926_v30 }
 0xce0   : > { %v5889_v48 = vmul.f32 %v12016_v8, %v5735_v20  ;;  %5974 = vmatpush1.msra.mxu0 %v5925_v10 }
 0xce1   : > { %v5903_v47 = vadd.f32 %v12019_v13, %v5888_v27  ;;  %6849 = vmatmul.mubr.msk.f32.vlgmr.msra.gmra.mrb[28].mxu0 %vm503_vm0, %v12031_v23 }
 0xce2   : > { %v5904_v12 = vadd.f32 %v12019_v13, %v5889_v48  ;;  %6043 = vmatprep.mubr.f32.mxu0 %v12252_v59 }
 0xce3   : > { %v5911_v53 = vadd.f32 %v5903_v47, %v12420_v17 }
 0xce4   : > { %v5912_v55 = vadd.f32 %v5904_v12, %v12421_v39 }
 0xce5   : > { %v5919_v25 = vmax.f32 %v5911_v53, 0.0  ;;  %6850 = vmatmul.mubr.msk.f32.gmra.mrb[30].mxu0 %vm503_vm0, %v5934_v3 }
 0xce6   : > { %6049 = vmatprep.mubr.f32.mxu0 %v12252_v59  ;;  %v5920_v22 = vmax.f32 %v5912_v55, 0.0 }
 0xce7   : > { %v5927_v40 = vadd.f32 %v5919_v25, %v12423_v0 }
 0xce8   : > { %v5928_v52 = vadd.f32 %v5920_v22, %v12422_v49 }
 0xce9   : > { %6851 = vmatmul.mubr.msk.f32.gmra.mrb[32].mxu0 %vm503_vm0, %v5935_v37 }
 0xcea   : > { %6062 = vmatprep.subr.mxu1 %v5928_v52  ;;  %6055 = vmatprep.mubr.f32.mxu0 %v12252_v59 }
 0xceb   : > { %6063 = vmatpush1.msra.mxu1 %v5927_v40 }
 0xcec   : > { %6853 = vmatmul.mubr.msk.f32.vlgmr.msra.gmra.mrb[28].mxu1 %vm503_vm0, %v12031_v23 }
 0xced   : > { %6852 = vmatmul.mubr.msk.f32.gmra.mrb[34].mxu0 %vm503_vm0, %v5936_v58  ;;  %6132 = vmatprep.mubr.f32.mxu1 %v12252_v59 }
 0xcee   : > { %6215 = vmatprep.mubr.f32.mxu0 %v12252_v59 }
 0xcf0   : > { %6854 = vmatmul.mubr.msk.f32.gmra.mrb[30].mxu1 %vm503_vm0, %v5934_v3 }
 0xcf1   : > { %6138 = vmatprep.mubr.f32.mxu1 %v12252_v59 }
 0xcf4   : > { %6855 = vmatmul.mubr.msk.f32.gmra.mrb[32].mxu1 %vm503_vm0, %v5935_v37 }
 0xcf5   : > { %6144 = vmatprep.mubr.f32.mxu1 %v12252_v59 }
 0xcf6   : > { %v5803_v15 = vpop.f32.mrb[26].mxu0  ;;  %v5874_v43 = vpop.f32.mrb[26].mxu1 }
 0xcf7   : > { %v5804_v24 = vadd.f32 %v5803_v15, %v5590_v28  ;;  %v5805_v54 = vpop.f32.mrb[27].mxu0  ;;  %v5875_v45 = vadd.f32 %v5874_v43, %v5590_v28  ;;  %v5876_v7 = vpop.f32.mrb[27].mxu1 }
 0xcf8   : > { %v5806_v18 = vadd.f32 %v5805_v54, %v5590_v28  ;;  %6856 = vmatmul.mubr.msk.f32.gmra.mrb[34].mxu1 %vm503_vm0, %v5936_v58  ;;  %v5877_v19 = vadd.f32 %v5876_v7, %v5590_v28  ;;  %v12424_v28 = vld [vmem:[#allocation18_spill] sm:$0xff] }
 0xcf9   : > { %v5890_v46 = vmul.f32 %v12016_v8, %v5804_v24  ;;  %6304 = vmatprep.mubr.f32.mxu1 %v12252_v59  ;;  %v5892_v61 = vmul.f32 %v12016_v8, %v5875_v45 }
 0xcfa   : > { %v5891_v16 = vmul.f32 %v12016_v8, %v5806_v18  ;;  %v5893_v38 = vmul.f32 %v12016_v8, %v5877_v19 }
 0xcfb   : > { %v5905_v36 = vadd.f32 %v12019_v13, %v5890_v46  ;;  %v5907_v44 = vadd.f32 %v12019_v13, %v5892_v61 }
 0xcfc   : > { %v5906_v62 = vadd.f32 %v12019_v13, %v5891_v16  ;;  %v5908_v33 = vadd.f32 %v12019_v13, %v5893_v38 }
 0xcfd   : > { %v5913_v32 = vadd.f32 %v5905_v36, %v10605_v4  ;;  %v5915_v34 = vadd.f32 %v5907_v44, %v10598_v1  ;;  %v12429_v4 = vld [vmem:[#allocation6_spill] sm:$0xff]  ;;  %v5944_v1 = vpop.permute.xlu0 %5943 }
 0xcfe   : > { %v5914_v35 = vadd.f32 %v5906_v62, %v12424_v28  ;;  %v5916_v60 = vadd.f32 %v5908_v33, %v12425_v57 }
 0xcff   : > { %v5921_v14 = vmax.f32 %v5913_v32, 0.0  ;;  %v5923_v63 = vmax.f32 %v5915_v34, 0.0 }
 0xd00   : > { %v5922_v26 = vmax.f32 %v5914_v35, 0.0  ;;  %v5924_v56 = vmax.f32 %v5916_v60, 0.0 }
 0xd01   : > { %v5929_v50 = vadd.f32 %v5921_v14, %v12428_v9  ;;  %v5931_v5 = vadd.f32 %v5923_v63, %v12429_v4  ;;  %v12113_v42 = vpop.permute.xlu0 %5953 }
 0xd02   : > { %v5930_v8 = vadd.f32 %v5922_v26, %v12426_v29  ;;  %v5932_v6 = vadd.f32 %v5924_v56, %v12427_v31 }
 0xd04   : > { %6151 = vmatprep.subr.mxu0 %v5930_v8  ;;  %6240 = vmatprep.subr.mxu1 %v5932_v6 }
 0xd05   : > { %6152 = vmatpush1.msra.mxu0 %v5929_v50  ;;  %6241 = vmatpush1.msra.mxu1 %v5931_v5 }
 0xd06   : > { %6857 = vmatmul.mubr.msk.f32.vlgmr.msra.gmra.mrb[36].mxu0 %vm503_vm0, %v12031_v23  ;;  %6861 = vmatmul.mubr.msk.f32.vlgmr.msra.gmra.mrb[36].mxu1 %vm503_vm0, %v12031_v23 }
 0xd07   : > { %6221 = vmatprep.mubr.f32.mxu0 %v12252_v59  ;;  %6310 = vmatprep.mubr.f32.mxu1 %v12252_v59 }
 0xd0a   : > { %6858 = vmatmul.mubr.msk.f32.gmra.mrb[38].mxu0 %vm503_vm0, %v5934_v3  ;;  %6862 = vmatmul.mubr.msk.f32.gmra.mrb[38].mxu1 %vm503_vm0, %v5934_v3 }
 0xd0b   : > { %6227 = vmatprep.mubr.f32.mxu0 %v12252_v59  ;;  %6316 = vmatprep.mubr.f32.mxu1 %v12252_v59 }
 0xd0e   : > { %6859 = vmatmul.mubr.msk.f32.gmra.mrb[40].mxu0 %vm503_vm0, %v5935_v37  ;;  %6863 = vmatmul.mubr.msk.f32.gmra.mrb[40].mxu1 %vm503_vm0, %v5935_v37 }
 0xd0f   : > { %6233 = vmatprep.mubr.f32.mxu0 %v12252_v59  ;;  %6322 = vmatprep.mubr.f32.mxu1 %v12252_v59  ;;  %v12107_v59 = vpop.permute.xlu1 %5948 }
 0xd12   : > { %6860 = vmatmul.mubr.msk.f32.gmra.mrb[42].mxu0 %vm503_vm0, %v5936_v58  ;;  %6864 = vmatmul.mubr.msk.f32.gmra.mrb[42].mxu1 %vm503_vm0, %v5936_v58 }
 0xd13   : > { %v12118_v47 = vpop.permute.xlu1 %5958 }
 0xdb4   : > { %v6039_v13 = vpop.f32.mrb[28].mxu0 }
 0xdb5   : > { %v6040_v41 = vadd.f32 %v6039_v13, %v5944_v1  ;;  %v6041_v2 = vpop.f32.mrb[29].mxu0 }
 0xdb6   : > { %v6042_v51 = vadd.f32 %v6041_v2, %v5944_v1 }
 0xdb7   : > { %6329 = vst [vmem:[%s12104_s0] sm:$0xff] %v6040_v41 }
 0xdb8   : > { %6330 = vst [vmem:[%s12104_s0 + $0x8] sm:$0xff] %v6042_v51  ;;  %v6045_v21 = vpop.f32.mrb[30].mxu0 }
 0xdb9   : > { %v6046_v11 = vadd.f32 %v6045_v21, %v12107_v59  ;;  %v6047_v30 = vpop.f32.mrb[31].mxu0 }
 0xdba   : > { %v6048_v20 = vadd.f32 %v6047_v30, %v12107_v59 }
 0xdbb   : > { %6337 = vst [vmem:[%s12104_s0 + $0x40] sm:$0xff] %v6046_v11 }
 0xdbc   : > { %6338 = vst [vmem:[%s12104_s0 + $0x48] sm:$0xff] %v6048_v20  ;;  %v6051_v10 = vpop.f32.mrb[32].mxu0 }
 0xdbd   : > { %v6052_v23 = vadd.f32 %v6051_v10, %v12113_v42  ;;  %v6053_v27 = vpop.f32.mrb[33].mxu0 }
 0xdbe   : > { %v6054_v48 = vadd.f32 %v6053_v27, %v12113_v42 }
 0xdbf   : > { %6345 = vst [vmem:[%s12104_s0 + $0x80] sm:$0xff] %v6052_v23  ;;  %v6128_v12 = vpop.f32.mrb[28].mxu1 }
 0xdc0   : > { %6346 = vst [vmem:[%s12104_s0 + $0x88] sm:$0xff] %v6054_v48  ;;  %v6129_v3 = vadd.f32 %v6128_v12, %v5944_v1  ;;  %v6057_v17 = vpop.f32.mrb[34].mxu0  ;;  %v6130_v53 = vpop.f32.mrb[29].mxu1 }
 0xdc1   : > { %v6058_v39 = vadd.f32 %v6057_v17, %v12118_v47  ;;  %v6131_v55 = vadd.f32 %v6130_v53, %v5944_v1  ;;  %v6059_v25 = vpop.f32.mrb[35].mxu0 }
 0xdc2   : > { %6331 = vst [vmem:[%s12104_s0 + $0x10] sm:$0xff] %v6129_v3  ;;  %v6060_v37 = vadd.f32 %v6059_v25, %v12118_v47 }
 0xdc3   : > { %6353 = vst [vmem:[%s12104_s0 + $0xc0] sm:$0xff] %v6058_v39  ;;  %6332 = vst [vmem:[%s12104_s0 + $0x18] sm:$0xff] %v6131_v55  ;;  %v6134_v22 = vpop.f32.mrb[30].mxu1 }
 0xdc4   : > { %6354 = vst [vmem:[%s12104_s0 + $0xc8] sm:$0xff] %v6060_v37  ;;  %v6135_v49 = vadd.f32 %v6134_v22, %v12107_v59  ;;  %v6136_v52 = vpop.f32.mrb[31].mxu1 }
 0xdc5   : > { %v6137_v0 = vadd.f32 %v6136_v52, %v12107_v59 }
 0xdc6   : > { %6339 = vst [vmem:[%s12104_s0 + $0x50] sm:$0xff] %v6135_v49 }
 0xdc7   : > { %6340 = vst [vmem:[%s12104_s0 + $0x58] sm:$0xff] %v6137_v0  ;;  %v6140_v40 = vpop.f32.mrb[32].mxu1 }
 0xdc8   : > { %v6141_v58 = vadd.f32 %v6140_v40, %v12113_v42  ;;  %v6142_v15 = vpop.f32.mrb[33].mxu1 }
 0xdc9   : > { %v6143_v24 = vadd.f32 %v6142_v15, %v12113_v42 }
 0xdca   : > { %6347 = vst [vmem:[%s12104_s0 + $0x90] sm:$0xff] %v6141_v58 }
 0xdcb   : > { %6348 = vst [vmem:[%s12104_s0 + $0x98] sm:$0xff] %v6143_v24  ;;  %v6146_v43 = vpop.f32.mrb[34].mxu1 }
 0xdcc   : > { %v6147_v54 = vadd.f32 %v6146_v43, %v12118_v47  ;;  %v6148_v45 = vpop.f32.mrb[35].mxu1 }
 0xdcd   : > { %v6149_v18 = vadd.f32 %v6148_v45, %v12118_v47 }
 0xdce   : > { %6355 = vst [vmem:[%s12104_s0 + $0xd0] sm:$0xff] %v6147_v54 }
 0xdcf   : > { %6356 = vst [vmem:[%s12104_s0 + $0xd8] sm:$0xff] %v6149_v18 }
 0xdd9   : > { %v6217_v7 = vpop.f32.mrb[36].mxu0  ;;  %v6306_v19 = vpop.f32.mrb[36].mxu1 }
 0xdda   : > { %v6218_v46 = vadd.f32 %v6217_v7, %v5944_v1  ;;  %v6219_v61 = vpop.f32.mrb[37].mxu0  ;;  %v6307_v16 = vadd.f32 %v6306_v19, %v5944_v1  ;;  %v6308_v38 = vpop.f32.mrb[37].mxu1 }
 0xddb   : > { %v6220_v36 = vadd.f32 %v6219_v61, %v5944_v1  ;;  %v6309_v44 = vadd.f32 %v6308_v38, %v5944_v1 }
 0xddc   : > { %6333 = vst [vmem:[%s12104_s0 + $0x20] sm:$0xff] %v6218_v46  ;;  %6335 = vst [vmem:[%s12104_s0 + $0x30] sm:$0xff] %v6307_v16 }
 0xddd   : > { %6334 = vst [vmem:[%s12104_s0 + $0x28] sm:$0xff] %v6220_v36  ;;  %v6223_v62 = vpop.f32.mrb[38].mxu0  ;;  %6336 = vst [vmem:[%s12104_s0 + $0x38] sm:$0xff] %v6309_v44  ;;  %v6312_v33 = vpop.f32.mrb[38].mxu1 }
 0xdde   : > { %v6224_v32 = vadd.f32 %v6223_v62, %v12107_v59  ;;  %v6225_v34 = vpop.f32.mrb[39].mxu0  ;;  %v6313_v28 = vadd.f32 %v6312_v33, %v12107_v59  ;;  %v6314_v14 = vpop.f32.mrb[39].mxu1 }
 0xddf   : > { %v6226_v35 = vadd.f32 %v6225_v34, %v12107_v59  ;;  %v6315_v57 = vadd.f32 %v6314_v14, %v12107_v59 }
 0xde0   : > { %6341 = vst [vmem:[%s12104_s0 + $0x60] sm:$0xff] %v6224_v32  ;;  %6343 = vst [vmem:[%s12104_s0 + $0x70] sm:$0xff] %v6313_v28 }
 0xde1   : > { %6342 = vst [vmem:[%s12104_s0 + $0x68] sm:$0xff] %v6226_v35  ;;  %v6229_v60 = vpop.f32.mrb[40].mxu0  ;;  %6344 = vst [vmem:[%s12104_s0 + $0x78] sm:$0xff] %v6315_v57  ;;  %v6318_v26 = vpop.f32.mrb[40].mxu1 }
 0xde2   : > { %v6230_v63 = vadd.f32 %v6229_v60, %v12113_v42  ;;  %v6231_v56 = vpop.f32.mrb[41].mxu0  ;;  %v6319_v29 = vadd.f32 %v6318_v26, %v12113_v42  ;;  %v6320_v31 = vpop.f32.mrb[41].mxu1 }
 0xde3   : > { %v6232_v8 = vadd.f32 %v6231_v56, %v12113_v42  ;;  %v6321_v6 = vadd.f32 %v6320_v31, %v12113_v42 }
 0xde4   : > { %6349 = vst [vmem:[%s12104_s0 + $0xa0] sm:$0xff] %v6230_v63  ;;  %6351 = vst [vmem:[%s12104_s0 + $0xb0] sm:$0xff] %v6319_v29 }
 0xde5   : > { %6350 = vst [vmem:[%s12104_s0 + $0xa8] sm:$0xff] %v6232_v8  ;;  %v6235_v9 = vpop.f32.mrb[42].mxu0  ;;  %6352 = vst [vmem:[%s12104_s0 + $0xb8] sm:$0xff] %v6321_v6  ;;  %v6324_v4 = vpop.f32.mrb[42].mxu1 }
 0xde6   : > { %v6236_v50 = vadd.f32 %v6235_v9, %v12118_v47  ;;  %v6237_v5 = vpop.f32.mrb[43].mxu0  ;;  %v6325_v1 = vadd.f32 %v6324_v4, %v12118_v47  ;;  %v6326_v41 = vpop.f32.mrb[43].mxu1 }
 0xde7   : > { %v6238_v13 = vadd.f32 %v6237_v5, %v12118_v47  ;;  %v6327_v2 = vadd.f32 %v6326_v41, %v12118_v47 }
 0xde8   : > { %6357 = vst [vmem:[%s12104_s0 + $0xe0] sm:$0xff] %v6236_v50  ;;  %6359 = vst [vmem:[%s12104_s0 + $0xf0] sm:$0xff] %v6325_v1 }
 0xde9   : > { %6358 = vst [vmem:[%s12104_s0 + $0xe8] sm:$0xff] %v6238_v13  ;;  %6360 = vst [vmem:[%s12104_s0 + $0xf8] sm:$0xff] %v6327_v2 }
 0xdea PF: > { %s24_s29 = sadd.s32 1, %s6968_s29  }
 0xdeb   : > { %p21_p4 = scmp.ge.s32.totalorder %s24_s29, 4  }
 0xded   :  { %23 = sbr.rel (!%p21_p4) target bundleno = 3 (0x3), region = 183 }

</bundles_post_ra>
